<compile_context>
chip_gen: v7x
topology: tpu7x:2x2x1
jax: 0.10.0
libtpu: 0.0.40
codegen_flags: <defaults>
</compile_context>

<pallas_src>
import jax
import jax.numpy as jnp
from jax.experimental import pallas as pl
from jax.experimental.pallas import tpu as pltpu

LANES = 128
VMEM_LIMIT = 32 * 1024 * 1024


def _compiler_params():
    return pltpu.CompilerParams(
        dimension_semantics=("parallel",),
        vmem_limit_bytes=VMEM_LIMIT)


# ----------------------------------------------------------------------------
# conv1 (Cin=1): per-parity im2col matmul + bias + ReLU + 2x2 max-pool.
# x_ref: (1, 4, bm*m, 16) bf16  -- 4 pool parities x (tap-major im2col, 9->16)
# w_ref: (16, Cout) bf16 ; b_ref: (1, Cout) f32 ; o_ref: (1, bm*m, Cout) bf16
# ----------------------------------------------------------------------------
def _conv1_kernel(x_ref, w_ref, b_ref, o_ref):
    pooled = None
    for p in range(4):                               # pool parity (ph, pw)
        acc = jnp.dot(x_ref[0, p], w_ref[...],
                      preferred_element_type=jnp.float32)
        pooled = acc if pooled is None else jnp.maximum(pooled, acc)
    # pool(relu(x+b)) == relu(pool(x)+b); epilogue stays f32 on the VPU.
    y = jnp.maximum(pooled + b_ref[...], 0.0)
    o_ref[0] = y.astype(o_ref.dtype)


def conv1_relu_pool(x_nhwc, w16, bias, bm):
    """x (B,H,W,1) f32, w16 (16,Cout) bf16, bias (1,Cout) f32 -> (B,H//2,W//2,Cout) bf16."""
    B, H, W, _ = x_nhwc.shape
    ho, wo = H // 2, W // 2
    m = ho * wo
    nb = B // bm
    cout = w16.shape[-1]
    xp = jnp.pad(x_nhwc[..., 0], ((0, 0), (1, 1), (1, 1)))       # (B, H+2, W+2)
    cols = []
    for ph in (0, 1):
        for pw in (0, 1):
            taps = [xp[:, ph + dh: ph + dh + 2 * ho - 1: 2,
                        pw + dw: pw + dw + 2 * wo - 1: 2]
                    for dh in range(3) for dw in range(3)]
            cols.append(jnp.stack(taps, axis=-1))                # (B, ho, wo, 9)
    imc = jnp.stack(cols, axis=1)                                # (B, 4, ho, wo, 9)
    imc = jnp.pad(imc, ((0, 0), (0, 0), (0, 0), (0, 0), (0, 16 - 9)))
    imc = (imc.reshape(nb, bm, 4, m, 16).transpose(0, 2, 1, 3, 4)
              .reshape(nb, 4, bm * m, 16).astype(jnp.bfloat16))

    out = pl.pallas_call(
        _conv1_kernel,
        out_shape=jax.ShapeDtypeStruct((nb, bm * m, cout), jnp.bfloat16),
        grid=(nb,),
        in_specs=[
            pl.BlockSpec((1, 4, bm * m, 16), lambda b: (b, 0, 0, 0)),
            pl.BlockSpec((16, cout), lambda b: (0, 0)),
            pl.BlockSpec((1, cout), lambda b: (0, 0)),
        ],
        out_specs=pl.BlockSpec((1, bm * m, cout), lambda b: (b, 0, 0)),
        compiler_params=_compiler_params(),
    )(imc, w16, bias)
    return out.reshape(B, ho, wo, cout)


# ----------------------------------------------------------------------------
# Fused conv3x3(same) + bias + ReLU + maxpool2x2 kernel (batch tile / grid step).
# x_ref: (1, 16, bm*m, Cin) bf16 -- 16 (row,col)-phase slabs of the padded input;
#        slab (r, c)[img, i, j] = padded[img, r + 2i, c + 2j, :]
# w_ref: (9, Cin, Cout) bf16     -- per-tap weight matrices (HWIO, tap-major)
# b_ref: (1, Cout) f32
# o_ref: (1, bm*m, Cout) bf16    -- pooled activation, lane-dense Cout=128
# ----------------------------------------------------------------------------
def _conv_pool_kernel(x_ref, w_ref, b_ref, o_ref):
    mrows, cout = o_ref.shape[1], o_ref.shape[2]
    pooled = None
    for ph in (0, 1):                      # pool row parity
        for pw in (0, 1):                  # pool col parity
            acc = jnp.zeros((mrows, cout), jnp.float32)
            for dh in range(3):
                for dw in range(3):
                    slab = (ph + dh) * 4 + (pw + dw)
                    acc += jnp.dot(x_ref[0, slab], w_ref[dh * 3 + dw],
                                   preferred_element_type=jnp.float32)
            pooled = acc if pooled is None else jnp.maximum(pooled, acc)
    y = jnp.maximum(pooled + b_ref[...], 0.0)      # f32 epilogue on the VPU
    o_ref[0] = y.astype(o_ref.dtype)


def conv3x3_relu_pool(x_nhwc, w9, bias, bm):
    """x (B,H,W,Cin), w9 (9,Cin,Cout) bf16, bias (1,Cout) f32 -> (B,H//2,W//2,Cout) bf16."""
    B, H, W, C = x_nhwc.shape
    assert w9.shape[1] == C
    cout = w9.shape[-1]
    ho, wo = H // 2, W // 2
    m = ho * wo
    nb = B // bm
    xp = jnp.pad(x_nhwc, ((0, 0), (1, 1), (1, 1), (0, 0)))
    # 16 phase slabs, each exactly (ho, wo) rows -> every tap is a full slab.
    slabs = [xp[:, r: r + 2 * ho - 1: 2, c: c + 2 * wo - 1: 2, :]
             for r in range(4) for c in range(4)]
    s = jnp.stack(slabs, axis=1)                                  # (B,16,ho,wo,C)
    s = (s.reshape(nb, bm, 16, m, C).transpose(0, 2, 1, 3, 4)
          .reshape(nb, 16, bm * m, C).astype(jnp.bfloat16))

    out = pl.pallas_call(
        _conv_pool_kernel,
        out_shape=jax.ShapeDtypeStruct((nb, bm * m, cout), jnp.bfloat16),
        grid=(nb,),
        in_specs=[
            pl.BlockSpec((1, 16, bm * m, C), lambda b: (b, 0, 0, 0)),
            pl.BlockSpec((9, C, cout), lambda b: (0, 0, 0)),
            pl.BlockSpec((1, cout), lambda b: (0, 0)),
        ],
        out_specs=pl.BlockSpec((1, bm * m, cout), lambda b: (b, 0, 0)),
        compiler_params=_compiler_params(),
    )(s, w9, bias)
    return out.reshape(B, ho, wo, cout)


# ----------------------------------------------------------------------------
# Fused fc1(ReLU)+fc2, batch-tiled; weights grid-invariant (VMEM-resident).
# ----------------------------------------------------------------------------
def _mlp_kernel(x_ref, w1_ref, b1_ref, w2_ref, b2_ref, o_ref):
    h = jnp.dot(x_ref[...], w1_ref[...], preferred_element_type=jnp.float32)
    h = jnp.maximum(h + b1_ref[...], 0.0)                        # f32 epilogue
    out = jnp.dot(h.astype(jnp.bfloat16), w2_ref[...],
                  preferred_element_type=jnp.float32)
    o_ref[...] = out + b2_ref[...]


def fused_mlp(x_bf16, w1, b1, w2, b2, bt):
    B, K = x_bf16.shape
    nb = B // bt
    n_out = w2.shape[-1]
    return pl.pallas_call(
        _mlp_kernel,
        out_shape=jax.ShapeDtypeStruct((B, n_out), jnp.float32),
        grid=(nb,),
        in_specs=[
            pl.BlockSpec((bt, K), lambda i: (i, 0)),
            pl.BlockSpec(w1.shape, lambda i: (0, 0)),
            pl.BlockSpec(b1.shape, lambda i: (0, 0)),
            pl.BlockSpec(w2.shape, lambda i: (0, 0)),
            pl.BlockSpec(b2.shape, lambda i: (0, 0)),
        ],
        out_specs=pl.BlockSpec((bt, n_out), lambda i: (i, 0)),
        compiler_params=_compiler_params(),
    )(x_bf16, w1, b1, w2, b2)


# ----------------------------------------------------------------------------
# Parameters (deterministic synthetic init, PyTorch-equivalent shapes) + prep
# ----------------------------------------------------------------------------
def init_params(key):
    ks = jax.random.split(key, 10)

    def uni(k, shape, fan_in):
        bound = 1.0 / jnp.sqrt(jnp.float32(fan_in))
        return jax.random.uniform(k, shape, jnp.float32, -bound, bound)

    return {
        # conv weights HWIO (= PyTorch OIHW transposed to (kh,kw,in,out))
        "w1": uni(ks[0], (3, 3, 1, 32), 1 * 9),
        "b1": uni(ks[1], (32,), 1 * 9),
        "w2": uni(ks[2], (3, 3, 32, 64), 32 * 9),
        "b2": uni(ks[3], (64,), 32 * 9),
        "w3": uni(ks[4], (3, 3, 64, 128), 64 * 9),
        "b3": uni(ks[5], (128,), 64 * 9),
        # fc weights (in, out), input features in NCHW-flatten order (like PyTorch)
        "wf1": uni(ks[6], (128 * 3 * 3, 625), 128 * 3 * 3),
        "bf1": uni(ks[7], (625,), 128 * 3 * 3),
        "wf2": uni(ks[8], (625, 10), 625),
        "bf2": uni(ks[9], (10,), 625),
    }


def prepare_params(p):
    """One-time re-layout: tap-major bf16 conv weights (lane-padded), permuted/padded fc."""
    def conv_w(w_hwio, cin_pad, cout_pad):
        kh, kw, ci, co = w_hwio.shape
        w = w_hwio.reshape(kh * kw, ci, co)
        w = jnp.pad(w, ((0, 0), (0, cin_pad - ci), (0, cout_pad - co)))
        return w.astype(jnp.bfloat16)

    def bias_pad(v, n):
        return jnp.pad(v, (0, n - v.shape[0])).reshape(1, n).astype(jnp.float32)

    # conv1: (tap, cout) matrix for the im2col MXU path; taps padded 9->16.
    w1 = p["w1"].reshape(9, 32)
    w1 = jnp.pad(w1, ((0, 16 - 9), (0, LANES - 32))).astype(jnp.bfloat16)

    # Fold the NHWC->NCHW flatten transpose into fc1's weight:
    # rows go from PyTorch order (c*9 + hw) to NHWC-flatten order (hw*128 + c).
    wf1 = p["wf1"].reshape(128, 9, 625).transpose(1, 0, 2).reshape(1152, 625)
    wf1 = jnp.pad(wf1, ((0, 0), (0, 640 - 625))).astype(jnp.bfloat16)
    wf2 = jnp.pad(p["wf2"], ((0, 640 - 625), (0, LANES - 10))).astype(jnp.bfloat16)

    return {
        "cw1": w1, "cb1": bias_pad(p["b1"], LANES),
        "cw2": conv_w(p["w2"], LANES, LANES), "cb2": bias_pad(p["b2"], LANES),
        "cw3": conv_w(p["w3"], LANES, LANES), "cb3": bias_pad(p["b3"], LANES),
        "wf1": wf1, "bf1": bias_pad(p["bf1"], 640),
        "wf2": wf2, "bf2": bias_pad(p["bf2"], LANES),
    }


# ----------------------------------------------------------------------------
# Forward pass (matches Net.forward) + plain-JAX reference
# ----------------------------------------------------------------------------
@jax.jit
def net_forward(x_nchw, q):
    B = x_nchw.shape[0]
    bm = min(8, B)                           # batch tile per grid step
    Bp = ((B + bm - 1) // bm) * bm
    x = jnp.transpose(x_nchw, (0, 2, 3, 1)).astype(jnp.float32)   # NCHW -> NHWC
    if Bp != B:
        x = jnp.pad(x, ((0, Bp - B), (0, 0), (0, 0), (0, 0)))
    x = conv1_relu_pool(x, q["cw1"], q["cb1"], bm)      # (Bp,14,14,128) bf16 [96 zero ch]
    x = conv3x3_relu_pool(x, q["cw2"], q["cb2"], bm)    # (Bp, 7, 7,128) bf16 [64 zero ch]
    x = conv3x3_relu_pool(x, q["cw3"], q["cb3"], bm)    # (Bp, 3, 3,128) bf16
    x = x.reshape(Bp, 3 * 3 * LANES)                    # NHWC flatten (matches permuted wf1)
    out = fused_mlp(x, q["wf1"], q["bf1"], q["wf2"], q["bf2"], bm)   # (Bp, 128) f32
    return out[:B, :10]


def net_reference(x_nchw, p):
    x = jnp.transpose(x_nchw, (0, 2, 3, 1)).astype(jnp.float32)

    def block(x, w, b):
        y = jax.lax.conv_general_dilated(
            x, w, window_strides=(1, 1), padding="SAME",
            dimension_numbers=("NHWC", "HWIO", "NHWC"))
        y = jnp.maximum(y + b, 0.0)
        return jax.lax.reduce_window(y, -jnp.inf, jax.lax.max,
                                     (1, 2, 2, 1), (1, 2, 2, 1), "VALID")

    x = block(x, p["w1"], p["b1"])
    x = block(x, p["w2"], p["b2"])
    x = block(x, p["w3"], p["b3"])
    B = x.shape[0]
    x = jnp.transpose(x, (0, 3, 1, 2)).reshape(B, 128 * 3 * 3)   # PyTorch view order
    x = jnp.maximum(x @ p["wf1"] + p["bf1"], 0.0)
    return x @ p["wf2"] + p["bf2"]


if __name__ == "__main__":
    key = jax.random.PRNGKey(0)
    k_param, k_x = jax.random.split(key)

    params = init_params(k_param)
    prepped = prepare_params(params)

    # fc1 expects 128*3*3 features -> 28x28 single-channel input (MNIST-style).
    x = jax.random.normal(k_x, (2, 1, 28, 28), dtype=jnp.float32)  # NCHW

    out = jax.block_until_ready(net_forward(x, prepped))
    assert out.shape == (2, 10), out.shape
    assert out.dtype == jnp.float32
    assert bool(jnp.all(jnp.isfinite(out)))

    ref = net_reference(x, params)
    err = float(jnp.max(jnp.abs(out - ref)))
    assert err < 5e-2, f"mismatch vs reference: max abs err = {err}"

    print("KERNEL_OK")
</pallas_src>

<mosaic_0001>
module attributes {stable_mosaic.version = 11 : i64} {
  func.func @_conv1_kernel(%arg0: i32, %arg1: memref<1x4x392x16xbf16, #tpu.memory_space<vmem>>, %arg2: memref<16x128xbf16, #tpu.memory_space<vmem>>, %arg3: memref<1x128xf32, #tpu.memory_space<vmem>>, %arg4: memref<1x392x128xbf16, #tpu.memory_space<vmem>>) attributes {dimension_semantics = [#tpu.dimension_semantics<parallel>], iteration_bounds = array<i64: 1>, scalar_prefetch = 0 : i64, scratch_operands = 0 : i64, tpu.core_type = #tpu.core_type<tc>, window_params = [{transform_indices = @transform_0, window_bounds = array<i64: 1, 4, 392, 16>}, {pipeline_mode = #tpu.pipeline_mode<synchronous>, transform_indices = @transform_1, window_bounds = array<i64: 16, 128>}, {pipeline_mode = #tpu.pipeline_mode<synchronous>, transform_indices = @transform_2, window_bounds = array<i64: 1, 128>}, {transform_indices = @transform_3, window_bounds = array<i64: 1, 392, 128>}]} {
    %c0 = arith.constant 0 : index
    %c0_0 = arith.constant 0 : index
    %c0_1 = arith.constant 0 : index
    %c0_2 = arith.constant 0 : index
    %0 = vector.load %arg1[%c0, %c0_0, %c0_1, %c0_2] : memref<1x4x392x16xbf16, #tpu.memory_space<vmem>>, vector<1x1x392x16xbf16>
    %1 = vector.shape_cast %0 : vector<1x1x392x16xbf16> to vector<392x16xbf16>
    %c0_3 = arith.constant 0 : index
    %c0_4 = arith.constant 0 : index
    %2 = vector.load %arg2[%c0_3, %c0_4] : memref<16x128xbf16, #tpu.memory_space<vmem>>, vector<16x128xbf16>
    %cst = arith.constant dense<0.000000e+00> : vector<392x128xf32>
    %3 = tpu.matmul %1, %2, %cst {dimension_numbers = #tpu.dot_dimension_numbers<[1], [0], [0], [1], [0, 0, 1, 1], [], []>} : vector<392x16xbf16>, vector<16x128xbf16>, vector<392x128xf32> -> vector<392x128xf32>
    %c0_5 = arith.constant 0 : index
    %c1 = arith.constant 1 : index
    %c0_6 = arith.constant 0 : index
    %c0_7 = arith.constant 0 : index
    %4 = vector.load %arg1[%c0_5, %c1, %c0_6, %c0_7] : memref<1x4x392x16xbf16, #tpu.memory_space<vmem>>, vector<1x1x392x16xbf16>
    %5 = vector.shape_cast %4 : vector<1x1x392x16xbf16> to vector<392x16xbf16>
    %c0_8 = arith.constant 0 : index
    %c0_9 = arith.constant 0 : index
    %6 = vector.load %arg2[%c0_8, %c0_9] : memref<16x128xbf16, #tpu.memory_space<vmem>>, vector<16x128xbf16>
    %cst_10 = arith.constant dense<0.000000e+00> : vector<392x128xf32>
    %7 = tpu.matmul %5, %6, %cst_10 {dimension_numbers = #tpu.dot_dimension_numbers<[1], [0], [0], [1], [0, 0, 1, 1], [], []>} : vector<392x16xbf16>, vector<16x128xbf16>, vector<392x128xf32> -> vector<392x128xf32>
    %8 = arith.maximumf %3, %7 : vector<392x128xf32>
    %c0_11 = arith.constant 0 : index
    %c2 = arith.constant 2 : index
    %c0_12 = arith.constant 0 : index
    %c0_13 = arith.constant 0 : index
    %9 = vector.load %arg1[%c0_11, %c2, %c0_12, %c0_13] : memref<1x4x392x16xbf16, #tpu.memory_space<vmem>>, vector<1x1x392x16xbf16>
    %10 = vector.shape_cast %9 : vector<1x1x392x16xbf16> to vector<392x16xbf16>
    %c0_14 = arith.constant 0 : index
    %c0_15 = arith.constant 0 : index
    %11 = vector.load %arg2[%c0_14, %c0_15] : memref<16x128xbf16, #tpu.memory_space<vmem>>, vector<16x128xbf16>
    %cst_16 = arith.constant dense<0.000000e+00> : vector<392x128xf32>
    %12 = tpu.matmul %10, %11, %cst_16 {dimension_numbers = #tpu.dot_dimension_numbers<[1], [0], [0], [1], [0, 0, 1, 1], [], []>} : vector<392x16xbf16>, vector<16x128xbf16>, vector<392x128xf32> -> vector<392x128xf32>
    %13 = arith.maximumf %8, %12 : vector<392x128xf32>
    %c0_17 = arith.constant 0 : index
    %c3 = arith.constant 3 : index
    %c0_18 = arith.constant 0 : index
    %c0_19 = arith.constant 0 : index
    %14 = vector.load %arg1[%c0_17, %c3, %c0_18, %c0_19] : memref<1x4x392x16xbf16, #tpu.memory_space<vmem>>, vector<1x1x392x16xbf16>
    %15 = vector.shape_cast %14 : vector<1x1x392x16xbf16> to vector<392x16xbf16>
    %c0_20 = arith.constant 0 : index
    %c0_21 = arith.constant 0 : index
    %16 = vector.load %arg2[%c0_20, %c0_21] : memref<16x128xbf16, #tpu.memory_space<vmem>>, vector<16x128xbf16>
    %cst_22 = arith.constant dense<0.000000e+00> : vector<392x128xf32>
    %17 = tpu.matmul %15, %16, %cst_22 {dimension_numbers = #tpu.dot_dimension_numbers<[1], [0], [0], [1], [0, 0, 1, 1], [], []>} : vector<392x16xbf16>, vector<16x128xbf16>, vector<392x128xf32> -> vector<392x128xf32>
    %18 = arith.maximumf %13, %17 : vector<392x128xf32>
    %c0_23 = arith.constant 0 : index
    %c0_24 = arith.constant 0 : index
    %19 = vector.load %arg3[%c0_23, %c0_24] : memref<1x128xf32, #tpu.memory_space<vmem>>, vector<1x128xf32>
    %20 = vector.broadcast %19 : vector<1x128xf32> to vector<392x128xf32>
    %21 = arith.addf %18, %20 : vector<392x128xf32>
    %cst_25 = arith.constant 0.000000e+00 : f32
    %22 = vector.broadcast %cst_25 : f32 to vector<392x128xf32>
    %23 = arith.maximumf %21, %22 : vector<392x128xf32>
    %24 = arith.truncf %23 : vector<392x128xf32> to vector<392x128xbf16>
    %c0_26 = arith.constant 0 : index
    %c0_27 = arith.constant 0 : index
    %c0_28 = arith.constant 0 : index
    %25 = vector.load %arg4[%c0_26, %c0_27, %c0_28] : memref<1x392x128xbf16, #tpu.memory_space<vmem>>, vector<1x392x128xbf16>
    %26 = vector.shape_cast %25 : vector<1x392x128xbf16> to vector<392x128xbf16>
    %27 = vector.shape_cast %24 : vector<392x128xbf16> to vector<1x392x128xbf16>
    tpu.vector_store %arg4[%c0_26, %c0_27, %c0_28], %27 {strides = array<i32>} : memref<1x392x128xbf16, #tpu.memory_space<vmem>>, vector<1x392x128xbf16>,
    return
  }
  func.func @transform_0(%arg0: i32) -> (i32, i32, i32, i32) {
    %c0_i32 = arith.constant 0 : i32
    %c0_i32_0 = arith.constant 0 : i32
    %c0_i32_1 = arith.constant 0 : i32
    %c0_i32_2 = arith.constant 0 : i32
    return %arg0, %c0_i32, %c0_i32_0, %c0_i32_1 : i32, i32, i32, i32
  }
  func.func @transform_1(%arg0: i32) -> (i32, i32) {
    %c0_i32 = arith.constant 0 : i32
    %c0_i32_0 = arith.constant 0 : i32
    %c0_i32_1 = arith.constant 0 : i32
    return %c0_i32, %c0_i32_0 : i32, i32
  }
  func.func @transform_2(%arg0: i32) -> (i32, i32) {
    %c0_i32 = arith.constant 0 : i32
    %c0_i32_0 = arith.constant 0 : i32
    %c0_i32_1 = arith.constant 0 : i32
    return %c0_i32, %c0_i32_0 : i32, i32
  }
  func.func @transform_3(%arg0: i32) -> (i32, i32, i32) {
    %c0_i32 = arith.constant 0 : i32
    %c0_i32_0 = arith.constant 0 : i32
    %c0_i32_1 = arith.constant 0 : i32
    return %arg0, %c0_i32, %c0_i32_0 : i32, i32, i32
  }
}

module attributes {stable_mosaic.version = 11 : i64} {
  func.func @_conv_pool_kernel(%arg0: i32, %arg1: memref<1x16x98x128xbf16, #tpu.memory_space<vmem>>, %arg2: memref<9x128x128xbf16, #tpu.memory_space<vmem>>, %arg3: memref<1x128xf32, #tpu.memory_space<vmem>>, %arg4: memref<1x98x128xbf16, #tpu.memory_space<vmem>>) attributes {dimension_semantics = [#tpu.dimension_semantics<parallel>], iteration_bounds = array<i64: 1>, scalar_prefetch = 0 : i64, scratch_operands = 0 : i64, tpu.core_type = #tpu.core_type<tc>, window_params = [{transform_indices = @transform_0, window_bounds = array<i64: 1, 16, 98, 128>}, {pipeline_mode = #tpu.pipeline_mode<synchronous>, transform_indices = @transform_1, window_bounds = array<i64: 9, 128, 128>}, {pipeline_mode = #tpu.pipeline_mode<synchronous>, transform_indices = @transform_2, window_bounds = array<i64: 1, 128>}, {transform_indices = @transform_3, window_bounds = array<i64: 1, 98, 128>}]} {
    %cst = arith.constant 0.000000e+00 : f32
    %0 = vector.broadcast %cst : f32 to vector<98x128xf32>
    %c0 = arith.constant 0 : index
    %c0_0 = arith.constant 0 : index
    %c0_1 = arith.constant 0 : index
    %c0_2 = arith.constant 0 : index
    %1 = vector.load %arg1[%c0, %c0_0, %c0_1, %c0_2] : memref<1x16x98x128xbf16, #tpu.memory_space<vmem>>, vector<1x1x98x128xbf16>
    %2 = vector.shape_cast %1 : vector<1x1x98x128xbf16> to vector<98x128xbf16>
    %c0_3 = arith.constant 0 : index
    %c0_4 = arith.constant 0 : index
    %c0_5 = arith.constant 0 : index
    %3 = vector.load %arg2[%c0_3, %c0_4, %c0_5] : memref<9x128x128xbf16, #tpu.memory_space<vmem>>, vector<1x128x128xbf16>
    %4 = vector.shape_cast %3 : vector<1x128x128xbf16> to vector<128x128xbf16>
    %cst_6 = arith.constant dense<0.000000e+00> : vector<98x128xf32>
    %5 = tpu.matmul %2, %4, %cst_6 {dimension_numbers = #tpu.dot_dimension_numbers<[1], [0], [0], [1], [0, 0, 1, 1], [], []>} : vector<98x128xbf16>, vector<128x128xbf16>, vector<98x128xf32> -> vector<98x128xf32>
    %6 = arith.addf %0, %5 : vector<98x128xf32>
    %c0_7 = arith.constant 0 : index
    %c1 = arith.constant 1 : index
    %c0_8 = arith.constant 0 : index
    %c0_9 = arith.constant 0 : index
    %7 = vector.load %arg1[%c0_7, %c1, %c0_8, %c0_9] : memref<1x16x98x128xbf16, #tpu.memory_space<vmem>>, vector<1x1x98x128xbf16>
    %8 = vector.shape_cast %7 : vector<1x1x98x128xbf16> to vector<98x128xbf16>
    %c1_10 = arith.constant 1 : index
    %c0_11 = arith.constant 0 : index
    %c0_12 = arith.constant 0 : index
    %9 = vector.load %arg2[%c1_10, %c0_11, %c0_12] : memref<9x128x128xbf16, #tpu.memory_space<vmem>>, vector<1x128x128xbf16>
    %10 = vector.shape_cast %9 : vector<1x128x128xbf16> to vector<128x128xbf16>
    %cst_13 = arith.constant dense<0.000000e+00> : vector<98x128xf32>
    %11 = tpu.matmul %8, %10, %cst_13 {dimension_numbers = #tpu.dot_dimension_numbers<[1], [0], [0], [1], [0, 0, 1, 1], [], []>} : vector<98x128xbf16>, vector<128x128xbf16>, vector<98x128xf32> -> vector<98x128xf32>
    %12 = arith.addf %6, %11 : vector<98x128xf32>
    %c0_14 = arith.constant 0 : index
    %c2 = arith.constant 2 : index
    %c0_15 = arith.constant 0 : index
    %c0_16 = arith.constant 0 : index
    %13 = vector.load %arg1[%c0_14, %c2, %c0_15, %c0_16] : memref<1x16x98x128xbf16, #tpu.memory_space<vmem>>, vector<1x1x98x128xbf16>
    %14 = vector.shape_cast %13 : vector<1x1x98x128xbf16> to vector<98x128xbf16>
    %c2_17 = arith.constant 2 : index
    %c0_18 = arith.constant 0 : index
    %c0_19 = arith.constant 0 : index
    %15 = vector.load %arg2[%c2_17, %c0_18, %c0_19] : memref<9x128x128xbf16, #tpu.memory_space<vmem>>, vector<1x128x128xbf16>
    %16 = vector.shape_cast %15 : vector<1x128x128xbf16> to vector<128x128xbf16>
    %cst_20 = arith.constant dense<0.000000e+00> : vector<98x128xf32>
    %17 = tpu.matmul %14, %16, %cst_20 {dimension_numbers = #tpu.dot_dimension_numbers<[1], [0], [0], [1], [0, 0, 1, 1], [], []>} : vector<98x128xbf16>, vector<128x128xbf16>, vector<98x128xf32> -> vector<98x128xf32>
    %18 = arith.addf %12, %17 : vector<98x128xf32>
    %c0_21 = arith.constant 0 : index
    %c4 = arith.constant 4 : index
    %c0_22 = arith.constant 0 : index
    %c0_23 = arith.constant 0 : index
    %19 = vector.load %arg1[%c0_21, %c4, %c0_22, %c0_23] : memref<1x16x98x128xbf16, #tpu.memory_space<vmem>>, vector<1x1x98x128xbf16>
    %20 = vector.shape_cast %19 : vector<1x1x98x128xbf16> to vector<98x128xbf16>
    %c3 = arith.constant 3 : index
    %c0_24 = arith.constant 0 : index
    %c0_25 = arith.constant 0 : index
    %21 = vector.load %arg2[%c3, %c0_24, %c0_25] : memref<9x128x128xbf16, #tpu.memory_space<vmem>>, vector<1x128x128xbf16>
    %22 = vector.shape_cast %21 : vector<1x128x128xbf16> to vector<128x128xbf16>
    %cst_26 = arith.constant dense<0.000000e+00> : vector<98x128xf32>
    %23 = tpu.matmul %20, %22, %cst_26 {dimension_numbers = #tpu.dot_dimension_numbers<[1], [0], [0], [1], [0, 0, 1, 1], [], []>} : vector<98x128xbf16>, vector<128x128xbf16>, vector<98x128xf32> -> vector<98x128xf32>
    %24 = arith.addf %18, %23 : vector<98x128xf32>
    %c0_27 = arith.constant 0 : index
    %c5 = arith.constant 5 : index
    %c0_28 = arith.constant 0 : index
    %c0_29 = arith.constant 0 : index
    %25 = vector.load %arg1[%c0_27, %c5, %c0_28, %c0_29] : memref<1x16x98x128xbf16, #tpu.memory_space<vmem>>, vector<1x1x98x128xbf16>
    %26 = vector.shape_cast %25 : vector<1x1x98x128xbf16> to vector<98x128xbf16>
    %c4_30 = arith.constant 4 : index
    %c0_31 = arith.constant 0 : index
    %c0_32 = arith.constant 0 : index
    %27 = vector.load %arg2[%c4_30, %c0_31, %c0_32] : memref<9x128x128xbf16, #tpu.memory_space<vmem>>, vector<1x128x128xbf16>
    %28 = vector.shape_cast %27 : vector<1x128x128xbf16> to vector<128x128xbf16>
    %cst_33 = arith.constant dense<0.000000e+00> : vector<98x128xf32>
    %29 = tpu.matmul %26, %28, %cst_33 {dimension_numbers = #tpu.dot_dimension_numbers<[1], [0], [0], [1], [0, 0, 1, 1], [], []>} : vector<98x128xbf16>, vector<128x128xbf16>, vector<98x128xf32> -> vector<98x128xf32>
    %30 = arith.addf %24, %29 : vector<98x128xf32>
    %c0_34 = arith.constant 0 : index
    %c6 = arith.constant 6 : index
    %c0_35 = arith.constant 0 : index
    %c0_36 = arith.constant 0 : index
    %31 = vector.load %arg1[%c0_34, %c6, %c0_35, %c0_36] : memref<1x16x98x128xbf16, #tpu.memory_space<vmem>>, vector<1x1x98x128xbf16>
    %32 = vector.shape_cast %31 : vector<1x1x98x128xbf16> to vector<98x128xbf16>
    %c5_37 = arith.constant 5 : index
    %c0_38 = arith.constant 0 : index
    %c0_39 = arith.constant 0 : index
    %33 = vector.load %arg2[%c5_37, %c0_38, %c0_39] : memref<9x128x128xbf16, #tpu.memory_space<vmem>>, vector<1x128x128xbf16>
    %34 = vector.shape_cast %33 : vector<1x128x128xbf16> to vector<128x128xbf16>
    %cst_40 = arith.constant dense<0.000000e+00> : vector<98x128xf32>
    %35 = tpu.matmul %32, %34, %cst_40 {dimension_numbers = #tpu.dot_dimension_numbers<[1], [0], [0], [1], [0, 0, 1, 1], [], []>} : vector<98x128xbf16>, vector<128x128xbf16>, vector<98x128xf32> -> vector<98x128xf32>
    %36 = arith.addf %30, %35 : vector<98x128xf32>
    %c0_41 = arith.constant 0 : index
    %c8 = arith.constant 8 : index
    %c0_42 = arith.constant 0 : index
    %c0_43 = arith.constant 0 : index
    %37 = vector.load %arg1[%c0_41, %c8, %c0_42, %c0_43] : memref<1x16x98x128xbf16, #tpu.memory_space<vmem>>, vector<1x1x98x128xbf16>
    %38 = vector.shape_cast %37 : vector<1x1x98x128xbf16> to vector<98x128xbf16>
    %c6_44 = arith.constant 6 : index
    %c0_45 = arith.constant 0 : index
    %c0_46 = arith.constant 0 : index
    %39 = vector.load %arg2[%c6_44, %c0_45, %c0_46] : memref<9x128x128xbf16, #tpu.memory_space<vmem>>, vector<1x128x128xbf16>
    %40 = vector.shape_cast %39 : vector<1x128x128xbf16> to vector<128x128xbf16>
    %cst_47 = arith.constant dense<0.000000e+00> : vector<98x128xf32>
    %41 = tpu.matmul %38, %40, %cst_47 {dimension_numbers = #tpu.dot_dimension_numbers<[1], [0], [0], [1], [0, 0, 1, 1], [], []>} : vector<98x128xbf16>, vector<128x128xbf16>, vector<98x128xf32> -> vector<98x128xf32>
    %42 = arith.addf %36, %41 : vector<98x128xf32>
    %c0_48 = arith.constant 0 : index
    %c9 = arith.constant 9 : index
    %c0_49 = arith.constant 0 : index
    %c0_50 = arith.constant 0 : index
    %43 = vector.load %arg1[%c0_48, %c9, %c0_49, %c0_50] : memref<1x16x98x128xbf16, #tpu.memory_space<vmem>>, vector<1x1x98x128xbf16>
    %44 = vector.shape_cast %43 : vector<1x1x98x128xbf16> to vector<98x128xbf16>
    %c7 = arith.constant 7 : index
    %c0_51 = arith.constant 0 : index
    %c0_52 = arith.constant 0 : index
    %45 = vector.load %arg2[%c7, %c0_51, %c0_52] : memref<9x128x128xbf16, #tpu.memory_space<vmem>>, vector<1x128x128xbf16>
    %46 = vector.shape_cast %45 : vector<1x128x128xbf16> to vector<128x128xbf16>
    %cst_53 = arith.constant dense<0.000000e+00> : vector<98x128xf32>
    %47 = tpu.matmul %44, %46, %cst_53 {dimension_numbers = #tpu.dot_dimension_numbers<[1], [0], [0], [1], [0, 0, 1, 1], [], []>} : vector<98x128xbf16>, vector<128x128xbf16>, vector<98x128xf32> -> vector<98x128xf32>
    %48 = arith.addf %42, %47 : vector<98x128xf32>
    %c0_54 = arith.constant 0 : index
    %c10 = arith.constant 10 : index
    %c0_55 = arith.constant 0 : index
    %c0_56 = arith.constant 0 : index
    %49 = vector.load %arg1[%c0_54, %c10, %c0_55, %c0_56] : memref<1x16x98x128xbf16, #tpu.memory_space<vmem>>, vector<1x1x98x128xbf16>
    %50 = vector.shape_cast %49 : vector<1x1x98x128xbf16> to vector<98x128xbf16>
    %c8_57 = arith.constant 8 : index
    %c0_58 = arith.constant 0 : index
    %c0_59 = arith.constant 0 : index
    %51 = vector.load %arg2[%c8_57, %c0_58, %c0_59] : memref<9x128x128xbf16, #tpu.memory_space<vmem>>, vector<1x128x128xbf16>
    %52 = vector.shape_cast %51 : vector<1x128x128xbf16> to vector<128x128xbf16>
    %cst_60 = arith.constant dense<0.000000e+00> : vector<98x128xf32>
    %53 = tpu.matmul %50, %52, %cst_60 {dimension_numbers = #tpu.dot_dimension_numbers<[1], [0], [0], [1], [0, 0, 1, 1], [], []>} : vector<98x128xbf16>, vector<128x128xbf16>, vector<98x128xf32> -> vector<98x128xf32>
    %54 = arith.addf %48, %53 : vector<98x128xf32>
    %cst_61 = arith.constant 0.000000e+00 : f32
    %55 = vector.broadcast %cst_61 : f32 to vector<98x128xf32>
    %c0_62 = arith.constant 0 : index
    %c1_63 = arith.constant 1 : index
    %c0_64 = arith.constant 0 : index
    %c0_65 = arith.constant 0 : index
    %56 = vector.load %arg1[%c0_62, %c1_63, %c0_64, %c0_65] : memref<1x16x98x128xbf16, #tpu.memory_space<vmem>>, vector<1x1x98x128xbf16>
    %57 = vector.shape_cast %56 : vector<1x1x98x128xbf16> to vector<98x128xbf16>
    %c0_66 = arith.constant 0 : index
    %c0_67 = arith.constant 0 : index
    %c0_68 = arith.constant 0 : index
    %58 = vector.load %arg2[%c0_66, %c0_67, %c0_68] : memref<9x128x128xbf16, #tpu.memory_space<vmem>>, vector<1x128x128xbf16>
    %59 = vector.shape_cast %58 : vector<1x128x128xbf16> to vector<128x128xbf16>
    %cst_69 = arith.constant dense<0.000000e+00> : vector<98x128xf32>
    %60 = tpu.matmul %57, %59, %cst_69 {dimension_numbers = #tpu.dot_dimension_numbers<[1], [0], [0], [1], [0, 0, 1, 1], [], []>} : vector<98x128xbf16>, vector<128x128xbf16>, vector<98x128xf32> -> vector<98x128xf32>
    %61 = arith.addf %55, %60 : vector<98x128xf32>
    %c0_70 = arith.constant 0 : index
    %c2_71 = arith.constant 2 : index
    %c0_72 = arith.constant 0 : index
    %c0_73 = arith.constant 0 : index
    %62 = vector.load %arg1[%c0_70, %c2_71, %c0_72, %c0_73] : memref<1x16x98x128xbf16, #tpu.memory_space<vmem>>, vector<1x1x98x128xbf16>
    %63 = vector.shape_cast %62 : vector<1x1x98x128xbf16> to vector<98x128xbf16>
    %c1_74 = arith.constant 1 : index
    %c0_75 = arith.constant 0 : index
    %c0_76 = arith.constant 0 : index
    %64 = vector.load %arg2[%c1_74, %c0_75, %c0_76] : memref<9x128x128xbf16, #tpu.memory_space<vmem>>, vector<1x128x128xbf16>
    %65 = vector.shape_cast %64 : vector<1x128x128xbf16> to vector<128x128xbf16>
    %cst_77 = arith.constant dense<0.000000e+00> : vector<98x128xf32>
    %66 = tpu.matmul %63, %65, %cst_77 {dimension_numbers = #tpu.dot_dimension_numbers<[1], [0], [0], [1], [0, 0, 1, 1], [], []>} : vector<98x128xbf16>, vector<128x128xbf16>, vector<98x128xf32> -> vector<98x128xf32>
    %67 = arith.addf %61, %66 : vector<98x128xf32>
    %c0_78 = arith.constant 0 : index
    %c3_79 = arith.constant 3 : index
    %c0_80 = arith.constant 0 : index
    %c0_81 = arith.constant 0 : index
    %68 = vector.load %arg1[%c0_78, %c3_79, %c0_80, %c0_81] : memref<1x16x98x128xbf16, #tpu.memory_space<vmem>>, vector<1x1x98x128xbf16>
    %69 = vector.shape_cast %68 : vector<1x1x98x128xbf16> to vector<98x128xbf16>
    %c2_82 = arith.constant 2 : index
    %c0_83 = arith.constant 0 : index
    %c0_84 = arith.constant 0 : index
    %70 = vector.load %arg2[%c2_82, %c0_83, %c0_84] : memref<9x128x128xbf16, #tpu.memory_space<vmem>>, vector<1x128x128xbf16>
    %71 = vector.shape_cast %70 : vector<1x128x128xbf16> to vector<128x128xbf16>
    %cst_85 = arith.constant dense<0.000000e+00> : vector<98x128xf32>
    %72 = tpu.matmul %69, %71, %cst_85 {dimension_numbers = #tpu.dot_dimension_numbers<[1], [0], [0], [1], [0, 0, 1, 1], [], []>} : vector<98x128xbf16>, vector<128x128xbf16>, vector<98x128xf32> -> vector<98x128xf32>
    %73 = arith.addf %67, %72 : vector<98x128xf32>
    %c0_86 = arith.constant 0 : index
    %c5_87 = arith.constant 5 : index
    %c0_88 = arith.constant 0 : index
    %c0_89 = arith.constant 0 : index
    %74 = vector.load %arg1[%c0_86, %c5_87, %c0_88, %c0_89] : memref<1x16x98x128xbf16, #tpu.memory_space<vmem>>, vector<1x1x98x128xbf16>
    %75 = vector.shape_cast %74 : vector<1x1x98x128xbf16> to vector<98x128xbf16>
    %c3_90 = arith.constant 3 : index
    %c0_91 = arith.constant 0 : index
    %c0_92 = arith.constant 0 : index
    %76 = vector.load %arg2[%c3_90, %c0_91, %c0_92] : memref<9x128x128xbf16, #tpu.memory_space<vmem>>, vector<1x128x128xbf16>
    %77 = vector.shape_cast %76 : vector<1x128x128xbf16> to vector<128x128xbf16>
    %cst_93 = arith.constant dense<0.000000e+00> : vector<98x128xf32>
    %78 = tpu.matmul %75, %77, %cst_93 {dimension_numbers = #tpu.dot_dimension_numbers<[1], [0], [0], [1], [0, 0, 1, 1], [], []>} : vector<98x128xbf16>, vector<128x128xbf16>, vector<98x128xf32> -> vector<98x128xf32>
    %79 = arith.addf %73, %78 : vector<98x128xf32>
    %c0_94 = arith.constant 0 : index
    %c6_95 = arith.constant 6 : index
    %c0_96 = arith.constant 0 : index
    %c0_97 = arith.constant 0 : index
    %80 = vector.load %arg1[%c0_94, %c6_95, %c0_96, %c0_97] : memref<1x16x98x128xbf16, #tpu.memory_space<vmem>>, vector<1x1x98x128xbf16>
    %81 = vector.shape_cast %80 : vector<1x1x98x128xbf16> to vector<98x128xbf16>
    %c4_98 = arith.constant 4 : index
    %c0_99 = arith.constant 0 : index
    %c0_100 = arith.constant 0 : index
    %82 = vector.load %arg2[%c4_98, %c0_99, %c0_100] : memref<9x128x128xbf16, #tpu.memory_space<vmem>>, vector<1x128x128xbf16>
    %83 = vector.shape_cast %82 : vector<1x128x128xbf16> to vector<128x128xbf16>
    %cst_101 = arith.constant dense<0.000000e+00> : vector<98x128xf32>
    %84 = tpu.matmul %81, %83, %cst_101 {dimension_numbers = #tpu.dot_dimension_numbers<[1], [0], [0], [1], [0, 0, 1, 1], [], []>} : vector<98x128xbf16>, vector<128x128xbf16>, vector<98x128xf32> -> vector<98x128xf32>
    %85 = arith.addf %79, %84 : vector<98x128xf32>
    %c0_102 = arith.constant 0 : index
    %c7_103 = arith.constant 7 : index
    %c0_104 = arith.constant 0 : index
    %c0_105 = arith.constant 0 : index
    %86 = vector.load %arg1[%c0_102, %c7_103, %c0_104, %c0_105] : memref<1x16x98x128xbf16, #tpu.memory_space<vmem>>, vector<1x1x98x128xbf16>
    %87 = vector.shape_cast %86 : vector<1x1x98x128xbf16> to vector<98x128xbf16>
    %c5_106 = arith.constant 5 : index
    %c0_107 = arith.constant 0 : index
    %c0_108 = arith.constant 0 : index
    %88 = vector.load %arg2[%c5_106, %c0_107, %c0_108] : memref<9x128x128xbf16, #tpu.memory_space<vmem>>, vector<1x128x128xbf16>
    %89 = vector.shape_cast %88 : vector<1x128x128xbf16> to vector<128x128xbf16>
    %cst_109 = arith.constant dense<0.000000e+00> : vector<98x128xf32>
    %90 = tpu.matmul %87, %89, %cst_109 {dimension_numbers = #tpu.dot_dimension_numbers<[1], [0], [0], [1], [0, 0, 1, 1], [], []>} : vector<98x128xbf16>, vector<128x128xbf16>, vector<98x128xf32> -> vector<98x128xf32>
    %91 = arith.addf %85, %90 : vector<98x128xf32>
    %c0_110 = arith.constant 0 : index
    %c9_111 = arith.constant 9 : index
    %c0_112 = arith.constant 0 : index
    %c0_113 = arith.constant 0 : index
    %92 = vector.load %arg1[%c0_110, %c9_111, %c0_112, %c0_113] : memref<1x16x98x128xbf16, #tpu.memory_space<vmem>>, vector<1x1x98x128xbf16>
    %93 = vector.shape_cast %92 : vector<1x1x98x128xbf16> to vector<98x128xbf16>
    %c6_114 = arith.constant 6 : index
    %c0_115 = arith.constant 0 : index
    %c0_116 = arith.constant 0 : index
    %94 = vector.load %arg2[%c6_114, %c0_115, %c0_116] : memref<9x128x128xbf16, #tpu.memory_space<vmem>>, vector<1x128x128xbf16>
    %95 = vector.shape_cast %94 : vector<1x128x128xbf16> to vector<128x128xbf16>
    %cst_117 = arith.constant dense<0.000000e+00> : vector<98x128xf32>
    %96 = tpu.matmul %93, %95, %cst_117 {dimension_numbers = #tpu.dot_dimension_numbers<[1], [0], [0], [1], [0, 0, 1, 1], [], []>} : vector<98x128xbf16>, vector<128x128xbf16>, vector<98x128xf32> -> vector<98x128xf32>
    %97 = arith.addf %91, %96 : vector<98x128xf32>
    %c0_118 = arith.constant 0 : index
    %c10_119 = arith.constant 10 : index
    %c0_120 = arith.constant 0 : index
    %c0_121 = arith.constant 0 : index
    %98 = vector.load %arg1[%c0_118, %c10_119, %c0_120, %c0_121] : memref<1x16x98x128xbf16, #tpu.memory_space<vmem>>, vector<1x1x98x128xbf16>
    %99 = vector.shape_cast %98 : vector<1x1x98x128xbf16> to vector<98x128xbf16>
    %c7_122 = arith.constant 7 : index
    %c0_123 = arith.constant 0 : index
    %c0_124 = arith.constant 0 : index
    %100 = vector.load %arg2[%c7_122, %c0_123, %c0_124] : memref<9x128x128xbf16, #tpu.memory_space<vmem>>, vector<1x128x128xbf16>
    %101 = vector.shape_cast %100 : vector<1x128x128xbf16> to vector<128x128xbf16>
    %cst_125 = arith.constant dense<0.000000e+00> : vector<98x128xf32>
    %102 = tpu.matmul %99, %101, %cst_125 {dimension_numbers = #tpu.dot_dimension_numbers<[1], [0], [0], [1], [0, 0, 1, 1], [], []>} : vector<98x128xbf16>, vector<128x128xbf16>, vector<98x128xf32> -> vector<98x128xf32>
    %103 = arith.addf %97, %102 : vector<98x128xf32>
    %c0_126 = arith.constant 0 : index
    %c11 = arith.constant 11 : index
    %c0_127 = arith.constant 0 : index
    %c0_128 = arith.constant 0 : index
    %104 = vector.load %arg1[%c0_126, %c11, %c0_127, %c0_128] : memref<1x16x98x128xbf16, #tpu.memory_space<vmem>>, vector<1x1x98x128xbf16>
    %105 = vector.shape_cast %104 : vector<1x1x98x128xbf16> to vector<98x128xbf16>
    %c8_129 = arith.constant 8 : index
    %c0_130 = arith.constant 0 : index
    %c0_131 = arith.constant 0 : index
    %106 = vector.load %arg2[%c8_129, %c0_130, %c0_131] : memref<9x128x128xbf16, #tpu.memory_space<vmem>>, vector<1x128x128xbf16>
    %107 = vector.shape_cast %106 : vector<1x128x128xbf16> to vector<128x128xbf16>
    %cst_132 = arith.constant dense<0.000000e+00> : vector<98x128xf32>
    %108 = tpu.matmul %105, %107, %cst_132 {dimension_numbers = #tpu.dot_dimension_numbers<[1], [0], [0], [1], [0, 0, 1, 1], [], []>} : vector<98x128xbf16>, vector<128x128xbf16>, vector<98x128xf32> -> vector<98x128xf32>
    %109 = arith.addf %103, %108 : vector<98x128xf32>
    %110 = arith.maximumf %54, %109 : vector<98x128xf32>
    %cst_133 = arith.constant 0.000000e+00 : f32
    %111 = vector.broadcast %cst_133 : f32 to vector<98x128xf32>
    %c0_134 = arith.constant 0 : index
    %c4_135 = arith.constant 4 : index
    %c0_136 = arith.constant 0 : index
    %c0_137 = arith.constant 0 : index
    %112 = vector.load %arg1[%c0_134, %c4_135, %c0_136, %c0_137] : memref<1x16x98x128xbf16, #tpu.memory_space<vmem>>, vector<1x1x98x128xbf16>
    %113 = vector.shape_cast %112 : vector<1x1x98x128xbf16> to vector<98x128xbf16>
    %c0_138 = arith.constant 0 : index
    %c0_139 = arith.constant 0 : index
    %c0_140 = arith.constant 0 : index
    %114 = vector.load %arg2[%c0_138, %c0_139, %c0_140] : memref<9x128x128xbf16, #tpu.memory_space<vmem>>, vector<1x128x128xbf16>
    %115 = vector.shape_cast %114 : vector<1x128x128xbf16> to vector<128x128xbf16>
    %cst_141 = arith.constant dense<0.000000e+00> : vector<98x128xf32>
    %116 = tpu.matmul %113, %115, %cst_141 {dimension_numbers = #tpu.dot_dimension_numbers<[1], [0], [0], [1], [0, 0, 1, 1], [], []>} : vector<98x128xbf16>, vector<128x128xbf16>, vector<98x128xf32> -> vector<98x128xf32>
    %117 = arith.addf %111, %116 : vector<98x128xf32>
    %c0_142 = arith.constant 0 : index
    %c5_143 = arith.constant 5 : index
    %c0_144 = arith.constant 0 : index
    %c0_145 = arith.constant 0 : index
    %118 = vector.load %arg1[%c0_142, %c5_143, %c0_144, %c0_145] : memref<1x16x98x128xbf16, #tpu.memory_space<vmem>>, vector<1x1x98x128xbf16>
    %119 = vector.shape_cast %118 : vector<1x1x98x128xbf16> to vector<98x128xbf16>
    %c1_146 = arith.constant 1 : index
    %c0_147 = arith.constant 0 : index
    %c0_148 = arith.constant 0 : index
    %120 = vector.load %arg2[%c1_146, %c0_147, %c0_148] : memref<9x128x128xbf16, #tpu.memory_space<vmem>>, vector<1x128x128xbf16>
    %121 = vector.shape_cast %120 : vector<1x128x128xbf16> to vector<128x128xbf16>
    %cst_149 = arith.constant dense<0.000000e+00> : vector<98x128xf32>
    %122 = tpu.matmul %119, %121, %cst_149 {dimension_numbers = #tpu.dot_dimension_numbers<[1], [0], [0], [1], [0, 0, 1, 1], [], []>} : vector<98x128xbf16>, vector<128x128xbf16>, vector<98x128xf32> -> vector<98x128xf32>
    %123 = arith.addf %117, %122 : vector<98x128xf32>
    %c0_150 = arith.constant 0 : index
    %c6_151 = arith.constant 6 : index
    %c0_152 = arith.constant 0 : index
    %c0_153 = arith.constant 0 : index
    %124 = vector.load %arg1[%c0_150, %c6_151, %c0_152, %c0_153] : memref<1x16x98x128xbf16, #tpu.memory_space<vmem>>, vector<1x1x98x128xbf16>
    %125 = vector.shape_cast %124 : vector<1x1x98x128xbf16> to vector<98x128xbf16>
    %c2_154 = arith.constant 2 : index
    %c0_155 = arith.constant 0 : index
    %c0_156 = arith.constant 0 : index
    %126 = vector.load %arg2[%c2_154, %c0_155, %c0_156] : memref<9x128x128xbf16, #tpu.memory_space<vmem>>, vector<1x128x128xbf16>
    %127 = vector.shape_cast %126 : vector<1x128x128xbf16> to vector<128x128xbf16>
    %cst_157 = arith.constant dense<0.000000e+00> : vector<98x128xf32>
    %128 = tpu.matmul %125, %127, %cst_157 {dimension_numbers = #tpu.dot_dimension_numbers<[1], [0], [0], [1], [0, 0, 1, 1], [], []>} : vector<98x128xbf16>, vector<128x128xbf16>, vector<98x128xf32> -> vector<98x128xf32>
    %129 = arith.addf %123, %128 : vector<98x128xf32>
    %c0_158 = arith.constant 0 : index
    %c8_159 = arith.constant 8 : index
    %c0_160 = arith.constant 0 : index
    %c0_161 = arith.constant 0 : index
    %130 = vector.load %arg1[%c0_158, %c8_159, %c0_160, %c0_161] : memref<1x16x98x128xbf16, #tpu.memory_space<vmem>>, vector<1x1x98x128xbf16>
    %131 = vector.shape_cast %130 : vector<1x1x98x128xbf16> to vector<98x128xbf16>
    %c3_162 = arith.constant 3 : index
    %c0_163 = arith.constant 0 : index
    %c0_164 = arith.constant 0 : index
    %132 = vector.load %arg2[%c3_162, %c0_163, %c0_164] : memref<9x128x128xbf16, #tpu.memory_space<vmem>>, vector<1x128x128xbf16>
    %133 = vector.shape_cast %132 : vector<1x128x128xbf16> to vector<128x128xbf16>
    %cst_165 = arith.constant dense<0.000000e+00> : vector<98x128xf32>
    %134 = tpu.matmul %131, %133, %cst_165 {dimension_numbers = #tpu.dot_dimension_numbers<[1], [0], [0], [1], [0, 0, 1, 1], [], []>} : vector<98x128xbf16>, vector<128x128xbf16>, vector<98x128xf32> -> vector<98x128xf32>
    %135 = arith.addf %129, %134 : vector<98x128xf32>
    %c0_166 = arith.constant 0 : index
    %c9_167 = arith.constant 9 : index
    %c0_168 = arith.constant 0 : index
    %c0_169 = arith.constant 0 : index
    %136 = vector.load %arg1[%c0_166, %c9_167, %c0_168, %c0_169] : memref<1x16x98x128xbf16, #tpu.memory_space<vmem>>, vector<1x1x98x128xbf16>
    %137 = vector.shape_cast %136 : vector<1x1x98x128xbf16> to vector<98x128xbf16>
    %c4_170 = arith.constant 4 : index
    %c0_171 = arith.constant 0 : index
    %c0_172 = arith.constant 0 : index
    %138 = vector.load %arg2[%c4_170, %c0_171, %c0_172] : memref<9x128x128xbf16, #tpu.memory_space<vmem>>, vector<1x128x128xbf16>
    %139 = vector.shape_cast %138 : vector<1x128x128xbf16> to vector<128x128xbf16>
    %cst_173 = arith.constant dense<0.000000e+00> : vector<98x128xf32>
    %140 = tpu.matmul %137, %139, %cst_173 {dimension_numbers = #tpu.dot_dimension_numbers<[1], [0], [0], [1], [0, 0, 1, 1], [], []>} : vector<98x128xbf16>, vector<128x128xbf16>, vector<98x128xf32> -> vector<98x128xf32>
    %141 = arith.addf %135, %140 : vector<98x128xf32>
    %c0_174 = arith.constant 0 : index
    %c10_175 = arith.constant 10 : index
    %c0_176 = arith.constant 0 : index
    %c0_177 = arith.constant 0 : index
    %142 = vector.load %arg1[%c0_174, %c10_175, %c0_176, %c0_177] : memref<1x16x98x128xbf16, #tpu.memory_space<vmem>>, vector<1x1x98x128xbf16>
    %143 = vector.shape_cast %142 : vector<1x1x98x128xbf16> to vector<98x128xbf16>
    %c5_178 = arith.constant 5 : index
    %c0_179 = arith.constant 0 : index
    %c0_180 = arith.constant 0 : index
    %144 = vector.load %arg2[%c5_178, %c0_179, %c0_180] : memref<9x128x128xbf16, #tpu.memory_space<vmem>>, vector<1x128x128xbf16>
    %145 = vector.shape_cast %144 : vector<1x128x128xbf16> to vector<128x128xbf16>
    %cst_181 = arith.constant dense<0.000000e+00> : vector<98x128xf32>
    %146 = tpu.matmul %143, %145, %cst_181 {dimension_numbers = #tpu.dot_dimension_numbers<[1], [0], [0], [1], [0, 0, 1, 1], [], []>} : vector<98x128xbf16>, vector<128x128xbf16>, vector<98x128xf32> -> vector<98x128xf32>
    %147 = arith.addf %141, %146 : vector<98x128xf32>
    %c0_182 = arith.constant 0 : index
    %c12 = arith.constant 12 : index
    %c0_183 = arith.constant 0 : index
    %c0_184 = arith.constant 0 : index
    %148 = vector.load %arg1[%c0_182, %c12, %c0_183, %c0_184] : memref<1x16x98x128xbf16, #tpu.memory_space<vmem>>, vector<1x1x98x128xbf16>
    %149 = vector.shape_cast %148 : vector<1x1x98x128xbf16> to vector<98x128xbf16>
    %c6_185 = arith.constant 6 : index
    %c0_186 = arith.constant 0 : index
    %c0_187 = arith.constant 0 : index
    %150 = vector.load %arg2[%c6_185, %c0_186, %c0_187] : memref<9x128x128xbf16, #tpu.memory_space<vmem>>, vector<1x128x128xbf16>
    %151 = vector.shape_cast %150 : vector<1x128x128xbf16> to vector<128x128xbf16>
    %cst_188 = arith.constant dense<0.000000e+00> : vector<98x128xf32>
    %152 = tpu.matmul %149, %151, %cst_188 {dimension_numbers = #tpu.dot_dimension_numbers<[1], [0], [0], [1], [0, 0, 1, 1], [], []>} : vector<98x128xbf16>, vector<128x128xbf16>, vector<98x128xf32> -> vector<98x128xf32>
    %153 = arith.addf %147, %152 : vector<98x128xf32>
    %c0_189 = arith.constant 0 : index
    %c13 = arith.constant 13 : index
    %c0_190 = arith.constant 0 : index
    %c0_191 = arith.constant 0 : index
    %154 = vector.load %arg1[%c0_189, %c13, %c0_190, %c0_191] : memref<1x16x98x128xbf16, #tpu.memory_space<vmem>>, vector<1x1x98x128xbf16>
    %155 = vector.shape_cast %154 : vector<1x1x98x128xbf16> to vector<98x128xbf16>
    %c7_192 = arith.constant 7 : index
    %c0_193 = arith.constant 0 : index
    %c0_194 = arith.constant 0 : index
    %156 = vector.load %arg2[%c7_192, %c0_193, %c0_194] : memref<9x128x128xbf16, #tpu.memory_space<vmem>>, vector<1x128x128xbf16>
    %157 = vector.shape_cast %156 : vector<1x128x128xbf16> to vector<128x128xbf16>
    %cst_195 = arith.constant dense<0.000000e+00> : vector<98x128xf32>
    %158 = tpu.matmul %155, %157, %cst_195 {dimension_numbers = #tpu.dot_dimension_numbers<[1], [0], [0], [1], [0, 0, 1, 1], [], []>} : vector<98x128xbf16>, vector<128x128xbf16>, vector<98x128xf32> -> vector<98x128xf32>
    %159 = arith.addf %153, %158 : vector<98x128xf32>
    %c0_196 = arith.constant 0 : index
    %c14 = arith.constant 14 : index
    %c0_197 = arith.constant 0 : index
    %c0_198 = arith.constant 0 : index
    %160 = vector.load %arg1[%c0_196, %c14, %c0_197, %c0_198] : memref<1x16x98x128xbf16, #tpu.memory_space<vmem>>, vector<1x1x98x128xbf16>
    %161 = vector.shape_cast %160 : vector<1x1x98x128xbf16> to vector<98x128xbf16>
    %c8_199 = arith.constant 8 : index
    %c0_200 = arith.constant 0 : index
    %c0_201 = arith.constant 0 : index
    %162 = vector.load %arg2[%c8_199, %c0_200, %c0_201] : memref<9x128x128xbf16, #tpu.memory_space<vmem>>, vector<1x128x128xbf16>
    %163 = vector.shape_cast %162 : vector<1x128x128xbf16> to vector<128x128xbf16>
    %cst_202 = arith.constant dense<0.000000e+00> : vector<98x128xf32>
    %164 = tpu.matmul %161, %163, %cst_202 {dimension_numbers = #tpu.dot_dimension_numbers<[1], [0], [0], [1], [0, 0, 1, 1], [], []>} : vector<98x128xbf16>, vector<128x128xbf16>, vector<98x128xf32> -> vector<98x128xf32>
    %165 = arith.addf %159, %164 : vector<98x128xf32>
    %166 = arith.maximumf %110, %165 : vector<98x128xf32>
    %cst_203 = arith.constant 0.000000e+00 : f32
    %167 = vector.broadcast %cst_203 : f32 to vector<98x128xf32>
    %c0_204 = arith.constant 0 : index
    %c5_205 = arith.constant 5 : index
    %c0_206 = arith.constant 0 : index
    %c0_207 = arith.constant 0 : index
    %168 = vector.load %arg1[%c0_204, %c5_205, %c0_206, %c0_207] : memref<1x16x98x128xbf16, #tpu.memory_space<vmem>>, vector<1x1x98x128xbf16>
    %169 = vector.shape_cast %168 : vector<1x1x98x128xbf16> to vector<98x128xbf16>
    %c0_208 = arith.constant 0 : index
    %c0_209 = arith.constant 0 : index
    %c0_210 = arith.constant 0 : index
    %170 = vector.load %arg2[%c0_208, %c0_209, %c0_210] : memref<9x128x128xbf16, #tpu.memory_space<vmem>>, vector<1x128x128xbf16>
    %171 = vector.shape_cast %170 : vector<1x128x128xbf16> to vector<128x128xbf16>
    %cst_211 = arith.constant dense<0.000000e+00> : vector<98x128xf32>
    %172 = tpu.matmul %169, %171, %cst_211 {dimension_numbers = #tpu.dot_dimension_numbers<[1], [0], [0], [1], [0, 0, 1, 1], [], []>} : vector<98x128xbf16>, vector<128x128xbf16>, vector<98x128xf32> -> vector<98x128xf32>
    %173 = arith.addf %167, %172 : vector<98x128xf32>
    %c0_212 = arith.constant 0 : index
    %c6_213 = arith.constant 6 : index
    %c0_214 = arith.constant 0 : index
    %c0_215 = arith.constant 0 : index
    %174 = vector.load %arg1[%c0_212, %c6_213, %c0_214, %c0_215] : memref<1x16x98x128xbf16, #tpu.memory_space<vmem>>, vector<1x1x98x128xbf16>
    %175 = vector.shape_cast %174 : vector<1x1x98x128xbf16> to vector<98x128xbf16>
    %c1_216 = arith.constant 1 : index
    %c0_217 = arith.constant 0 : index
    %c0_218 = arith.constant 0 : index
    %176 = vector.load %arg2[%c1_216, %c0_217, %c0_218] : memref<9x128x128xbf16, #tpu.memory_space<vmem>>, vector<1x128x128xbf16>
    %177 = vector.shape_cast %176 : vector<1x128x128xbf16> to vector<128x128xbf16>
    %cst_219 = arith.constant dense<0.000000e+00> : vector<98x128xf32>
    %178 = tpu.matmul %175, %177, %cst_219 {dimension_numbers = #tpu.dot_dimension_numbers<[1], [0], [0], [1], [0, 0, 1, 1], [], []>} : vector<98x128xbf16>, vector<128x128xbf16>, vector<98x128xf32> -> vector<98x128xf32>
    %179 = arith.addf %173, %178 : vector<98x128xf32>
    %c0_220 = arith.constant 0 : index
    %c7_221 = arith.constant 7 : index
    %c0_222 = arith.constant 0 : index
    %c0_223 = arith.constant 0 : index
    %180 = vector.load %arg1[%c0_220, %c7_221, %c0_222, %c0_223] : memref<1x16x98x128xbf16, #tpu.memory_space<vmem>>, vector<1x1x98x128xbf16>
    %181 = vector.shape_cast %180 : vector<1x1x98x128xbf16> to vector<98x128xbf16>
    %c2_224 = arith.constant 2 : index
    %c0_225 = arith.constant 0 : index
    %c0_226 = arith.constant 0 : index
    %182 = vector.load %arg2[%c2_224, %c0_225, %c0_226] : memref<9x128x128xbf16, #tpu.memory_space<vmem>>, vector<1x128x128xbf16>
    %183 = vector.shape_cast %182 : vector<1x128x128xbf16> to vector<128x128xbf16>
    %cst_227 = arith.constant dense<0.000000e+00> : vector<98x128xf32>
    %184 = tpu.matmul %181, %183, %cst_227 {dimension_numbers = #tpu.dot_dimension_numbers<[1], [0], [0], [1], [0, 0, 1, 1], [], []>} : vector<98x128xbf16>, vector<128x128xbf16>, vector<98x128xf32> -> vector<98x128xf32>
    %185 = arith.addf %179, %184 : vector<98x128xf32>
    %c0_228 = arith.constant 0 : index
    %c9_229 = arith.constant 9 : index
    %c0_230 = arith.constant 0 : index
    %c0_231 = arith.constant 0 : index
    %186 = vector.load %arg1[%c0_228, %c9_229, %c0_230, %c0_231] : memref<1x16x98x128xbf16, #tpu.memory_space<vmem>>, vector<1x1x98x128xbf16>
    %187 = vector.shape_cast %186 : vector<1x1x98x128xbf16> to vector<98x128xbf16>
    %c3_232 = arith.constant 3 : index
    %c0_233 = arith.constant 0 : index
    %c0_234 = arith.constant 0 : index
    %188 = vector.load %arg2[%c3_232, %c0_233, %c0_234] : memref<9x128x128xbf16, #tpu.memory_space<vmem>>, vector<1x128x128xbf16>
    %189 = vector.shape_cast %188 : vector<1x128x128xbf16> to vector<128x128xbf16>
    %cst_235 = arith.constant dense<0.000000e+00> : vector<98x128xf32>
    %190 = tpu.matmul %187, %189, %cst_235 {dimension_numbers = #tpu.dot_dimension_numbers<[1], [0], [0], [1], [0, 0, 1, 1], [], []>} : vector<98x128xbf16>, vector<128x128xbf16>, vector<98x128xf32> -> vector<98x128xf32>
    %191 = arith.addf %185, %190 : vector<98x128xf32>
    %c0_236 = arith.constant 0 : index
    %c10_237 = arith.constant 10 : index
    %c0_238 = arith.constant 0 : index
    %c0_239 = arith.constant 0 : index
    %192 = vector.load %arg1[%c0_236, %c10_237, %c0_238, %c0_239] : memref<1x16x98x128xbf16, #tpu.memory_space<vmem>>, vector<1x1x98x128xbf16>
    %193 = vector.shape_cast %192 : vector<1x1x98x128xbf16> to vector<98x128xbf16>
    %c4_240 = arith.constant 4 : index
    %c0_241 = arith.constant 0 : index
    %c0_242 = arith.constant 0 : index
    %194 = vector.load %arg2[%c4_240, %c0_241, %c0_242] : memref<9x128x128xbf16, #tpu.memory_space<vmem>>, vector<1x128x128xbf16>
    %195 = vector.shape_cast %194 : vector<1x128x128xbf16> to vector<128x128xbf16>
    %cst_243 = arith.constant dense<0.000000e+00> : vector<98x128xf32>
    %196 = tpu.matmul %193, %195, %cst_243 {dimension_numbers = #tpu.dot_dimension_numbers<[1], [0], [0], [1], [0, 0, 1, 1], [], []>} : vector<98x128xbf16>, vector<128x128xbf16>, vector<98x128xf32> -> vector<98x128xf32>
    %197 = arith.addf %191, %196 : vector<98x128xf32>
    %c0_244 = arith.constant 0 : index
    %c11_245 = arith.constant 11 : index
    %c0_246 = arith.constant 0 : index
    %c0_247 = arith.constant 0 : index
    %198 = vector.load %arg1[%c0_244, %c11_245, %c0_246, %c0_247] : memref<1x16x98x128xbf16, #tpu.memory_space<vmem>>, vector<1x1x98x128xbf16>
    %199 = vector.shape_cast %198 : vector<1x1x98x128xbf16> to vector<98x128xbf16>
    %c5_248 = arith.constant 5 : index
    %c0_249 = arith.constant 0 : index
    %c0_250 = arith.constant 0 : index
    %200 = vector.load %arg2[%c5_248, %c0_249, %c0_250] : memref<9x128x128xbf16, #tpu.memory_space<vmem>>, vector<1x128x128xbf16>
    %201 = vector.shape_cast %200 : vector<1x128x128xbf16> to vector<128x128xbf16>
    %cst_251 = arith.constant dense<0.000000e+00> : vector<98x128xf32>
    %202 = tpu.matmul %199, %201, %cst_251 {dimension_numbers = #tpu.dot_dimension_numbers<[1], [0], [0], [1], [0, 0, 1, 1], [], []>} : vector<98x128xbf16>, vector<128x128xbf16>, vector<98x128xf32> -> vector<98x128xf32>
    %203 = arith.addf %197, %202 : vector<98x128xf32>
    %c0_252 = arith.constant 0 : index
    %c13_253 = arith.constant 13 : index
    %c0_254 = arith.constant 0 : index
    %c0_255 = arith.constant 0 : index
    %204 = vector.load %arg1[%c0_252, %c13_253, %c0_254, %c0_255] : memref<1x16x98x128xbf16, #tpu.memory_space<vmem>>, vector<1x1x98x128xbf16>
    %205 = vector.shape_cast %204 : vector<1x1x98x128xbf16> to vector<98x128xbf16>
    %c6_256 = arith.constant 6 : index
    %c0_257 = arith.constant 0 : index
    %c0_258 = arith.constant 0 : index
    %206 = vector.load %arg2[%c6_256, %c0_257, %c0_258] : memref<9x128x128xbf16, #tpu.memory_space<vmem>>, vector<1x128x128xbf16>
    %207 = vector.shape_cast %206 : vector<1x128x128xbf16> to vector<128x128xbf16>
    %cst_259 = arith.constant dense<0.000000e+00> : vector<98x128xf32>
    %208 = tpu.matmul %205, %207, %cst_259 {dimension_numbers = #tpu.dot_dimension_numbers<[1], [0], [0], [1], [0, 0, 1, 1], [], []>} : vector<98x128xbf16>, vector<128x128xbf16>, vector<98x128xf32> -> vector<98x128xf32>
    %209 = arith.addf %203, %208 : vector<98x128xf32>
    %c0_260 = arith.constant 0 : index
    %c14_261 = arith.constant 14 : index
    %c0_262 = arith.constant 0 : index
    %c0_263 = arith.constant 0 : index
    %210 = vector.load %arg1[%c0_260, %c14_261, %c0_262, %c0_263] : memref<1x16x98x128xbf16, #tpu.memory_space<vmem>>, vector<1x1x98x128xbf16>
    %211 = vector.shape_cast %210 : vector<1x1x98x128xbf16> to vector<98x128xbf16>
    %c7_264 = arith.constant 7 : index
    %c0_265 = arith.constant 0 : index
    %c0_266 = arith.constant 0 : index
    %212 = vector.load %arg2[%c7_264, %c0_265, %c0_266] : memref<9x128x128xbf16, #tpu.memory_space<vmem>>, vector<1x128x128xbf16>
    %213 = vector.shape_cast %212 : vector<1x128x128xbf16> to vector<128x128xbf16>
    %cst_267 = arith.constant dense<0.000000e+00> : vector<98x128xf32>
    %214 = tpu.matmul %211, %213, %cst_267 {dimension_numbers = #tpu.dot_dimension_numbers<[1], [0], [0], [1], [0, 0, 1, 1], [], []>} : vector<98x128xbf16>, vector<128x128xbf16>, vector<98x128xf32> -> vector<98x128xf32>
    %215 = arith.addf %209, %214 : vector<98x128xf32>
    %c0_268 = arith.constant 0 : index
    %c15 = arith.constant 15 : index
    %c0_269 = arith.constant 0 : index
    %c0_270 = arith.constant 0 : index
    %216 = vector.load %arg1[%c0_268, %c15, %c0_269, %c0_270] : memref<1x16x98x128xbf16, #tpu.memory_space<vmem>>, vector<1x1x98x128xbf16>
    %217 = vector.shape_cast %216 : vector<1x1x98x128xbf16> to vector<98x128xbf16>
    %c8_271 = arith.constant 8 : index
    %c0_272 = arith.constant 0 : index
    %c0_273 = arith.constant 0 : index
    %218 = vector.load %arg2[%c8_271, %c0_272, %c0_273] : memref<9x128x128xbf16, #tpu.memory_space<vmem>>, vector<1x128x128xbf16>
    %219 = vector.shape_cast %218 : vector<1x128x128xbf16> to vector<128x128xbf16>
    %cst_274 = arith.constant dense<0.000000e+00> : vector<98x128xf32>
    %220 = tpu.matmul %217, %219, %cst_274 {dimension_numbers = #tpu.dot_dimension_numbers<[1], [0], [0], [1], [0, 0, 1, 1], [], []>} : vector<98x128xbf16>, vector<128x128xbf16>, vector<98x128xf32> -> vector<98x128xf32>
    %221 = arith.addf %215, %220 : vector<98x128xf32>
    %222 = arith.maximumf %166, %221 : vector<98x128xf32>
    %c0_275 = arith.constant 0 : index
    %c0_276 = arith.constant 0 : index
    %223 = vector.load %arg3[%c0_275, %c0_276] : memref<1x128xf32, #tpu.memory_space<vmem>>, vector<1x128xf32>
    %224 = vector.broadcast %223 : vector<1x128xf32> to vector<98x128xf32>
    %225 = arith.addf %222, %224 : vector<98x128xf32>
    %cst_277 = arith.constant 0.000000e+00 : f32
    %226 = vector.broadcast %cst_277 : f32 to vector<98x128xf32>
    %227 = arith.maximumf %225, %226 : vector<98x128xf32>
    %228 = arith.truncf %227 : vector<98x128xf32> to vector<98x128xbf16>
    %c0_278 = arith.constant 0 : index
    %c0_279 = arith.constant 0 : index
    %c0_280 = arith.constant 0 : index
    %229 = vector.load %arg4[%c0_278, %c0_279, %c0_280] : memref<1x98x128xbf16, #tpu.memory_space<vmem>>, vector<1x98x128xbf16>
    %230 = vector.shape_cast %229 : vector<1x98x128xbf16> to vector<98x128xbf16>
    %231 = vector.shape_cast %228 : vector<98x128xbf16> to vector<1x98x128xbf16>
    tpu.vector_store %arg4[%c0_278, %c0_279, %c0_280], %231 {strides = array<i32>} : memref<1x98x128xbf16, #tpu.memory_space<vmem>>, vector<1x98x128xbf16>,
    return
  }
  func.func @transform_0(%arg0: i32) -> (i32, i32, i32, i32) {
    %c0_i32 = arith.constant 0 : i32
    %c0_i32_0 = arith.constant 0 : i32
    %c0_i32_1 = arith.constant 0 : i32
    %c0_i32_2 = arith.constant 0 : i32
    return %arg0, %c0_i32, %c0_i32_0, %c0_i32_1 : i32, i32, i32, i32
  }
  func.func @transform_1(%arg0: i32) -> (i32, i32, i32) {
    %c0_i32 = arith.constant 0 : i32
    %c0_i32_0 = arith.constant 0 : i32
    %c0_i32_1 = arith.constant 0 : i32
    %c0_i32_2 = arith.constant 0 : i32
    return %c0_i32, %c0_i32_0, %c0_i32_1 : i32, i32, i32
  }
  func.func @transform_2(%arg0: i32) -> (i32, i32) {
    %c0_i32 = arith.constant 0 : i32
    %c0_i32_0 = arith.constant 0 : i32
    %c0_i32_1 = arith.constant 0 : i32
    return %c0_i32, %c0_i32_0 : i32, i32
  }
  func.func @transform_3(%arg0: i32) -> (i32, i32, i32) {
    %c0_i32 = arith.constant 0 : i32
    %c0_i32_0 = arith.constant 0 : i32
    %c0_i32_1 = arith.constant 0 : i32
    return %arg0, %c0_i32, %c0_i32_0 : i32, i32, i32
  }
}

module attributes {stable_mosaic.version = 11 : i64} {
  func.func @_mlp_kernel(%arg0: i32, %arg1: memref<2x1152xbf16, #tpu.memory_space<vmem>>, %arg2: memref<1152x640xbf16, #tpu.memory_space<vmem>>, %arg3: memref<1x640xf32, #tpu.memory_space<vmem>>, %arg4: memref<640x128xbf16, #tpu.memory_space<vmem>>, %arg5: memref<1x128xf32, #tpu.memory_space<vmem>>, %arg6: memref<2x128xf32, #tpu.memory_space<vmem>>) attributes {dimension_semantics = [#tpu.dimension_semantics<parallel>], iteration_bounds = array<i64: 1>, scalar_prefetch = 0 : i64, scratch_operands = 0 : i64, tpu.core_type = #tpu.core_type<tc>, window_params = [{transform_indices = @transform_0, window_bounds = array<i64: 2, 1152>}, {pipeline_mode = #tpu.pipeline_mode<synchronous>, transform_indices = @transform_1, window_bounds = array<i64: 1152, 640>}, {pipeline_mode = #tpu.pipeline_mode<synchronous>, transform_indices = @transform_2, window_bounds = array<i64: 1, 640>}, {pipeline_mode = #tpu.pipeline_mode<synchronous>, transform_indices = @transform_3, window_bounds = array<i64: 640, 128>}, {pipeline_mode = #tpu.pipeline_mode<synchronous>, transform_indices = @transform_4, window_bounds = array<i64: 1, 128>}, {transform_indices = @transform_5, window_bounds = array<i64: 2, 128>}]} {
    %c0 = arith.constant 0 : index
    %c0_0 = arith.constant 0 : index
    %0 = vector.load %arg1[%c0, %c0_0] : memref<2x1152xbf16, #tpu.memory_space<vmem>>, vector<2x1152xbf16>
    %c0_1 = arith.constant 0 : index
    %c0_2 = arith.constant 0 : index
    %1 = vector.load %arg2[%c0_1, %c0_2] : memref<1152x640xbf16, #tpu.memory_space<vmem>>, vector<1152x640xbf16>
    %cst = arith.constant dense<0.000000e+00> : vector<2x640xf32>
    %2 = tpu.matmul %0, %1, %cst {dimension_numbers = #tpu.dot_dimension_numbers<[1], [0], [0], [1], [0, 0, 1, 1], [], []>} : vector<2x1152xbf16>, vector<1152x640xbf16>, vector<2x640xf32> -> vector<2x640xf32>
    %c0_3 = arith.constant 0 : index
    %c0_4 = arith.constant 0 : index
    %3 = vector.load %arg3[%c0_3, %c0_4] : memref<1x640xf32, #tpu.memory_space<vmem>>, vector<1x640xf32>
    %4 = vector.broadcast %3 : vector<1x640xf32> to vector<2x640xf32>
    %5 = arith.addf %2, %4 : vector<2x640xf32>
    %cst_5 = arith.constant 0.000000e+00 : f32
    %6 = vector.broadcast %cst_5 : f32 to vector<2x640xf32>
    %7 = arith.maximumf %5, %6 : vector<2x640xf32>
    %8 = arith.truncf %7 : vector<2x640xf32> to vector<2x640xbf16>
    %c0_6 = arith.constant 0 : index
    %c0_7 = arith.constant 0 : index
    %9 = vector.load %arg4[%c0_6, %c0_7] : memref<640x128xbf16, #tpu.memory_space<vmem>>, vector<640x128xbf16>
    %cst_8 = arith.constant dense<0.000000e+00> : vector<2x128xf32>
    %10 = tpu.matmul %8, %9, %cst_8 {dimension_numbers = #tpu.dot_dimension_numbers<[1], [0], [0], [1], [0, 0, 1, 1], [], []>} : vector<2x640xbf16>, vector<640x128xbf16>, vector<2x128xf32> -> vector<2x128xf32>
    %c0_9 = arith.constant 0 : index
    %c0_10 = arith.constant 0 : index
    %11 = vector.load %arg5[%c0_9, %c0_10] : memref<1x128xf32, #tpu.memory_space<vmem>>, vector<1x128xf32>
    %12 = vector.broadcast %11 : vector<1x128xf32> to vector<2x128xf32>
    %13 = arith.addf %10, %12 : vector<2x128xf32>
    %c0_11 = arith.constant 0 : index
    %c0_12 = arith.constant 0 : index
    %14 = vector.load %arg6[%c0_11, %c0_12] : memref<2x128xf32, #tpu.memory_space<vmem>>, vector<2x128xf32>
    tpu.vector_store %arg6[%c0_11, %c0_12], %13 {strides = array<i32>} : memref<2x128xf32, #tpu.memory_space<vmem>>, vector<2x128xf32>,
    return
  }
  func.func @transform_0(%arg0: i32) -> (i32, i32) {
    %c0_i32 = arith.constant 0 : i32
    %c0_i32_0 = arith.constant 0 : i32
    return %arg0, %c0_i32 : i32, i32
  }
  func.func @transform_1(%arg0: i32) -> (i32, i32) {
    %c0_i32 = arith.constant 0 : i32
    %c0_i32_0 = arith.constant 0 : i32
    %c0_i32_1 = arith.constant 0 : i32
    return %c0_i32, %c0_i32_0 : i32, i32
  }
  func.func @transform_2(%arg0: i32) -> (i32, i32) {
    %c0_i32 = arith.constant 0 : i32
    %c0_i32_0 = arith.constant 0 : i32
    %c0_i32_1 = arith.constant 0 : i32
    return %c0_i32, %c0_i32_0 : i32, i32
  }
  func.func @transform_3(%arg0: i32) -> (i32, i32) {
    %c0_i32 = arith.constant 0 : i32
    %c0_i32_0 = arith.constant 0 : i32
    %c0_i32_1 = arith.constant 0 : i32
    return %c0_i32, %c0_i32_0 : i32, i32
  }
  func.func @transform_4(%arg0: i32) -> (i32, i32) {
    %c0_i32 = arith.constant 0 : i32
    %c0_i32_0 = arith.constant 0 : i32
    %c0_i32_1 = arith.constant 0 : i32
    return %c0_i32, %c0_i32_0 : i32, i32
  }
  func.func @transform_5(%arg0: i32) -> (i32, i32) {
    %c0_i32 = arith.constant 0 : i32
    %c0_i32_0 = arith.constant 0 : i32
    return %arg0, %c0_i32 : i32, i32
  }
}

module attributes {stable_mosaic.version = 11 : i64} {
  func.func @_conv_pool_kernel(%arg0: i32, %arg1: memref<1x16x18x128xbf16, #tpu.memory_space<vmem>>, %arg2: memref<9x128x128xbf16, #tpu.memory_space<vmem>>, %arg3: memref<1x128xf32, #tpu.memory_space<vmem>>, %arg4: memref<1x18x128xbf16, #tpu.memory_space<vmem>>) attributes {dimension_semantics = [#tpu.dimension_semantics<parallel>], iteration_bounds = array<i64: 1>, scalar_prefetch = 0 : i64, scratch_operands = 0 : i64, tpu.core_type = #tpu.core_type<tc>, window_params = [{transform_indices = @transform_0, window_bounds = array<i64: 1, 16, 18, 128>}, {pipeline_mode = #tpu.pipeline_mode<synchronous>, transform_indices = @transform_1, window_bounds = array<i64: 9, 128, 128>}, {pipeline_mode = #tpu.pipeline_mode<synchronous>, transform_indices = @transform_2, window_bounds = array<i64: 1, 128>}, {transform_indices = @transform_3, window_bounds = array<i64: 1, 18, 128>}]} {
    %cst = arith.constant 0.000000e+00 : f32
    %0 = vector.broadcast %cst : f32 to vector<18x128xf32>
    %c0 = arith.constant 0 : index
    %c0_0 = arith.constant 0 : index
    %c0_1 = arith.constant 0 : index
    %c0_2 = arith.constant 0 : index
    %1 = vector.load %arg1[%c0, %c0_0, %c0_1, %c0_2] : memref<1x16x18x128xbf16, #tpu.memory_space<vmem>>, vector<1x1x18x128xbf16>
    %2 = vector.shape_cast %1 : vector<1x1x18x128xbf16> to vector<18x128xbf16>
    %c0_3 = arith.constant 0 : index
    %c0_4 = arith.constant 0 : index
    %c0_5 = arith.constant 0 : index
    %3 = vector.load %arg2[%c0_3, %c0_4, %c0_5] : memref<9x128x128xbf16, #tpu.memory_space<vmem>>, vector<1x128x128xbf16>
    %4 = vector.shape_cast %3 : vector<1x128x128xbf16> to vector<128x128xbf16>
    %cst_6 = arith.constant dense<0.000000e+00> : vector<18x128xf32>
    %5 = tpu.matmul %2, %4, %cst_6 {dimension_numbers = #tpu.dot_dimension_numbers<[1], [0], [0], [1], [0, 0, 1, 1], [], []>} : vector<18x128xbf16>, vector<128x128xbf16>, vector<18x128xf32> -> vector<18x128xf32>
    %6 = arith.addf %0, %5 : vector<18x128xf32>
    %c0_7 = arith.constant 0 : index
    %c1 = arith.constant 1 : index
    %c0_8 = arith.constant 0 : index
    %c0_9 = arith.constant 0 : index
    %7 = vector.load %arg1[%c0_7, %c1, %c0_8, %c0_9] : memref<1x16x18x128xbf16, #tpu.memory_space<vmem>>, vector<1x1x18x128xbf16>
    %8 = vector.shape_cast %7 : vector<1x1x18x128xbf16> to vector<18x128xbf16>
    %c1_10 = arith.constant 1 : index
    %c0_11 = arith.constant 0 : index
    %c0_12 = arith.constant 0 : index
    %9 = vector.load %arg2[%c1_10, %c0_11, %c0_12] : memref<9x128x128xbf16, #tpu.memory_space<vmem>>, vector<1x128x128xbf16>
    %10 = vector.shape_cast %9 : vector<1x128x128xbf16> to vector<128x128xbf16>
    %cst_13 = arith.constant dense<0.000000e+00> : vector<18x128xf32>
    %11 = tpu.matmul %8, %10, %cst_13 {dimension_numbers = #tpu.dot_dimension_numbers<[1], [0], [0], [1], [0, 0, 1, 1], [], []>} : vector<18x128xbf16>, vector<128x128xbf16>, vector<18x128xf32> -> vector<18x128xf32>
    %12 = arith.addf %6, %11 : vector<18x128xf32>
    %c0_14 = arith.constant 0 : index
    %c2 = arith.constant 2 : index
    %c0_15 = arith.constant 0 : index
    %c0_16 = arith.constant 0 : index
    %13 = vector.load %arg1[%c0_14, %c2, %c0_15, %c0_16] : memref<1x16x18x128xbf16, #tpu.memory_space<vmem>>, vector<1x1x18x128xbf16>
    %14 = vector.shape_cast %13 : vector<1x1x18x128xbf16> to vector<18x128xbf16>
    %c2_17 = arith.constant 2 : index
    %c0_18 = arith.constant 0 : index
    %c0_19 = arith.constant 0 : index
    %15 = vector.load %arg2[%c2_17, %c0_18, %c0_19] : memref<9x128x128xbf16, #tpu.memory_space<vmem>>, vector<1x128x128xbf16>
    %16 = vector.shape_cast %15 : vector<1x128x128xbf16> to vector<128x128xbf16>
    %cst_20 = arith.constant dense<0.000000e+00> : vector<18x128xf32>
    %17 = tpu.matmul %14, %16, %cst_20 {dimension_numbers = #tpu.dot_dimension_numbers<[1], [0], [0], [1], [0, 0, 1, 1], [], []>} : vector<18x128xbf16>, vector<128x128xbf16>, vector<18x128xf32> -> vector<18x128xf32>
    %18 = arith.addf %12, %17 : vector<18x128xf32>
    %c0_21 = arith.constant 0 : index
    %c4 = arith.constant 4 : index
    %c0_22 = arith.constant 0 : index
    %c0_23 = arith.constant 0 : index
    %19 = vector.load %arg1[%c0_21, %c4, %c0_22, %c0_23] : memref<1x16x18x128xbf16, #tpu.memory_space<vmem>>, vector<1x1x18x128xbf16>
    %20 = vector.shape_cast %19 : vector<1x1x18x128xbf16> to vector<18x128xbf16>
    %c3 = arith.constant 3 : index
    %c0_24 = arith.constant 0 : index
    %c0_25 = arith.constant 0 : index
    %21 = vector.load %arg2[%c3, %c0_24, %c0_25] : memref<9x128x128xbf16, #tpu.memory_space<vmem>>, vector<1x128x128xbf16>
    %22 = vector.shape_cast %21 : vector<1x128x128xbf16> to vector<128x128xbf16>
    %cst_26 = arith.constant dense<0.000000e+00> : vector<18x128xf32>
    %23 = tpu.matmul %20, %22, %cst_26 {dimension_numbers = #tpu.dot_dimension_numbers<[1], [0], [0], [1], [0, 0, 1, 1], [], []>} : vector<18x128xbf16>, vector<128x128xbf16>, vector<18x128xf32> -> vector<18x128xf32>
    %24 = arith.addf %18, %23 : vector<18x128xf32>
    %c0_27 = arith.constant 0 : index
    %c5 = arith.constant 5 : index
    %c0_28 = arith.constant 0 : index
    %c0_29 = arith.constant 0 : index
    %25 = vector.load %arg1[%c0_27, %c5, %c0_28, %c0_29] : memref<1x16x18x128xbf16, #tpu.memory_space<vmem>>, vector<1x1x18x128xbf16>
    %26 = vector.shape_cast %25 : vector<1x1x18x128xbf16> to vector<18x128xbf16>
    %c4_30 = arith.constant 4 : index
    %c0_31 = arith.constant 0 : index
    %c0_32 = arith.constant 0 : index
    %27 = vector.load %arg2[%c4_30, %c0_31, %c0_32] : memref<9x128x128xbf16, #tpu.memory_space<vmem>>, vector<1x128x128xbf16>
    %28 = vector.shape_cast %27 : vector<1x128x128xbf16> to vector<128x128xbf16>
    %cst_33 = arith.constant dense<0.000000e+00> : vector<18x128xf32>
    %29 = tpu.matmul %26, %28, %cst_33 {dimension_numbers = #tpu.dot_dimension_numbers<[1], [0], [0], [1], [0, 0, 1, 1], [], []>} : vector<18x128xbf16>, vector<128x128xbf16>, vector<18x128xf32> -> vector<18x128xf32>
    %30 = arith.addf %24, %29 : vector<18x128xf32>
    %c0_34 = arith.constant 0 : index
    %c6 = arith.constant 6 : index
    %c0_35 = arith.constant 0 : index
    %c0_36 = arith.constant 0 : index
    %31 = vector.load %arg1[%c0_34, %c6, %c0_35, %c0_36] : memref<1x16x18x128xbf16, #tpu.memory_space<vmem>>, vector<1x1x18x128xbf16>
    %32 = vector.shape_cast %31 : vector<1x1x18x128xbf16> to vector<18x128xbf16>
    %c5_37 = arith.constant 5 : index
    %c0_38 = arith.constant 0 : index
    %c0_39 = arith.constant 0 : index
    %33 = vector.load %arg2[%c5_37, %c0_38, %c0_39] : memref<9x128x128xbf16, #tpu.memory_space<vmem>>, vector<1x128x128xbf16>
    %34 = vector.shape_cast %33 : vector<1x128x128xbf16> to vector<128x128xbf16>
    %cst_40 = arith.constant dense<0.000000e+00> : vector<18x128xf32>
    %35 = tpu.matmul %32, %34, %cst_40 {dimension_numbers = #tpu.dot_dimension_numbers<[1], [0], [0], [1], [0, 0, 1, 1], [], []>} : vector<18x128xbf16>, vector<128x128xbf16>, vector<18x128xf32> -> vector<18x128xf32>
    %36 = arith.addf %30, %35 : vector<18x128xf32>
    %c0_41 = arith.constant 0 : index
    %c8 = arith.constant 8 : index
    %c0_42 = arith.constant 0 : index
    %c0_43 = arith.constant 0 : index
    %37 = vector.load %arg1[%c0_41, %c8, %c0_42, %c0_43] : memref<1x16x18x128xbf16, #tpu.memory_space<vmem>>, vector<1x1x18x128xbf16>
    %38 = vector.shape_cast %37 : vector<1x1x18x128xbf16> to vector<18x128xbf16>
    %c6_44 = arith.constant 6 : index
    %c0_45 = arith.constant 0 : index
    %c0_46 = arith.constant 0 : index
    %39 = vector.load %arg2[%c6_44, %c0_45, %c0_46] : memref<9x128x128xbf16, #tpu.memory_space<vmem>>, vector<1x128x128xbf16>
    %40 = vector.shape_cast %39 : vector<1x128x128xbf16> to vector<128x128xbf16>
    %cst_47 = arith.constant dense<0.000000e+00> : vector<18x128xf32>
    %41 = tpu.matmul %38, %40, %cst_47 {dimension_numbers = #tpu.dot_dimension_numbers<[1], [0], [0], [1], [0, 0, 1, 1], [], []>} : vector<18x128xbf16>, vector<128x128xbf16>, vector<18x128xf32> -> vector<18x128xf32>
    %42 = arith.addf %36, %41 : vector<18x128xf32>
    %c0_48 = arith.constant 0 : index
    %c9 = arith.constant 9 : index
    %c0_49 = arith.constant 0 : index
    %c0_50 = arith.constant 0 : index
    %43 = vector.load %arg1[%c0_48, %c9, %c0_49, %c0_50] : memref<1x16x18x128xbf16, #tpu.memory_space<vmem>>, vector<1x1x18x128xbf16>
    %44 = vector.shape_cast %43 : vector<1x1x18x128xbf16> to vector<18x128xbf16>
    %c7 = arith.constant 7 : index
    %c0_51 = arith.constant 0 : index
    %c0_52 = arith.constant 0 : index
    %45 = vector.load %arg2[%c7, %c0_51, %c0_52] : memref<9x128x128xbf16, #tpu.memory_space<vmem>>, vector<1x128x128xbf16>
    %46 = vector.shape_cast %45 : vector<1x128x128xbf16> to vector<128x128xbf16>
    %cst_53 = arith.constant dense<0.000000e+00> : vector<18x128xf32>
    %47 = tpu.matmul %44, %46, %cst_53 {dimension_numbers = #tpu.dot_dimension_numbers<[1], [0], [0], [1], [0, 0, 1, 1], [], []>} : vector<18x128xbf16>, vector<128x128xbf16>, vector<18x128xf32> -> vector<18x128xf32>
    %48 = arith.addf %42, %47 : vector<18x128xf32>
    %c0_54 = arith.constant 0 : index
    %c10 = arith.constant 10 : index
    %c0_55 = arith.constant 0 : index
    %c0_56 = arith.constant 0 : index
    %49 = vector.load %arg1[%c0_54, %c10, %c0_55, %c0_56] : memref<1x16x18x128xbf16, #tpu.memory_space<vmem>>, vector<1x1x18x128xbf16>
    %50 = vector.shape_cast %49 : vector<1x1x18x128xbf16> to vector<18x128xbf16>
    %c8_57 = arith.constant 8 : index
    %c0_58 = arith.constant 0 : index
    %c0_59 = arith.constant 0 : index
    %51 = vector.load %arg2[%c8_57, %c0_58, %c0_59] : memref<9x128x128xbf16, #tpu.memory_space<vmem>>, vector<1x128x128xbf16>
    %52 = vector.shape_cast %51 : vector<1x128x128xbf16> to vector<128x128xbf16>
    %cst_60 = arith.constant dense<0.000000e+00> : vector<18x128xf32>
    %53 = tpu.matmul %50, %52, %cst_60 {dimension_numbers = #tpu.dot_dimension_numbers<[1], [0], [0], [1], [0, 0, 1, 1], [], []>} : vector<18x128xbf16>, vector<128x128xbf16>, vector<18x128xf32> -> vector<18x128xf32>
    %54 = arith.addf %48, %53 : vector<18x128xf32>
    %cst_61 = arith.constant 0.000000e+00 : f32
    %55 = vector.broadcast %cst_61 : f32 to vector<18x128xf32>
    %c0_62 = arith.constant 0 : index
    %c1_63 = arith.constant 1 : index
    %c0_64 = arith.constant 0 : index
    %c0_65 = arith.constant 0 : index
    %56 = vector.load %arg1[%c0_62, %c1_63, %c0_64, %c0_65] : memref<1x16x18x128xbf16, #tpu.memory_space<vmem>>, vector<1x1x18x128xbf16>
    %57 = vector.shape_cast %56 : vector<1x1x18x128xbf16> to vector<18x128xbf16>
    %c0_66 = arith.constant 0 : index
    %c0_67 = arith.constant 0 : index
    %c0_68 = arith.constant 0 : index
    %58 = vector.load %arg2[%c0_66, %c0_67, %c0_68] : memref<9x128x128xbf16, #tpu.memory_space<vmem>>, vector<1x128x128xbf16>
    %59 = vector.shape_cast %58 : vector<1x128x128xbf16> to vector<128x128xbf16>
    %cst_69 = arith.constant dense<0.000000e+00> : vector<18x128xf32>
    %60 = tpu.matmul %57, %59, %cst_69 {dimension_numbers = #tpu.dot_dimension_numbers<[1], [0], [0], [1], [0, 0, 1, 1], [], []>} : vector<18x128xbf16>, vector<128x128xbf16>, vector<18x128xf32> -> vector<18x128xf32>
    %61 = arith.addf %55, %60 : vector<18x128xf32>
    %c0_70 = arith.constant 0 : index
    %c2_71 = arith.constant 2 : index
    %c0_72 = arith.constant 0 : index
    %c0_73 = arith.constant 0 : index
    %62 = vector.load %arg1[%c0_70, %c2_71, %c0_72, %c0_73] : memref<1x16x18x128xbf16, #tpu.memory_space<vmem>>, vector<1x1x18x128xbf16>
    %63 = vector.shape_cast %62 : vector<1x1x18x128xbf16> to vector<18x128xbf16>
    %c1_74 = arith.constant 1 : index
    %c0_75 = arith.constant 0 : index
    %c0_76 = arith.constant 0 : index
    %64 = vector.load %arg2[%c1_74, %c0_75, %c0_76] : memref<9x128x128xbf16, #tpu.memory_space<vmem>>, vector<1x128x128xbf16>
    %65 = vector.shape_cast %64 : vector<1x128x128xbf16> to vector<128x128xbf16>
    %cst_77 = arith.constant dense<0.000000e+00> : vector<18x128xf32>
    %66 = tpu.matmul %63, %65, %cst_77 {dimension_numbers = #tpu.dot_dimension_numbers<[1], [0], [0], [1], [0, 0, 1, 1], [], []>} : vector<18x128xbf16>, vector<128x128xbf16>, vector<18x128xf32> -> vector<18x128xf32>
    %67 = arith.addf %61, %66 : vector<18x128xf32>
    %c0_78 = arith.constant 0 : index
    %c3_79 = arith.constant 3 : index
    %c0_80 = arith.constant 0 : index
    %c0_81 = arith.constant 0 : index
    %68 = vector.load %arg1[%c0_78, %c3_79, %c0_80, %c0_81] : memref<1x16x18x128xbf16, #tpu.memory_space<vmem>>, vector<1x1x18x128xbf16>
    %69 = vector.shape_cast %68 : vector<1x1x18x128xbf16> to vector<18x128xbf16>
    %c2_82 = arith.constant 2 : index
    %c0_83 = arith.constant 0 : index
    %c0_84 = arith.constant 0 : index
    %70 = vector.load %arg2[%c2_82, %c0_83, %c0_84] : memref<9x128x128xbf16, #tpu.memory_space<vmem>>, vector<1x128x128xbf16>
    %71 = vector.shape_cast %70 : vector<1x128x128xbf16> to vector<128x128xbf16>
    %cst_85 = arith.constant dense<0.000000e+00> : vector<18x128xf32>
    %72 = tpu.matmul %69, %71, %cst_85 {dimension_numbers = #tpu.dot_dimension_numbers<[1], [0], [0], [1], [0, 0, 1, 1], [], []>} : vector<18x128xbf16>, vector<128x128xbf16>, vector<18x128xf32> -> vector<18x128xf32>
    %73 = arith.addf %67, %72 : vector<18x128xf32>
    %c0_86 = arith.constant 0 : index
    %c5_87 = arith.constant 5 : index
    %c0_88 = arith.constant 0 : index
    %c0_89 = arith.constant 0 : index
    %74 = vector.load %arg1[%c0_86, %c5_87, %c0_88, %c0_89] : memref<1x16x18x128xbf16, #tpu.memory_space<vmem>>, vector<1x1x18x128xbf16>
    %75 = vector.shape_cast %74 : vector<1x1x18x128xbf16> to vector<18x128xbf16>
    %c3_90 = arith.constant 3 : index
    %c0_91 = arith.constant 0 : index
    %c0_92 = arith.constant 0 : index
    %76 = vector.load %arg2[%c3_90, %c0_91, %c0_92] : memref<9x128x128xbf16, #tpu.memory_space<vmem>>, vector<1x128x128xbf16>
    %77 = vector.shape_cast %76 : vector<1x128x128xbf16> to vector<128x128xbf16>
    %cst_93 = arith.constant dense<0.000000e+00> : vector<18x128xf32>
    %78 = tpu.matmul %75, %77, %cst_93 {dimension_numbers = #tpu.dot_dimension_numbers<[1], [0], [0], [1], [0, 0, 1, 1], [], []>} : vector<18x128xbf16>, vector<128x128xbf16>, vector<18x128xf32> -> vector<18x128xf32>
    %79 = arith.addf %73, %78 : vector<18x128xf32>
    %c0_94 = arith.constant 0 : index
    %c6_95 = arith.constant 6 : index
    %c0_96 = arith.constant 0 : index
    %c0_97 = arith.constant 0 : index
    %80 = vector.load %arg1[%c0_94, %c6_95, %c0_96, %c0_97] : memref<1x16x18x128xbf16, #tpu.memory_space<vmem>>, vector<1x1x18x128xbf16>
    %81 = vector.shape_cast %80 : vector<1x1x18x128xbf16> to vector<18x128xbf16>
    %c4_98 = arith.constant 4 : index
    %c0_99 = arith.constant 0 : index
    %c0_100 = arith.constant 0 : index
    %82 = vector.load %arg2[%c4_98, %c0_99, %c0_100] : memref<9x128x128xbf16, #tpu.memory_space<vmem>>, vector<1x128x128xbf16>
    %83 = vector.shape_cast %82 : vector<1x128x128xbf16> to vector<128x128xbf16>
    %cst_101 = arith.constant dense<0.000000e+00> : vector<18x128xf32>
    %84 = tpu.matmul %81, %83, %cst_101 {dimension_numbers = #tpu.dot_dimension_numbers<[1], [0], [0], [1], [0, 0, 1, 1], [], []>} : vector<18x128xbf16>, vector<128x128xbf16>, vector<18x128xf32> -> vector<18x128xf32>
    %85 = arith.addf %79, %84 : vector<18x128xf32>
    %c0_102 = arith.constant 0 : index
    %c7_103 = arith.constant 7 : index
    %c0_104 = arith.constant 0 : index
    %c0_105 = arith.constant 0 : index
    %86 = vector.load %arg1[%c0_102, %c7_103, %c0_104, %c0_105] : memref<1x16x18x128xbf16, #tpu.memory_space<vmem>>, vector<1x1x18x128xbf16>
    %87 = vector.shape_cast %86 : vector<1x1x18x128xbf16> to vector<18x128xbf16>
    %c5_106 = arith.constant 5 : index
    %c0_107 = arith.constant 0 : index
    %c0_108 = arith.constant 0 : index
    %88 = vector.load %arg2[%c5_106, %c0_107, %c0_108] : memref<9x128x128xbf16, #tpu.memory_space<vmem>>, vector<1x128x128xbf16>
    %89 = vector.shape_cast %88 : vector<1x128x128xbf16> to vector<128x128xbf16>
    %cst_109 = arith.constant dense<0.000000e+00> : vector<18x128xf32>
    %90 = tpu.matmul %87, %89, %cst_109 {dimension_numbers = #tpu.dot_dimension_numbers<[1], [0], [0], [1], [0, 0, 1, 1], [], []>} : vector<18x128xbf16>, vector<128x128xbf16>, vector<18x128xf32> -> vector<18x128xf32>
    %91 = arith.addf %85, %90 : vector<18x128xf32>
    %c0_110 = arith.constant 0 : index
    %c9_111 = arith.constant 9 : index
    %c0_112 = arith.constant 0 : index
    %c0_113 = arith.constant 0 : index
    %92 = vector.load %arg1[%c0_110, %c9_111, %c0_112, %c0_113] : memref<1x16x18x128xbf16, #tpu.memory_space<vmem>>, vector<1x1x18x128xbf16>
    %93 = vector.shape_cast %92 : vector<1x1x18x128xbf16> to vector<18x128xbf16>
    %c6_114 = arith.constant 6 : index
    %c0_115 = arith.constant 0 : index
    %c0_116 = arith.constant 0 : index
    %94 = vector.load %arg2[%c6_114, %c0_115, %c0_116] : memref<9x128x128xbf16, #tpu.memory_space<vmem>>, vector<1x128x128xbf16>
    %95 = vector.shape_cast %94 : vector<1x128x128xbf16> to vector<128x128xbf16>
    %cst_117 = arith.constant dense<0.000000e+00> : vector<18x128xf32>
    %96 = tpu.matmul %93, %95, %cst_117 {dimension_numbers = #tpu.dot_dimension_numbers<[1], [0], [0], [1], [0, 0, 1, 1], [], []>} : vector<18x128xbf16>, vector<128x128xbf16>, vector<18x128xf32> -> vector<18x128xf32>
    %97 = arith.addf %91, %96 : vector<18x128xf32>
    %c0_118 = arith.constant 0 : index
    %c10_119 = arith.constant 10 : index
    %c0_120 = arith.constant 0 : index
    %c0_121 = arith.constant 0 : index
    %98 = vector.load %arg1[%c0_118, %c10_119, %c0_120, %c0_121] : memref<1x16x18x128xbf16, #tpu.memory_space<vmem>>, vector<1x1x18x128xbf16>
    %99 = vector.shape_cast %98 : vector<1x1x18x128xbf16> to vector<18x128xbf16>
    %c7_122 = arith.constant 7 : index
    %c0_123 = arith.constant 0 : index
    %c0_124 = arith.constant 0 : index
    %100 = vector.load %arg2[%c7_122, %c0_123, %c0_124] : memref<9x128x128xbf16, #tpu.memory_space<vmem>>, vector<1x128x128xbf16>
    %101 = vector.shape_cast %100 : vector<1x128x128xbf16> to vector<128x128xbf16>
    %cst_125 = arith.constant dense<0.000000e+00> : vector<18x128xf32>
    %102 = tpu.matmul %99, %101, %cst_125 {dimension_numbers = #tpu.dot_dimension_numbers<[1], [0], [0], [1], [0, 0, 1, 1], [], []>} : vector<18x128xbf16>, vector<128x128xbf16>, vector<18x128xf32> -> vector<18x128xf32>
    %103 = arith.addf %97, %102 : vector<18x128xf32>
    %c0_126 = arith.constant 0 : index
    %c11 = arith.constant 11 : index
    %c0_127 = arith.constant 0 : index
    %c0_128 = arith.constant 0 : index
    %104 = vector.load %arg1[%c0_126, %c11, %c0_127, %c0_128] : memref<1x16x18x128xbf16, #tpu.memory_space<vmem>>, vector<1x1x18x128xbf16>
    %105 = vector.shape_cast %104 : vector<1x1x18x128xbf16> to vector<18x128xbf16>
    %c8_129 = arith.constant 8 : index
    %c0_130 = arith.constant 0 : index
    %c0_131 = arith.constant 0 : index
    %106 = vector.load %arg2[%c8_129, %c0_130, %c0_131] : memref<9x128x128xbf16, #tpu.memory_space<vmem>>, vector<1x128x128xbf16>
    %107 = vector.shape_cast %106 : vector<1x128x128xbf16> to vector<128x128xbf16>
    %cst_132 = arith.constant dense<0.000000e+00> : vector<18x128xf32>
    %108 = tpu.matmul %105, %107, %cst_132 {dimension_numbers = #tpu.dot_dimension_numbers<[1], [0], [0], [1], [0, 0, 1, 1], [], []>} : vector<18x128xbf16>, vector<128x128xbf16>, vector<18x128xf32> -> vector<18x128xf32>
    %109 = arith.addf %103, %108 : vector<18x128xf32>
    %110 = arith.maximumf %54, %109 : vector<18x128xf32>
    %cst_133 = arith.constant 0.000000e+00 : f32
    %111 = vector.broadcast %cst_133 : f32 to vector<18x128xf32>
    %c0_134 = arith.constant 0 : index
    %c4_135 = arith.constant 4 : index
    %c0_136 = arith.constant 0 : index
    %c0_137 = arith.constant 0 : index
    %112 = vector.load %arg1[%c0_134, %c4_135, %c0_136, %c0_137] : memref<1x16x18x128xbf16, #tpu.memory_space<vmem>>, vector<1x1x18x128xbf16>
    %113 = vector.shape_cast %112 : vector<1x1x18x128xbf16> to vector<18x128xbf16>
    %c0_138 = arith.constant 0 : index
    %c0_139 = arith.constant 0 : index
    %c0_140 = arith.constant 0 : index
    %114 = vector.load %arg2[%c0_138, %c0_139, %c0_140] : memref<9x128x128xbf16, #tpu.memory_space<vmem>>, vector<1x128x128xbf16>
    %115 = vector.shape_cast %114 : vector<1x128x128xbf16> to vector<128x128xbf16>
    %cst_141 = arith.constant dense<0.000000e+00> : vector<18x128xf32>
    %116 = tpu.matmul %113, %115, %cst_141 {dimension_numbers = #tpu.dot_dimension_numbers<[1], [0], [0], [1], [0, 0, 1, 1], [], []>} : vector<18x128xbf16>, vector<128x128xbf16>, vector<18x128xf32> -> vector<18x128xf32>
    %117 = arith.addf %111, %116 : vector<18x128xf32>
    %c0_142 = arith.constant 0 : index
    %c5_143 = arith.constant 5 : index
    %c0_144 = arith.constant 0 : index
    %c0_145 = arith.constant 0 : index
    %118 = vector.load %arg1[%c0_142, %c5_143, %c0_144, %c0_145] : memref<1x16x18x128xbf16, #tpu.memory_space<vmem>>, vector<1x1x18x128xbf16>
    %119 = vector.shape_cast %118 : vector<1x1x18x128xbf16> to vector<18x128xbf16>
    %c1_146 = arith.constant 1 : index
    %c0_147 = arith.constant 0 : index
    %c0_148 = arith.constant 0 : index
    %120 = vector.load %arg2[%c1_146, %c0_147, %c0_148] : memref<9x128x128xbf16, #tpu.memory_space<vmem>>, vector<1x128x128xbf16>
    %121 = vector.shape_cast %120 : vector<1x128x128xbf16> to vector<128x128xbf16>
    %cst_149 = arith.constant dense<0.000000e+00> : vector<18x128xf32>
    %122 = tpu.matmul %119, %121, %cst_149 {dimension_numbers = #tpu.dot_dimension_numbers<[1], [0], [0], [1], [0, 0, 1, 1], [], []>} : vector<18x128xbf16>, vector<128x128xbf16>, vector<18x128xf32> -> vector<18x128xf32>
    %123 = arith.addf %117, %122 : vector<18x128xf32>
    %c0_150 = arith.constant 0 : index
    %c6_151 = arith.constant 6 : index
    %c0_152 = arith.constant 0 : index
    %c0_153 = arith.constant 0 : index
    %124 = vector.load %arg1[%c0_150, %c6_151, %c0_152, %c0_153] : memref<1x16x18x128xbf16, #tpu.memory_space<vmem>>, vector<1x1x18x128xbf16>
    %125 = vector.shape_cast %124 : vector<1x1x18x128xbf16> to vector<18x128xbf16>
    %c2_154 = arith.constant 2 : index
    %c0_155 = arith.constant 0 : index
    %c0_156 = arith.constant 0 : index
    %126 = vector.load %arg2[%c2_154, %c0_155, %c0_156] : memref<9x128x128xbf16, #tpu.memory_space<vmem>>, vector<1x128x128xbf16>
    %127 = vector.shape_cast %126 : vector<1x128x128xbf16> to vector<128x128xbf16>
    %cst_157 = arith.constant dense<0.000000e+00> : vector<18x128xf32>
    %128 = tpu.matmul %125, %127, %cst_157 {dimension_numbers = #tpu.dot_dimension_numbers<[1], [0], [0], [1], [0, 0, 1, 1], [], []>} : vector<18x128xbf16>, vector<128x128xbf16>, vector<18x128xf32> -> vector<18x128xf32>
    %129 = arith.addf %123, %128 : vector<18x128xf32>
    %c0_158 = arith.constant 0 : index
    %c8_159 = arith.constant 8 : index
    %c0_160 = arith.constant 0 : index
    %c0_161 = arith.constant 0 : index
    %130 = vector.load %arg1[%c0_158, %c8_159, %c0_160, %c0_161] : memref<1x16x18x128xbf16, #tpu.memory_space<vmem>>, vector<1x1x18x128xbf16>
    %131 = vector.shape_cast %130 : vector<1x1x18x128xbf16> to vector<18x128xbf16>
    %c3_162 = arith.constant 3 : index
    %c0_163 = arith.constant 0 : index
    %c0_164 = arith.constant 0 : index
    %132 = vector.load %arg2[%c3_162, %c0_163, %c0_164] : memref<9x128x128xbf16, #tpu.memory_space<vmem>>, vector<1x128x128xbf16>
    %133 = vector.shape_cast %132 : vector<1x128x128xbf16> to vector<128x128xbf16>
    %cst_165 = arith.constant dense<0.000000e+00> : vector<18x128xf32>
    %134 = tpu.matmul %131, %133, %cst_165 {dimension_numbers = #tpu.dot_dimension_numbers<[1], [0], [0], [1], [0, 0, 1, 1], [], []>} : vector<18x128xbf16>, vector<128x128xbf16>, vector<18x128xf32> -> vector<18x128xf32>
    %135 = arith.addf %129, %134 : vector<18x128xf32>
    %c0_166 = arith.constant 0 : index
    %c9_167 = arith.constant 9 : index
    %c0_168 = arith.constant 0 : index
    %c0_169 = arith.constant 0 : index
    %136 = vector.load %arg1[%c0_166, %c9_167, %c0_168, %c0_169] : memref<1x16x18x128xbf16, #tpu.memory_space<vmem>>, vector<1x1x18x128xbf16>
    %137 = vector.shape_cast %136 : vector<1x1x18x128xbf16> to vector<18x128xbf16>
    %c4_170 = arith.constant 4 : index
    %c0_171 = arith.constant 0 : index
    %c0_172 = arith.constant 0 : index
    %138 = vector.load %arg2[%c4_170, %c0_171, %c0_172] : memref<9x128x128xbf16, #tpu.memory_space<vmem>>, vector<1x128x128xbf16>
    %139 = vector.shape_cast %138 : vector<1x128x128xbf16> to vector<128x128xbf16>
    %cst_173 = arith.constant dense<0.000000e+00> : vector<18x128xf32>
    %140 = tpu.matmul %137, %139, %cst_173 {dimension_numbers = #tpu.dot_dimension_numbers<[1], [0], [0], [1], [0, 0, 1, 1], [], []>} : vector<18x128xbf16>, vector<128x128xbf16>, vector<18x128xf32> -> vector<18x128xf32>
    %141 = arith.addf %135, %140 : vector<18x128xf32>
    %c0_174 = arith.constant 0 : index
    %c10_175 = arith.constant 10 : index
    %c0_176 = arith.constant 0 : index
    %c0_177 = arith.constant 0 : index
    %142 = vector.load %arg1[%c0_174, %c10_175, %c0_176, %c0_177] : memref<1x16x18x128xbf16, #tpu.memory_space<vmem>>, vector<1x1x18x128xbf16>
    %143 = vector.shape_cast %142 : vector<1x1x18x128xbf16> to vector<18x128xbf16>
    %c5_178 = arith.constant 5 : index
    %c0_179 = arith.constant 0 : index
    %c0_180 = arith.constant 0 : index
    %144 = vector.load %arg2[%c5_178, %c0_179, %c0_180] : memref<9x128x128xbf16, #tpu.memory_space<vmem>>, vector<1x128x128xbf16>
    %145 = vector.shape_cast %144 : vector<1x128x128xbf16> to vector<128x128xbf16>
    %cst_181 = arith.constant dense<0.000000e+00> : vector<18x128xf32>
    %146 = tpu.matmul %143, %145, %cst_181 {dimension_numbers = #tpu.dot_dimension_numbers<[1], [0], [0], [1], [0, 0, 1, 1], [], []>} : vector<18x128xbf16>, vector<128x128xbf16>, vector<18x128xf32> -> vector<18x128xf32>
    %147 = arith.addf %141, %146 : vector<18x128xf32>
    %c0_182 = arith.constant 0 : index
    %c12 = arith.constant 12 : index
    %c0_183 = arith.constant 0 : index
    %c0_184 = arith.constant 0 : index
    %148 = vector.load %arg1[%c0_182, %c12, %c0_183, %c0_184] : memref<1x16x18x128xbf16, #tpu.memory_space<vmem>>, vector<1x1x18x128xbf16>
    %149 = vector.shape_cast %148 : vector<1x1x18x128xbf16> to vector<18x128xbf16>
    %c6_185 = arith.constant 6 : index
    %c0_186 = arith.constant 0 : index
    %c0_187 = arith.constant 0 : index
    %150 = vector.load %arg2[%c6_185, %c0_186, %c0_187] : memref<9x128x128xbf16, #tpu.memory_space<vmem>>, vector<1x128x128xbf16>
    %151 = vector.shape_cast %150 : vector<1x128x128xbf16> to vector<128x128xbf16>
    %cst_188 = arith.constant dense<0.000000e+00> : vector<18x128xf32>
    %152 = tpu.matmul %149, %151, %cst_188 {dimension_numbers = #tpu.dot_dimension_numbers<[1], [0], [0], [1], [0, 0, 1, 1], [], []>} : vector<18x128xbf16>, vector<128x128xbf16>, vector<18x128xf32> -> vector<18x128xf32>
    %153 = arith.addf %147, %152 : vector<18x128xf32>
    %c0_189 = arith.constant 0 : index
    %c13 = arith.constant 13 : index
    %c0_190 = arith.constant 0 : index
    %c0_191 = arith.constant 0 : index
    %154 = vector.load %arg1[%c0_189, %c13, %c0_190, %c0_191] : memref<1x16x18x128xbf16, #tpu.memory_space<vmem>>, vector<1x1x18x128xbf16>
    %155 = vector.shape_cast %154 : vector<1x1x18x128xbf16> to vector<18x128xbf16>
    %c7_192 = arith.constant 7 : index
    %c0_193 = arith.constant 0 : index
    %c0_194 = arith.constant 0 : index
    %156 = vector.load %arg2[%c7_192, %c0_193, %c0_194] : memref<9x128x128xbf16, #tpu.memory_space<vmem>>, vector<1x128x128xbf16>
    %157 = vector.shape_cast %156 : vector<1x128x128xbf16> to vector<128x128xbf16>
    %cst_195 = arith.constant dense<0.000000e+00> : vector<18x128xf32>
    %158 = tpu.matmul %155, %157, %cst_195 {dimension_numbers = #tpu.dot_dimension_numbers<[1], [0], [0], [1], [0, 0, 1, 1], [], []>} : vector<18x128xbf16>, vector<128x128xbf16>, vector<18x128xf32> -> vector<18x128xf32>
    %159 = arith.addf %153, %158 : vector<18x128xf32>
    %c0_196 = arith.constant 0 : index
    %c14 = arith.constant 14 : index
    %c0_197 = arith.constant 0 : index
    %c0_198 = arith.constant 0 : index
    %160 = vector.load %arg1[%c0_196, %c14, %c0_197, %c0_198] : memref<1x16x18x128xbf16, #tpu.memory_space<vmem>>, vector<1x1x18x128xbf16>
    %161 = vector.shape_cast %160 : vector<1x1x18x128xbf16> to vector<18x128xbf16>
    %c8_199 = arith.constant 8 : index
    %c0_200 = arith.constant 0 : index
    %c0_201 = arith.constant 0 : index
    %162 = vector.load %arg2[%c8_199, %c0_200, %c0_201] : memref<9x128x128xbf16, #tpu.memory_space<vmem>>, vector<1x128x128xbf16>
    %163 = vector.shape_cast %162 : vector<1x128x128xbf16> to vector<128x128xbf16>
    %cst_202 = arith.constant dense<0.000000e+00> : vector<18x128xf32>
    %164 = tpu.matmul %161, %163, %cst_202 {dimension_numbers = #tpu.dot_dimension_numbers<[1], [0], [0], [1], [0, 0, 1, 1], [], []>} : vector<18x128xbf16>, vector<128x128xbf16>, vector<18x128xf32> -> vector<18x128xf32>
    %165 = arith.addf %159, %164 : vector<18x128xf32>
    %166 = arith.maximumf %110, %165 : vector<18x128xf32>
    %cst_203 = arith.constant 0.000000e+00 : f32
    %167 = vector.broadcast %cst_203 : f32 to vector<18x128xf32>
    %c0_204 = arith.constant 0 : index
    %c5_205 = arith.constant 5 : index
    %c0_206 = arith.constant 0 : index
    %c0_207 = arith.constant 0 : index
    %168 = vector.load %arg1[%c0_204, %c5_205, %c0_206, %c0_207] : memref<1x16x18x128xbf16, #tpu.memory_space<vmem>>, vector<1x1x18x128xbf16>
    %169 = vector.shape_cast %168 : vector<1x1x18x128xbf16> to vector<18x128xbf16>
    %c0_208 = arith.constant 0 : index
    %c0_209 = arith.constant 0 : index
    %c0_210 = arith.constant 0 : index
    %170 = vector.load %arg2[%c0_208, %c0_209, %c0_210] : memref<9x128x128xbf16, #tpu.memory_space<vmem>>, vector<1x128x128xbf16>
    %171 = vector.shape_cast %170 : vector<1x128x128xbf16> to vector<128x128xbf16>
    %cst_211 = arith.constant dense<0.000000e+00> : vector<18x128xf32>
    %172 = tpu.matmul %169, %171, %cst_211 {dimension_numbers = #tpu.dot_dimension_numbers<[1], [0], [0], [1], [0, 0, 1, 1], [], []>} : vector<18x128xbf16>, vector<128x128xbf16>, vector<18x128xf32> -> vector<18x128xf32>
    %173 = arith.addf %167, %172 : vector<18x128xf32>
    %c0_212 = arith.constant 0 : index
    %c6_213 = arith.constant 6 : index
    %c0_214 = arith.constant 0 : index
    %c0_215 = arith.constant 0 : index
    %174 = vector.load %arg1[%c0_212, %c6_213, %c0_214, %c0_215] : memref<1x16x18x128xbf16, #tpu.memory_space<vmem>>, vector<1x1x18x128xbf16>
    %175 = vector.shape_cast %174 : vector<1x1x18x128xbf16> to vector<18x128xbf16>
    %c1_216 = arith.constant 1 : index
    %c0_217 = arith.constant 0 : index
    %c0_218 = arith.constant 0 : index
    %176 = vector.load %arg2[%c1_216, %c0_217, %c0_218] : memref<9x128x128xbf16, #tpu.memory_space<vmem>>, vector<1x128x128xbf16>
    %177 = vector.shape_cast %176 : vector<1x128x128xbf16> to vector<128x128xbf16>
    %cst_219 = arith.constant dense<0.000000e+00> : vector<18x128xf32>
    %178 = tpu.matmul %175, %177, %cst_219 {dimension_numbers = #tpu.dot_dimension_numbers<[1], [0], [0], [1], [0, 0, 1, 1], [], []>} : vector<18x128xbf16>, vector<128x128xbf16>, vector<18x128xf32> -> vector<18x128xf32>
    %179 = arith.addf %173, %178 : vector<18x128xf32>
    %c0_220 = arith.constant 0 : index
    %c7_221 = arith.constant 7 : index
    %c0_222 = arith.constant 0 : index
    %c0_223 = arith.constant 0 : index
    %180 = vector.load %arg1[%c0_220, %c7_221, %c0_222, %c0_223] : memref<1x16x18x128xbf16, #tpu.memory_space<vmem>>, vector<1x1x18x128xbf16>
    %181 = vector.shape_cast %180 : vector<1x1x18x128xbf16> to vector<18x128xbf16>
    %c2_224 = arith.constant 2 : index
    %c0_225 = arith.constant 0 : index
    %c0_226 = arith.constant 0 : index
    %182 = vector.load %arg2[%c2_224, %c0_225, %c0_226] : memref<9x128x128xbf16, #tpu.memory_space<vmem>>, vector<1x128x128xbf16>
    %183 = vector.shape_cast %182 : vector<1x128x128xbf16> to vector<128x128xbf16>
    %cst_227 = arith.constant dense<0.000000e+00> : vector<18x128xf32>
    %184 = tpu.matmul %181, %183, %cst_227 {dimension_numbers = #tpu.dot_dimension_numbers<[1], [0], [0], [1], [0, 0, 1, 1], [], []>} : vector<18x128xbf16>, vector<128x128xbf16>, vector<18x128xf32> -> vector<18x128xf32>
    %185 = arith.addf %179, %184 : vector<18x128xf32>
    %c0_228 = arith.constant 0 : index
    %c9_229 = arith.constant 9 : index
    %c0_230 = arith.constant 0 : index
    %c0_231 = arith.constant 0 : index
    %186 = vector.load %arg1[%c0_228, %c9_229, %c0_230, %c0_231] : memref<1x16x18x128xbf16, #tpu.memory_space<vmem>>, vector<1x1x18x128xbf16>
    %187 = vector.shape_cast %186 : vector<1x1x18x128xbf16> to vector<18x128xbf16>
    %c3_232 = arith.constant 3 : index
    %c0_233 = arith.constant 0 : index
    %c0_234 = arith.constant 0 : index
    %188 = vector.load %arg2[%c3_232, %c0_233, %c0_234] : memref<9x128x128xbf16, #tpu.memory_space<vmem>>, vector<1x128x128xbf16>
    %189 = vector.shape_cast %188 : vector<1x128x128xbf16> to vector<128x128xbf16>
    %cst_235 = arith.constant dense<0.000000e+00> : vector<18x128xf32>
    %190 = tpu.matmul %187, %189, %cst_235 {dimension_numbers = #tpu.dot_dimension_numbers<[1], [0], [0], [1], [0, 0, 1, 1], [], []>} : vector<18x128xbf16>, vector<128x128xbf16>, vector<18x128xf32> -> vector<18x128xf32>
    %191 = arith.addf %185, %190 : vector<18x128xf32>
    %c0_236 = arith.constant 0 : index
    %c10_237 = arith.constant 10 : index
    %c0_238 = arith.constant 0 : index
    %c0_239 = arith.constant 0 : index
    %192 = vector.load %arg1[%c0_236, %c10_237, %c0_238, %c0_239] : memref<1x16x18x128xbf16, #tpu.memory_space<vmem>>, vector<1x1x18x128xbf16>
    %193 = vector.shape_cast %192 : vector<1x1x18x128xbf16> to vector<18x128xbf16>
    %c4_240 = arith.constant 4 : index
    %c0_241 = arith.constant 0 : index
    %c0_242 = arith.constant 0 : index
    %194 = vector.load %arg2[%c4_240, %c0_241, %c0_242] : memref<9x128x128xbf16, #tpu.memory_space<vmem>>, vector<1x128x128xbf16>
    %195 = vector.shape_cast %194 : vector<1x128x128xbf16> to vector<128x128xbf16>
    %cst_243 = arith.constant dense<0.000000e+00> : vector<18x128xf32>
    %196 = tpu.matmul %193, %195, %cst_243 {dimension_numbers = #tpu.dot_dimension_numbers<[1], [0], [0], [1], [0, 0, 1, 1], [], []>} : vector<18x128xbf16>, vector<128x128xbf16>, vector<18x128xf32> -> vector<18x128xf32>
    %197 = arith.addf %191, %196 : vector<18x128xf32>
    %c0_244 = arith.constant 0 : index
    %c11_245 = arith.constant 11 : index
    %c0_246 = arith.constant 0 : index
    %c0_247 = arith.constant 0 : index
    %198 = vector.load %arg1[%c0_244, %c11_245, %c0_246, %c0_247] : memref<1x16x18x128xbf16, #tpu.memory_space<vmem>>, vector<1x1x18x128xbf16>
    %199 = vector.shape_cast %198 : vector<1x1x18x128xbf16> to vector<18x128xbf16>
    %c5_248 = arith.constant 5 : index
    %c0_249 = arith.constant 0 : index
    %c0_250 = arith.constant 0 : index
    %200 = vector.load %arg2[%c5_248, %c0_249, %c0_250] : memref<9x128x128xbf16, #tpu.memory_space<vmem>>, vector<1x128x128xbf16>
    %201 = vector.shape_cast %200 : vector<1x128x128xbf16> to vector<128x128xbf16>
    %cst_251 = arith.constant dense<0.000000e+00> : vector<18x128xf32>
    %202 = tpu.matmul %199, %201, %cst_251 {dimension_numbers = #tpu.dot_dimension_numbers<[1], [0], [0], [1], [0, 0, 1, 1], [], []>} : vector<18x128xbf16>, vector<128x128xbf16>, vector<18x128xf32> -> vector<18x128xf32>
    %203 = arith.addf %197, %202 : vector<18x128xf32>
    %c0_252 = arith.constant 0 : index
    %c13_253 = arith.constant 13 : index
    %c0_254 = arith.constant 0 : index
    %c0_255 = arith.constant 0 : index
    %204 = vector.load %arg1[%c0_252, %c13_253, %c0_254, %c0_255] : memref<1x16x18x128xbf16, #tpu.memory_space<vmem>>, vector<1x1x18x128xbf16>
    %205 = vector.shape_cast %204 : vector<1x1x18x128xbf16> to vector<18x128xbf16>
    %c6_256 = arith.constant 6 : index
    %c0_257 = arith.constant 0 : index
    %c0_258 = arith.constant 0 : index
    %206 = vector.load %arg2[%c6_256, %c0_257, %c0_258] : memref<9x128x128xbf16, #tpu.memory_space<vmem>>, vector<1x128x128xbf16>
    %207 = vector.shape_cast %206 : vector<1x128x128xbf16> to vector<128x128xbf16>
    %cst_259 = arith.constant dense<0.000000e+00> : vector<18x128xf32>
    %208 = tpu.matmul %205, %207, %cst_259 {dimension_numbers = #tpu.dot_dimension_numbers<[1], [0], [0], [1], [0, 0, 1, 1], [], []>} : vector<18x128xbf16>, vector<128x128xbf16>, vector<18x128xf32> -> vector<18x128xf32>
    %209 = arith.addf %203, %208 : vector<18x128xf32>
    %c0_260 = arith.constant 0 : index
    %c14_261 = arith.constant 14 : index
    %c0_262 = arith.constant 0 : index
    %c0_263 = arith.constant 0 : index
    %210 = vector.load %arg1[%c0_260, %c14_261, %c0_262, %c0_263] : memref<1x16x18x128xbf16, #tpu.memory_space<vmem>>, vector<1x1x18x128xbf16>
    %211 = vector.shape_cast %210 : vector<1x1x18x128xbf16> to vector<18x128xbf16>
    %c7_264 = arith.constant 7 : index
    %c0_265 = arith.constant 0 : index
    %c0_266 = arith.constant 0 : index
    %212 = vector.load %arg2[%c7_264, %c0_265, %c0_266] : memref<9x128x128xbf16, #tpu.memory_space<vmem>>, vector<1x128x128xbf16>
    %213 = vector.shape_cast %212 : vector<1x128x128xbf16> to vector<128x128xbf16>
    %cst_267 = arith.constant dense<0.000000e+00> : vector<18x128xf32>
    %214 = tpu.matmul %211, %213, %cst_267 {dimension_numbers = #tpu.dot_dimension_numbers<[1], [0], [0], [1], [0, 0, 1, 1], [], []>} : vector<18x128xbf16>, vector<128x128xbf16>, vector<18x128xf32> -> vector<18x128xf32>
    %215 = arith.addf %209, %214 : vector<18x128xf32>
    %c0_268 = arith.constant 0 : index
    %c15 = arith.constant 15 : index
    %c0_269 = arith.constant 0 : index
    %c0_270 = arith.constant 0 : index
    %216 = vector.load %arg1[%c0_268, %c15, %c0_269, %c0_270] : memref<1x16x18x128xbf16, #tpu.memory_space<vmem>>, vector<1x1x18x128xbf16>
    %217 = vector.shape_cast %216 : vector<1x1x18x128xbf16> to vector<18x128xbf16>
    %c8_271 = arith.constant 8 : index
    %c0_272 = arith.constant 0 : index
    %c0_273 = arith.constant 0 : index
    %218 = vector.load %arg2[%c8_271, %c0_272, %c0_273] : memref<9x128x128xbf16, #tpu.memory_space<vmem>>, vector<1x128x128xbf16>
    %219 = vector.shape_cast %218 : vector<1x128x128xbf16> to vector<128x128xbf16>
    %cst_274 = arith.constant dense<0.000000e+00> : vector<18x128xf32>
    %220 = tpu.matmul %217, %219, %cst_274 {dimension_numbers = #tpu.dot_dimension_numbers<[1], [0], [0], [1], [0, 0, 1, 1], [], []>} : vector<18x128xbf16>, vector<128x128xbf16>, vector<18x128xf32> -> vector<18x128xf32>
    %221 = arith.addf %215, %220 : vector<18x128xf32>
    %222 = arith.maximumf %166, %221 : vector<18x128xf32>
    %c0_275 = arith.constant 0 : index
    %c0_276 = arith.constant 0 : index
    %223 = vector.load %arg3[%c0_275, %c0_276] : memref<1x128xf32, #tpu.memory_space<vmem>>, vector<1x128xf32>
    %224 = vector.broadcast %223 : vector<1x128xf32> to vector<18x128xf32>
    %225 = arith.addf %222, %224 : vector<18x128xf32>
    %cst_277 = arith.constant 0.000000e+00 : f32
    %226 = vector.broadcast %cst_277 : f32 to vector<18x128xf32>
    %227 = arith.maximumf %225, %226 : vector<18x128xf32>
    %228 = arith.truncf %227 : vector<18x128xf32> to vector<18x128xbf16>
    %c0_278 = arith.constant 0 : index
    %c0_279 = arith.constant 0 : index
    %c0_280 = arith.constant 0 : index
    %229 = vector.load %arg4[%c0_278, %c0_279, %c0_280] : memref<1x18x128xbf16, #tpu.memory_space<vmem>>, vector<1x18x128xbf16>
    %230 = vector.shape_cast %229 : vector<1x18x128xbf16> to vector<18x128xbf16>
    %231 = vector.shape_cast %228 : vector<18x128xbf16> to vector<1x18x128xbf16>
    tpu.vector_store %arg4[%c0_278, %c0_279, %c0_280], %231 {strides = array<i32>} : memref<1x18x128xbf16, #tpu.memory_space<vmem>>, vector<1x18x128xbf16>,
    return
  }
  func.func @transform_0(%arg0: i32) -> (i32, i32, i32, i32) {
    %c0_i32 = arith.constant 0 : i32
    %c0_i32_0 = arith.constant 0 : i32
    %c0_i32_1 = arith.constant 0 : i32
    %c0_i32_2 = arith.constant 0 : i32
    return %arg0, %c0_i32, %c0_i32_0, %c0_i32_1 : i32, i32, i32, i32
  }
  func.func @transform_1(%arg0: i32) -> (i32, i32, i32) {
    %c0_i32 = arith.constant 0 : i32
    %c0_i32_0 = arith.constant 0 : i32
    %c0_i32_1 = arith.constant 0 : i32
    %c0_i32_2 = arith.constant 0 : i32
    return %c0_i32, %c0_i32_0, %c0_i32_1 : i32, i32, i32
  }
  func.func @transform_2(%arg0: i32) -> (i32, i32) {
    %c0_i32 = arith.constant 0 : i32
    %c0_i32_0 = arith.constant 0 : i32
    %c0_i32_1 = arith.constant 0 : i32
    return %c0_i32, %c0_i32_0 : i32, i32
  }
  func.func @transform_3(%arg0: i32) -> (i32, i32, i32) {
    %c0_i32 = arith.constant 0 : i32
    %c0_i32_0 = arith.constant 0 : i32
    %c0_i32_1 = arith.constant 0 : i32
    return %arg0, %c0_i32, %c0_i32_0 : i32, i32, i32
  }
}

</mosaic_0001>

<bundles_post_ra>
// kernel: net_forward.4
= control target key start
LH: loop header
LB: loop body
LE: loop exit
PB: predicated region body
PF: predicated region fallthrough
CT: control target
= control target key end

     0   :  { %v4853_v0 = vmov 0.0   ;;  %vm3651_vm0 = vmmov 0   ;;  %vm195_vm1 = vcmask 130048   ;;  %s4849_s1 = inlined_call_operand.vmem [shape: bf16[16,128], index: 1, kind: input, shape index: {}]   ;;  %s4850_s0 = inlined_call_operand.vmem [shape: bf16[1,4,392,16], index: 0, kind: input, shape index: {}]   ;;  %s4851_s2 = inlined_call_operand.vmem [shape: f32[1,128], index: 2, kind: input, shape index: {}]   ;;  %s4852_s3 = inlined_call_operand.vmem [shape: bf16[1,392,128], index: 3, kind: output, shape index: {}]  }
   0x1   :  { %3139 = vmatprep.subr.bf16.mxu0 %v4853_v0  ;;  %3241 = vmatprep.subr.bf16.mxu1 %v4853_v0  ;;  %v3549_v1 = vld [vmem:[%s4849_s1] sm:$0xff]   ;;  %v3552_v4 = vld [vmem:[%s4850_s0 + $0x8] sm:$0xff]   ;;  %v3554_v6 = vld [vmem:[%s4850_s0 + $0x10] sm:$0xff]  }
   0x2   :  { %3141 = vmatprep.mubr.msk.bf16.mxu0 %vm3651_vm0, %v4853_v0  ;;  %3243 = vmatprep.mubr.msk.bf16.mxu1 %vm3651_vm0, %v4853_v0  ;;  %v3550_v2 = vld [vmem:[%s4850_s0] sm:$0xff]   ;;  %v3553_v5 = vld [vmem:[%s4850_s0 + $0xcc] sm:$0xff]   ;;  %v3555_v7 = vld [vmem:[%s4850_s0 + $0xd4] sm:$0xff]  }
   0x3   :  { %3140 = vmatpush3.bf16.msra.mxu0 %v3549_v1  ;;  %3242 = vmatpush3.bf16.msra.mxu1 %v3549_v1  ;;  %v3551_v3 = vld [vmem:[%s4850_s0 + $0xc4] sm:$0xff]   ;;  %v3556_v8 = vld [vmem:[%s4850_s0 + $0x18] sm:$0xff]   ;;  %v3561_v13 = vld [vmem:[%s4850_s0 + $0xec] sm:$0xff]  }
   0x4   :  { %3343 = vmatprep.subr.bf16.mxu0 %v4853_v0  ;;  %3445 = vmatprep.subr.bf16.mxu1 %v4853_v0  ;;  %v3557_v9 = vld [vmem:[%s4850_s0 + $0xdc] sm:$0xff]   ;;  %v3559_v11 = vld [vmem:[%s4850_s0 + $0xe4] sm:$0xff]   ;;  %v3562_v14 = vld [vmem:[%s4850_s0 + $0x30] sm:$0xff]  }
   0x5   :  { %v3558_v10 = vld [vmem:[%s4850_s0 + $0x20] sm:$0xff]   ;;  %v3560_v12 = vld [vmem:[%s4850_s0 + $0x28] sm:$0xff]   ;;  %v3563_v15 = vld [vmem:[%s4850_s0 + $0xf4] sm:$0xff]  }
   0x6   :  { %3142 = vmatmul.mubr.msk.bf16.vlgmr.msra.gmra.mrb[0].mxu0 %vm195_vm1, %v3550_v2  ;;  %3244 = vmatmul.mubr.msk.bf16.vlgmr.msra.gmra.mrb[0].mxu1 %vm195_vm1, %v3551_v3  ;;  %v3564_v16 = vld [vmem:[%s4850_s0 + $0x38] sm:$0xff]   ;;  %v3566_v18 = vld [vmem:[%s4850_s0 + $0x40] sm:$0xff]   ;;  %v3568_v20 = vld [vmem:[%s4850_s0 + $0x48] sm:$0xff]  }
   0x7   :  { %3344 = vmatpush3.bf16.msra.mxu0 %v3549_v1  ;;  %3446 = vmatpush3.bf16.msra.mxu1 %v3549_v1  ;;  %v3565_v17 = vld [vmem:[%s4850_s0 + $0xfc] sm:$0xff]   ;;  %v3567_v19 = vld [vmem:[%s4850_s0 + $0x104] sm:$0xff]   ;;  %v3569_v21 = vld [vmem:[%s4850_s0 + $0x10c] sm:$0xff]  }
   0x8   :  { %3145 = vmatprep.mubr.msk.bf16.mxu0 %vm3651_vm0, %v4853_v0  ;;  %3247 = vmatprep.mubr.msk.bf16.mxu1 %vm3651_vm0, %v4853_v0  ;;  %v3570_v22 = vld [vmem:[%s4850_s0 + $0x50] sm:$0xff]   ;;  %v3572_v24 = vld [vmem:[%s4850_s0 + $0x58] sm:$0xff]   ;;  %v3574_v26 = vld [vmem:[%s4850_s0 + $0x60] sm:$0xff]  }
   0x9   :  { %v3571_v23 = vld [vmem:[%s4850_s0 + $0x114] sm:$0xff]   ;;  %v3573_v25 = vld [vmem:[%s4850_s0 + $0x11c] sm:$0xff]   ;;  %v3575_v27 = vld [vmem:[%s4850_s0 + $0x124] sm:$0xff]  }
   0xa   :  { %v3576_v28 = vld [vmem:[%s4850_s0 + $0x68] sm:$0xff]   ;;  %v3578_v30 = vld [vmem:[%s4850_s0 + $0x70] sm:$0xff]   ;;  %v3580_v32 = vld [vmem:[%s4850_s0 + $0x78] sm:$0xff]  }
   0xb   :  { %v3577_v29 = vld [vmem:[%s4850_s0 + $0x12c] sm:$0xff]   ;;  %v3579_v31 = vld [vmem:[%s4850_s0 + $0x134] sm:$0xff]   ;;  %v3581_v33 = vld [vmem:[%s4850_s0 + $0x13c] sm:$0xff]  }
   0xc   :  { %v3582_v34 = vld [vmem:[%s4850_s0 + $0x80] sm:$0xff]   ;;  %v3584_v36 = vld [vmem:[%s4850_s0 + $0x88] sm:$0xff]   ;;  %v3586_v38 = vld [vmem:[%s4850_s0 + $0x90] sm:$0xff]  }
   0xd   :  { %v3583_v35 = vld [vmem:[%s4850_s0 + $0x144] sm:$0xff]   ;;  %v3585_v37 = vld [vmem:[%s4850_s0 + $0x14c] sm:$0xff]   ;;  %v3587_v39 = vld [vmem:[%s4850_s0 + $0x154] sm:$0xff]  }
   0xe   :  { %3146 = vmatmul.mubr.msk.bf16.gmra.mrb[4].mxu0 %vm195_vm1, %v3552_v4  ;;  %3248 = vmatmul.mubr.msk.bf16.gmra.mrb[4].mxu1 %vm195_vm1, %v3553_v5  ;;  %v3588_v40 = vld [vmem:[%s4850_s0 + $0x98] sm:$0xff]   ;;  %v3590_v42 = vld [vmem:[%s4850_s0 + $0xa0] sm:$0xff]   ;;  %v3592_v44 = vld [vmem:[%s4850_s0 + $0xa8] sm:$0xff]  }
   0xf   :  { %3149 = vmatprep.mubr.msk.bf16.mxu0 %vm3651_vm0, %v4853_v0  ;;  %3251 = vmatprep.mubr.msk.bf16.mxu1 %vm3651_vm0, %v4853_v0  ;;  %v3589_v41 = vld [vmem:[%s4850_s0 + $0x15c] sm:$0xff]   ;;  %v3591_v43 = vld [vmem:[%s4850_s0 + $0x164] sm:$0xff]   ;;  %v3593_v45 = vld [vmem:[%s4850_s0 + $0x16c] sm:$0xff]  }
  0x10   :  { %v3594_v46 = vld [vmem:[%s4850_s0 + $0xb0] sm:$0xff]   ;;  %v3596_v48 = vld [vmem:[%s4850_s0 + $0xb8] sm:$0xff]   ;;  %v3598_v50 = vld [vmem:[%s4850_s0 + $0xc0] ss:$0 sps:$4 sm:$0xff]  }
  0x11   :  { %v3595_v47 = vld [vmem:[%s4850_s0 + $0x174] sm:$0xff]   ;;  %v3597_v49 = vld [vmem:[%s4850_s0 + $0x17c] sm:$0xff]   ;;  %v3599_v51 = vld [vmem:[%s4850_s0 + $0x184] ss:$0 sps:$4 sm:$0xff]  }
  0x12   :  { %v3600_v52 = vld [vmem:[%s4850_s0 + $0x188] sm:$0xff]   ;;  %v3602_v54 = vld [vmem:[%s4850_s0 + $0x190] sm:$0xff]   ;;  %v3604_v61 = vld [vmem:[%s4850_s0 + $0x198] sm:$0xff]  }
  0x13   :  { %v3601_v53 = vld [vmem:[%s4850_s0 + $0x24c] sm:$0xff]   ;;  %v3603_v55 = vld [vmem:[%s4850_s0 + $0x254] sm:$0xff]   ;;  %v3605_v62 = vld [vmem:[%s4850_s0 + $0x25c] sm:$0xff]  }
  0x16   :  { %3150 = vmatmul.mubr.msk.bf16.gmra.mrb[8].mxu0 %vm195_vm1, %v3554_v6  ;;  %3252 = vmatmul.mubr.msk.bf16.gmra.mrb[8].mxu1 %vm195_vm1, %v3555_v7 }
  0x17   :  { %3153 = vmatprep.mubr.msk.bf16.mxu0 %vm3651_vm0, %v4853_v0  ;;  %3255 = vmatprep.mubr.msk.bf16.mxu1 %vm3651_vm0, %v4853_v0 }
  0x1e   :  { %3154 = vmatmul.mubr.msk.bf16.gmra.mrb[12].mxu0 %vm195_vm1, %v3556_v8  ;;  %3256 = vmatmul.mubr.msk.bf16.gmra.mrb[12].mxu1 %vm195_vm1, %v3557_v9 }
  0x1f   :  { %3157 = vmatprep.mubr.msk.bf16.mxu0 %vm3651_vm0, %v4853_v0  ;;  %3259 = vmatprep.mubr.msk.bf16.mxu1 %vm3651_vm0, %v4853_v0 }
  0x26   :  { %3158 = vmatmul.mubr.msk.bf16.gmra.mrb[16].mxu0 %vm195_vm1, %v3558_v10  ;;  %3260 = vmatmul.mubr.msk.bf16.gmra.mrb[16].mxu1 %vm195_vm1, %v3559_v11  ;;  %v3606_v10 = vld [vmem:[%s4850_s0 + $0x1a0] sm:$0xff]  }
  0x27   :  { %3161 = vmatprep.mubr.msk.bf16.mxu0 %vm3651_vm0, %v4853_v0  ;;  %3263 = vmatprep.mubr.msk.bf16.mxu1 %vm3651_vm0, %v4853_v0  ;;  %v3607_v11 = vld [vmem:[%s4850_s0 + $0x264] sm:$0xff]  }
  0x2e   :  { %3162 = vmatmul.mubr.msk.bf16.gmra.mrb[20].mxu0 %vm195_vm1, %v3560_v12  ;;  %3264 = vmatmul.mubr.msk.bf16.gmra.mrb[20].mxu1 %vm195_vm1, %v3561_v13 }
  0x2f   :  { %3165 = vmatprep.mubr.msk.bf16.mxu0 %vm3651_vm0, %v4853_v0  ;;  %3267 = vmatprep.mubr.msk.bf16.mxu1 %vm3651_vm0, %v4853_v0 }
  0x36   :  { %3166 = vmatmul.mubr.msk.bf16.gmra.mrb[24].mxu0 %vm195_vm1, %v3562_v14  ;;  %3268 = vmatmul.mubr.msk.bf16.gmra.mrb[24].mxu1 %vm195_vm1, %v3563_v15 }
  0x37   :  { %3169 = vmatprep.mubr.msk.bf16.mxu0 %vm3651_vm0, %v4853_v0  ;;  %3271 = vmatprep.mubr.msk.bf16.mxu1 %vm3651_vm0, %v4853_v0 }
  0x3e   :  { %3170 = vmatmul.mubr.msk.bf16.gmra.mrb[28].mxu0 %vm195_vm1, %v3564_v16  ;;  %3272 = vmatmul.mubr.msk.bf16.gmra.mrb[28].mxu1 %vm195_vm1, %v3565_v17 }
  0x3f   :  { %3173 = vmatprep.mubr.msk.bf16.mxu0 %vm3651_vm0, %v4853_v0  ;;  %3275 = vmatprep.mubr.msk.bf16.mxu1 %vm3651_vm0, %v4853_v0 }
  0x46   :  { %3174 = vmatmul.mubr.msk.bf16.gmra.mrb[32].mxu0 %vm195_vm1, %v3566_v18  ;;  %3276 = vmatmul.mubr.msk.bf16.gmra.mrb[32].mxu1 %vm195_vm1, %v3567_v19 }
  0x47   :  { %3177 = vmatprep.mubr.msk.bf16.mxu0 %vm3651_vm0, %v4853_v0  ;;  %3279 = vmatprep.mubr.msk.bf16.mxu1 %vm3651_vm0, %v4853_v0 }
  0x4e   :  { %3178 = vmatmul.mubr.msk.bf16.gmra.mrb[36].mxu0 %vm195_vm1, %v3568_v20  ;;  %3280 = vmatmul.mubr.msk.bf16.gmra.mrb[36].mxu1 %vm195_vm1, %v3569_v21 }
  0x4f   :  { %3181 = vmatprep.mubr.msk.bf16.mxu0 %vm3651_vm0, %v4853_v0  ;;  %3283 = vmatprep.mubr.msk.bf16.mxu1 %vm3651_vm0, %v4853_v0 }
  0x56   :  { %3182 = vmatmul.mubr.msk.bf16.gmra.mrb[40].mxu0 %vm195_vm1, %v3570_v22  ;;  %3284 = vmatmul.mubr.msk.bf16.gmra.mrb[40].mxu1 %vm195_vm1, %v3571_v23  ;;  %v3608_v22 = vld [vmem:[%s4850_s0 + $0x1a8] sm:$0xff]  }
  0x57   :  { %3185 = vmatprep.mubr.msk.bf16.mxu0 %vm3651_vm0, %v4853_v0  ;;  %3287 = vmatprep.mubr.msk.bf16.mxu1 %vm3651_vm0, %v4853_v0  ;;  %v3609_v23 = vld [vmem:[%s4850_s0 + $0x26c] sm:$0xff]  }
  0x5e   :  { %3186 = vmatmul.mubr.msk.bf16.gmra.mrb[44].mxu0 %vm195_vm1, %v3572_v24  ;;  %3288 = vmatmul.mubr.msk.bf16.gmra.mrb[44].mxu1 %vm195_vm1, %v3573_v25 }
  0x5f   :  { %3189 = vmatprep.mubr.msk.bf16.mxu0 %vm3651_vm0, %v4853_v0  ;;  %3291 = vmatprep.mubr.msk.bf16.mxu1 %vm3651_vm0, %v4853_v0 }
  0x66   :  { %3190 = vmatmul.mubr.msk.bf16.gmra.mrb[48].mxu0 %vm195_vm1, %v3574_v26  ;;  %3292 = vmatmul.mubr.msk.bf16.gmra.mrb[48].mxu1 %vm195_vm1, %v3575_v27 }
  0x67   :  { %3193 = vmatprep.mubr.msk.bf16.mxu0 %vm3651_vm0, %v4853_v0  ;;  %3295 = vmatprep.mubr.msk.bf16.mxu1 %vm3651_vm0, %v4853_v0 }
  0x6e   :  { %3194 = vmatmul.mubr.msk.bf16.gmra.mrb[52].mxu0 %vm195_vm1, %v3576_v28  ;;  %3296 = vmatmul.mubr.msk.bf16.gmra.mrb[52].mxu1 %vm195_vm1, %v3577_v29 }
  0x6f   :  { %3197 = vmatprep.mubr.msk.bf16.mxu0 %vm3651_vm0, %v4853_v0  ;;  %3299 = vmatprep.mubr.msk.bf16.mxu1 %vm3651_vm0, %v4853_v0 }
  0x76   :  { %3198 = vmatmul.mubr.msk.bf16.gmra.mrb[56].mxu0 %vm195_vm1, %v3578_v30  ;;  %3300 = vmatmul.mubr.msk.bf16.gmra.mrb[56].mxu1 %vm195_vm1, %v3579_v31 }
  0x77   :  { %3201 = vmatprep.mubr.msk.bf16.mxu0 %vm3651_vm0, %v4853_v0  ;;  %3303 = vmatprep.mubr.msk.bf16.mxu1 %vm3651_vm0, %v4853_v0 }
  0x7e   :  { %3202 = vmatmul.mubr.msk.bf16.gmra.mrb[60].mxu0 %vm195_vm1, %v3580_v32  ;;  %3304 = vmatmul.mubr.msk.bf16.gmra.mrb[60].mxu1 %vm195_vm1, %v3581_v33 }
  0x7f   :  { %3205 = vmatprep.mubr.msk.bf16.mxu0 %vm3651_vm0, %v4853_v0  ;;  %3307 = vmatprep.mubr.msk.bf16.mxu1 %vm3651_vm0, %v4853_v0 }
  0x86   :  { %3206 = vmatmul.mubr.msk.bf16.gmra.mrb[64].mxu0 %vm195_vm1, %v3582_v34  ;;  %3308 = vmatmul.mubr.msk.bf16.gmra.mrb[64].mxu1 %vm195_vm1, %v3583_v35  ;;  %v3610_v34 = vld [vmem:[%s4850_s0 + $0x1b0] sm:$0xff]  }
  0x87   :  { %3209 = vmatprep.mubr.msk.bf16.mxu0 %vm3651_vm0, %v4853_v0  ;;  %3311 = vmatprep.mubr.msk.bf16.mxu1 %vm3651_vm0, %v4853_v0  ;;  %v3611_v35 = vld [vmem:[%s4850_s0 + $0x274] sm:$0xff]  }
  0x8e   :  { %3210 = vmatmul.mubr.msk.bf16.gmra.mrb[68].mxu0 %vm195_vm1, %v3584_v36  ;;  %3312 = vmatmul.mubr.msk.bf16.gmra.mrb[68].mxu1 %vm195_vm1, %v3585_v37 }
  0x8f   :  { %3213 = vmatprep.mubr.msk.bf16.mxu0 %vm3651_vm0, %v4853_v0  ;;  %3315 = vmatprep.mubr.msk.bf16.mxu1 %vm3651_vm0, %v4853_v0 }
  0x96   :  { %3214 = vmatmul.mubr.msk.bf16.gmra.mrb[72].mxu0 %vm195_vm1, %v3586_v38  ;;  %3316 = vmatmul.mubr.msk.bf16.gmra.mrb[72].mxu1 %vm195_vm1, %v3587_v39 }
  0x97   :  { %3217 = vmatprep.mubr.msk.bf16.mxu0 %vm3651_vm0, %v4853_v0  ;;  %3319 = vmatprep.mubr.msk.bf16.mxu1 %vm3651_vm0, %v4853_v0 }
  0x9e   :  { %3218 = vmatmul.mubr.msk.bf16.gmra.mrb[76].mxu0 %vm195_vm1, %v3588_v40  ;;  %3320 = vmatmul.mubr.msk.bf16.gmra.mrb[76].mxu1 %vm195_vm1, %v3589_v41 }
  0x9f   :  { %3221 = vmatprep.mubr.msk.bf16.mxu0 %vm3651_vm0, %v4853_v0  ;;  %3323 = vmatprep.mubr.msk.bf16.mxu1 %vm3651_vm0, %v4853_v0 }
  0xa6   :  { %3222 = vmatmul.mubr.msk.bf16.gmra.mrb[80].mxu0 %vm195_vm1, %v3590_v42  ;;  %3324 = vmatmul.mubr.msk.bf16.gmra.mrb[80].mxu1 %vm195_vm1, %v3591_v43 }
  0xa7   :  { %3225 = vmatprep.mubr.msk.bf16.mxu0 %vm3651_vm0, %v4853_v0  ;;  %3327 = vmatprep.mubr.msk.bf16.mxu1 %vm3651_vm0, %v4853_v0 }
  0xae   :  { %3226 = vmatmul.mubr.msk.bf16.gmra.mrb[84].mxu0 %vm195_vm1, %v3592_v44  ;;  %3328 = vmatmul.mubr.msk.bf16.gmra.mrb[84].mxu1 %vm195_vm1, %v3593_v45 }
  0xaf   :  { %3229 = vmatprep.mubr.msk.bf16.mxu0 %vm3651_vm0, %v4853_v0  ;;  %3331 = vmatprep.mubr.msk.bf16.mxu1 %vm3651_vm0, %v4853_v0 }
  0xb6   :  { %3230 = vmatmul.mubr.msk.bf16.gmra.mrb[88].mxu0 %vm195_vm1, %v3594_v46  ;;  %3332 = vmatmul.mubr.msk.bf16.gmra.mrb[88].mxu1 %vm195_vm1, %v3595_v47  ;;  %v3612_v46 = vld [vmem:[%s4850_s0 + $0x1b8] sm:$0xff]  }
  0xb7   :  { %3233 = vmatprep.mubr.msk.bf16.mxu0 %vm3651_vm0, %v4853_v0  ;;  %3335 = vmatprep.mubr.msk.bf16.mxu1 %vm3651_vm0, %v4853_v0  ;;  %v3613_v47 = vld [vmem:[%s4850_s0 + $0x27c] sm:$0xff]  }
  0xbe   :  { %3234 = vmatmul.mubr.msk.bf16.gmra.mrb[92].mxu0 %vm195_vm1, %v3596_v48  ;;  %3336 = vmatmul.mubr.msk.bf16.gmra.mrb[92].mxu1 %vm195_vm1, %v3597_v49 }
  0xbf   :  { %3237 = vmatprep.mubr.msk.bf16.mxu0 %vm3651_vm0, %v4853_v0  ;;  %3339 = vmatprep.mubr.msk.bf16.mxu1 %vm3651_vm0, %v4853_v0 }
  0xc6   :  { %3238 = vmatmul.mubr.msk.bf16.gmra.mrb[96].mxu0 %vm195_vm1, %v3598_v50  ;;  %3340 = vmatmul.mubr.msk.bf16.gmra.mrb[96].mxu1 %vm195_vm1, %v3599_v51 }
  0xc7   :  { %3345 = vmatprep.mubr.msk.bf16.mxu0 %vm3651_vm0, %v4853_v0  ;;  %3447 = vmatprep.mubr.msk.bf16.mxu1 %vm3651_vm0, %v4853_v0 }
  0xce   :  { %3346 = vmatmul.mubr.msk.bf16.vlgmr.msra.gmra.mrb[100].mxu0 %vm195_vm1, %v3600_v52  ;;  %3448 = vmatmul.mubr.msk.bf16.vlgmr.msra.gmra.mrb[100].mxu1 %vm195_vm1, %v3601_v53 }
  0xcf   :  { %3349 = vmatprep.mubr.msk.bf16.mxu0 %vm3651_vm0, %v4853_v0  ;;  %3451 = vmatprep.mubr.msk.bf16.mxu1 %vm3651_vm0, %v4853_v0 }
  0xd6   :  { %3350 = vmatmul.mubr.msk.bf16.gmra.mrb[104].mxu0 %vm195_vm1, %v3602_v54  ;;  %3452 = vmatmul.mubr.msk.bf16.gmra.mrb[104].mxu1 %vm195_vm1, %v3603_v55 }
  0xd7   :  { %3353 = vmatprep.mubr.msk.bf16.mxu0 %vm3651_vm0, %v4853_v0  ;;  %3455 = vmatprep.mubr.msk.bf16.mxu1 %vm3651_vm0, %v4853_v0 }
  0xd9   :  { %v4007_v56 = vpop.f32.mrb[0].mxu0  ;;  %v4009_v57 = vpop.f32.mrb[0].mxu1 }
  0xda   :  { %v3143_v59 = vpop.f32.mrb[1].mxu0  ;;  %v3245_v60 = vpop.f32.mrb[1].mxu1 }
  0xdb   :  { %v4019_v63 = vpop.f32.mrb[2].mxu0  ;;  %v4021_v1 = vpop.f32.mrb[2].mxu1 }
  0xdc   :  { %v3144_v3 = vpop.f32.mrb[3].mxu0  ;;  %v3246_v4 = vpop.f32.mrb[3].mxu1 }
  0xde   :  { %3354 = vmatmul.mubr.msk.bf16.gmra.mrb[108].mxu0 %vm195_vm1, %v3604_v61  ;;  %3456 = vmatmul.mubr.msk.bf16.gmra.mrb[108].mxu1 %vm195_vm1, %v3605_v62  ;;  %v3614_v61 = vld [vmem:[%s4850_s0 + $0x1c0] sm:$0xff]  }
  0xdf   :  { %3357 = vmatprep.mubr.msk.bf16.mxu0 %vm3651_vm0, %v4853_v0  ;;  %3459 = vmatprep.mubr.msk.bf16.mxu1 %vm3651_vm0, %v4853_v0  ;;  %v3615_v62 = vld [vmem:[%s4850_s0 + $0x284] sm:$0xff]  }
  0xe1   :  { %v4031_v5 = vpop.f32.mrb[4].mxu0  ;;  %v4033_v6 = vpop.f32.mrb[4].mxu1 }
  0xe2   :  { %v3147_v8 = vpop.f32.mrb[5].mxu0  ;;  %v3249_v9 = vpop.f32.mrb[5].mxu1 }
  0xe3   :  { %v4043_v12 = vpop.f32.mrb[6].mxu0  ;;  %v4045_v13 = vpop.f32.mrb[6].mxu1 }
  0xe4   :  { %v3148_v15 = vpop.f32.mrb[7].mxu0  ;;  %v3250_v16 = vpop.f32.mrb[7].mxu1 }
  0xe6   :  { %3358 = vmatmul.mubr.msk.bf16.gmra.mrb[112].mxu0 %vm195_vm1, %v3606_v10  ;;  %3460 = vmatmul.mubr.msk.bf16.gmra.mrb[112].mxu1 %vm195_vm1, %v3607_v11 }
  0xe7   :  { %3361 = vmatprep.mubr.msk.bf16.mxu0 %vm3651_vm0, %v4853_v0  ;;  %3463 = vmatprep.mubr.msk.bf16.mxu1 %vm3651_vm0, %v4853_v0 }
  0xe9   :  { %v4055_v17 = vpop.f32.mrb[8].mxu0  ;;  %v4057_v18 = vpop.f32.mrb[8].mxu1 }
  0xea   :  { %v3151_v20 = vpop.f32.mrb[9].mxu0  ;;  %v3253_v21 = vpop.f32.mrb[9].mxu1 }
  0xeb   :  { %v4067_v24 = vpop.f32.mrb[10].mxu0  ;;  %v4069_v25 = vpop.f32.mrb[10].mxu1 }
  0xec   :  { %v3152_v27 = vpop.f32.mrb[11].mxu0  ;;  %v3254_v28 = vpop.f32.mrb[11].mxu1 }
  0xee   :  { %3362 = vmatmul.mubr.msk.bf16.gmra.mrb[116].mxu0 %vm195_vm1, %v3608_v22  ;;  %3464 = vmatmul.mubr.msk.bf16.gmra.mrb[116].mxu1 %vm195_vm1, %v3609_v23  ;;  %v3616_v22 = vld [vmem:[%s4850_s0 + $0x1c8] sm:$0xff]  }
  0xef   :  { %3365 = vmatprep.mubr.msk.bf16.mxu0 %vm3651_vm0, %v4853_v0  ;;  %3467 = vmatprep.mubr.msk.bf16.mxu1 %vm3651_vm0, %v4853_v0  ;;  %v3617_v23 = vld [vmem:[%s4850_s0 + $0x28c] sm:$0xff]  }
  0xf1   :  { %v4079_v29 = vpop.f32.mrb[12].mxu0  ;;  %v4081_v30 = vpop.f32.mrb[12].mxu1 }
  0xf2   :  { %v3155_v32 = vpop.f32.mrb[13].mxu0  ;;  %v3257_v33 = vpop.f32.mrb[13].mxu1 }
  0xf3   :  { %v4091_v36 = vpop.f32.mrb[14].mxu0  ;;  %v4093_v37 = vpop.f32.mrb[14].mxu1 }
  0xf4   :  { %v3156_v39 = vpop.f32.mrb[15].mxu0  ;;  %v3258_v40 = vpop.f32.mrb[15].mxu1 }
  0xf6   :  { %3366 = vmatmul.mubr.msk.bf16.gmra.mrb[120].mxu0 %vm195_vm1, %v3610_v34  ;;  %3468 = vmatmul.mubr.msk.bf16.gmra.mrb[120].mxu1 %vm195_vm1, %v3611_v35 }
  0xf7   :  { %3369 = vmatprep.mubr.msk.bf16.mxu0 %vm3651_vm0, %v4853_v0  ;;  %3471 = vmatprep.mubr.msk.bf16.mxu1 %vm3651_vm0, %v4853_v0 }
  0xf9   :  { %v4103_v41 = vpop.f32.mrb[16].mxu0  ;;  %v4105_v42 = vpop.f32.mrb[16].mxu1 }
  0xfa   :  { %v3159_v44 = vpop.f32.mrb[17].mxu0  ;;  %v3261_v45 = vpop.f32.mrb[17].mxu1 }
  0xfb   :  { %v4115_v48 = vpop.f32.mrb[18].mxu0  ;;  %v4117_v49 = vpop.f32.mrb[18].mxu1 }
  0xfc   :  { %v3160_v51 = vpop.f32.mrb[19].mxu0  ;;  %v3262_v52 = vpop.f32.mrb[19].mxu1 }
  0xfe   :  { %3370 = vmatmul.mubr.msk.bf16.gmra.mrb[124].mxu0 %vm195_vm1, %v3612_v46  ;;  %3472 = vmatmul.mubr.msk.bf16.gmra.mrb[124].mxu1 %vm195_vm1, %v3613_v47  ;;  %v3618_v46 = vld [vmem:[%s4850_s0 + $0x1d0] sm:$0xff]  }
  0xff   :  { %3373 = vmatprep.mubr.msk.bf16.mxu0 %vm3651_vm0, %v4853_v0  ;;  %3475 = vmatprep.mubr.msk.bf16.mxu1 %vm3651_vm0, %v4853_v0  ;;  %v3619_v47 = vld [vmem:[%s4850_s0 + $0x294] sm:$0xff]  }
 0x101   :  { %v4127_v53 = vpop.f32.mrb[20].mxu0  ;;  %v4129_v54 = vpop.f32.mrb[20].mxu1 }
 0x102   :  { %v3163_v59 = vpop.f32.mrb[21].mxu0  ;;  %v3265_v60 = vpop.f32.mrb[21].mxu1 }
 0x103   :  { %v4139_v3 = vpop.f32.mrb[22].mxu0  ;;  %v4141_v4 = vpop.f32.mrb[22].mxu1 }
 0x104   :  { %v3164_v9 = vpop.f32.mrb[23].mxu0  ;;  %v3266_v10 = vpop.f32.mrb[23].mxu1 }
 0x106   :  { %3374 = vmatmul.mubr.msk.bf16.gmra.mrb[128].mxu0 %vm195_vm1, %v3614_v61  ;;  %3476 = vmatmul.mubr.msk.bf16.gmra.mrb[128].mxu1 %vm195_vm1, %v3615_v62 }
 0x107   :  { %3377 = vmatprep.mubr.msk.bf16.mxu0 %vm3651_vm0, %v4853_v0  ;;  %3479 = vmatprep.mubr.msk.bf16.mxu1 %vm3651_vm0, %v4853_v0 }
 0x109   :  { %v4151_v11 = vpop.f32.mrb[24].mxu0  ;;  %v4153_v15 = vpop.f32.mrb[24].mxu1 }
 0x10a   :  { %v3167_v20 = vpop.f32.mrb[25].mxu0  ;;  %v3269_v21 = vpop.f32.mrb[25].mxu1 }
 0x10b   :  { %v4163_v27 = vpop.f32.mrb[26].mxu0  ;;  %v4165_v28 = vpop.f32.mrb[26].mxu1 }
 0x10c   :  { %v3168_v33 = vpop.f32.mrb[27].mxu0  ;;  %v3270_v34 = vpop.f32.mrb[27].mxu1 }
 0x10e   :  { %3378 = vmatmul.mubr.msk.bf16.gmra.mrb[132].mxu0 %vm195_vm1, %v3616_v22  ;;  %3480 = vmatmul.mubr.msk.bf16.gmra.mrb[132].mxu1 %vm195_vm1, %v3617_v23  ;;  %v3620_v22 = vld [vmem:[%s4850_s0 + $0x1d8] sm:$0xff]  }
 0x10f   :  { %3381 = vmatprep.mubr.msk.bf16.mxu0 %vm3651_vm0, %v4853_v0  ;;  %3483 = vmatprep.mubr.msk.bf16.mxu1 %vm3651_vm0, %v4853_v0  ;;  %v3621_v23 = vld [vmem:[%s4850_s0 + $0x29c] sm:$0xff]  }
 0x111   :  { %v4175_v35 = vpop.f32.mrb[28].mxu0  ;;  %v4177_v39 = vpop.f32.mrb[28].mxu1 }
 0x112   :  { %v3171_v44 = vpop.f32.mrb[29].mxu0  ;;  %v3273_v45 = vpop.f32.mrb[29].mxu1 }
 0x113   :  { %v4187_v51 = vpop.f32.mrb[30].mxu0  ;;  %v4189_v52 = vpop.f32.mrb[30].mxu1 }
 0x114   :  { %v3172_v60 = vpop.f32.mrb[31].mxu0  ;;  %v3274_v61 = vpop.f32.mrb[31].mxu1 }
 0x116   :  { %3382 = vmatmul.mubr.msk.bf16.gmra.mrb[136].mxu0 %vm195_vm1, %v3618_v46  ;;  %3484 = vmatmul.mubr.msk.bf16.gmra.mrb[136].mxu1 %vm195_vm1, %v3619_v47 }
 0x117   :  { %3385 = vmatprep.mubr.msk.bf16.mxu0 %vm3651_vm0, %v4853_v0  ;;  %3487 = vmatprep.mubr.msk.bf16.mxu1 %vm3651_vm0, %v4853_v0 }
 0x119   :  { %v4199_v62 = vpop.f32.mrb[32].mxu0  ;;  %v4201_v9 = vpop.f32.mrb[32].mxu1 }
 0x11a   :  { %v3175_v20 = vpop.f32.mrb[33].mxu0  ;;  %v3277_v21 = vpop.f32.mrb[33].mxu1 }
 0x11b   :  { %v4211_v33 = vpop.f32.mrb[34].mxu0  ;;  %v4213_v34 = vpop.f32.mrb[34].mxu1 }
 0x11c   :  { %v3176_v45 = vpop.f32.mrb[35].mxu0  ;;  %v3278_v46 = vpop.f32.mrb[35].mxu1 }
 0x11e   :  { %3386 = vmatmul.mubr.msk.bf16.gmra.mrb[140].mxu0 %vm195_vm1, %v3620_v22  ;;  %3488 = vmatmul.mubr.msk.bf16.gmra.mrb[140].mxu1 %vm195_vm1, %v3621_v23  ;;  %v3622_v22 = vld [vmem:[%s4850_s0 + $0x1e0] sm:$0xff]  }
 0x11f   :  { %3389 = vmatprep.mubr.msk.bf16.mxu0 %vm3651_vm0, %v4853_v0  ;;  %3491 = vmatprep.mubr.msk.bf16.mxu1 %vm3651_vm0, %v4853_v0  ;;  %v3623_v23 = vld [vmem:[%s4850_s0 + $0x2a4] sm:$0xff]  }
 0x121   :  { %v4223_v47 = vpop.f32.mrb[36].mxu0  ;;  %v4225_v60 = vpop.f32.mrb[36].mxu1 }
 0x122   :  { %v3179_v20 = vpop.f32.mrb[37].mxu0  ;;  %v3281_v21 = vpop.f32.mrb[37].mxu1 }
 0x123   :  { %v4235_v45 = vpop.f32.mrb[38].mxu0  ;;  %v4237_v46 = vpop.f32.mrb[38].mxu1 }
 0x124   :  { %v3180_v10 = vpop.f32.mrb[39].mxu0  ;;  %v3282_v59 = vpop.f32.mrb[39].mxu1 }
 0x125   :  { %v3624_v59 = vld [vmem:[%s4850_s0 + $0x1e8] sm:$0xff]  }
 0x126   :  { %3390 = vmatmul.mubr.msk.bf16.gmra.mrb[144].mxu0 %vm195_vm1, %v3622_v22  ;;  %3492 = vmatmul.mubr.msk.bf16.gmra.mrb[144].mxu1 %vm195_vm1, %v3623_v23  ;;  %v3625_v22 = vld [vmem:[%s4850_s0 + $0x2ac] sm:$0xff]  }
 0x127   :  { %3393 = vmatprep.mubr.msk.bf16.mxu0 %vm3651_vm0, %v4853_v0  ;;  %3495 = vmatprep.mubr.msk.bf16.mxu1 %vm3651_vm0, %v4853_v0 }
 0x129   :  { %v4247_v20 = vpop.f32.mrb[40].mxu0  ;;  %v4249_v21 = vpop.f32.mrb[40].mxu1 }
 0x12a   :  { %v3183_v44 = vpop.f32.mrb[41].mxu0  ;;  %v3285_v10 = vpop.f32.mrb[41].mxu1 }
 0x12b   :  { %v4259_v23 = vpop.f32.mrb[42].mxu0  ;;  %v4261_v40 = vpop.f32.mrb[42].mxu1 }
 0x12c   :  { %v3184_v16 = vpop.f32.mrb[43].mxu0  ;;  %v3286_v8 = vpop.f32.mrb[43].mxu1 }
 0x12d   :  { %v3626_v8 = vld [vmem:[%s4850_s0 + $0x1f0] sm:$0xff]  }
 0x12e   :  { %3394 = vmatmul.mubr.msk.bf16.gmra.mrb[148].mxu0 %vm195_vm1, %v3624_v59  ;;  %3496 = vmatmul.mubr.msk.bf16.gmra.mrb[148].mxu1 %vm195_vm1, %v3625_v22  ;;  %v3627_v59 = vld [vmem:[%s4850_s0 + $0x2b4] sm:$0xff]  }
 0x12f   :  { %3397 = vmatprep.mubr.msk.bf16.mxu0 %vm3651_vm0, %v4853_v0  ;;  %3499 = vmatprep.mubr.msk.bf16.mxu1 %vm3651_vm0, %v4853_v0 }
 0x131   :  { %v4271_v44 = vpop.f32.mrb[44].mxu0  ;;  %v4273_v10 = vpop.f32.mrb[44].mxu1 }
 0x132   :  { %v3187_v32 = vpop.f32.mrb[45].mxu0  ;;  %v3289_v16 = vpop.f32.mrb[45].mxu1 }
 0x133   :  { %v4283_v22 = vpop.f32.mrb[46].mxu0  ;;  %v4285_v55 = vpop.f32.mrb[46].mxu1 }
 0x134   :  { %4907 = vst [vmem:[#allocation2_spill] sm:$0xff] %v4283_v22  ;;  %4908 = vst [vmem:[#allocation3_spill] sm:$0xff] %v4285_v55  ;;  %v3188_v43 = vpop.f32.mrb[47].mxu0  ;;  %v3290_v38 = vpop.f32.mrb[47].mxu1 }
 0x135   :  { %v3628_v38 = vld [vmem:[%s4850_s0 + $0x1f8] sm:$0xff]  }
 0x136   :  { %3398 = vmatmul.mubr.msk.bf16.gmra.mrb[152].mxu0 %vm195_vm1, %v3626_v8  ;;  %3500 = vmatmul.mubr.msk.bf16.gmra.mrb[152].mxu1 %vm195_vm1, %v3627_v59  ;;  %v3629_v8 = vld [vmem:[%s4850_s0 + $0x2bc] sm:$0xff]  }
 0x137   :  { %3401 = vmatprep.mubr.msk.bf16.mxu0 %vm3651_vm0, %v4853_v0  ;;  %3503 = vmatprep.mubr.msk.bf16.mxu1 %vm3651_vm0, %v4853_v0 }
 0x139   :  { %v4295_v32 = vpop.f32.mrb[48].mxu0  ;;  %v4297_v16 = vpop.f32.mrb[48].mxu1 }
 0x13a   :  { %4909 = vst [vmem:[#allocation4_spill] sm:$0xff] %v4295_v32  ;;  %4910 = vst [vmem:[#allocation5_spill] sm:$0xff] %v4297_v16  ;;  %v3191_v50 = vpop.f32.mrb[49].mxu0  ;;  %v3293_v43 = vpop.f32.mrb[49].mxu1 }
 0x13b   :  { %v4307_v59 = vpop.f32.mrb[50].mxu0  ;;  %v4309_v31 = vpop.f32.mrb[50].mxu1 }
 0x13c   :  { %4911 = vst [vmem:[#allocation6_spill] sm:$0xff] %v4307_v59  ;;  %4912 = vst [vmem:[#allocation7_spill] sm:$0xff] %v4309_v31  ;;  %v3192_v19 = vpop.f32.mrb[51].mxu0  ;;  %v3294_v14 = vpop.f32.mrb[51].mxu1 }
 0x13d   :  { %v3630_v14 = vld [vmem:[%s4850_s0 + $0x200] sm:$0xff]  }
 0x13e   :  { %3402 = vmatmul.mubr.msk.bf16.gmra.mrb[156].mxu0 %vm195_vm1, %v3628_v38  ;;  %3504 = vmatmul.mubr.msk.bf16.gmra.mrb[156].mxu1 %vm195_vm1, %v3629_v8  ;;  %v3631_v38 = vld [vmem:[%s4850_s0 + $0x2c4] sm:$0xff]  }
 0x13f   :  { %3405 = vmatprep.mubr.msk.bf16.mxu0 %vm3651_vm0, %v4853_v0  ;;  %3507 = vmatprep.mubr.msk.bf16.mxu1 %vm3651_vm0, %v4853_v0 }
 0x141   :  { %v4319_v50 = vpop.f32.mrb[52].mxu0  ;;  %v4321_v43 = vpop.f32.mrb[52].mxu1 }
 0x142   :  { %4913 = vst [vmem:[#allocation8_spill] sm:$0xff] %v4319_v50  ;;  %4914 = vst [vmem:[#allocation9_spill] sm:$0xff] %v4321_v43  ;;  %v3195_v26 = vpop.f32.mrb[53].mxu0  ;;  %v3297_v19 = vpop.f32.mrb[53].mxu1 }
 0x143   :  { %v4331_v8 = vpop.f32.mrb[54].mxu0  ;;  %v4333_v7 = vpop.f32.mrb[54].mxu1  ;;  %v4917_v26 = vmov 0.0  }
 0x144   :  { %4915 = vst [vmem:[#allocation10_spill] sm:$0xff] %v4331_v8  ;;  %4916 = vst [vmem:[#allocation11_spill] sm:$0xff] %v4333_v7  ;;  %v3196_v58 = vpop.f32.mrb[55].mxu0  ;;  %v3298_v0 = vpop.f32.mrb[55].mxu1 }
 0x145   :  { %v3632_v0 = vld [vmem:[%s4850_s0 + $0x208] sm:$0xff]  }
 0x146   :  { %3406 = vmatmul.mubr.msk.bf16.gmra.mrb[160].mxu0 %vm195_vm1, %v3630_v14  ;;  %3508 = vmatmul.mubr.msk.bf16.gmra.mrb[160].mxu1 %vm195_vm1, %v3631_v38  ;;  %v3633_v14 = vld [vmem:[%s4850_s0 + $0x2cc] sm:$0xff]  }
 0x147   :  { %3409 = vmatprep.mubr.msk.bf16.mxu0 %vm3651_vm0, %v4917_v26  ;;  %3511 = vmatprep.mubr.msk.bf16.mxu1 %vm3651_vm0, %v4917_v26 }
 0x149   :  { %v4343_v19 = vpop.f32.mrb[56].mxu0  ;;  %v4345_v61 = vpop.f32.mrb[56].mxu1 }
 0x14a   :  { %4918 = vst [vmem:[#allocation12_spill] sm:$0xff] %v4343_v19  ;;  %4919 = vst [vmem:[#allocation13_spill] sm:$0xff] %v4345_v61  ;;  %v3199_v2 = vpop.f32.mrb[57].mxu0  ;;  %v3301_v58 = vpop.f32.mrb[57].mxu1 }
 0x14b   :  { %v4355_v38 = vpop.f32.mrb[58].mxu0  ;;  %v4357_v7 = vpop.f32.mrb[58].mxu1 }
 0x14c   :  { %4920 = vst [vmem:[#allocation14_spill] sm:$0xff] %v4355_v38  ;;  %4921 = vst [vmem:[#allocation15_spill] sm:$0xff] %v4357_v7  ;;  %v3200_v50 = vpop.f32.mrb[59].mxu0  ;;  %v3302_v31 = vpop.f32.mrb[59].mxu1 }
 0x14d   :  { %v3634_v31 = vld [vmem:[%s4850_s0 + $0x210] sm:$0xff]  }
 0x14e   :  { %3410 = vmatmul.mubr.msk.bf16.gmra.mrb[164].mxu0 %vm195_vm1, %v3632_v0  ;;  %3512 = vmatmul.mubr.msk.bf16.gmra.mrb[164].mxu1 %vm195_vm1, %v3633_v14  ;;  %v3635_v0 = vld [vmem:[%s4850_s0 + $0x2d4] sm:$0xff]  }
 0x14f   :  { %3413 = vmatprep.mubr.msk.bf16.mxu0 %vm3651_vm0, %v4917_v26  ;;  %3515 = vmatprep.mubr.msk.bf16.mxu1 %vm3651_vm0, %v4917_v26 }
 0x151   :  { %v4367_v2 = vpop.f32.mrb[60].mxu0  ;;  %v4369_v58 = vpop.f32.mrb[60].mxu1 }
 0x152   :  { %4922 = vst [vmem:[#allocation16_spill] sm:$0xff] %v4367_v2  ;;  %4923 = vst [vmem:[#allocation17_spill] sm:$0xff] %v4369_v58  ;;  %v3203_v8 = vpop.f32.mrb[61].mxu0  ;;  %v3305_v50 = vpop.f32.mrb[61].mxu1 }
 0x153   :  { %v4379_v14 = vpop.f32.mrb[62].mxu0  ;;  %v4381_v7 = vpop.f32.mrb[62].mxu1 }
 0x154   :  { %4924 = vst [vmem:[#allocation18_spill] sm:$0xff] %v4379_v14  ;;  %4925 = vst [vmem:[#allocation19_spill] sm:$0xff] %v4381_v7  ;;  %v3204_v61 = vpop.f32.mrb[63].mxu0  ;;  %v3306_v19 = vpop.f32.mrb[63].mxu1 }
 0x155   :  { %v3636_v19 = vld [vmem:[%s4850_s0 + $0x218] sm:$0xff]  }
 0x156   :  { %3414 = vmatmul.mubr.msk.bf16.gmra.mrb[168].mxu0 %vm195_vm1, %v3634_v31  ;;  %3516 = vmatmul.mubr.msk.bf16.gmra.mrb[168].mxu1 %vm195_vm1, %v3635_v0  ;;  %v3637_v31 = vld [vmem:[%s4850_s0 + $0x2dc] sm:$0xff]  }
 0x157   :  { %3417 = vmatprep.mubr.msk.bf16.mxu0 %vm3651_vm0, %v4917_v26  ;;  %3519 = vmatprep.mubr.msk.bf16.mxu1 %vm3651_vm0, %v4917_v26 }
 0x159   :  { %v4391_v8 = vpop.f32.mrb[64].mxu0  ;;  %v4393_v50 = vpop.f32.mrb[64].mxu1 }
 0x15a   :  { %4926 = vst [vmem:[#allocation20_spill] sm:$0xff] %v4391_v8  ;;  %4927 = vst [vmem:[#allocation21_spill] sm:$0xff] %v4393_v50  ;;  %v3207_v38 = vpop.f32.mrb[65].mxu0  ;;  %v3309_v61 = vpop.f32.mrb[65].mxu1 }
 0x15b   :  { %v4403_v0 = vpop.f32.mrb[66].mxu0  ;;  %v4405_v7 = vpop.f32.mrb[66].mxu1 }
 0x15c   :  { %4928 = vst [vmem:[#allocation22_spill] sm:$0xff] %v4403_v0  ;;  %4929 = vst [vmem:[#allocation23_spill] sm:$0xff] %v4405_v7  ;;  %v3208_v58 = vpop.f32.mrb[67].mxu0  ;;  %v3310_v2 = vpop.f32.mrb[67].mxu1 }
 0x15d   :  { %v3638_v2 = vld [vmem:[%s4850_s0 + $0x220] sm:$0xff]  }
 0x15e   :  { %3418 = vmatmul.mubr.msk.bf16.gmra.mrb[172].mxu0 %vm195_vm1, %v3636_v19  ;;  %3520 = vmatmul.mubr.msk.bf16.gmra.mrb[172].mxu1 %vm195_vm1, %v3637_v31  ;;  %v3639_v19 = vld [vmem:[%s4850_s0 + $0x2e4] sm:$0xff]  }
 0x15f   :  { %3421 = vmatprep.mubr.msk.bf16.mxu0 %vm3651_vm0, %v4917_v26  ;;  %3523 = vmatprep.mubr.msk.bf16.mxu1 %vm3651_vm0, %v4917_v26 }
 0x161   :  { %v4415_v38 = vpop.f32.mrb[68].mxu0  ;;  %v4417_v61 = vpop.f32.mrb[68].mxu1 }
 0x162   :  { %4930 = vst [vmem:[#allocation24_spill] sm:$0xff] %v4415_v38  ;;  %4931 = vst [vmem:[#allocation25_spill] sm:$0xff] %v4417_v61  ;;  %v3211_v14 = vpop.f32.mrb[69].mxu0  ;;  %v3313_v58 = vpop.f32.mrb[69].mxu1 }
 0x163   :  { %v4427_v31 = vpop.f32.mrb[70].mxu0  ;;  %v4429_v7 = vpop.f32.mrb[70].mxu1 }
 0x164   :  { %4932 = vst [vmem:[#allocation26_spill] sm:$0xff] %v4427_v31  ;;  %4933 = vst [vmem:[#allocation27_spill] sm:$0xff] %v4429_v7  ;;  %v3212_v50 = vpop.f32.mrb[71].mxu0  ;;  %v3314_v8 = vpop.f32.mrb[71].mxu1 }
 0x165   :  { %v3640_v8 = vld [vmem:[%s4850_s0 + $0x228] sm:$0xff]  }
 0x166   :  { %3422 = vmatmul.mubr.msk.bf16.gmra.mrb[176].mxu0 %vm195_vm1, %v3638_v2  ;;  %3524 = vmatmul.mubr.msk.bf16.gmra.mrb[176].mxu1 %vm195_vm1, %v3639_v19  ;;  %v3641_v2 = vld [vmem:[%s4850_s0 + $0x2ec] sm:$0xff]  }
 0x167   :  { %3425 = vmatprep.mubr.msk.bf16.mxu0 %vm3651_vm0, %v4917_v26  ;;  %3527 = vmatprep.mubr.msk.bf16.mxu1 %vm3651_vm0, %v4917_v26 }
 0x169   :  { %v4439_v14 = vpop.f32.mrb[72].mxu0  ;;  %v4441_v58 = vpop.f32.mrb[72].mxu1 }
 0x16a   :  { %4934 = vst [vmem:[#allocation28_spill] sm:$0xff] %v4439_v14  ;;  %4935 = vst [vmem:[#allocation29_spill] sm:$0xff] %v4441_v58  ;;  %v3215_v0 = vpop.f32.mrb[73].mxu0  ;;  %v3317_v50 = vpop.f32.mrb[73].mxu1 }
 0x16b   :  { %v4451_v19 = vpop.f32.mrb[74].mxu0  ;;  %v4453_v7 = vpop.f32.mrb[74].mxu1 }
 0x16c   :  { %4936 = vst [vmem:[#allocation30_spill] sm:$0xff] %v4451_v19  ;;  %4937 = vst [vmem:[#allocation31_spill] sm:$0xff] %v4453_v7  ;;  %v3216_v61 = vpop.f32.mrb[75].mxu0  ;;  %v3318_v38 = vpop.f32.mrb[75].mxu1 }
 0x16d   :  { %v3642_v38 = vld [vmem:[%s4850_s0 + $0x230] sm:$0xff]  }
 0x16e   :  { %3426 = vmatmul.mubr.msk.bf16.gmra.mrb[180].mxu0 %vm195_vm1, %v3640_v8  ;;  %3528 = vmatmul.mubr.msk.bf16.gmra.mrb[180].mxu1 %vm195_vm1, %v3641_v2  ;;  %v3643_v8 = vld [vmem:[%s4850_s0 + $0x2f4] sm:$0xff]  }
 0x16f   :  { %3429 = vmatprep.mubr.msk.bf16.mxu0 %vm3651_vm0, %v4917_v26  ;;  %3531 = vmatprep.mubr.msk.bf16.mxu1 %vm3651_vm0, %v4917_v26 }
 0x171   :  { %v4463_v0 = vpop.f32.mrb[76].mxu0  ;;  %v4465_v50 = vpop.f32.mrb[76].mxu1 }
 0x172   :  { %4938 = vst [vmem:[#allocation32_spill] sm:$0xff] %v4463_v0  ;;  %4939 = vst [vmem:[#allocation33_spill] sm:$0xff] %v4465_v50  ;;  %v3219_v31 = vpop.f32.mrb[77].mxu0  ;;  %v3321_v61 = vpop.f32.mrb[77].mxu1 }
 0x173   :  { %v4475_v2 = vpop.f32.mrb[78].mxu0  ;;  %v4477_v7 = vpop.f32.mrb[78].mxu1 }
 0x174   :  { %4940 = vst [vmem:[#allocation34_spill] sm:$0xff] %v4475_v2  ;;  %4941 = vst [vmem:[#allocation35_spill] sm:$0xff] %v4477_v7  ;;  %v3220_v58 = vpop.f32.mrb[79].mxu0  ;;  %v3322_v14 = vpop.f32.mrb[79].mxu1 }
 0x175   :  { %v3644_v14 = vld [vmem:[%s4850_s0 + $0x238] sm:$0xff]  }
 0x176   :  { %3430 = vmatmul.mubr.msk.bf16.gmra.mrb[184].mxu0 %vm195_vm1, %v3642_v38  ;;  %3532 = vmatmul.mubr.msk.bf16.gmra.mrb[184].mxu1 %vm195_vm1, %v3643_v8  ;;  %v3645_v38 = vld [vmem:[%s4850_s0 + $0x2fc] sm:$0xff]  }
 0x177   :  { %3433 = vmatprep.mubr.msk.bf16.mxu0 %vm3651_vm0, %v4917_v26  ;;  %3535 = vmatprep.mubr.msk.bf16.mxu1 %vm3651_vm0, %v4917_v26 }
 0x179   :  { %v4487_v31 = vpop.f32.mrb[80].mxu0  ;;  %v4489_v61 = vpop.f32.mrb[80].mxu1 }
 0x17a   :  { %4942 = vst [vmem:[#allocation36_spill] sm:$0xff] %v4487_v31  ;;  %4943 = vst [vmem:[#allocation37_spill] sm:$0xff] %v4489_v61  ;;  %v3223_v19 = vpop.f32.mrb[81].mxu0  ;;  %v3325_v58 = vpop.f32.mrb[81].mxu1 }
 0x17b   :  { %v4499_v8 = vpop.f32.mrb[82].mxu0  ;;  %v4501_v7 = vpop.f32.mrb[82].mxu1 }
 0x17c   :  { %4944 = vst [vmem:[#allocation38_spill] sm:$0xff] %v4499_v8  ;;  %4945 = vst [vmem:[#allocation39_spill] sm:$0xff] %v4501_v7  ;;  %v3224_v50 = vpop.f32.mrb[83].mxu0  ;;  %v3326_v0 = vpop.f32.mrb[83].mxu1 }
 0x17d   :  { %v3646_v0 = vld [vmem:[%s4850_s0 + $0x240] sm:$0xff]  }
 0x17e   :  { %3434 = vmatmul.mubr.msk.bf16.gmra.mrb[188].mxu0 %vm195_vm1, %v3644_v14  ;;  %3536 = vmatmul.mubr.msk.bf16.gmra.mrb[188].mxu1 %vm195_vm1, %v3645_v38  ;;  %v3647_v14 = vld [vmem:[%s4850_s0 + $0x304] sm:$0xff]  }
 0x17f   :  { %3437 = vmatprep.mubr.msk.bf16.mxu0 %vm3651_vm0, %v4917_v26  ;;  %3539 = vmatprep.mubr.msk.bf16.mxu1 %vm3651_vm0, %v4917_v26 }
 0x181   :  { %v4511_v19 = vpop.f32.mrb[84].mxu0  ;;  %v4513_v58 = vpop.f32.mrb[84].mxu1 }
 0x182   :  { %4946 = vst [vmem:[#allocation40_spill] sm:$0xff] %v4511_v19  ;;  %4947 = vst [vmem:[#allocation41_spill] sm:$0xff] %v4513_v58  ;;  %v3227_v2 = vpop.f32.mrb[85].mxu0  ;;  %v3329_v50 = vpop.f32.mrb[85].mxu1 }
 0x183   :  { %v4523_v38 = vpop.f32.mrb[86].mxu0  ;;  %v4525_v7 = vpop.f32.mrb[86].mxu1 }
 0x184   :  { %4948 = vst [vmem:[#allocation42_spill] sm:$0xff] %v4523_v38  ;;  %4949 = vst [vmem:[#allocation43_spill] sm:$0xff] %v4525_v7  ;;  %v3228_v61 = vpop.f32.mrb[87].mxu0  ;;  %v3330_v31 = vpop.f32.mrb[87].mxu1 }
 0x185   :  { %v3648_v31 = vld [vmem:[%s4850_s0 + $0x248] ss:$0 sps:$4 sm:$0xff]  }
 0x186   :  { %3438 = vmatmul.mubr.msk.bf16.gmra.mrb[192].mxu0 %vm195_vm1, %v3646_v0  ;;  %3540 = vmatmul.mubr.msk.bf16.gmra.mrb[192].mxu1 %vm195_vm1, %v3647_v14  ;;  %v3649_v0 = vld [vmem:[%s4850_s0 + $0x30c] ss:$0 sps:$4 sm:$0xff]  }
 0x187   :  { %3441 = vmatprep.mubr.msk.bf16.mxu0 %vm3651_vm0, %v4917_v26  ;;  %3543 = vmatprep.mubr.msk.bf16.mxu1 %vm3651_vm0, %v4917_v26 }
 0x189   :  { %v4535_v2 = vpop.f32.mrb[88].mxu0  ;;  %v4537_v50 = vpop.f32.mrb[88].mxu1 }
 0x18a   :  { %4950 = vst [vmem:[#allocation44_spill] sm:$0xff] %v4535_v2  ;;  %4951 = vst [vmem:[#allocation45_spill] sm:$0xff] %v4537_v50  ;;  %v3231_v8 = vpop.f32.mrb[89].mxu0  ;;  %v3333_v61 = vpop.f32.mrb[89].mxu1 }
 0x18b   :  { %v4547_v14 = vpop.f32.mrb[90].mxu0  ;;  %v4549_v26 = vpop.f32.mrb[90].mxu1 }
 0x18c   :  { %4952 = vst [vmem:[#allocation46_spill] sm:$0xff] %v4547_v14  ;;  %4953 = vst [vmem:[#allocation47_spill] sm:$0xff] %v4549_v26  ;;  %v3232_v38 = vpop.f32.mrb[91].mxu0  ;;  %v3334_v58 = vpop.f32.mrb[91].mxu1 }
 0x18d   :  { %v4960_v58 = vmax.f32 %v4007_v56, %v4009_v57 }
 0x18e   :  { %3442 = vmatmul.mubr.msk.bf16.gmra.mrb[196].mxu0 %vm195_vm1, %v3648_v31  ;;  %3544 = vmatmul.mubr.msk.bf16.gmra.mrb[196].mxu1 %vm195_vm1, %v3649_v0 }
 0x191   :  { %v4555_v8 = vpop.f32.mrb[92].mxu0  ;;  %v4557_v61 = vpop.f32.mrb[92].mxu1 }
 0x192   :  { %4954 = vst [vmem:[#allocation48_spill] sm:$0xff] %v4555_v8  ;;  %4955 = vst [vmem:[#allocation49_spill] sm:$0xff] %v4557_v61  ;;  %v3235_v50 = vpop.f32.mrb[93].mxu0  ;;  %v3337_v2 = vpop.f32.mrb[93].mxu1 }
 0x193   :  { %v4561_v19 = vpop.f32.mrb[94].mxu0  ;;  %v4563_v59 = vpop.f32.mrb[94].mxu1 }
 0x194   :  { %4956 = vst [vmem:[#allocation50_spill] sm:$0xff] %v4561_v19  ;;  %4957 = vst [vmem:[#allocation51_spill] sm:$0xff] %v4563_v59  ;;  %v3236_v38 = vpop.f32.mrb[95].mxu0  ;;  %v3338_v31 = vpop.f32.mrb[95].mxu1  ;;  %v4579_v19 = vld [vmem:[%s4851_s2] ss:$0 sm:$0xff] }
 0x199   :  { %v4567_v7 = vpop.f32.mrb[96].mxu0  ;;  %v4569_v0 = vpop.f32.mrb[96].mxu1 }
 0x19a   :  { %4958 = vst [vmem:[#allocation52_spill] sm:$0xff] %v4567_v7  ;;  %4959 = vst [vmem:[#allocation53_spill] sm:$0xff] %v4569_v0  ;;  %v3239_v14 = vpop.f32.mrb[97].mxu0  ;;  %v3341_v43 = vpop.f32.mrb[97].mxu1  ;;  %v4962_v7 = vmax.f32 %v4031_v5, %v4033_v6 }
 0x19b   :  { %v500_v50 = vpop.f32.mrb[98].mxu0  ;;  %v980_v2 = vpop.f32.mrb[98].mxu1 }
 0x19c   :  { %v3240_v61 = vpop.f32.mrb[99].mxu0  ;;  %v3342_v8 = vpop.f32.mrb[99].mxu1 }
 0x19d   :  { %v4961_v61 = vmax.f32 %v4019_v63, %v4021_v1 }
 0x1a1   :  { %v1314_v16 = vpop.f32.mrb[100].mxu0  ;;  %v1843_v32 = vpop.f32.mrb[100].mxu1 }
 0x1a2   :  { %v1512_v38 = vmax.f32 %v4960_v58, %v1314_v16  ;;  %v3347_v31 = vpop.f32.mrb[101].mxu0  ;;  %v3449_v59 = vpop.f32.mrb[101].mxu1 }
 0x1a3   :  { %v1317_v26 = vpop.f32.mrb[102].mxu0  ;;  %v1846_v14 = vpop.f32.mrb[102].mxu1 }
 0x1a4   :  { %v2041_v43 = vmax.f32 %v1512_v38, %v1843_v32  ;;  %v1513_v8 = vmax.f32 %v4961_v61, %v1317_v26  ;;  %v3348_v50 = vpop.f32.mrb[103].mxu0  ;;  %v3450_v2 = vpop.f32.mrb[103].mxu1 }
 0x1a6   :  { %v2097_v0 = vadd.f32 %v4579_v19, %v2041_v43  ;;  %v2042_v56 = vmax.f32 %v1513_v8, %v1846_v14  ;;  %v4963_v43 = vmax.f32 %v4043_v12, %v4045_v13 }
 0x1a8   :  { %v2098_v57 = vadd.f32 %v4579_v19, %v2042_v56  ;;  %v2146_v58 = vmax.f32 %v2097_v0, 0.0 }
 0x1a9   :  { %v1322_v16 = vpop.f32.mrb[104].mxu0  ;;  %v1851_v59 = vpop.f32.mrb[104].mxu1 }
 0x1aa   :  { %v2147_v31 = vmax.f32 %v2098_v57, 0.0  ;;  %v1514_v55 = vmax.f32 %v4962_v7, %v1322_v16  ;;  %v3351_v32 = vpop.f32.mrb[105].mxu0  ;;  %v3453_v38 = vpop.f32.mrb[105].mxu1 }
 0x1ab   :  { %v1325_v22 = vpop.f32.mrb[106].mxu0  ;;  %v1854_v63 = vpop.f32.mrb[106].mxu1 }
 0x1ac   :  { %v2895_v1 = vpack.c.bf16 %v2147_v31, %v2146_v58  ;;  %v2043_v26 = vmax.f32 %v1514_v55, %v1851_v59  ;;  %v1515_v14 = vmax.f32 %v4963_v43, %v1325_v22  ;;  %v3352_v61 = vpop.f32.mrb[107].mxu0  ;;  %v3454_v8 = vpop.f32.mrb[107].mxu1  ;;  %v4964_v55 = vmax.f32 %v4055_v17, %v4057_v18 }
 0x1ad   :  { %v4965_v31 = vmax.f32 %v4067_v24, %v4069_v25  ;;  %v4966_v8 = vmax.f32 %v4079_v29, %v4081_v30 }
 0x1ae   :  { %2896 = vst [vmem:[%s4852_s3] sm:$0xff] %v2895_v1   ;;  %v2099_v0 = vadd.f32 %v4579_v19, %v2043_v26  ;;  %v2044_v5 = vmax.f32 %v1515_v14, %v1854_v63 }
 0x1b0   :  { %v2100_v6 = vadd.f32 %v4579_v19, %v2044_v5  ;;  %v2148_v2 = vmax.f32 %v2099_v0, 0.0 }
 0x1b1   :  { %v1330_v7 = vpop.f32.mrb[108].mxu0  ;;  %v1859_v50 = vpop.f32.mrb[108].mxu1 }
 0x1b2   :  { %v2149_v56 = vmax.f32 %v2100_v6, 0.0  ;;  %v1516_v12 = vmax.f32 %v4964_v55, %v1330_v7  ;;  %v3355_v13 = vpop.f32.mrb[109].mxu0  ;;  %v3457_v22 = vpop.f32.mrb[109].mxu1 }
 0x1b3   :  { %v1333_v57 = vpop.f32.mrb[110].mxu0  ;;  %v1862_v16 = vpop.f32.mrb[110].mxu1 }
 0x1b4   :  { %v2900_v59 = vpack.c.bf16 %v2149_v56, %v2148_v2  ;;  %v2045_v58 = vmax.f32 %v1516_v12, %v1859_v50  ;;  %v1517_v32 = vmax.f32 %v4965_v31, %v1333_v57  ;;  %v3356_v38 = vpop.f32.mrb[111].mxu0  ;;  %v3458_v63 = vpop.f32.mrb[111].mxu1  ;;  %v4967_v2 = vmax.f32 %v4091_v36, %v4093_v37 }
 0x1b6   :  { %3012 = vst [vmem:[%s4852_s3 + $0x8] sm:$0xff] %v2900_v59   ;;  %v2101_v1 = vadd.f32 %v4579_v19, %v2045_v58  ;;  %v2046_v17 = vmax.f32 %v1517_v32, %v1862_v16  ;;  %v4968_v58 = vmax.f32 %v4103_v41, %v4105_v42 }
 0x1b8   :  { %v2102_v18 = vadd.f32 %v4579_v19, %v2046_v17  ;;  %v2150_v14 = vmax.f32 %v2101_v1, 0.0  ;;  %v4969_v17 = vmax.f32 %v4115_v48, %v4117_v49 }
 0x1b9   :  { %v1338_v26 = vpop.f32.mrb[112].mxu0  ;;  %v1867_v43 = vpop.f32.mrb[112].mxu1 }
 0x1ba   :  { %v2151_v61 = vmax.f32 %v2102_v18, 0.0  ;;  %v1518_v24 = vmax.f32 %v4966_v8, %v1338_v26  ;;  %v3359_v25 = vpop.f32.mrb[113].mxu0  ;;  %v3461_v0 = vpop.f32.mrb[113].mxu1 }
 0x1bb   :  { %v1341_v5 = vpop.f32.mrb[114].mxu0  ;;  %v1870_v6 = vpop.f32.mrb[114].mxu1  ;;  %v4970_v0 = vmax.f32 %v4127_v53, %v4129_v54 }
 0x1bc   :  { %v2905_v7 = vpack.c.bf16 %v2151_v61, %v2150_v14  ;;  %v2047_v50 = vmax.f32 %v1518_v24, %v1867_v43  ;;  %v1519_v56 = vmax.f32 %v4967_v2, %v1341_v5  ;;  %v3360_v55 = vpop.f32.mrb[115].mxu0  ;;  %v3462_v12 = vpop.f32.mrb[115].mxu1 }
 0x1be   :  { %3013 = vst [vmem:[%s4852_s3 + $0x10] sm:$0xff] %v2905_v7   ;;  %v2103_v13 = vadd.f32 %v4579_v19, %v2047_v50  ;;  %v2048_v29 = vmax.f32 %v1519_v56, %v1870_v6  ;;  %v4971_v56 = vmax.f32 %v4139_v3, %v4141_v4 }
 0x1c0   :  { %v2104_v30 = vadd.f32 %v4579_v19, %v2048_v29  ;;  %v2152_v16 = vmax.f32 %v2103_v13, 0.0 }
 0x1c1   :  { %v1346_v22 = vpop.f32.mrb[116].mxu0  ;;  %v1875_v57 = vpop.f32.mrb[116].mxu1 }
 0x1c2   :  { %v2153_v59 = vmax.f32 %v2104_v30, 0.0  ;;  %v1520_v36 = vmax.f32 %v4968_v58, %v1346_v22  ;;  %v3363_v37 = vpop.f32.mrb[117].mxu0  ;;  %v3465_v31 = vpop.f32.mrb[117].mxu1 }
 0x1c3   :  { %v1349_v32 = vpop.f32.mrb[118].mxu0  ;;  %v1878_v38 = vpop.f32.mrb[118].mxu1 }
 0x1c4   :  { %v2910_v63 = vpack.c.bf16 %v2153_v59, %v2152_v16  ;;  %v2049_v1 = vmax.f32 %v1520_v36, %v1875_v57  ;;  %v1521_v18 = vmax.f32 %v4969_v17, %v1349_v32  ;;  %v3364_v26 = vpop.f32.mrb[119].mxu0  ;;  %v3466_v43 = vpop.f32.mrb[119].mxu1  ;;  %v4972_v59 = vmax.f32 %v4151_v11, %v4153_v15 }
 0x1c6   :  { %3014 = vst [vmem:[%s4852_s3 + $0x18] sm:$0xff] %v2910_v63   ;;  %v2105_v14 = vadd.f32 %v4579_v19, %v2049_v1  ;;  %v2050_v41 = vmax.f32 %v1521_v18, %v1878_v38  ;;  %v4973_v38 = vmax.f32 %v4163_v27, %v4165_v28 }
 0x1c8   :  { %v2106_v42 = vadd.f32 %v4579_v19, %v2050_v41  ;;  %v2154_v24 = vmax.f32 %v2105_v14, 0.0 }
 0x1c9   :  { %v1354_v61 = vpop.f32.mrb[120].mxu0  ;;  %v1883_v8 = vpop.f32.mrb[120].mxu1 }
 0x1ca   :  { %v2155_v25 = vmax.f32 %v2106_v42, 0.0  ;;  %v1522_v48 = vmax.f32 %v4970_v0, %v1354_v61  ;;  %v3367_v49 = vpop.f32.mrb[121].mxu0  ;;  %v3469_v5 = vpop.f32.mrb[121].mxu1  ;;  %v4974_v42 = vmax.f32 %v4175_v35, %v4177_v39 }
 0x1cb   :  { %v1357_v6 = vpop.f32.mrb[122].mxu0  ;;  %v1886_v7 = vpop.f32.mrb[122].mxu1 }
 0x1cc   :  { %v2915_v50 = vpack.c.bf16 %v2155_v25, %v2154_v24  ;;  %v2051_v2 = vmax.f32 %v1522_v48, %v1883_v8  ;;  %v1523_v55 = vmax.f32 %v4971_v56, %v1357_v6  ;;  %v3368_v12 = vpop.f32.mrb[123].mxu0  ;;  %v3470_v13 = vpop.f32.mrb[123].mxu1  ;;  %v4975_v48 = vmax.f32 %v4187_v51, %v4189_v52 }
 0x1cd   :  { %v4976_v12 = vmax.f32 %v4199_v62, %v4201_v9 }
 0x1ce   :  { %3015 = vst [vmem:[%s4852_s3 + $0x20] sm:$0xff] %v2915_v50   ;;  %v2107_v29 = vadd.f32 %v4579_v19, %v2051_v2  ;;  %v2052_v53 = vmax.f32 %v1523_v55, %v1886_v7 }
 0x1d0   :  { %v2108_v54 = vadd.f32 %v4579_v19, %v2052_v53  ;;  %v2156_v57 = vmax.f32 %v2107_v29, 0.0 }
 0x1d1   :  { %v1362_v30 = vpop.f32.mrb[124].mxu0  ;;  %v1891_v22 = vpop.f32.mrb[124].mxu1 }
 0x1d2   :  { %v2157_v16 = vmax.f32 %v2108_v54, 0.0  ;;  %v1524_v3 = vmax.f32 %v4972_v59, %v1362_v30  ;;  %v3371_v4 = vpop.f32.mrb[125].mxu0  ;;  %v3473_v58 = vpop.f32.mrb[125].mxu1 }
 0x1d3   :  { %v1365_v36 = vpop.f32.mrb[126].mxu0  ;;  %v1894_v37 = vpop.f32.mrb[126].mxu1 }
 0x1d4   :  { %v2920_v31 = vpack.c.bf16 %v2157_v16, %v2156_v57  ;;  %v2053_v32 = vmax.f32 %v1524_v3, %v1891_v22  ;;  %v1525_v63 = vmax.f32 %v4973_v38, %v1365_v36  ;;  %v3372_v1 = vpop.f32.mrb[127].mxu0  ;;  %v3474_v17 = vpop.f32.mrb[127].mxu1  ;;  %v4977_v22 = vmax.f32 %v4211_v33, %v4213_v34 }
 0x1d6   :  { %3016 = vst [vmem:[%s4852_s3 + $0x28] sm:$0xff] %v2920_v31   ;;  %v2109_v18 = vadd.f32 %v4579_v19, %v2053_v32  ;;  %v2054_v11 = vmax.f32 %v1525_v63, %v1894_v37  ;;  %v4978_v31 = vmax.f32 %v4223_v47, %v4225_v60 }
 0x1d8   :  { %v2110_v15 = vadd.f32 %v4579_v19, %v2054_v11  ;;  %v2158_v14 = vmax.f32 %v2109_v18, 0.0  ;;  %v4979_v18 = vmax.f32 %v4235_v45, %v4237_v46 }
 0x1d9   :  { %v1370_v26 = vpop.f32.mrb[128].mxu0  ;;  %v1899_v43 = vpop.f32.mrb[128].mxu1 }
 0x1da   :  { %v2159_v41 = vmax.f32 %v2110_v15, 0.0  ;;  %v1526_v27 = vmax.f32 %v4974_v42, %v1370_v26  ;;  %v3375_v28 = vpop.f32.mrb[129].mxu0  ;;  %v3477_v61 = vpop.f32.mrb[129].mxu1 }
 0x1db   :  { %v1373_v8 = vpop.f32.mrb[130].mxu0  ;;  %v1902_v24 = vpop.f32.mrb[130].mxu1  ;;  %v4980_v28 = vmax.f32 %v4247_v20, %v4249_v21 }
 0x1dc   :  { %v2925_v25 = vpack.c.bf16 %v2159_v41, %v2158_v14  ;;  %v2055_v0 = vmax.f32 %v1526_v27, %v1899_v43  ;;  %v1527_v49 = vmax.f32 %v4975_v48, %v1373_v8  ;;  %v3376_v5 = vpop.f32.mrb[131].mxu0  ;;  %v3478_v6 = vpop.f32.mrb[131].mxu1  ;;  %v4981_v48 = vmax.f32 %v4259_v23, %v4261_v40 }
 0x1de   :  { %3017 = vst [vmem:[%s4852_s3 + $0x30] sm:$0xff] %v2925_v25   ;;  %v2111_v7 = vadd.f32 %v4579_v19, %v2055_v0  ;;  %v2056_v35 = vmax.f32 %v1527_v49, %v1902_v24 }
 0x1e0   :  { %v2112_v39 = vadd.f32 %v4579_v19, %v2056_v35  ;;  %v2160_v56 = vmax.f32 %v2111_v7, 0.0 }
 0x1e1   :  { %v1378_v50 = vpop.f32.mrb[132].mxu0  ;;  %v1907_v2 = vpop.f32.mrb[132].mxu1 }
 0x1e2   :  { %v2161_v55 = vmax.f32 %v2112_v39, 0.0  ;;  %v1528_v51 = vmax.f32 %v4976_v12, %v1378_v50  ;;  %v3379_v52 = vpop.f32.mrb[133].mxu0  ;;  %v3481_v13 = vpop.f32.mrb[133].mxu1 }
 0x1e3   :  { %v1381_v29 = vpop.f32.mrb[134].mxu0  ;;  %v1910_v53 = vpop.f32.mrb[134].mxu1 }
 0x1e4   :  { %v2930_v54 = vpack.c.bf16 %v2161_v55, %v2160_v56  ;;  %v2057_v30 = vmax.f32 %v1528_v51, %v1907_v2  ;;  %v1529_v57 = vmax.f32 %v4977_v22, %v1381_v29  ;;  %v3380_v16 = vpop.f32.mrb[135].mxu0  ;;  %v3482_v59 = vpop.f32.mrb[135].mxu1  ;;  %v4982_v56 = vmax.f32 %v4271_v44, %v4273_v10  ;;  %v4983_v29 = vld [vmem:[#allocation2_spill] sm:$0xff] }
 0x1e6   :  { %3018 = vst [vmem:[%s4852_s3 + $0x38] sm:$0xff] %v2930_v54   ;;  %v2113_v3 = vadd.f32 %v4579_v19, %v2057_v30  ;;  %v2058_v62 = vmax.f32 %v1529_v57, %v1910_v53  ;;  %v4984_v53 = vld [vmem:[#allocation3_spill] sm:$0xff] }
 0x1e7   :  { %v4985_v54 = vmax.f32 %v4983_v29, %v4984_v53 }
 0x1e8   :  { %v2114_v9 = vadd.f32 %v4579_v19, %v2058_v62  ;;  %v2162_v36 = vmax.f32 %v2113_v3, 0.0 }
 0x1e9   :  { %v1386_v4 = vpop.f32.mrb[136].mxu0  ;;  %v1915_v58 = vpop.f32.mrb[136].mxu1 }
 0x1ea   :  { %v2163_v37 = vmax.f32 %v2114_v9, 0.0  ;;  %v1530_v33 = vmax.f32 %v4978_v31, %v1386_v4  ;;  %v3383_v34 = vpop.f32.mrb[137].mxu0  ;;  %v3485_v32 = vpop.f32.mrb[137].mxu1  ;;  %v4986_v4 = vld [vmem:[#allocation4_spill] sm:$0xff] }
 0x1eb   :  { %v1389_v38 = vpop.f32.mrb[138].mxu0  ;;  %v1918_v63 = vpop.f32.mrb[138].mxu1 }
 0x1ec   :  { %v2935_v1 = vpack.c.bf16 %v2163_v37, %v2162_v36  ;;  %v2059_v17 = vmax.f32 %v1530_v33, %v1915_v58  ;;  %v1531_v11 = vmax.f32 %v4979_v18, %v1389_v38  ;;  %v3384_v15 = vpop.f32.mrb[139].mxu0  ;;  %v3486_v26 = vpop.f32.mrb[139].mxu1  ;;  %v4987_v58 = vld [vmem:[#allocation5_spill] sm:$0xff] }
 0x1ed   :  { %v4988_v36 = vmax.f32 %v4986_v4, %v4987_v58 }
 0x1ee   :  { %3019 = vst [vmem:[%s4852_s3 + $0x40] sm:$0xff] %v2935_v1   ;;  %v2115_v43 = vadd.f32 %v4579_v19, %v2059_v17  ;;  %v2060_v47 = vmax.f32 %v1531_v11, %v1918_v63  ;;  %v4989_v1 = vld [vmem:[#allocation6_spill] sm:$0xff]  ;;  %v4990_v17 = vld [vmem:[#allocation7_spill] sm:$0xff] }
 0x1ef   :  { %v4991_v18 = vmax.f32 %v4989_v1, %v4990_v17 }
 0x1f0   :  { %v2116_v60 = vadd.f32 %v4579_v19, %v2060_v47  ;;  %v2164_v42 = vmax.f32 %v2115_v43, 0.0 }
 0x1f1   :  { %v1394_v14 = vpop.f32.mrb[140].mxu0  ;;  %v1923_v41 = vpop.f32.mrb[140].mxu1 }
 0x1f2   :  { %v2165_v27 = vmax.f32 %v2116_v60, 0.0  ;;  %v1532_v45 = vmax.f32 %v4980_v28, %v1394_v14  ;;  %v3387_v46 = vpop.f32.mrb[141].mxu0  ;;  %v3489_v61 = vpop.f32.mrb[141].mxu1  ;;  %v4992_v28 = vld [vmem:[#allocation8_spill] sm:$0xff] }
 0x1f3   :  { %v1397_v8 = vpop.f32.mrb[142].mxu0  ;;  %v1926_v24 = vpop.f32.mrb[142].mxu1 }
 0x1f4   :  { %v2940_v25 = vpack.c.bf16 %v2165_v27, %v2164_v42  ;;  %v2061_v0 = vmax.f32 %v1532_v45, %v1923_v41  ;;  %v1533_v49 = vmax.f32 %v4981_v48, %v1397_v8  ;;  %v3388_v5 = vpop.f32.mrb[143].mxu0  ;;  %v3490_v6 = vpop.f32.mrb[143].mxu1  ;;  %v4993_v45 = vld [vmem:[#allocation9_spill] sm:$0xff] }
 0x1f5   :  { %v4994_v46 = vmax.f32 %v4992_v28, %v4993_v45  ;;  %v4995_v5 = vld [vmem:[#allocation10_spill] sm:$0xff]  ;;  %v4996_v6 = vld [vmem:[#allocation11_spill] sm:$0xff] }
 0x1f6   :  { %3020 = vst [vmem:[%s4852_s3 + $0x48] sm:$0xff] %v2940_v25   ;;  %v2117_v7 = vadd.f32 %v4579_v19, %v2061_v0  ;;  %v2062_v20 = vmax.f32 %v1533_v49, %v1926_v24 }
 0x1f8   :  { %v2118_v21 = vadd.f32 %v4579_v19, %v2062_v20  ;;  %v2166_v50 = vmax.f32 %v2117_v7, 0.0  ;;  %v4997_v7 = vmax.f32 %v4995_v5, %v4996_v6 }
 0x1f9   :  { %v1402_v35 = vpop.f32.mrb[144].mxu0  ;;  %v1931_v39 = vpop.f32.mrb[144].mxu1 }
 0x1fa   :  { %v2167_v2 = vmax.f32 %v2118_v21, 0.0  ;;  %v1534_v40 = vmax.f32 %v4982_v56, %v1402_v35  ;;  %v3391_v23 = vpop.f32.mrb[145].mxu0  ;;  %v3493_v55 = vpop.f32.mrb[145].mxu1 }
 0x1fb   :  { %v1405_v12 = vpop.f32.mrb[146].mxu0  ;;  %v1934_v51 = vpop.f32.mrb[146].mxu1 }
 0x1fc   :  { %v2945_v52 = vpack.c.bf16 %v2167_v2, %v2166_v50  ;;  %v2063_v13 = vmax.f32 %v1534_v40, %v1931_v39  ;;  %v1535_v30 = vmax.f32 %v4985_v54, %v1405_v12  ;;  %v3392_v22 = vpop.f32.mrb[147].mxu0  ;;  %v3494_v57 = vpop.f32.mrb[147].mxu1  ;;  %v4998_v12 = vld [vmem:[#allocation12_spill] sm:$0xff] }
 0x1fe   :  { %3021 = vst [vmem:[%s4852_s3 + $0x50] sm:$0xff] %v2945_v52   ;;  %v2119_v16 = vadd.f32 %v4579_v19, %v2063_v13  ;;  %v2064_v44 = vmax.f32 %v1535_v30, %v1934_v51  ;;  %v4999_v51 = vld [vmem:[#allocation13_spill] sm:$0xff] }
 0x1ff   :  { %v5000_v52 = vmax.f32 %v4998_v12, %v4999_v51 }
 0x200   :  { %v2120_v10 = vadd.f32 %v4579_v19, %v2064_v44  ;;  %v2168_v62 = vmax.f32 %v2119_v16, 0.0  ;;  %v5001_v16 = vld [vmem:[#allocation14_spill] sm:$0xff]  ;;  %v5002_v44 = vld [vmem:[#allocation15_spill] sm:$0xff] }
 0x201   :  { %v1410_v59 = vpop.f32.mrb[148].mxu0  ;;  %v1939_v3 = vpop.f32.mrb[148].mxu1 }
 0x202   :  { %v2169_v9 = vmax.f32 %v2120_v10, 0.0  ;;  %v1536_v37 = vmax.f32 %v4988_v36, %v1410_v59  ;;  %v3395_v31 = vpop.f32.mrb[149].mxu0  ;;  %v3497_v33 = vpop.f32.mrb[149].mxu1  ;;  %v5003_v10 = vmax.f32 %v5001_v16, %v5002_v44 }
 0x203   :  { %v1413_v34 = vpop.f32.mrb[150].mxu0  ;;  %v1942_v32 = vpop.f32.mrb[150].mxu1 }
 0x204   :  { %v2950_v38 = vpack.c.bf16 %v2169_v9, %v2168_v62  ;;  %v2065_v63 = vmax.f32 %v1536_v37, %v1939_v3  ;;  %v1537_v11 = vmax.f32 %v4991_v18, %v1413_v34  ;;  %v3396_v15 = vpop.f32.mrb[151].mxu0  ;;  %v3498_v26 = vpop.f32.mrb[151].mxu1  ;;  %v5004_v34 = vld [vmem:[#allocation16_spill] sm:$0xff] }
 0x206   :  { %3022 = vst [vmem:[%s4852_s3 + $0x58] sm:$0xff] %v2950_v38   ;;  %v2121_v43 = vadd.f32 %v4579_v19, %v2065_v63  ;;  %v2066_v47 = vmax.f32 %v1537_v11, %v1942_v32  ;;  %v5005_v32 = vld [vmem:[#allocation17_spill] sm:$0xff] }
 0x207   :  { %v5006_v38 = vmax.f32 %v5004_v34, %v5005_v32 }
 0x208   :  { %v2122_v60 = vadd.f32 %v4579_v19, %v2066_v47  ;;  %v2170_v42 = vmax.f32 %v2121_v43, 0.0  ;;  %v5007_v43 = vld [vmem:[#allocation18_spill] sm:$0xff]  ;;  %v5008_v47 = vld [vmem:[#allocation19_spill] sm:$0xff] }
 0x209   :  { %v1418_v14 = vpop.f32.mrb[152].mxu0  ;;  %v1947_v41 = vpop.f32.mrb[152].mxu1 }
 0x20a   :  { %v2171_v27 = vmax.f32 %v2122_v60, 0.0  ;;  %v1538_v61 = vmax.f32 %v4994_v46, %v1418_v14  ;;  %v3399_v8 = vpop.f32.mrb[153].mxu0  ;;  %v3501_v24 = vpop.f32.mrb[153].mxu1  ;;  %v5009_v60 = vmax.f32 %v5007_v43, %v5008_v47 }
 0x20b   :  { %v1421_v25 = vpop.f32.mrb[154].mxu0  ;;  %v1950_v0 = vpop.f32.mrb[154].mxu1 }
 0x20c   :  { %v2955_v48 = vpack.c.bf16 %v2171_v27, %v2170_v42  ;;  %v2067_v49 = vmax.f32 %v1538_v61, %v1947_v41  ;;  %v1539_v20 = vmax.f32 %v4997_v7, %v1421_v25  ;;  %v3400_v21 = vpop.f32.mrb[155].mxu0  ;;  %v3502_v35 = vpop.f32.mrb[155].mxu1  ;;  %v5010_v25 = vld [vmem:[#allocation20_spill] sm:$0xff] }
 0x20e   :  { %3023 = vst [vmem:[%s4852_s3 + $0x60] sm:$0xff] %v2955_v48   ;;  %v2123_v39 = vadd.f32 %v4579_v19, %v2067_v49  ;;  %v2068_v50 = vmax.f32 %v1539_v20, %v1950_v0  ;;  %v5011_v0 = vld [vmem:[#allocation21_spill] sm:$0xff] }
 0x20f   :  { %v5012_v48 = vmax.f32 %v5010_v25, %v5011_v0 }
 0x210   :  { %v2124_v2 = vadd.f32 %v4579_v19, %v2068_v50  ;;  %v2172_v23 = vmax.f32 %v2123_v39, 0.0  ;;  %v5013_v39 = vld [vmem:[#allocation22_spill] sm:$0xff]  ;;  %v5014_v50 = vld [vmem:[#allocation23_spill] sm:$0xff] }
 0x211   :  { %v1426_v56 = vpop.f32.mrb[156].mxu0  ;;  %v1955_v40 = vpop.f32.mrb[156].mxu1 }
 0x212   :  { %v2173_v55 = vmax.f32 %v2124_v2, 0.0  ;;  %v1540_v13 = vmax.f32 %v5000_v52, %v1426_v56  ;;  %v3403_v29 = vpop.f32.mrb[157].mxu0  ;;  %v3505_v53 = vpop.f32.mrb[157].mxu1  ;;  %v5015_v2 = vmax.f32 %v5013_v39, %v5014_v50 }
 0x213   :  { %v1429_v54 = vpop.f32.mrb[158].mxu0  ;;  %v1958_v30 = vpop.f32.mrb[158].mxu1 }
 0x214   :  { %v2960_v22 = vpack.c.bf16 %v2173_v55, %v2172_v23  ;;  %v2069_v57 = vmax.f32 %v1540_v13, %v1955_v40  ;;  %v1541_v59 = vmax.f32 %v5003_v10, %v1429_v54  ;;  %v3404_v3 = vpop.f32.mrb[159].mxu0  ;;  %v3506_v62 = vpop.f32.mrb[159].mxu1  ;;  %v5016_v54 = vld [vmem:[#allocation24_spill] sm:$0xff] }
 0x216   :  { %3024 = vst [vmem:[%s4852_s3 + $0x68] sm:$0xff] %v2960_v22   ;;  %v2125_v9 = vadd.f32 %v4579_v19, %v2069_v57  ;;  %v2070_v4 = vmax.f32 %v1541_v59, %v1958_v30  ;;  %v5017_v30 = vld [vmem:[#allocation25_spill] sm:$0xff] }
 0x217   :  { %v5018_v22 = vmax.f32 %v5016_v54, %v5017_v30 }
 0x218   :  { %v2126_v58 = vadd.f32 %v4579_v19, %v2070_v4  ;;  %v2174_v31 = vmax.f32 %v2125_v9, 0.0  ;;  %v5019_v9 = vld [vmem:[#allocation26_spill] sm:$0xff]  ;;  %v5020_v4 = vld [vmem:[#allocation27_spill] sm:$0xff] }
 0x219   :  { %v1434_v36 = vpop.f32.mrb[160].mxu0  ;;  %v1963_v37 = vpop.f32.mrb[160].mxu1 }
 0x21a   :  { %v2175_v33 = vmax.f32 %v2126_v58, 0.0  ;;  %v1542_v63 = vmax.f32 %v5006_v38, %v1434_v36  ;;  %v3407_v1 = vpop.f32.mrb[161].mxu0  ;;  %v3509_v17 = vpop.f32.mrb[161].mxu1  ;;  %v5021_v58 = vmax.f32 %v5019_v9, %v5020_v4 }
 0x21b   :  { %v1437_v18 = vpop.f32.mrb[162].mxu0  ;;  %v1966_v11 = vpop.f32.mrb[162].mxu1 }
 0x21c   :  { %v2965_v15 = vpack.c.bf16 %v2175_v33, %v2174_v31  ;;  %v2071_v26 = vmax.f32 %v1542_v63, %v1963_v37  ;;  %v1543_v14 = vmax.f32 %v5009_v60, %v1437_v18  ;;  %v3408_v41 = vpop.f32.mrb[163].mxu0  ;;  %v3510_v42 = vpop.f32.mrb[163].mxu1  ;;  %v5022_v18 = vld [vmem:[#allocation28_spill] sm:$0xff] }
 0x21e   :  { %3025 = vst [vmem:[%s4852_s3 + $0x70] sm:$0xff] %v2965_v15   ;;  %v2127_v27 = vadd.f32 %v4579_v19, %v2071_v26  ;;  %v2072_v28 = vmax.f32 %v1543_v14, %v1966_v11  ;;  %v5023_v11 = vld [vmem:[#allocation29_spill] sm:$0xff] }
 0x21f   :  { %v5024_v15 = vmax.f32 %v5022_v18, %v5023_v11 }
 0x220   :  { %v2128_v45 = vadd.f32 %v4579_v19, %v2072_v28  ;;  %v2176_v8 = vmax.f32 %v2127_v27, 0.0  ;;  %v5025_v27 = vld [vmem:[#allocation30_spill] sm:$0xff]  ;;  %v5026_v28 = vld [vmem:[#allocation31_spill] sm:$0xff] }
 0x221   :  { %v1442_v46 = vpop.f32.mrb[164].mxu0  ;;  %v1971_v61 = vpop.f32.mrb[164].mxu1 }
 0x222   :  { %v2177_v24 = vmax.f32 %v2128_v45, 0.0  ;;  %v1544_v49 = vmax.f32 %v5012_v48, %v1442_v46  ;;  %v3411_v5 = vpop.f32.mrb[165].mxu0  ;;  %v3513_v6 = vpop.f32.mrb[165].mxu1  ;;  %v5027_v45 = vmax.f32 %v5025_v27, %v5026_v28 }
 0x223   :  { %v1445_v7 = vpop.f32.mrb[166].mxu0  ;;  %v1974_v20 = vpop.f32.mrb[166].mxu1 }
 0x224   :  { %v2970_v21 = vpack.c.bf16 %v2177_v24, %v2176_v8  ;;  %v2073_v35 = vmax.f32 %v1544_v49, %v1971_v61  ;;  %v1545_v56 = vmax.f32 %v5015_v2, %v1445_v7  ;;  %v3412_v40 = vpop.f32.mrb[167].mxu0  ;;  %v3514_v23 = vpop.f32.mrb[167].mxu1  ;;  %v5028_v7 = vld [vmem:[#allocation32_spill] sm:$0xff] }
 0x226   :  { %3026 = vst [vmem:[%s4852_s3 + $0x78] sm:$0xff] %v2970_v21   ;;  %v2129_v55 = vadd.f32 %v4579_v19, %v2073_v35  ;;  %v2074_v12 = vmax.f32 %v1545_v56, %v1974_v20  ;;  %v5029_v20 = vld [vmem:[#allocation33_spill] sm:$0xff] }
 0x227   :  { %v5030_v21 = vmax.f32 %v5028_v7, %v5029_v20 }
 0x228   :  { %v2130_v51 = vadd.f32 %v4579_v19, %v2074_v12  ;;  %v2178_v29 = vmax.f32 %v2129_v55, 0.0  ;;  %v5031_v55 = vld [vmem:[#allocation34_spill] sm:$0xff]  ;;  %v5032_v12 = vld [vmem:[#allocation35_spill] sm:$0xff] }
 0x229   :  { %v1450_v52 = vpop.f32.mrb[168].mxu0  ;;  %v1979_v13 = vpop.f32.mrb[168].mxu1 }
 0x22a   :  { %v2179_v53 = vmax.f32 %v2130_v51, 0.0  ;;  %v1546_v57 = vmax.f32 %v5018_v22, %v1450_v52  ;;  %v3415_v16 = vpop.f32.mrb[169].mxu0  ;;  %v3517_v44 = vpop.f32.mrb[169].mxu1  ;;  %v5033_v51 = vmax.f32 %v5031_v55, %v5032_v12 }
 0x22b   :  { %v1453_v10 = vpop.f32.mrb[170].mxu0  ;;  %v1982_v59 = vpop.f32.mrb[170].mxu1 }
 0x22c   :  { %v2975_v3 = vpack.c.bf16 %v2179_v53, %v2178_v29  ;;  %v2075_v62 = vmax.f32 %v1546_v57, %v1979_v13  ;;  %v1547_v36 = vmax.f32 %v5021_v58, %v1453_v10  ;;  %v3416_v37 = vpop.f32.mrb[171].mxu0  ;;  %v3518_v31 = vpop.f32.mrb[171].mxu1  ;;  %v5034_v10 = vld [vmem:[#allocation36_spill] sm:$0xff] }
 0x22e   :  { %3027 = vst [vmem:[%s4852_s3 + $0x80] sm:$0xff] %v2975_v3   ;;  %v2131_v33 = vadd.f32 %v4579_v19, %v2075_v62  ;;  %v2076_v34 = vmax.f32 %v1547_v36, %v1982_v59  ;;  %v5035_v59 = vld [vmem:[#allocation37_spill] sm:$0xff] }
 0x22f   :  { %v5036_v3 = vmax.f32 %v5034_v10, %v5035_v59 }
 0x230   :  { %v2132_v32 = vadd.f32 %v4579_v19, %v2076_v34  ;;  %v2180_v1 = vmax.f32 %v2131_v33, 0.0  ;;  %v5037_v33 = vld [vmem:[#allocation38_spill] sm:$0xff]  ;;  %v5038_v34 = vld [vmem:[#allocation39_spill] sm:$0xff] }
 0x231   :  { %v1458_v38 = vpop.f32.mrb[172].mxu0  ;;  %v1987_v63 = vpop.f32.mrb[172].mxu1 }
 0x232   :  { %v2181_v17 = vmax.f32 %v2132_v32, 0.0  ;;  %v1548_v26 = vmax.f32 %v5024_v15, %v1458_v38  ;;  %v3419_v43 = vpop.f32.mrb[173].mxu0  ;;  %v3521_v47 = vpop.f32.mrb[173].mxu1  ;;  %v5039_v32 = vmax.f32 %v5037_v33, %v5038_v34 }
 0x233   :  { %v1461_v60 = vpop.f32.mrb[174].mxu0  ;;  %v1990_v14 = vpop.f32.mrb[174].mxu1 }
 0x234   :  { %v2980_v41 = vpack.c.bf16 %v2181_v17, %v2180_v1  ;;  %v2077_v42 = vmax.f32 %v1548_v26, %v1987_v63  ;;  %v1549_v46 = vmax.f32 %v5027_v45, %v1461_v60  ;;  %v3420_v61 = vpop.f32.mrb[175].mxu0  ;;  %v3522_v8 = vpop.f32.mrb[175].mxu1  ;;  %v5040_v60 = vld [vmem:[#allocation40_spill] sm:$0xff] }
 0x236   :  { %3028 = vst [vmem:[%s4852_s3 + $0x88] sm:$0xff] %v2980_v41   ;;  %v2133_v24 = vadd.f32 %v4579_v19, %v2077_v42  ;;  %v2078_v25 = vmax.f32 %v1549_v46, %v1990_v14  ;;  %v5041_v14 = vld [vmem:[#allocation41_spill] sm:$0xff] }
 0x237   :  { %v5042_v41 = vmax.f32 %v5040_v60, %v5041_v14 }
 0x238   :  { %v2134_v0 = vadd.f32 %v4579_v19, %v2078_v25  ;;  %v2182_v5 = vmax.f32 %v2133_v24, 0.0  ;;  %v5043_v24 = vld [vmem:[#allocation42_spill] sm:$0xff]  ;;  %v5044_v25 = vld [vmem:[#allocation43_spill] sm:$0xff] }
 0x239   :  { %v1466_v48 = vpop.f32.mrb[176].mxu0  ;;  %v1995_v49 = vpop.f32.mrb[176].mxu1 }
 0x23a   :  { %v2183_v6 = vmax.f32 %v2134_v0, 0.0  ;;  %v1550_v35 = vmax.f32 %v5030_v21, %v1466_v48  ;;  %v3423_v39 = vpop.f32.mrb[177].mxu0  ;;  %v3525_v50 = vpop.f32.mrb[177].mxu1  ;;  %v5045_v0 = vmax.f32 %v5043_v24, %v5044_v25 }
 0x23b   :  { %v1469_v2 = vpop.f32.mrb[178].mxu0  ;;  %v1998_v56 = vpop.f32.mrb[178].mxu1 }
 0x23c   :  { %v2985_v40 = vpack.c.bf16 %v2183_v6, %v2182_v5  ;;  %v2079_v23 = vmax.f32 %v1550_v35, %v1995_v49  ;;  %v1551_v52 = vmax.f32 %v5033_v51, %v1469_v2  ;;  %v3424_v13 = vpop.f32.mrb[179].mxu0  ;;  %v3526_v29 = vpop.f32.mrb[179].mxu1  ;;  %v5046_v2 = vld [vmem:[#allocation44_spill] sm:$0xff] }
 0x23e   :  { %3029 = vst [vmem:[%s4852_s3 + $0x90] sm:$0xff] %v2985_v40   ;;  %v2135_v53 = vadd.f32 %v4579_v19, %v2079_v23  ;;  %v2080_v54 = vmax.f32 %v1551_v52, %v1998_v56  ;;  %v5047_v56 = vld [vmem:[#allocation45_spill] sm:$0xff] }
 0x23f   :  { %v5048_v40 = vmax.f32 %v5046_v2, %v5047_v56 }
 0x240   :  { %v2136_v30 = vadd.f32 %v4579_v19, %v2080_v54  ;;  %v2184_v16 = vmax.f32 %v2135_v53, 0.0  ;;  %v5049_v53 = vld [vmem:[#allocation46_spill] sm:$0xff]  ;;  %v5050_v54 = vld [vmem:[#allocation47_spill] sm:$0xff] }
 0x241   :  { %v1474_v22 = vpop.f32.mrb[180].mxu0  ;;  %v2003_v57 = vpop.f32.mrb[180].mxu1 }
 0x242   :  { %v2185_v44 = vmax.f32 %v2136_v30, 0.0  ;;  %v1552_v62 = vmax.f32 %v5036_v3, %v1474_v22  ;;  %v3427_v9 = vpop.f32.mrb[181].mxu0  ;;  %v3529_v4 = vpop.f32.mrb[181].mxu1  ;;  %v5051_v30 = vmax.f32 %v5049_v53, %v5050_v54 }
 0x243   :  { %v1477_v58 = vpop.f32.mrb[182].mxu0  ;;  %v2006_v36 = vpop.f32.mrb[182].mxu1 }
 0x244   :  { %v2990_v37 = vpack.c.bf16 %v2185_v44, %v2184_v16  ;;  %v2081_v31 = vmax.f32 %v1552_v62, %v2003_v57  ;;  %v1553_v38 = vmax.f32 %v5039_v32, %v1477_v58  ;;  %v3428_v63 = vpop.f32.mrb[183].mxu0  ;;  %v3530_v1 = vpop.f32.mrb[183].mxu1  ;;  %v5052_v58 = vld [vmem:[#allocation48_spill] sm:$0xff] }
 0x246   :  { %3030 = vst [vmem:[%s4852_s3 + $0x98] sm:$0xff] %v2990_v37   ;;  %v2137_v17 = vadd.f32 %v4579_v19, %v2081_v31  ;;  %v2082_v18 = vmax.f32 %v1553_v38, %v2006_v36  ;;  %v5053_v36 = vld [vmem:[#allocation49_spill] sm:$0xff] }
 0x247   :  { %v5054_v37 = vmax.f32 %v5052_v58, %v5053_v36 }
 0x248   :  { %v2138_v11 = vadd.f32 %v4579_v19, %v2082_v18  ;;  %v2186_v43 = vmax.f32 %v2137_v17, 0.0  ;;  %v5055_v17 = vld [vmem:[#allocation50_spill] sm:$0xff]  ;;  %v5056_v18 = vld [vmem:[#allocation51_spill] sm:$0xff] }
 0x249   :  { %v1482_v15 = vpop.f32.mrb[184].mxu0  ;;  %v2011_v26 = vpop.f32.mrb[184].mxu1 }
 0x24a   :  { %v2187_v47 = vmax.f32 %v2138_v11, 0.0  ;;  %v1554_v42 = vmax.f32 %v5042_v41, %v1482_v15  ;;  %v3431_v27 = vpop.f32.mrb[185].mxu0  ;;  %v3533_v28 = vpop.f32.mrb[185].mxu1  ;;  %v5057_v11 = vmax.f32 %v5055_v17, %v5056_v18 }
 0x24b   :  { %v1485_v45 = vpop.f32.mrb[186].mxu0  ;;  %v2014_v46 = vpop.f32.mrb[186].mxu1 }
 0x24c   :  { %v2995_v61 = vpack.c.bf16 %v2187_v47, %v2186_v43  ;;  %v2083_v8 = vmax.f32 %v1554_v42, %v2011_v26  ;;  %v1555_v48 = vmax.f32 %v5045_v0, %v1485_v45  ;;  %v3432_v49 = vpop.f32.mrb[187].mxu0  ;;  %v3534_v5 = vpop.f32.mrb[187].mxu1  ;;  %v5058_v45 = vld [vmem:[#allocation52_spill] sm:$0xff] }
 0x24e   :  { %3031 = vst [vmem:[%s4852_s3 + $0xa0] sm:$0xff] %v2995_v61   ;;  %v2139_v6 = vadd.f32 %v4579_v19, %v2083_v8  ;;  %v2084_v7 = vmax.f32 %v1555_v48, %v2014_v46  ;;  %v5059_v46 = vld [vmem:[#allocation53_spill] sm:$0xff] }
 0x24f   :  { %v5060_v61 = vmax.f32 %v5058_v45, %v5059_v46 }
 0x250   :  { %v2140_v20 = vadd.f32 %v4579_v19, %v2084_v7  ;;  %v2188_v39 = vmax.f32 %v2139_v6, 0.0 }
 0x251   :  { %v1490_v21 = vpop.f32.mrb[188].mxu0  ;;  %v2019_v35 = vpop.f32.mrb[188].mxu1 }
 0x252   :  { %v2189_v50 = vmax.f32 %v2140_v20, 0.0  ;;  %v1556_v23 = vmax.f32 %v5048_v40, %v1490_v21  ;;  %v3435_v55 = vpop.f32.mrb[189].mxu0  ;;  %v3537_v12 = vpop.f32.mrb[189].mxu1 }
 0x253   :  { %v1493_v51 = vpop.f32.mrb[190].mxu0  ;;  %v2022_v52 = vpop.f32.mrb[190].mxu1 }
 0x254   :  { %v3000_v13 = vpack.c.bf16 %v2189_v50, %v2188_v39  ;;  %v2085_v29 = vmax.f32 %v1556_v23, %v2019_v35  ;;  %v1557_v22 = vmax.f32 %v5051_v30, %v1493_v51  ;;  %v3436_v57 = vpop.f32.mrb[191].mxu0  ;;  %v3538_v16 = vpop.f32.mrb[191].mxu1 }
 0x256   :  { %3032 = vst [vmem:[%s4852_s3 + $0xa8] sm:$0xff] %v3000_v13   ;;  %v2141_v44 = vadd.f32 %v4579_v19, %v2085_v29  ;;  %v2086_v10 = vmax.f32 %v1557_v22, %v2022_v52 }
 0x258   :  { %v2142_v59 = vadd.f32 %v4579_v19, %v2086_v10  ;;  %v2190_v9 = vmax.f32 %v2141_v44, 0.0 }
 0x259   :  { %v1498_v3 = vpop.f32.mrb[192].mxu0  ;;  %v2027_v62 = vpop.f32.mrb[192].mxu1 }
 0x25a   :  { %v2191_v4 = vmax.f32 %v2142_v59, 0.0  ;;  %v1558_v31 = vmax.f32 %v5054_v37, %v1498_v3  ;;  %v3439_v33 = vpop.f32.mrb[193].mxu0  ;;  %v3541_v34 = vpop.f32.mrb[193].mxu1 }
 0x25b   :  { %v1501_v32 = vpop.f32.mrb[194].mxu0  ;;  %v2030_v38 = vpop.f32.mrb[194].mxu1 }
 0x25c   :  { %v3005_v63 = vpack.c.bf16 %v2191_v4, %v2190_v9  ;;  %v2087_v1 = vmax.f32 %v1558_v31, %v2027_v62  ;;  %v1559_v15 = vmax.f32 %v5057_v11, %v1501_v32  ;;  %v3440_v26 = vpop.f32.mrb[195].mxu0  ;;  %v3542_v43 = vpop.f32.mrb[195].mxu1 }
 0x25e   :  { %3033 = vst [vmem:[%s4852_s3 + $0xb0] sm:$0xff] %v3005_v63   ;;  %v2143_v47 = vadd.f32 %v4579_v19, %v2087_v1  ;;  %v2088_v60 = vmax.f32 %v1559_v15, %v2030_v38 }
 0x260   :  { %v2144_v14 = vadd.f32 %v4579_v19, %v2088_v60  ;;  %v2192_v27 = vmax.f32 %v2143_v47, 0.0 }
 0x261   :  { %v1506_v41 = vpop.f32.mrb[196].mxu0  ;;  %v2035_v42 = vpop.f32.mrb[196].mxu1 }
 0x262   :  { %v2193_v28 = vmax.f32 %v2144_v14, 0.0  ;;  %v1560_v8 = vmax.f32 %v5060_v61, %v1506_v41  ;;  %v3443_v24 = vpop.f32.mrb[197].mxu0  ;;  %v3545_v25 = vpop.f32.mrb[197].mxu1 }
 0x263   :  { %v1509_v0 = vpop.f32.mrb[198].mxu0  ;;  %v2038_v48 = vpop.f32.mrb[198].mxu1 }
 0x264   :  { %v3010_v49 = vpack.c.bf16 %v2193_v28, %v2192_v27  ;;  %v2089_v5 = vmax.f32 %v1560_v8, %v2035_v42  ;;  %v3444_v6 = vpop.f32.mrb[199].mxu0  ;;  %v3546_v7 = vpop.f32.mrb[199].mxu1 }
 0x266   :  { %3034 = vst [vmem:[%s4852_s3 + $0xb8] sm:$0xff] %v3010_v49   ;;  %v2145_v20 = vadd.f32 %v4579_v19, %v2089_v5 }
 0x268   :  { %v2194_v21 = vmax.f32 %v2145_v20, 0.0 }
 0x26a   :  { %v2891_v35 = vpack.c.bf16 %v2194_v21, %v2194_v21 }
 0x26c   :  { %2440 = vst [vmem:[%s4852_s3 + $0xc0] sm:$0xf] %v2891_v35 }

// kernel: net_forward.6
= control target key start
LH: loop header
LB: loop body
LE: loop exit
PB: predicated region body
PF: predicated region fallthrough
CT: control target
= control target key end

     0   :  { %s5375_s1 = inlined_call_operand.vmem [shape: bf16[9,128,128], index: 1, kind: input, shape index: {}]   ;;  %s5376_s0 = inlined_call_operand.vmem [shape: bf16[1,16,18,128], index: 0, kind: input, shape index: {}]   ;;  %s5377_s2 = inlined_call_operand.vmem [shape: f32[1,128], index: 2, kind: input, shape index: {}]   ;;  %s5378_s3 = inlined_call_operand.vmem [shape: bf16[1,18,128], index: 3, kind: output, shape index: {}]  }
   0x1   :  { %v4173_v0 = vld [vmem:[%s5375_s1 + $0x40] sm:$0xff]   ;;  %v4174_v1 = vld [vmem:[%s5375_s1 + $0x48] sm:$0xff]   ;;  %v4175_v2 = vld [vmem:[%s5375_s1 + $0x50] sm:$0xff]  }
   0x2   :  { %3325 = vmatprep.subr.bf16.mxu0 %v4173_v0  ;;  %3505 = vmatprep.subr.bf16.mxu1 %v4173_v0  ;;  %v4176_v3 = vld [vmem:[%s5375_s1 + $0x58] sm:$0xff]   ;;  %v4181_v4 = vld [vmem:[%s5376_s0 + $0xc] sm:$0xff]   ;;  %v4177_v6 = vld [vmem:[%s5375_s1 + $0x60] sm:$0xff]  }
   0x3   :  { %3326 = vmatpush3.bf16.msra.mxu0 %v4173_v0  ;;  %3506 = vmatpush3.bf16.msra.mxu1 %v4173_v0  ;;  %v4328_v5 = vld [vmem:[%s5376_s0 + $0x18] sm:$0xff]   ;;  %v4178_v7 = vld [vmem:[%s5375_s1 + $0x68] sm:$0xff]   ;;  %v4179_v8 = vld [vmem:[%s5375_s1 + $0x70] sm:$0xff]  }
   0x4   :  { %3327 = vmatprep.subr.bf16.mxu0 %v4174_v1  ;;  %3507 = vmatprep.subr.bf16.mxu1 %v4174_v1  ;;  %v4180_v9 = vld [vmem:[%s5375_s1 + $0x78] sm:$0xff]   ;;  %v4182_v10 = vld [vmem:[%s5375_s1] sm:$0xff]   ;;  %v4184_v11 = vld [vmem:[%s5376_s0 + $0x14] ss:$0 sps:$4 sm:$0x11]  }
   0x5   :  { %3341 = vmatprep.mubr.bf16.mxu0 %v4181_v4  ;;  %3521 = vmatprep.mubr.bf16.mxu1 %v4328_v5  ;;  %v4352_v12 = vld [vmem:[%s5376_s0 + $0x20] ss:$0 sps:$4 sm:$0x11]   ;;  %v4186_v13 = vld [vmem:[%s5375_s1 + $0x8] sm:$0xff]   ;;  %v4187_v15 = vld [vmem:[%s5375_s1 + $0x10] sm:$0xff]  }
   0x6   :  { %v4193_v14 = vld [vmem:[%s5376_s0] sm:$0xff]   ;;  %v4188_v16 = vld [vmem:[%s5375_s1 + $0x18] sm:$0xff]   ;;  %v4373_v18 = vld [vmem:[%s5375_s1 + $0x28] sm:$0xff]  }
   0x7   :  { %3328 = vmatpush3.bf16.msra.mxu0 %v4174_v1  ;;  %3508 = vmatpush3.bf16.msra.mxu1 %v4174_v1  ;;  %v4189_v17 = vld [vmem:[%s5375_s1 + $0x20] sm:$0xff]   ;;  %v4380_v19 = vld [vmem:[%s5375_s1 + $0x30] sm:$0xff]   ;;  %v4389_v20 = vld [vmem:[%s5375_s1 + $0x38] sm:$0xff]  }
   0x8   :  { %3329 = vmatprep.subr.bf16.mxu0 %v4175_v2  ;;  %3509 = vmatprep.subr.bf16.mxu1 %v4175_v2  ;;  %v4396_v21 = vld [vmem:[%s5375_s1 + $0x80] sm:$0xff]   ;;  %v4195_v22 = vld [vmem:[%s5376_s0 + $0x8] ss:$0 sps:$4 sm:$0x11]   ;;  %v4420_v25 = vld [vmem:[%s5375_s1 + $0x90] sm:$0xff]  }
   0x9   :  { %v4410_v23 = vld [vmem:[%s5375_s1 + $0x88] sm:$0xff]   ;;  %v4430_v26 = vld [vmem:[%s5375_s1 + $0x98] sm:$0xff]   ;;  %v4439_v27 = vld [vmem:[%s5375_s1 + $0xa0] sm:$0xff]  }
   0xa   :  { %v4204_v24 = vld [vmem:[%s5376_s0 + $0x24] sm:$0xff]   ;;  %v4457_v29 = vld [vmem:[%s5375_s1 + $0xb0] sm:$0xff]   ;;  %v4468_v30 = vld [vmem:[%s5375_s1 + $0xb8] sm:$0xff]  }
   0xb   :  { %3330 = vmatpush3.bf16.msra.mxu0 %v4175_v2  ;;  %3510 = vmatpush3.bf16.msra.mxu1 %v4175_v2  ;;  %v4448_v28 = vld [vmem:[%s5375_s1 + $0xa8] sm:$0xff]   ;;  %v4477_v31 = vld [vmem:[%s5375_s1 + $0xc0] sm:$0xff]   ;;  %v4494_v34 = vld [vmem:[%s5376_s0 + $0x30] sm:$0xff]  }
   0xc   :  { %3331 = vmatprep.subr.bf16.mxu0 %v4176_v3  ;;  %3511 = vmatprep.subr.bf16.mxu1 %v4176_v3  ;;  %v4205_v32 = vld [vmem:[%s5376_s0 + $0x2c] ss:$0 sps:$4 sm:$0x11]   ;;  %v4499_v35 = vld [vmem:[%s5376_s0 + $0x3c] sm:$0xff]   ;;  %v4509_v36 = vld [vmem:[%s5375_s1 + $0xd0] sm:$0xff]  }
   0xd   :  { %v4489_v33 = vld [vmem:[%s5375_s1 + $0xc8] sm:$0xff]   ;;  %v4520_v37 = vld [vmem:[%s5375_s1 + $0xd8] sm:$0xff]   ;;  %v4529_v38 = vld [vmem:[%s5375_s1 + $0xe0] sm:$0xff]  }
   0xe   :  { %v4538_v39 = vld [vmem:[%s5375_s1 + $0xe8] sm:$0xff]   ;;  %v4547_v40 = vld [vmem:[%s5375_s1 + $0xf0] sm:$0xff]   ;;  %v4556_v41 = vld [vmem:[%s5375_s1 + $0xf8] sm:$0xff]  }
   0xf   :  { %3332 = vmatpush3.bf16.msra.mxu0 %v4176_v3  ;;  %3512 = vmatpush3.bf16.msra.mxu1 %v4176_v3  ;;  %v4565_v42 = vld [vmem:[%s5375_s1 + $0x100] sm:$0xff]   ;;  %v4570_v43 = vld [vmem:[%s5376_s0 + $0x38] ss:$0 sps:$4 sm:$0x11]   ;;  %v4584_v45 = vld [vmem:[%s5375_s1 + $0x108] sm:$0xff]  }
  0x10   :  { %3333 = vmatprep.subr.bf16.mxu0 %v4177_v6  ;;  %3513 = vmatprep.subr.bf16.mxu1 %v4177_v6  ;;  %v4575_v44 = vld [vmem:[%s5376_s0 + $0x44] ss:$0 sps:$4 sm:$0x11]   ;;  %v4589_v46 = vld [vmem:[%s5376_s0 + $0x48] sm:$0xff]   ;;  %v4600_v47 = vld [vmem:[%s5375_s1 + $0x110] sm:$0xff]  }
  0x11   :  { %v4611_v48 = vld [vmem:[%s5375_s1 + $0x118] sm:$0xff]   ;;  %v4620_v49 = vld [vmem:[%s5375_s1 + $0x120] sm:$0xff]   ;;  %v4629_v50 = vld [vmem:[%s5375_s1 + $0x128] sm:$0xff]  }
  0x12   :  { %v4638_v51 = vld [vmem:[%s5375_s1 + $0x130] sm:$0xff]   ;;  %v4647_v52 = vld [vmem:[%s5375_s1 + $0x138] sm:$0xff]   ;;  %v4656_v53 = vld [vmem:[%s5375_s1 + $0x140] sm:$0xff]  }
  0x13   :  { %3334 = vmatpush3.bf16.msra.mxu0 %v4177_v6  ;;  %3514 = vmatpush3.bf16.msra.mxu1 %v4177_v6  ;;  %v4661_v54 = vld [vmem:[%s5376_s0 + $0x50] ss:$0 sps:$4 sm:$0x11]   ;;  %v4670_v55 = vld [vmem:[%s5375_s1 + $0x148] sm:$0xff]   ;;  %v4675_v56 = vld [vmem:[%s5376_s0 + $0x54] sm:$0xff]  }
  0x14   :  { %3335 = vmatprep.subr.bf16.mxu0 %v4178_v7  ;;  %3515 = vmatprep.subr.bf16.mxu1 %v4178_v7  ;;  %v4686_v57 = vld [vmem:[%s5375_s1 + $0x150] sm:$0xff]   ;;  %v4697_v58 = vld [vmem:[%s5375_s1 + $0x158] sm:$0xff]   ;;  %v4706_v59 = vld [vmem:[%s5375_s1 + $0x160] sm:$0xff]  }
  0x15   :  { %v4715_v60 = vld [vmem:[%s5375_s1 + $0x168] sm:$0xff]   ;;  %v4724_v61 = vld [vmem:[%s5375_s1 + $0x170] sm:$0xff]   ;;  %v4733_v62 = vld [vmem:[%s5375_s1 + $0x178] sm:$0xff]  }
  0x16   :  { %v4742_v63 = vld [vmem:[%s5375_s1 + $0x180] sm:$0xff]   ;;  %v4747_v0 = vld [vmem:[%s5376_s0 + $0x5c] ss:$0 sps:$4 sm:$0x11]   ;;  %v4756_v1 = vld [vmem:[%s5375_s1 + $0x188] sm:$0xff]  }
  0x17   :  { %3336 = vmatpush3.bf16.msra.mxu0 %v4178_v7  ;;  %3516 = vmatpush3.bf16.msra.mxu1 %v4178_v7  ;;  %v4761_v2 = vld [vmem:[%s5376_s0 + $0x60] sm:$0xff]   ;;  %v4766_v3 = vld [vmem:[%s5376_s0 + $0x6c] sm:$0xff]  }
  0x18   :  { %3337 = vmatprep.subr.bf16.mxu0 %v4179_v8  ;;  %3517 = vmatprep.subr.bf16.mxu1 %v4179_v8  ;;  %v4797_v6 = vld [vmem:[%s5375_s1 + $0x1a0] sm:$0xff]   ;;  %v4806_v7 = vld [vmem:[%s5375_s1 + $0x1a8] sm:$0xff]  }
  0x1b   :  { %3338 = vmatpush3.bf16.msra.mxu0 %v4179_v8  ;;  %3518 = vmatpush3.bf16.msra.mxu1 %v4179_v8  ;;  %v4815_v8 = vld [vmem:[%s5375_s1 + $0x1b0] sm:$0xff]  }
  0x1c   :  { %3339 = vmatprep.subr.bf16.mxu0 %v4180_v9  ;;  %3519 = vmatprep.subr.bf16.mxu1 %v4180_v9 }
  0x1f   :  { %3340 = vmatpush3.bf16.msra.mxu0 %v4180_v9  ;;  %3520 = vmatpush3.bf16.msra.mxu1 %v4180_v9  ;;  %v4824_v9 = vld [vmem:[%s5375_s1 + $0x1b8] sm:$0xff]  }
  0x20   :  { %3345 = vmatprep.subr.bf16.mxu0 %v4182_v10  ;;  %3525 = vmatprep.subr.bf16.mxu1 %v4182_v10 }
  0x22   :  { %3342 = vmatmul.mubr.bf16.vlgmr.msra.gmra.mrb[0].mxu0 %v4184_v11  ;;  %3522 = vmatmul.mubr.bf16.vlgmr.msra.gmra.mrb[0].mxu1 %v4352_v12 }
  0x23   :  { %3346 = vmatpush3.bf16.msra.mxu0 %v4182_v10  ;;  %3526 = vmatpush3.bf16.msra.mxu1 %v4182_v10  ;;  %v4833_v10 = vld [vmem:[%s5375_s1 + $0x1c0] sm:$0xff]  }
  0x24   :  { %3347 = vmatprep.subr.bf16.mxu0 %v4186_v13  ;;  %3527 = vmatprep.subr.bf16.mxu1 %v4186_v13 }
  0x25   :  { %3361 = vmatprep.mubr.bf16.mxu0 %v4193_v14  ;;  %3541 = vmatprep.mubr.bf16.mxu1 %v4181_v4  ;;  %v4777_v4 = vld [vmem:[%s5375_s1 + $0x190] sm:$0xff]   ;;  %v4857_v14 = vld [vmem:[%s5376_s0 + $0x78] sm:$0xff]  }
  0x27   :  { %3348 = vmatpush3.bf16.msra.mxu0 %v4186_v13  ;;  %3528 = vmatpush3.bf16.msra.mxu1 %v4186_v13  ;;  %v4852_v13 = vld [vmem:[%s5375_s1 + $0x1c8] sm:$0xff]  }
  0x28   :  { %3349 = vmatprep.subr.bf16.mxu0 %v4187_v15  ;;  %3529 = vmatprep.subr.bf16.mxu1 %v4187_v15 }
  0x2b   :  { %3350 = vmatpush3.bf16.msra.mxu0 %v4187_v15  ;;  %3530 = vmatpush3.bf16.msra.mxu1 %v4187_v15  ;;  %v4868_v15 = vld [vmem:[%s5375_s1 + $0x1d0] sm:$0xff]  }
  0x2c   :  { %3351 = vmatprep.subr.bf16.mxu0 %v4188_v16  ;;  %3531 = vmatprep.subr.bf16.mxu1 %v4188_v16  ;;  %5407 = vst [vmem:[#allocation2_spill] sm:$0xff] %v4868_v15 }
  0x2f   :  { %3352 = vmatpush3.bf16.msra.mxu0 %v4188_v16  ;;  %3532 = vmatpush3.bf16.msra.mxu1 %v4188_v16  ;;  %v4879_v16 = vld [vmem:[%s5375_s1 + $0x1d8] sm:$0xff]  }
  0x30   :  { %3353 = vmatprep.subr.bf16.mxu0 %v4189_v17  ;;  %3533 = vmatprep.subr.bf16.mxu1 %v4189_v17  ;;  %5408 = vst [vmem:[#allocation3_spill] sm:$0xff] %v4879_v16 }
  0x33   :  { %3354 = vmatpush3.bf16.msra.mxu0 %v4189_v17  ;;  %3534 = vmatpush3.bf16.msra.mxu1 %v4189_v17  ;;  %v4888_v17 = vld [vmem:[%s5375_s1 + $0x1e0] sm:$0xff]  }
  0x34   :  { %3355 = vmatprep.subr.bf16.mxu0 %v4373_v18  ;;  %3535 = vmatprep.subr.bf16.mxu1 %v4373_v18  ;;  %5409 = vst [vmem:[#allocation4_spill] sm:$0xff] %v4888_v17 }
  0x37   :  { %3356 = vmatpush3.bf16.msra.mxu0 %v4373_v18  ;;  %3536 = vmatpush3.bf16.msra.mxu1 %v4373_v18 }
  0x38   :  { %3357 = vmatprep.subr.bf16.mxu0 %v4380_v19  ;;  %3537 = vmatprep.subr.bf16.mxu1 %v4380_v19 }
  0x3b   :  { %3358 = vmatpush3.bf16.msra.mxu0 %v4380_v19  ;;  %3538 = vmatpush3.bf16.msra.mxu1 %v4380_v19 }
  0x3c   :  { %3359 = vmatprep.subr.bf16.mxu0 %v4389_v20  ;;  %3539 = vmatprep.subr.bf16.mxu1 %v4389_v20 }
  0x3f   :  { %3360 = vmatpush3.bf16.msra.mxu0 %v4389_v20  ;;  %3540 = vmatpush3.bf16.msra.mxu1 %v4389_v20 }
  0x40   :  { %3365 = vmatprep.subr.bf16.mxu0 %v4396_v21  ;;  %3545 = vmatprep.subr.bf16.mxu1 %v4396_v21 }
  0x42   :  { %3362 = vmatmul.mubr.bf16.vlgmr.msra.gmra.mrb[0].mxu0 %v4195_v22  ;;  %3542 = vmatmul.mubr.bf16.vlgmr.msra.gmra.mrb[0].mxu1 %v4184_v11  ;;  %v4838_v11 = vld [vmem:[%s5376_s0 + $0x68] ss:$0 sps:$4 sm:$0x11]  }
  0x43   :  { %3366 = vmatpush3.bf16.msra.mxu0 %v4396_v21  ;;  %3546 = vmatpush3.bf16.msra.mxu1 %v4396_v21  ;;  %v4897_v22 = vld [vmem:[%s5375_s1 + $0x1e8] sm:$0xff]  }
  0x44   :  { %3367 = vmatprep.subr.bf16.mxu0 %v4410_v23  ;;  %3547 = vmatprep.subr.bf16.mxu1 %v4410_v23  ;;  %5410 = vst [vmem:[#allocation5_spill] sm:$0xff] %v4897_v22 }
  0x45   :  { %3381 = vmatprep.mubr.bf16.mxu0 %v4328_v5  ;;  %3561 = vmatprep.mubr.bf16.mxu1 %v4204_v24  ;;  %v4788_v5 = vld [vmem:[%s5375_s1 + $0x198] sm:$0xff]   ;;  %v4906_v24 = vld [vmem:[%s5375_s1 + $0x1f0] sm:$0xff]  }
  0x46   :  { %5411 = vst [vmem:[#allocation6_spill] sm:$0xff] %v4906_v24 }
  0x47   :  { %3368 = vmatpush3.bf16.msra.mxu0 %v4410_v23  ;;  %3548 = vmatpush3.bf16.msra.mxu1 %v4410_v23 }
  0x48   :  { %3369 = vmatprep.subr.bf16.mxu0 %v4420_v25  ;;  %3549 = vmatprep.subr.bf16.mxu1 %v4420_v25 }
  0x4b   :  { %3370 = vmatpush3.bf16.msra.mxu0 %v4420_v25  ;;  %3550 = vmatpush3.bf16.msra.mxu1 %v4420_v25 }
  0x4c   :  { %3371 = vmatprep.subr.bf16.mxu0 %v4430_v26  ;;  %3551 = vmatprep.subr.bf16.mxu1 %v4430_v26 }
  0x4f   :  { %3372 = vmatpush3.bf16.msra.mxu0 %v4430_v26  ;;  %3552 = vmatpush3.bf16.msra.mxu1 %v4430_v26 }
  0x50   :  { %3373 = vmatprep.subr.bf16.mxu0 %v4439_v27  ;;  %3553 = vmatprep.subr.bf16.mxu1 %v4439_v27 }
  0x53   :  { %3374 = vmatpush3.bf16.msra.mxu0 %v4439_v27  ;;  %3554 = vmatpush3.bf16.msra.mxu1 %v4439_v27 }
  0x54   :  { %3375 = vmatprep.subr.bf16.mxu0 %v4448_v28  ;;  %3555 = vmatprep.subr.bf16.mxu1 %v4448_v28 }
  0x57   :  { %3376 = vmatpush3.bf16.msra.mxu0 %v4448_v28  ;;  %3556 = vmatpush3.bf16.msra.mxu1 %v4448_v28 }
  0x58   :  { %3377 = vmatprep.subr.bf16.mxu0 %v4457_v29  ;;  %3557 = vmatprep.subr.bf16.mxu1 %v4457_v29 }
  0x5b   :  { %3378 = vmatpush3.bf16.msra.mxu0 %v4457_v29  ;;  %3558 = vmatpush3.bf16.msra.mxu1 %v4457_v29 }
  0x5c   :  { %3379 = vmatprep.subr.bf16.mxu0 %v4468_v30  ;;  %3559 = vmatprep.subr.bf16.mxu1 %v4468_v30 }
  0x5f   :  { %3380 = vmatpush3.bf16.msra.mxu0 %v4468_v30  ;;  %3560 = vmatpush3.bf16.msra.mxu1 %v4468_v30 }
  0x60   :  { %3385 = vmatprep.subr.bf16.mxu0 %v4477_v31  ;;  %3565 = vmatprep.subr.bf16.mxu1 %v4477_v31 }
  0x62   :  { %3382 = vmatmul.mubr.bf16.vlgmr.msra.gmra.mrb[0].mxu0 %v4352_v12  ;;  %3562 = vmatmul.mubr.bf16.vlgmr.msra.gmra.mrb[0].mxu1 %v4205_v32  ;;  %v4843_v12 = vld [vmem:[%s5376_s0 + $0x74] ss:$0 sps:$4 sm:$0x11]   ;;  %v4915_v32 = vld [vmem:[%s5375_s1 + $0x1f8] sm:$0xff]  }
  0x63   :  { %3386 = vmatpush3.bf16.msra.mxu0 %v4477_v31  ;;  %3566 = vmatpush3.bf16.msra.mxu1 %v4477_v31  ;;  %5412 = vst [vmem:[#allocation7_spill] sm:$0xff] %v4915_v32 }
  0x64   :  { %3387 = vmatprep.subr.bf16.mxu0 %v4489_v33  ;;  %3567 = vmatprep.subr.bf16.mxu1 %v4489_v33 }
  0x65   :  { %3401 = vmatprep.mubr.bf16.mxu0 %v4494_v34  ;;  %3581 = vmatprep.mubr.bf16.mxu1 %v4499_v35 }
  0x67   :  { %3388 = vmatpush3.bf16.msra.mxu0 %v4489_v33  ;;  %3568 = vmatpush3.bf16.msra.mxu1 %v4489_v33 }
  0x68   :  { %3389 = vmatprep.subr.bf16.mxu0 %v4509_v36  ;;  %3569 = vmatprep.subr.bf16.mxu1 %v4509_v36 }
  0x6b   :  { %3390 = vmatpush3.bf16.msra.mxu0 %v4509_v36  ;;  %3570 = vmatpush3.bf16.msra.mxu1 %v4509_v36 }
  0x6c   :  { %3391 = vmatprep.subr.bf16.mxu0 %v4520_v37  ;;  %3571 = vmatprep.subr.bf16.mxu1 %v4520_v37 }
  0x6f   :  { %3392 = vmatpush3.bf16.msra.mxu0 %v4520_v37  ;;  %3572 = vmatpush3.bf16.msra.mxu1 %v4520_v37 }
  0x70   :  { %3393 = vmatprep.subr.bf16.mxu0 %v4529_v38  ;;  %3573 = vmatprep.subr.bf16.mxu1 %v4529_v38 }
  0x73   :  { %3394 = vmatpush3.bf16.msra.mxu0 %v4529_v38  ;;  %3574 = vmatpush3.bf16.msra.mxu1 %v4529_v38 }
  0x74   :  { %3395 = vmatprep.subr.bf16.mxu0 %v4538_v39  ;;  %3575 = vmatprep.subr.bf16.mxu1 %v4538_v39 }
  0x77   :  { %3396 = vmatpush3.bf16.msra.mxu0 %v4538_v39  ;;  %3576 = vmatpush3.bf16.msra.mxu1 %v4538_v39 }
  0x78   :  { %3397 = vmatprep.subr.bf16.mxu0 %v4547_v40  ;;  %3577 = vmatprep.subr.bf16.mxu1 %v4547_v40 }
  0x7b   :  { %3398 = vmatpush3.bf16.msra.mxu0 %v4547_v40  ;;  %3578 = vmatpush3.bf16.msra.mxu1 %v4547_v40 }
  0x7c   :  { %3399 = vmatprep.subr.bf16.mxu0 %v4556_v41  ;;  %3579 = vmatprep.subr.bf16.mxu1 %v4556_v41 }
  0x7f   :  { %3400 = vmatpush3.bf16.msra.mxu0 %v4556_v41  ;;  %3580 = vmatpush3.bf16.msra.mxu1 %v4556_v41 }
  0x80   :  { %3405 = vmatprep.subr.bf16.mxu0 %v4565_v42  ;;  %3585 = vmatprep.subr.bf16.mxu1 %v4565_v42 }
  0x82   :  { %3402 = vmatmul.mubr.bf16.vlgmr.msra.gmra.mrb[0].mxu0 %v4570_v43  ;;  %3582 = vmatmul.mubr.bf16.vlgmr.msra.gmra.mrb[0].mxu1 %v4575_v44 }
  0x83   :  { %3406 = vmatpush3.bf16.msra.mxu0 %v4565_v42  ;;  %3586 = vmatpush3.bf16.msra.mxu1 %v4565_v42 }
  0x84   :  { %3407 = vmatprep.subr.bf16.mxu0 %v4584_v45  ;;  %3587 = vmatprep.subr.bf16.mxu1 %v4584_v45 }
  0x85   :  { %3421 = vmatprep.mubr.bf16.mxu0 %v4499_v35  ;;  %3601 = vmatprep.mubr.bf16.mxu1 %v4589_v46 }
  0x87   :  { %3408 = vmatpush3.bf16.msra.mxu0 %v4584_v45  ;;  %3588 = vmatpush3.bf16.msra.mxu1 %v4584_v45 }
  0x88   :  { %3409 = vmatprep.subr.bf16.mxu0 %v4600_v47  ;;  %3589 = vmatprep.subr.bf16.mxu1 %v4600_v47 }
  0x8b   :  { %3410 = vmatpush3.bf16.msra.mxu0 %v4600_v47  ;;  %3590 = vmatpush3.bf16.msra.mxu1 %v4600_v47 }
  0x8c   :  { %3411 = vmatprep.subr.bf16.mxu0 %v4611_v48  ;;  %3591 = vmatprep.subr.bf16.mxu1 %v4611_v48 }
  0x8f   :  { %3412 = vmatpush3.bf16.msra.mxu0 %v4611_v48  ;;  %3592 = vmatpush3.bf16.msra.mxu1 %v4611_v48 }
  0x90   :  { %3413 = vmatprep.subr.bf16.mxu0 %v4620_v49  ;;  %3593 = vmatprep.subr.bf16.mxu1 %v4620_v49 }
  0x93   :  { %3414 = vmatpush3.bf16.msra.mxu0 %v4620_v49  ;;  %3594 = vmatpush3.bf16.msra.mxu1 %v4620_v49 }
  0x94   :  { %3415 = vmatprep.subr.bf16.mxu0 %v4629_v50  ;;  %3595 = vmatprep.subr.bf16.mxu1 %v4629_v50 }
  0x97   :  { %3416 = vmatpush3.bf16.msra.mxu0 %v4629_v50  ;;  %3596 = vmatpush3.bf16.msra.mxu1 %v4629_v50 }
  0x98   :  { %3417 = vmatprep.subr.bf16.mxu0 %v4638_v51  ;;  %3597 = vmatprep.subr.bf16.mxu1 %v4638_v51 }
  0x9b   :  { %3418 = vmatpush3.bf16.msra.mxu0 %v4638_v51  ;;  %3598 = vmatpush3.bf16.msra.mxu1 %v4638_v51 }
  0x9c   :  { %3419 = vmatprep.subr.bf16.mxu0 %v4647_v52  ;;  %3599 = vmatprep.subr.bf16.mxu1 %v4647_v52 }
  0x9f   :  { %3420 = vmatpush3.bf16.msra.mxu0 %v4647_v52  ;;  %3600 = vmatpush3.bf16.msra.mxu1 %v4647_v52 }
  0xa0   :  { %3425 = vmatprep.subr.bf16.mxu0 %v4656_v53  ;;  %3605 = vmatprep.subr.bf16.mxu1 %v4656_v53 }
  0xa2   :  { %3422 = vmatmul.mubr.bf16.vlgmr.msra.gmra.mrb[0].mxu0 %v4575_v44  ;;  %3602 = vmatmul.mubr.bf16.vlgmr.msra.gmra.mrb[0].mxu1 %v4661_v54 }
  0xa3   :  { %3426 = vmatpush3.bf16.msra.mxu0 %v4656_v53  ;;  %3606 = vmatpush3.bf16.msra.mxu1 %v4656_v53 }
  0xa4   :  { %3427 = vmatprep.subr.bf16.mxu0 %v4670_v55  ;;  %3607 = vmatprep.subr.bf16.mxu1 %v4670_v55 }
  0xa5   :  { %3441 = vmatprep.mubr.bf16.mxu0 %v4589_v46  ;;  %3621 = vmatprep.mubr.bf16.mxu1 %v4675_v56 }
  0xa7   :  { %3428 = vmatpush3.bf16.msra.mxu0 %v4670_v55  ;;  %3608 = vmatpush3.bf16.msra.mxu1 %v4670_v55 }
  0xa8   :  { %3429 = vmatprep.subr.bf16.mxu0 %v4686_v57  ;;  %3609 = vmatprep.subr.bf16.mxu1 %v4686_v57 }
  0xab   :  { %3430 = vmatpush3.bf16.msra.mxu0 %v4686_v57  ;;  %3610 = vmatpush3.bf16.msra.mxu1 %v4686_v57 }
  0xac   :  { %3431 = vmatprep.subr.bf16.mxu0 %v4697_v58  ;;  %3611 = vmatprep.subr.bf16.mxu1 %v4697_v58 }
  0xaf   :  { %3432 = vmatpush3.bf16.msra.mxu0 %v4697_v58  ;;  %3612 = vmatpush3.bf16.msra.mxu1 %v4697_v58 }
  0xb0   :  { %3433 = vmatprep.subr.bf16.mxu0 %v4706_v59  ;;  %3613 = vmatprep.subr.bf16.mxu1 %v4706_v59 }
  0xb3   :  { %3434 = vmatpush3.bf16.msra.mxu0 %v4706_v59  ;;  %3614 = vmatpush3.bf16.msra.mxu1 %v4706_v59 }
  0xb4   :  { %3435 = vmatprep.subr.bf16.mxu0 %v4715_v60  ;;  %3615 = vmatprep.subr.bf16.mxu1 %v4715_v60 }
  0xb7   :  { %3436 = vmatpush3.bf16.msra.mxu0 %v4715_v60  ;;  %3616 = vmatpush3.bf16.msra.mxu1 %v4715_v60 }
  0xb8   :  { %3437 = vmatprep.subr.bf16.mxu0 %v4724_v61  ;;  %3617 = vmatprep.subr.bf16.mxu1 %v4724_v61 }
  0xbb   :  { %3438 = vmatpush3.bf16.msra.mxu0 %v4724_v61  ;;  %3618 = vmatpush3.bf16.msra.mxu1 %v4724_v61 }
  0xbc   :  { %3439 = vmatprep.subr.bf16.mxu0 %v4733_v62  ;;  %3619 = vmatprep.subr.bf16.mxu1 %v4733_v62 }
  0xbf   :  { %3440 = vmatpush3.bf16.msra.mxu0 %v4733_v62  ;;  %3620 = vmatpush3.bf16.msra.mxu1 %v4733_v62 }
  0xc0   :  { %3445 = vmatprep.subr.bf16.mxu0 %v4742_v63  ;;  %3625 = vmatprep.subr.bf16.mxu1 %v4742_v63 }
  0xc2   :  { %3442 = vmatmul.mubr.bf16.vlgmr.msra.gmra.mrb[0].mxu0 %v4661_v54  ;;  %3622 = vmatmul.mubr.bf16.vlgmr.msra.gmra.mrb[0].mxu1 %v4747_v0 }
  0xc3   :  { %3446 = vmatpush3.bf16.msra.mxu0 %v4742_v63  ;;  %3626 = vmatpush3.bf16.msra.mxu1 %v4742_v63 }
  0xc4   :  { %3447 = vmatprep.subr.bf16.mxu0 %v4756_v1  ;;  %3627 = vmatprep.subr.bf16.mxu1 %v4756_v1 }
  0xc5   :  { %3461 = vmatprep.mubr.bf16.mxu0 %v4761_v2  ;;  %3641 = vmatprep.mubr.bf16.mxu1 %v4766_v3 }
  0xc7   :  { %3448 = vmatpush3.bf16.msra.mxu0 %v4756_v1  ;;  %3628 = vmatpush3.bf16.msra.mxu1 %v4756_v1 }
  0xc8   :  { %3449 = vmatprep.subr.bf16.mxu0 %v4777_v4  ;;  %3629 = vmatprep.subr.bf16.mxu1 %v4777_v4 }
  0xcb   :  { %3450 = vmatpush3.bf16.msra.mxu0 %v4777_v4  ;;  %3630 = vmatpush3.bf16.msra.mxu1 %v4777_v4 }
  0xcc   :  { %3451 = vmatprep.subr.bf16.mxu0 %v4788_v5  ;;  %3631 = vmatprep.subr.bf16.mxu1 %v4788_v5 }
  0xcf   :  { %3452 = vmatpush3.bf16.msra.mxu0 %v4788_v5  ;;  %3632 = vmatpush3.bf16.msra.mxu1 %v4788_v5 }
  0xd0   :  { %3453 = vmatprep.subr.bf16.mxu0 %v4797_v6  ;;  %3633 = vmatprep.subr.bf16.mxu1 %v4797_v6 }
  0xd3   :  { %3454 = vmatpush3.bf16.msra.mxu0 %v4797_v6  ;;  %3634 = vmatpush3.bf16.msra.mxu1 %v4797_v6 }
  0xd4   :  { %3455 = vmatprep.subr.bf16.mxu0 %v4806_v7  ;;  %3635 = vmatprep.subr.bf16.mxu1 %v4806_v7 }
  0xd7   :  { %3456 = vmatpush3.bf16.msra.mxu0 %v4806_v7  ;;  %3636 = vmatpush3.bf16.msra.mxu1 %v4806_v7 }
  0xd8   :  { %3457 = vmatprep.subr.bf16.mxu0 %v4815_v8  ;;  %3637 = vmatprep.subr.bf16.mxu1 %v4815_v8 }
  0xdb   :  { %3458 = vmatpush3.bf16.msra.mxu0 %v4815_v8  ;;  %3638 = vmatpush3.bf16.msra.mxu1 %v4815_v8 }
  0xdc   :  { %3459 = vmatprep.subr.bf16.mxu0 %v4824_v9  ;;  %3639 = vmatprep.subr.bf16.mxu1 %v4824_v9 }
  0xdf   :  { %3460 = vmatpush3.bf16.msra.mxu0 %v4824_v9  ;;  %3640 = vmatpush3.bf16.msra.mxu1 %v4824_v9 }
  0xe0   :  { %3465 = vmatprep.subr.bf16.mxu0 %v4833_v10  ;;  %3645 = vmatprep.subr.bf16.mxu1 %v4833_v10 }
  0xe2   :  { %3462 = vmatmul.mubr.bf16.vlgmr.msra.gmra.mrb[0].mxu0 %v4838_v11  ;;  %3642 = vmatmul.mubr.bf16.vlgmr.msra.gmra.mrb[0].mxu1 %v4843_v12 }
  0xe3   :  { %3466 = vmatpush3.bf16.msra.mxu0 %v4833_v10  ;;  %3646 = vmatpush3.bf16.msra.mxu1 %v4833_v10 }
  0xe4   :  { %3467 = vmatprep.subr.bf16.mxu0 %v4852_v13  ;;  %3647 = vmatprep.subr.bf16.mxu1 %v4852_v13 }
  0xe5   :  { %3481 = vmatprep.mubr.bf16.mxu0 %v4766_v3  ;;  %3661 = vmatprep.mubr.bf16.mxu1 %v4857_v14 }
  0xe7   :  { %3468 = vmatpush3.bf16.msra.mxu0 %v4852_v13  ;;  %3648 = vmatpush3.bf16.msra.mxu1 %v4852_v13 }
  0xe8   :  { %3469 = vmatprep.subr.bf16.mxu0 %v4868_v15  ;;  %3649 = vmatprep.subr.bf16.mxu1 %v4868_v15 }
  0xeb   :  { %3470 = vmatpush3.bf16.msra.mxu0 %v4868_v15  ;;  %3650 = vmatpush3.bf16.msra.mxu1 %v4868_v15  ;;  %v4277_v15 = vld [vmem:[%s5375_s1 + $0x40] sm:$0xff]  }
  0xec   :  { %3471 = vmatprep.subr.bf16.mxu0 %v4879_v16  ;;  %3651 = vmatprep.subr.bf16.mxu1 %v4879_v16 }
  0xef   :  { %3472 = vmatpush3.bf16.msra.mxu0 %v4879_v16  ;;  %3652 = vmatpush3.bf16.msra.mxu1 %v4879_v16  ;;  %v4943_v16 = vld [vmem:[%s5376_s0 + $0x84] sm:$0xff]  }
  0xf0   :  { %3473 = vmatprep.subr.bf16.mxu0 %v4888_v17  ;;  %3653 = vmatprep.subr.bf16.mxu1 %v4888_v17 }
  0xf3   :  { %3474 = vmatpush3.bf16.msra.mxu0 %v4888_v17  ;;  %3654 = vmatpush3.bf16.msra.mxu1 %v4888_v17  ;;  %v4929_v17 = vld [vmem:[%s5376_s0 + $0x80] ss:$0 sps:$4 sm:$0x11]  }
  0xf4   :  { %3475 = vmatprep.subr.bf16.mxu0 %v4897_v22  ;;  %3655 = vmatprep.subr.bf16.mxu1 %v4897_v22 }
  0xf7   :  { %3476 = vmatpush3.bf16.msra.mxu0 %v4897_v22  ;;  %3656 = vmatpush3.bf16.msra.mxu1 %v4897_v22  ;;  %v4924_v22 = vld [vmem:[%s5375_s1 + $0x200] sm:$0xff]  }
  0xf8   :  { %3477 = vmatprep.subr.bf16.mxu0 %v4906_v24  ;;  %3657 = vmatprep.subr.bf16.mxu1 %v4906_v24  ;;  %5413 = vst [vmem:[#allocation8_spill] sm:$0xff] %v4924_v22 }
  0xfb   :  { %3478 = vmatpush3.bf16.msra.mxu0 %v4906_v24  ;;  %3658 = vmatpush3.bf16.msra.mxu1 %v4906_v24  ;;  %v4938_v24 = vld [vmem:[%s5375_s1 + $0x208] sm:$0xff]  }
  0xfc   :  { %3479 = vmatprep.subr.bf16.mxu0 %v4915_v32  ;;  %3659 = vmatprep.subr.bf16.mxu1 %v4915_v32  ;;  %5414 = vst [vmem:[#allocation9_spill] sm:$0xff] %v4938_v24 }
  0xff   :  { %3480 = vmatpush3.bf16.msra.mxu0 %v4915_v32  ;;  %3660 = vmatpush3.bf16.msra.mxu1 %v4915_v32  ;;  %v4954_v32 = vld [vmem:[%s5375_s1 + $0x210] sm:$0xff]  }
 0x100   :  { %3485 = vmatprep.subr.bf16.mxu0 %v4924_v22  ;;  %3665 = vmatprep.subr.bf16.mxu1 %v4924_v22  ;;  %5415 = vst [vmem:[#allocation10_spill] sm:$0xff] %v4954_v32 }
 0x102   :  { %3482 = vmatmul.mubr.bf16.vlgmr.msra.gmra.mrb[0].mxu0 %v4843_v12  ;;  %3662 = vmatmul.mubr.bf16.vlgmr.msra.gmra.mrb[0].mxu1 %v4929_v17 }
 0x103   :  { %3486 = vmatpush3.bf16.msra.mxu0 %v4924_v22  ;;  %3666 = vmatpush3.bf16.msra.mxu1 %v4924_v22  ;;  %v4965_v22 = vld [vmem:[%s5375_s1 + $0x218] sm:$0xff]  }
 0x104   :  { %3487 = vmatprep.subr.bf16.mxu0 %v4938_v24  ;;  %3667 = vmatprep.subr.bf16.mxu1 %v4938_v24  ;;  %5416 = vst [vmem:[#allocation11_spill] sm:$0xff] %v4965_v22 }
 0x105   :  { %3501 = vmatprep.mubr.bf16.mxu0 %v4857_v14  ;;  %3681 = vmatprep.mubr.bf16.mxu1 %v4943_v16 }
 0x107   :  { %3488 = vmatpush3.bf16.msra.mxu0 %v4938_v24  ;;  %3668 = vmatpush3.bf16.msra.mxu1 %v4938_v24  ;;  %v4974_v24 = vld [vmem:[%s5375_s1 + $0x220] sm:$0xff]  }
 0x108   :  { %3489 = vmatprep.subr.bf16.mxu0 %v4954_v32  ;;  %3669 = vmatprep.subr.bf16.mxu1 %v4954_v32  ;;  %5417 = vst [vmem:[#allocation12_spill] sm:$0xff] %v4974_v24 }
 0x10b   :  { %3490 = vmatpush3.bf16.msra.mxu0 %v4954_v32  ;;  %3670 = vmatpush3.bf16.msra.mxu1 %v4954_v32  ;;  %v4983_v32 = vld [vmem:[%s5375_s1 + $0x228] sm:$0xff]  }
 0x10c   :  { %3491 = vmatprep.subr.bf16.mxu0 %v4965_v22  ;;  %3671 = vmatprep.subr.bf16.mxu1 %v4965_v22  ;;  %5418 = vst [vmem:[#allocation13_spill] sm:$0xff] %v4983_v32 }
 0x10f   :  { %3492 = vmatpush3.bf16.msra.mxu0 %v4965_v22  ;;  %3672 = vmatpush3.bf16.msra.mxu1 %v4965_v22  ;;  %v4992_v22 = vld [vmem:[%s5375_s1 + $0x230] sm:$0xff]  }
 0x110   :  { %3493 = vmatprep.subr.bf16.mxu0 %v4974_v24  ;;  %3673 = vmatprep.subr.bf16.mxu1 %v4974_v24  ;;  %5419 = vst [vmem:[#allocation14_spill] sm:$0xff] %v4992_v22 }
 0x113   :  { %3494 = vmatpush3.bf16.msra.mxu0 %v4974_v24  ;;  %3674 = vmatpush3.bf16.msra.mxu1 %v4974_v24  ;;  %v5001_v24 = vld [vmem:[%s5375_s1 + $0x238] sm:$0xff]  }
 0x114   :  { %3495 = vmatprep.subr.bf16.mxu0 %v4983_v32  ;;  %3675 = vmatprep.subr.bf16.mxu1 %v4983_v32  ;;  %5420 = vst [vmem:[#allocation15_spill] sm:$0xff] %v5001_v24 }
 0x117   :  { %3496 = vmatpush3.bf16.msra.mxu0 %v4983_v32  ;;  %3676 = vmatpush3.bf16.msra.mxu1 %v4983_v32  ;;  %v5010_v32 = vld [vmem:[%s5376_s0 + $0x8c] ss:$0 sps:$4 sm:$0x11]  }
 0x118   :  { %3497 = vmatprep.subr.bf16.mxu0 %v4992_v22  ;;  %3677 = vmatprep.subr.bf16.mxu1 %v4992_v22 }
 0x11b   :  { %3498 = vmatpush3.bf16.msra.mxu0 %v4992_v22  ;;  %3678 = vmatpush3.bf16.msra.mxu1 %v4992_v22  ;;  %v4278_v22 = vld [vmem:[%s5375_s1 + $0x48] sm:$0xff]  }
 0x11c   :  { %3499 = vmatprep.subr.bf16.mxu0 %v5001_v24  ;;  %3679 = vmatprep.subr.bf16.mxu1 %v5001_v24 }
 0x11f   :  { %3500 = vmatpush3.bf16.msra.mxu0 %v5001_v24  ;;  %3680 = vmatpush3.bf16.msra.mxu1 %v5001_v24  ;;  %v4279_v24 = vld [vmem:[%s5375_s1 + $0x50] sm:$0xff]  }
 0x120   :  { %3685 = vmatprep.subr.bf16.mxu0 %v4277_v15  ;;  %3865 = vmatprep.subr.bf16.mxu1 %v4277_v15 }
 0x122   :  { %3502 = vmatmul.mubr.bf16.vlgmr.msra.gmra.mrb[0].mxu0 %v4929_v17  ;;  %3682 = vmatmul.mubr.bf16.vlgmr.msra.gmra.mrb[0].mxu1 %v5010_v32 }
 0x123   :  { %3686 = vmatpush3.bf16.msra.mxu0 %v4277_v15  ;;  %3866 = vmatpush3.bf16.msra.mxu1 %v4277_v15  ;;  %v4280_v15 = vld [vmem:[%s5375_s1 + $0x58] sm:$0xff]  }
 0x124   :  { %3687 = vmatprep.subr.bf16.mxu0 %v4278_v22  ;;  %3867 = vmatprep.subr.bf16.mxu1 %v4278_v22 }
 0x125   :  { %3701 = vmatprep.mubr.bf16.mxu0 %v4499_v35  ;;  %3881 = vmatprep.mubr.bf16.mxu1 %v4589_v46 }
 0x127   :  { %3688 = vmatpush3.bf16.msra.mxu0 %v4278_v22  ;;  %3868 = vmatpush3.bf16.msra.mxu1 %v4278_v22  ;;  %v4281_v22 = vld [vmem:[%s5375_s1 + $0x60] sm:$0xff]  }
 0x128   :  { %3689 = vmatprep.subr.bf16.mxu0 %v4279_v24  ;;  %3869 = vmatprep.subr.bf16.mxu1 %v4279_v24 }
 0x12b   :  { %3690 = vmatpush3.bf16.msra.mxu0 %v4279_v24  ;;  %3870 = vmatpush3.bf16.msra.mxu1 %v4279_v24  ;;  %v4282_v24 = vld [vmem:[%s5375_s1 + $0x68] sm:$0xff]  }
 0x12c   :  { %3691 = vmatprep.subr.bf16.mxu0 %v4280_v15  ;;  %3871 = vmatprep.subr.bf16.mxu1 %v4280_v15 }
 0x12f   :  { %3692 = vmatpush3.bf16.msra.mxu0 %v4280_v15  ;;  %3872 = vmatpush3.bf16.msra.mxu1 %v4280_v15  ;;  %v4283_v15 = vld [vmem:[%s5375_s1 + $0x70] sm:$0xff]  }
 0x130   :  { %3693 = vmatprep.subr.bf16.mxu0 %v4281_v22  ;;  %3873 = vmatprep.subr.bf16.mxu1 %v4281_v22 }
 0x133   :  { %3694 = vmatpush3.bf16.msra.mxu0 %v4281_v22  ;;  %3874 = vmatpush3.bf16.msra.mxu1 %v4281_v22  ;;  %v4284_v22 = vld [vmem:[%s5375_s1 + $0x78] sm:$0xff]  }
 0x134   :  { %3695 = vmatprep.subr.bf16.mxu0 %v4282_v24  ;;  %3875 = vmatprep.subr.bf16.mxu1 %v4282_v24 }
 0x137   :  { %3696 = vmatpush3.bf16.msra.mxu0 %v4282_v24  ;;  %3876 = vmatpush3.bf16.msra.mxu1 %v4282_v24  ;;  %v4285_v24 = vld [vmem:[%s5375_s1] sm:$0xff]  }
 0x138   :  { %3697 = vmatprep.subr.bf16.mxu0 %v4283_v15  ;;  %3877 = vmatprep.subr.bf16.mxu1 %v4283_v15 }
 0x13b   :  { %3698 = vmatpush3.bf16.msra.mxu0 %v4283_v15  ;;  %3878 = vmatpush3.bf16.msra.mxu1 %v4283_v15  ;;  %v4286_v15 = vld [vmem:[%s5375_s1 + $0x8] sm:$0xff]  }
 0x13c   :  { %3699 = vmatprep.subr.bf16.mxu0 %v4284_v22  ;;  %3879 = vmatprep.subr.bf16.mxu1 %v4284_v22 }
 0x13f   :  { %3700 = vmatpush3.bf16.msra.mxu0 %v4284_v22  ;;  %3880 = vmatpush3.bf16.msra.mxu1 %v4284_v22  ;;  %v4287_v22 = vld [vmem:[%s5375_s1 + $0x10] sm:$0xff]  }
 0x140   :  { %3705 = vmatprep.subr.bf16.mxu0 %v4285_v24  ;;  %3885 = vmatprep.subr.bf16.mxu1 %v4285_v24 }
 0x142   :  { %3702 = vmatmul.mubr.bf16.vlgmr.msra.gmra.mrb[4].mxu0 %v4575_v44  ;;  %3882 = vmatmul.mubr.bf16.vlgmr.msra.gmra.mrb[4].mxu1 %v4661_v54 }
 0x143   :  { %3706 = vmatpush3.bf16.msra.mxu0 %v4285_v24  ;;  %3886 = vmatpush3.bf16.msra.mxu1 %v4285_v24  ;;  %v4288_v24 = vld [vmem:[%s5375_s1 + $0x18] sm:$0xff]  }
 0x144   :  { %3707 = vmatprep.subr.bf16.mxu0 %v4286_v15  ;;  %3887 = vmatprep.subr.bf16.mxu1 %v4286_v15 }
 0x145   :  { %3721 = vmatprep.mubr.bf16.mxu0 %v4494_v34  ;;  %3901 = vmatprep.mubr.bf16.mxu1 %v4499_v35  ;;  %v4289_v34 = vld [vmem:[%s5375_s1 + $0x20] sm:$0xff]   ;;  %v4271_v35 = vld [vmem:[%s5376_s0 + $0x98] ss:$0 sps:$4 sm:$0x11]  }
 0x147   :  { %3708 = vmatpush3.bf16.msra.mxu0 %v4286_v15  ;;  %3888 = vmatpush3.bf16.msra.mxu1 %v4286_v15 }
 0x148   :  { %3709 = vmatprep.subr.bf16.mxu0 %v4287_v22  ;;  %3889 = vmatprep.subr.bf16.mxu1 %v4287_v22 }
 0x14b   :  { %3710 = vmatpush3.bf16.msra.mxu0 %v4287_v22  ;;  %3890 = vmatpush3.bf16.msra.mxu1 %v4287_v22 }
 0x14c   :  { %3711 = vmatprep.subr.bf16.mxu0 %v4288_v24  ;;  %3891 = vmatprep.subr.bf16.mxu1 %v4288_v24 }
 0x14f   :  { %3712 = vmatpush3.bf16.msra.mxu0 %v4288_v24  ;;  %3892 = vmatpush3.bf16.msra.mxu1 %v4288_v24 }
 0x150   :  { %3713 = vmatprep.subr.bf16.mxu0 %v4289_v34  ;;  %3893 = vmatprep.subr.bf16.mxu1 %v4289_v34 }
 0x153   :  { %3714 = vmatpush3.bf16.msra.mxu0 %v4289_v34  ;;  %3894 = vmatpush3.bf16.msra.mxu1 %v4289_v34 }
 0x154   :  { %3715 = vmatprep.subr.bf16.mxu0 %v4373_v18  ;;  %3895 = vmatprep.subr.bf16.mxu1 %v4373_v18 }
 0x157   :  { %3716 = vmatpush3.bf16.msra.mxu0 %v4373_v18  ;;  %3896 = vmatpush3.bf16.msra.mxu1 %v4373_v18  ;;  %v4269_v18 = vld [vmem:[%s5376_s0 + $0x90] sm:$0xff]  }
 0x158   :  { %3717 = vmatprep.subr.bf16.mxu0 %v4380_v19  ;;  %3897 = vmatprep.subr.bf16.mxu1 %v4380_v19 }
 0x15b   :  { %3718 = vmatpush3.bf16.msra.mxu0 %v4380_v19  ;;  %3898 = vmatpush3.bf16.msra.mxu1 %v4380_v19  ;;  %v4270_v19 = vld [vmem:[%s5376_s0 + $0x9c] sm:$0xff]  }
 0x15c   :  { %3719 = vmatprep.subr.bf16.mxu0 %v4389_v20  ;;  %3899 = vmatprep.subr.bf16.mxu1 %v4389_v20 }
 0x15f   :  { %3720 = vmatpush3.bf16.msra.mxu0 %v4389_v20  ;;  %3900 = vmatpush3.bf16.msra.mxu1 %v4389_v20 }
 0x160   :  { %3725 = vmatprep.subr.bf16.mxu0 %v4396_v21  ;;  %3905 = vmatprep.subr.bf16.mxu1 %v4396_v21 }
 0x162   :  { %3722 = vmatmul.mubr.bf16.vlgmr.msra.gmra.mrb[4].mxu0 %v4570_v43  ;;  %3902 = vmatmul.mubr.bf16.vlgmr.msra.gmra.mrb[4].mxu1 %v4575_v44  ;;  %v5426_v43 = vld [vmem:[#allocation7_spill] sm:$0xff]  ;;  %v4274_v44 = vld [vmem:[%s5376_s0 + $0xb0] ss:$0 sps:$4 sm:$0x11]  }
 0x163   :  { %3726 = vmatpush3.bf16.msra.mxu0 %v4396_v21  ;;  %3906 = vmatpush3.bf16.msra.mxu1 %v4396_v21 }
 0x164   :  { %3727 = vmatprep.subr.bf16.mxu0 %v4410_v23  ;;  %3907 = vmatprep.subr.bf16.mxu1 %v4410_v23 }
 0x165   :  { %3741 = vmatprep.mubr.bf16.mxu0 %v4589_v46  ;;  %3921 = vmatprep.mubr.bf16.mxu1 %v4675_v56  ;;  %v4275_v46 = vld [vmem:[%s5376_s0 + $0xb4] sm:$0xff]  }
 0x167   :  { %3728 = vmatpush3.bf16.msra.mxu0 %v4410_v23  ;;  %3908 = vmatpush3.bf16.msra.mxu1 %v4410_v23 }
 0x168   :  { %3729 = vmatprep.subr.bf16.mxu0 %v4420_v25  ;;  %3909 = vmatprep.subr.bf16.mxu1 %v4420_v25 }
 0x16b   :  { %3730 = vmatpush3.bf16.msra.mxu0 %v4420_v25  ;;  %3910 = vmatpush3.bf16.msra.mxu1 %v4420_v25 }
 0x16c   :  { %3731 = vmatprep.subr.bf16.mxu0 %v4430_v26  ;;  %3911 = vmatprep.subr.bf16.mxu1 %v4430_v26 }
 0x16f   :  { %3732 = vmatpush3.bf16.msra.mxu0 %v4430_v26  ;;  %3912 = vmatpush3.bf16.msra.mxu1 %v4430_v26 }
 0x170   :  { %3733 = vmatprep.subr.bf16.mxu0 %v4439_v27  ;;  %3913 = vmatprep.subr.bf16.mxu1 %v4439_v27 }
 0x173   :  { %3734 = vmatpush3.bf16.msra.mxu0 %v4439_v27  ;;  %3914 = vmatpush3.bf16.msra.mxu1 %v4439_v27 }
 0x174   :  { %3735 = vmatprep.subr.bf16.mxu0 %v4448_v28  ;;  %3915 = vmatprep.subr.bf16.mxu1 %v4448_v28 }
 0x177   :  { %3736 = vmatpush3.bf16.msra.mxu0 %v4448_v28  ;;  %3916 = vmatpush3.bf16.msra.mxu1 %v4448_v28 }
 0x178   :  { %3737 = vmatprep.subr.bf16.mxu0 %v4457_v29  ;;  %3917 = vmatprep.subr.bf16.mxu1 %v4457_v29 }
 0x17b   :  { %3738 = vmatpush3.bf16.msra.mxu0 %v4457_v29  ;;  %3918 = vmatpush3.bf16.msra.mxu1 %v4457_v29 }
 0x17c   :  { %3739 = vmatprep.subr.bf16.mxu0 %v4468_v30  ;;  %3919 = vmatprep.subr.bf16.mxu1 %v4468_v30 }
 0x17f   :  { %3740 = vmatpush3.bf16.msra.mxu0 %v4468_v30  ;;  %3920 = vmatpush3.bf16.msra.mxu1 %v4468_v30 }
 0x180   :  { %3745 = vmatprep.subr.bf16.mxu0 %v4477_v31  ;;  %3925 = vmatprep.subr.bf16.mxu1 %v4477_v31 }
 0x182   :  { %3742 = vmatmul.mubr.bf16.vlgmr.msra.gmra.mrb[4].mxu0 %v4661_v54  ;;  %3922 = vmatmul.mubr.bf16.vlgmr.msra.gmra.mrb[4].mxu1 %v4747_v0  ;;  %v4276_v54 = vld [vmem:[%s5376_s0 + $0xbc] ss:$0 sps:$4 sm:$0x11]  }
 0x183   :  { %3746 = vmatpush3.bf16.msra.mxu0 %v4477_v31  ;;  %3926 = vmatpush3.bf16.msra.mxu1 %v4477_v31 }
 0x184   :  { %3747 = vmatprep.subr.bf16.mxu0 %v4489_v33  ;;  %3927 = vmatprep.subr.bf16.mxu1 %v4489_v33 }
 0x185   :  { %3761 = vmatprep.mubr.bf16.mxu0 %v4761_v2  ;;  %3941 = vmatprep.mubr.bf16.mxu1 %v4766_v3 }
 0x187   :  { %3748 = vmatpush3.bf16.msra.mxu0 %v4489_v33  ;;  %3928 = vmatpush3.bf16.msra.mxu1 %v4489_v33 }
 0x188   :  { %3749 = vmatprep.subr.bf16.mxu0 %v4509_v36  ;;  %3929 = vmatprep.subr.bf16.mxu1 %v4509_v36 }
 0x18b   :  { %3750 = vmatpush3.bf16.msra.mxu0 %v4509_v36  ;;  %3930 = vmatpush3.bf16.msra.mxu1 %v4509_v36  ;;  %v4272_v36 = vld [vmem:[%s5376_s0 + $0xa4] ss:$0 sps:$4 sm:$0x11]  }
 0x18c   :  { %3751 = vmatprep.subr.bf16.mxu0 %v4520_v37  ;;  %3931 = vmatprep.subr.bf16.mxu1 %v4520_v37 }
 0x18f   :  { %3752 = vmatpush3.bf16.msra.mxu0 %v4520_v37  ;;  %3932 = vmatpush3.bf16.msra.mxu1 %v4520_v37  ;;  %v4273_v37 = vld [vmem:[%s5376_s0 + $0xa8] sm:$0xff]  }
 0x190   :  { %3753 = vmatprep.subr.bf16.mxu0 %v4529_v38  ;;  %3933 = vmatprep.subr.bf16.mxu1 %v4529_v38 }
 0x193   :  { %3754 = vmatpush3.bf16.msra.mxu0 %v4529_v38  ;;  %3934 = vmatpush3.bf16.msra.mxu1 %v4529_v38  ;;  %v5421_v38 = vld [vmem:[#allocation2_spill] sm:$0xff] }
 0x194   :  { %3755 = vmatprep.subr.bf16.mxu0 %v4538_v39  ;;  %3935 = vmatprep.subr.bf16.mxu1 %v4538_v39 }
 0x197   :  { %3756 = vmatpush3.bf16.msra.mxu0 %v4538_v39  ;;  %3936 = vmatpush3.bf16.msra.mxu1 %v4538_v39  ;;  %v5422_v39 = vld [vmem:[#allocation3_spill] sm:$0xff] }
 0x198   :  { %3757 = vmatprep.subr.bf16.mxu0 %v4547_v40  ;;  %3937 = vmatprep.subr.bf16.mxu1 %v4547_v40 }
 0x19b   :  { %3758 = vmatpush3.bf16.msra.mxu0 %v4547_v40  ;;  %3938 = vmatpush3.bf16.msra.mxu1 %v4547_v40  ;;  %v5423_v40 = vld [vmem:[#allocation4_spill] sm:$0xff] }
 0x19c   :  { %3759 = vmatprep.subr.bf16.mxu0 %v4556_v41  ;;  %3939 = vmatprep.subr.bf16.mxu1 %v4556_v41 }
 0x19f   :  { %3760 = vmatpush3.bf16.msra.mxu0 %v4556_v41  ;;  %3940 = vmatpush3.bf16.msra.mxu1 %v4556_v41  ;;  %v5424_v41 = vld [vmem:[#allocation5_spill] sm:$0xff] }
 0x1a0   :  { %3765 = vmatprep.subr.bf16.mxu0 %v4565_v42  ;;  %3945 = vmatprep.subr.bf16.mxu1 %v4565_v42 }
 0x1a2   :  { %3762 = vmatmul.mubr.bf16.vlgmr.msra.gmra.mrb[4].mxu0 %v4838_v11  ;;  %3942 = vmatmul.mubr.bf16.vlgmr.msra.gmra.mrb[4].mxu1 %v4843_v12 }
 0x1a3   :  { %3766 = vmatpush3.bf16.msra.mxu0 %v4565_v42  ;;  %3946 = vmatpush3.bf16.msra.mxu1 %v4565_v42  ;;  %v5425_v42 = vld [vmem:[#allocation6_spill] sm:$0xff] }
 0x1a4   :  { %3767 = vmatprep.subr.bf16.mxu0 %v4584_v45  ;;  %3947 = vmatprep.subr.bf16.mxu1 %v4584_v45 }
 0x1a5   :  { %3781 = vmatprep.mubr.bf16.mxu0 %v4766_v3  ;;  %3961 = vmatprep.mubr.bf16.mxu1 %v4857_v14 }
 0x1a7   :  { %3768 = vmatpush3.bf16.msra.mxu0 %v4584_v45  ;;  %3948 = vmatpush3.bf16.msra.mxu1 %v4584_v45  ;;  %v5427_v45 = vld [vmem:[#allocation8_spill] sm:$0xff] }
 0x1a8   :  { %3769 = vmatprep.subr.bf16.mxu0 %v4600_v47  ;;  %3949 = vmatprep.subr.bf16.mxu1 %v4600_v47 }
 0x1ab   :  { %3770 = vmatpush3.bf16.msra.mxu0 %v4600_v47  ;;  %3950 = vmatpush3.bf16.msra.mxu1 %v4600_v47  ;;  %v5428_v47 = vld [vmem:[#allocation9_spill] sm:$0xff] }
 0x1ac   :  { %3771 = vmatprep.subr.bf16.mxu0 %v4611_v48  ;;  %3951 = vmatprep.subr.bf16.mxu1 %v4611_v48 }
 0x1af   :  { %3772 = vmatpush3.bf16.msra.mxu0 %v4611_v48  ;;  %3952 = vmatpush3.bf16.msra.mxu1 %v4611_v48  ;;  %v5429_v48 = vld [vmem:[#allocation10_spill] sm:$0xff] }
 0x1b0   :  { %3773 = vmatprep.subr.bf16.mxu0 %v4620_v49  ;;  %3953 = vmatprep.subr.bf16.mxu1 %v4620_v49 }
 0x1b3   :  { %3774 = vmatpush3.bf16.msra.mxu0 %v4620_v49  ;;  %3954 = vmatpush3.bf16.msra.mxu1 %v4620_v49  ;;  %v5430_v49 = vld [vmem:[#allocation11_spill] sm:$0xff] }
 0x1b4   :  { %3775 = vmatprep.subr.bf16.mxu0 %v4629_v50  ;;  %3955 = vmatprep.subr.bf16.mxu1 %v4629_v50 }
 0x1b7   :  { %3776 = vmatpush3.bf16.msra.mxu0 %v4629_v50  ;;  %3956 = vmatpush3.bf16.msra.mxu1 %v4629_v50  ;;  %v5431_v50 = vld [vmem:[#allocation12_spill] sm:$0xff] }
 0x1b8   :  { %3777 = vmatprep.subr.bf16.mxu0 %v4638_v51  ;;  %3957 = vmatprep.subr.bf16.mxu1 %v4638_v51 }
 0x1bb   :  { %3778 = vmatpush3.bf16.msra.mxu0 %v4638_v51  ;;  %3958 = vmatpush3.bf16.msra.mxu1 %v4638_v51  ;;  %v5432_v51 = vld [vmem:[#allocation13_spill] sm:$0xff] }
 0x1bc   :  { %3779 = vmatprep.subr.bf16.mxu0 %v4647_v52  ;;  %3959 = vmatprep.subr.bf16.mxu1 %v4647_v52 }
 0x1bf   :  { %3780 = vmatpush3.bf16.msra.mxu0 %v4647_v52  ;;  %3960 = vmatpush3.bf16.msra.mxu1 %v4647_v52  ;;  %v5433_v52 = vld [vmem:[#allocation14_spill] sm:$0xff] }
 0x1c0   :  { %3785 = vmatprep.subr.bf16.mxu0 %v4656_v53  ;;  %3965 = vmatprep.subr.bf16.mxu1 %v4656_v53 }
 0x1c2   :  { %3782 = vmatmul.mubr.bf16.vlgmr.msra.gmra.mrb[4].mxu0 %v4843_v12  ;;  %3962 = vmatmul.mubr.bf16.vlgmr.msra.gmra.mrb[4].mxu1 %v4929_v17 }
 0x1c3   :  { %3786 = vmatpush3.bf16.msra.mxu0 %v4656_v53  ;;  %3966 = vmatpush3.bf16.msra.mxu1 %v4656_v53  ;;  %v5434_v53 = vld [vmem:[#allocation15_spill] sm:$0xff] }
 0x1c4   :  { %3787 = vmatprep.subr.bf16.mxu0 %v4670_v55  ;;  %3967 = vmatprep.subr.bf16.mxu1 %v4670_v55 }
 0x1c5   :  { %3801 = vmatprep.mubr.bf16.mxu0 %v4857_v14  ;;  %3981 = vmatprep.mubr.bf16.mxu1 %v4943_v16 }
 0x1c7   :  { %3788 = vmatpush3.bf16.msra.mxu0 %v4670_v55  ;;  %3968 = vmatpush3.bf16.msra.mxu1 %v4670_v55 }
 0x1c8   :  { %3789 = vmatprep.subr.bf16.mxu0 %v4686_v57  ;;  %3969 = vmatprep.subr.bf16.mxu1 %v4686_v57 }
 0x1cb   :  { %3790 = vmatpush3.bf16.msra.mxu0 %v4686_v57  ;;  %3970 = vmatpush3.bf16.msra.mxu1 %v4686_v57 }
 0x1cc   :  { %3791 = vmatprep.subr.bf16.mxu0 %v4697_v58  ;;  %3971 = vmatprep.subr.bf16.mxu1 %v4697_v58 }
 0x1cf   :  { %3792 = vmatpush3.bf16.msra.mxu0 %v4697_v58  ;;  %3972 = vmatpush3.bf16.msra.mxu1 %v4697_v58 }
 0x1d0   :  { %3793 = vmatprep.subr.bf16.mxu0 %v4706_v59  ;;  %3973 = vmatprep.subr.bf16.mxu1 %v4706_v59 }
 0x1d3   :  { %3794 = vmatpush3.bf16.msra.mxu0 %v4706_v59  ;;  %3974 = vmatpush3.bf16.msra.mxu1 %v4706_v59 }
 0x1d4   :  { %3795 = vmatprep.subr.bf16.mxu0 %v4715_v60  ;;  %3975 = vmatprep.subr.bf16.mxu1 %v4715_v60 }
 0x1d7   :  { %3796 = vmatpush3.bf16.msra.mxu0 %v4715_v60  ;;  %3976 = vmatpush3.bf16.msra.mxu1 %v4715_v60  ;;  %v2953_v60 = vld [vmem:[%s5377_s2] ss:$0 sm:$0xff] }
 0x1d8   :  { %3797 = vmatprep.subr.bf16.mxu0 %v4724_v61  ;;  %3977 = vmatprep.subr.bf16.mxu1 %v4724_v61 }
 0x1db   :  { %3798 = vmatpush3.bf16.msra.mxu0 %v4724_v61  ;;  %3978 = vmatpush3.bf16.msra.mxu1 %v4724_v61 }
 0x1dc   :  { %3799 = vmatprep.subr.bf16.mxu0 %v4733_v62  ;;  %3979 = vmatprep.subr.bf16.mxu1 %v4733_v62 }
 0x1df   :  { %3800 = vmatpush3.bf16.msra.mxu0 %v4733_v62  ;;  %3980 = vmatpush3.bf16.msra.mxu1 %v4733_v62 }
 0x1e0   :  { %3805 = vmatprep.subr.bf16.mxu0 %v4742_v63  ;;  %3985 = vmatprep.subr.bf16.mxu1 %v4742_v63 }
 0x1e2   :  { %3802 = vmatmul.mubr.bf16.vlgmr.msra.gmra.mrb[4].mxu0 %v4929_v17  ;;  %3982 = vmatmul.mubr.bf16.vlgmr.msra.gmra.mrb[4].mxu1 %v5010_v32 }
 0x1e3   :  { %3806 = vmatpush3.bf16.msra.mxu0 %v4742_v63  ;;  %3986 = vmatpush3.bf16.msra.mxu1 %v4742_v63 }
 0x1e4   :  { %3807 = vmatprep.subr.bf16.mxu0 %v4756_v1  ;;  %3987 = vmatprep.subr.bf16.mxu1 %v4756_v1 }
 0x1e5   :  { %3821 = vmatprep.mubr.bf16.mxu0 %v4269_v18  ;;  %4001 = vmatprep.mubr.bf16.mxu1 %v4270_v19 }
 0x1e7   :  { %3808 = vmatpush3.bf16.msra.mxu0 %v4756_v1  ;;  %3988 = vmatpush3.bf16.msra.mxu1 %v4756_v1 }
 0x1e8   :  { %3809 = vmatprep.subr.bf16.mxu0 %v4777_v4  ;;  %3989 = vmatprep.subr.bf16.mxu1 %v4777_v4 }
 0x1eb   :  { %3810 = vmatpush3.bf16.msra.mxu0 %v4777_v4  ;;  %3990 = vmatpush3.bf16.msra.mxu1 %v4777_v4 }
 0x1ec   :  { %3811 = vmatprep.subr.bf16.mxu0 %v4788_v5  ;;  %3991 = vmatprep.subr.bf16.mxu1 %v4788_v5 }
 0x1ef   :  { %3812 = vmatpush3.bf16.msra.mxu0 %v4788_v5  ;;  %3992 = vmatpush3.bf16.msra.mxu1 %v4788_v5 }
 0x1f0   :  { %3813 = vmatprep.subr.bf16.mxu0 %v4797_v6  ;;  %3993 = vmatprep.subr.bf16.mxu1 %v4797_v6 }
 0x1f3   :  { %3814 = vmatpush3.bf16.msra.mxu0 %v4797_v6  ;;  %3994 = vmatpush3.bf16.msra.mxu1 %v4797_v6 }
 0x1f4   :  { %3815 = vmatprep.subr.bf16.mxu0 %v4806_v7  ;;  %3995 = vmatprep.subr.bf16.mxu1 %v4806_v7 }
 0x1f5   :  { %v5247_v20 = vpop.f32.mrb[0].mxu0  ;;  %v5249_v21 = vpop.f32.mrb[0].mxu1 }
 0x1f6   :  { %v1674_v23 = vmax.f32 %v5247_v20, %v5249_v21  ;;  %v5253_v25 = vpop.f32.mrb[1].mxu0  ;;  %v5255_v26 = vpop.f32.mrb[1].mxu1 }
 0x1f7   :  { %v1672_v27 = vmax.f32 %v5253_v25, %v5255_v26  ;;  %v3504_v28 = vpop.f32.mrb[2].mxu0  ;;  %v3684_v29 = vpop.f32.mrb[2].mxu1  ;;  %3816 = vmatpush3.bf16.msra.mxu0 %v4806_v7  ;;  %3996 = vmatpush3.bf16.msra.mxu1 %v4806_v7 }
 0x1f8   :  { %v5261_v30 = vpop.f32.mrb[3].mxu0  ;;  %v5263_v31 = vpop.f32.mrb[3].mxu1  ;;  %3817 = vmatprep.subr.bf16.mxu0 %v4815_v8  ;;  %3997 = vmatprep.subr.bf16.mxu1 %v4815_v8 }
 0x1f9   :  { %v1673_v33 = vmax.f32 %v5261_v30, %v5263_v31 }
 0x1fb   :  { %3818 = vmatpush3.bf16.msra.mxu0 %v4815_v8  ;;  %3998 = vmatpush3.bf16.msra.mxu1 %v4815_v8 }
 0x1fc   :  { %3819 = vmatprep.subr.bf16.mxu0 %v4824_v9  ;;  %3999 = vmatprep.subr.bf16.mxu1 %v4824_v9 }
 0x1ff   :  { %3820 = vmatpush3.bf16.msra.mxu0 %v4824_v9  ;;  %4000 = vmatpush3.bf16.msra.mxu1 %v4824_v9 }
 0x200   :  { %3825 = vmatprep.subr.bf16.mxu0 %v4833_v10  ;;  %4005 = vmatprep.subr.bf16.mxu1 %v4833_v10 }
 0x202   :  { %3822 = vmatmul.mubr.bf16.vlgmr.msra.gmra.mrb[4].mxu0 %v4271_v35  ;;  %4002 = vmatmul.mubr.bf16.vlgmr.msra.gmra.mrb[4].mxu1 %v4272_v36 }
 0x203   :  { %3826 = vmatpush3.bf16.msra.mxu0 %v4833_v10  ;;  %4006 = vmatpush3.bf16.msra.mxu1 %v4833_v10 }
 0x204   :  { %3827 = vmatprep.subr.bf16.mxu0 %v4852_v13  ;;  %4007 = vmatprep.subr.bf16.mxu1 %v4852_v13 }
 0x205   :  { %3841 = vmatprep.mubr.bf16.mxu0 %v4270_v19  ;;  %4021 = vmatprep.mubr.bf16.mxu1 %v4273_v37 }
 0x207   :  { %3828 = vmatpush3.bf16.msra.mxu0 %v4852_v13  ;;  %4008 = vmatpush3.bf16.msra.mxu1 %v4852_v13 }
 0x208   :  { %3829 = vmatprep.subr.bf16.mxu0 %v5421_v38  ;;  %4009 = vmatprep.subr.bf16.mxu1 %v5421_v38 }
 0x20b   :  { %3830 = vmatpush3.bf16.msra.mxu0 %v5421_v38  ;;  %4010 = vmatpush3.bf16.msra.mxu1 %v5421_v38 }
 0x20c   :  { %3831 = vmatprep.subr.bf16.mxu0 %v5422_v39  ;;  %4011 = vmatprep.subr.bf16.mxu1 %v5422_v39 }
 0x20f   :  { %3832 = vmatpush3.bf16.msra.mxu0 %v5422_v39  ;;  %4012 = vmatpush3.bf16.msra.mxu1 %v5422_v39 }
 0x210   :  { %3833 = vmatprep.subr.bf16.mxu0 %v5423_v40  ;;  %4013 = vmatprep.subr.bf16.mxu1 %v5423_v40 }
 0x213   :  { %3834 = vmatpush3.bf16.msra.mxu0 %v5423_v40  ;;  %4014 = vmatpush3.bf16.msra.mxu1 %v5423_v40 }
 0x214   :  { %3835 = vmatprep.subr.bf16.mxu0 %v5424_v41  ;;  %4015 = vmatprep.subr.bf16.mxu1 %v5424_v41 }
 0x217   :  { %3836 = vmatpush3.bf16.msra.mxu0 %v5424_v41  ;;  %4016 = vmatpush3.bf16.msra.mxu1 %v5424_v41 }
 0x218   :  { %3837 = vmatprep.subr.bf16.mxu0 %v5425_v42  ;;  %4017 = vmatprep.subr.bf16.mxu1 %v5425_v42 }
 0x21b   :  { %3838 = vmatpush3.bf16.msra.mxu0 %v5425_v42  ;;  %4018 = vmatpush3.bf16.msra.mxu1 %v5425_v42 }
 0x21c   :  { %3839 = vmatprep.subr.bf16.mxu0 %v5426_v43  ;;  %4019 = vmatprep.subr.bf16.mxu1 %v5426_v43 }
 0x21f   :  { %3840 = vmatpush3.bf16.msra.mxu0 %v5426_v43  ;;  %4020 = vmatpush3.bf16.msra.mxu1 %v5426_v43 }
 0x220   :  { %3845 = vmatprep.subr.bf16.mxu0 %v5427_v45  ;;  %4025 = vmatprep.subr.bf16.mxu1 %v5427_v45 }
 0x222   :  { %3842 = vmatmul.mubr.bf16.vlgmr.msra.gmra.mrb[4].mxu0 %v4272_v36  ;;  %4022 = vmatmul.mubr.bf16.vlgmr.msra.gmra.mrb[4].mxu1 %v4274_v44 }
 0x223   :  { %3846 = vmatpush3.bf16.msra.mxu0 %v5427_v45  ;;  %4026 = vmatpush3.bf16.msra.mxu1 %v5427_v45 }
 0x224   :  { %3847 = vmatprep.subr.bf16.mxu0 %v5428_v47  ;;  %4027 = vmatprep.subr.bf16.mxu1 %v5428_v47 }
 0x225   :  { %3861 = vmatprep.mubr.bf16.mxu0 %v4273_v37  ;;  %4041 = vmatprep.mubr.bf16.mxu1 %v4275_v46 }
 0x227   :  { %3848 = vmatpush3.bf16.msra.mxu0 %v5428_v47  ;;  %4028 = vmatpush3.bf16.msra.mxu1 %v5428_v47 }
 0x228   :  { %3849 = vmatprep.subr.bf16.mxu0 %v5429_v48  ;;  %4029 = vmatprep.subr.bf16.mxu1 %v5429_v48 }
 0x22b   :  { %3850 = vmatpush3.bf16.msra.mxu0 %v5429_v48  ;;  %4030 = vmatpush3.bf16.msra.mxu1 %v5429_v48 }
 0x22c   :  { %3851 = vmatprep.subr.bf16.mxu0 %v5430_v49  ;;  %4031 = vmatprep.subr.bf16.mxu1 %v5430_v49 }
 0x22f   :  { %3852 = vmatpush3.bf16.msra.mxu0 %v5430_v49  ;;  %4032 = vmatpush3.bf16.msra.mxu1 %v5430_v49 }
 0x230   :  { %3853 = vmatprep.subr.bf16.mxu0 %v5431_v50  ;;  %4033 = vmatprep.subr.bf16.mxu1 %v5431_v50 }
 0x233   :  { %3854 = vmatpush3.bf16.msra.mxu0 %v5431_v50  ;;  %4034 = vmatpush3.bf16.msra.mxu1 %v5431_v50 }
 0x234   :  { %3855 = vmatprep.subr.bf16.mxu0 %v5432_v51  ;;  %4035 = vmatprep.subr.bf16.mxu1 %v5432_v51 }
 0x237   :  { %3856 = vmatpush3.bf16.msra.mxu0 %v5432_v51  ;;  %4036 = vmatpush3.bf16.msra.mxu1 %v5432_v51 }
 0x238   :  { %3857 = vmatprep.subr.bf16.mxu0 %v5433_v52  ;;  %4037 = vmatprep.subr.bf16.mxu1 %v5433_v52 }
 0x23b   :  { %3858 = vmatpush3.bf16.msra.mxu0 %v5433_v52  ;;  %4038 = vmatpush3.bf16.msra.mxu1 %v5433_v52 }
 0x23c   :  { %3859 = vmatprep.subr.bf16.mxu0 %v5434_v53  ;;  %4039 = vmatprep.subr.bf16.mxu1 %v5434_v53 }
 0x23f   :  { %3860 = vmatpush3.bf16.msra.mxu0 %v5434_v53  ;;  %4040 = vmatpush3.bf16.msra.mxu1 %v5434_v53 }
 0x242   :  { %3862 = vmatmul.mubr.bf16.vlgmr.msra.gmra.mrb[4].mxu0 %v4274_v44  ;;  %4042 = vmatmul.mubr.bf16.vlgmr.msra.gmra.mrb[4].mxu1 %v4276_v54 }
 0x315   :  { %v3863_v55 = vpop.f32.mrb[4].mxu0  ;;  %v4043_v56 = vpop.f32.mrb[4].mxu1 }
 0x316   :  { %v2172_v57 = vmax.f32 %v1674_v23, %v3863_v55  ;;  %v2153_v58 = vpop.f32.mrb[5].mxu0  ;;  %v2623_v59 = vpop.f32.mrb[5].mxu1 }
 0x317   :  { %v2170_v61 = vmax.f32 %v1672_v27, %v2153_v58  ;;  %v3864_v62 = vpop.f32.mrb[6].mxu0  ;;  %v4044_v63 = vpop.f32.mrb[6].mxu1 }
 0x318   :  { %v2642_v0 = vmax.f32 %v2172_v57, %v4043_v56  ;;  %v2156_v1 = vpop.f32.mrb[7].mxu0  ;;  %v2626_v2 = vpop.f32.mrb[7].mxu1 }
 0x319   :  { %v2640_v3 = vmax.f32 %v2170_v61, %v2623_v59  ;;  %v2171_v4 = vmax.f32 %v1673_v33, %v2156_v1 }
 0x31a   :  { %v2652_v5 = vadd.f32 %v2953_v60, %v2642_v0 }
 0x31b   :  { %v2650_v6 = vadd.f32 %v2953_v60, %v2640_v3  ;;  %v2641_v7 = vmax.f32 %v2171_v4, %v2626_v2 }
 0x31c   :  { %v2655_v8 = vmax.f32 %v2652_v5, 0.0 }
 0x31d   :  { %v2651_v9 = vadd.f32 %v2953_v60, %v2641_v7  ;;  %v2653_v11 = vmax.f32 %v2650_v6, 0.0 }
 0x31e   :  { %v2959_v10 = vpack.c.bf16 %v2655_v8, %v2655_v8 }
 0x31f   :  { %v2654_v12 = vmax.f32 %v2651_v9, 0.0 }
 0x320   :  { %2671 = vst [vmem:[%s5378_s3 + $0x8] sm:$0x1] %v2959_v10 }
 0x321   :  { %v2963_v13 = vpack.c.bf16 %v2654_v12, %v2653_v11 }
 0x323   :  { %2964 = vst [vmem:[%s5378_s3] sm:$0xff] %v2963_v13  }

// kernel: net_forward.5
= control target key start
LH: loop header
LB: loop body
LE: loop exit
PB: predicated region body
PF: predicated region fallthrough
CT: control target
= control target key end

     0   :  { %v8997_v0 = vmov 0.0   ;;  %vm8998_vm0 = vmmov 0   ;;  %s11126_s1 = inlined_call_operand.vmem [shape: bf16[9,128,128], index: 1, kind: input, shape index: {}]   ;;  %s11127_s0 = inlined_call_operand.vmem [shape: bf16[1,16,98,128], index: 0, kind: input, shape index: {}]   ;;  %s11128_s2 = inlined_call_operand.vmem [shape: f32[1,128], index: 2, kind: input, shape index: {}]   ;;  %s11129_s3 = inlined_call_operand.vmem [shape: bf16[1,98,128], index: 3, kind: output, shape index: {}]  }
   0x1   :  { %6245 = vmatprep.subr.bf16.mxu0 %v8997_v0  ;;  %6641 = vmatprep.subr.bf16.mxu1 %v8997_v0  ;;  %v8727_v1 = vld [vmem:[%s11126_s1 + $0x40] sm:$0xff]   ;;  %v8728_v2 = vld [vmem:[%s11126_s1 + $0x48] sm:$0xff]   ;;  %v8729_v3 = vld [vmem:[%s11126_s1 + $0x50] sm:$0xff]  }
   0x2   :  { %6261 = vmatprep.mubr.msk.bf16.mxu0 %vm8998_vm0, %v8997_v0  ;;  %6657 = vmatprep.mubr.msk.bf16.mxu1 %vm8998_vm0, %v8997_v0  ;;  %v8730_v4 = vld [vmem:[%s11126_s1 + $0x58] sm:$0xff]   ;;  %v8731_v5 = vld [vmem:[%s11126_s1 + $0x60] sm:$0xff]   ;;  %v8732_v6 = vld [vmem:[%s11126_s1 + $0x68] sm:$0xff]  }
   0x3   :  { %6246 = vmatpush3.bf16.msra.mxu0 %v8727_v1  ;;  %6642 = vmatpush3.bf16.msra.mxu1 %v8727_v1  ;;  %v8733_v7 = vld [vmem:[%s11126_s1 + $0x70] sm:$0xff]   ;;  %v8734_v8 = vld [vmem:[%s11126_s1 + $0x78] sm:$0xff]   ;;  %v9071_v10 = vld [vmem:[%s11127_s0 + $0x68] sm:$0xff]  }
   0x4   :  { %6247 = vmatprep.subr.bf16.mxu0 %v8997_v0  ;;  %6643 = vmatprep.subr.bf16.mxu1 %v8997_v0  ;;  %v9066_v9 = vld [vmem:[%s11127_s0 + $0x34] sm:$0xff]   ;;  %v8737_v11 = vld [vmem:[%s11126_s1] sm:$0xff]   ;;  %v8739_v12 = vld [vmem:[%s11126_s1 + $0x8] sm:$0xff]  }
   0x5   :  { %v9091_v13 = vld [vmem:[%s11127_s0 + $0x3c] sm:$0xff]   ;;  %v9097_v14 = vld [vmem:[%s11127_s0 + $0x70] sm:$0xff]   ;;  %v9116_v17 = vld [vmem:[%s11127_s0 + $0x44] sm:$0xff]  }
   0x6   :  { %v8741_v15 = vld [vmem:[%s11126_s1 + $0x10] sm:$0xff]   ;;  %v8744_v16 = vld [vmem:[%s11126_s1 + $0x18] sm:$0xff]   ;;  %v8747_v19 = vld [vmem:[%s11126_s1 + $0x20] sm:$0xff]  }
   0x7   :  { %6248 = vmatpush3.bf16.msra.mxu0 %v8728_v2  ;;  %6644 = vmatpush3.bf16.msra.mxu1 %v8728_v2  ;;  %v9123_v18 = vld [vmem:[%s11127_s0 + $0x78] sm:$0xff]   ;;  %v8750_v20 = vld [vmem:[%s11126_s1 + $0x28] sm:$0xff]   ;;  %v9149_v22 = vld [vmem:[%s11127_s0 + $0x80] sm:$0xff]  }
   0x8   :  { %6249 = vmatprep.subr.bf16.mxu0 %v8997_v0  ;;  %6645 = vmatprep.subr.bf16.mxu1 %v8997_v0  ;;  %v9142_v21 = vld [vmem:[%s11127_s0 + $0x4c] sm:$0xff]   ;;  %v8756_v24 = vld [vmem:[%s11126_s1 + $0x38] sm:$0xff]   ;;  %v9204_v29 = vld [vmem:[%s11127_s0 + $0x64] ss:$0 sps:$4 sm:$0x11]  }
   0x9   :  { %v8753_v23 = vld [vmem:[%s11126_s1 + $0x30] sm:$0xff]   ;;  %v9173_v26 = vld [vmem:[%s11127_s0 + $0x88] sm:$0xff]   ;;  %v9188_v27 = vld [vmem:[%s11127_s0 + $0x5c] sm:$0xff]  }
   0xa   :  { %v9168_v25 = vld [vmem:[%s11127_s0 + $0x54] sm:$0xff]   ;;  %v8757_v31 = vld [vmem:[%s11127_s0] sm:$0xff]   ;;  %v8760_v33 = vld [vmem:[%s11126_s1 + $0x88] sm:$0xff]  }
   0xb   :  { %6250 = vmatpush3.bf16.msra.mxu0 %v8729_v3  ;;  %6646 = vmatpush3.bf16.msra.mxu1 %v8729_v3  ;;  %v9193_v28 = vld [vmem:[%s11127_s0 + $0x90] sm:$0xff]   ;;  %v9209_v30 = vld [vmem:[%s11127_s0 + $0x98] ss:$0 sps:$4 sm:$0x11]   ;;  %v8758_v32 = vld [vmem:[%s11126_s1 + $0x80] sm:$0xff]  }
   0xc   :  { %6251 = vmatprep.subr.bf16.mxu0 %v8997_v0  ;;  %6647 = vmatprep.subr.bf16.mxu1 %v8997_v0  ;;  %v8759_v34 = vld [vmem:[%s11127_s0 + $0x8] sm:$0xff]   ;;  %v8761_v35 = vld [vmem:[%s11126_s1 + $0x90] sm:$0xff]   ;;  %v8763_v36 = vld [vmem:[%s11126_s1 + $0x98] sm:$0xff]  }
   0xd   :  { %v8762_v37 = vld [vmem:[%s11127_s0 + $0x10] sm:$0xff]   ;;  %v8765_v38 = vld [vmem:[%s11126_s1 + $0xa0] sm:$0xff]   ;;  %v8767_v39 = vld [vmem:[%s11126_s1 + $0xa8] sm:$0xff]  }
   0xe   :  { %v8764_v40 = vld [vmem:[%s11127_s0 + $0x18] sm:$0xff]   ;;  %v8769_v41 = vld [vmem:[%s11126_s1 + $0xb0] sm:$0xff]   ;;  %v8766_v43 = vld [vmem:[%s11127_s0 + $0x20] sm:$0xff]  }
   0xf   :  { %6252 = vmatpush3.bf16.msra.mxu0 %v8730_v4  ;;  %6648 = vmatpush3.bf16.msra.mxu1 %v8730_v4  ;;  %v8771_v42 = vld [vmem:[%s11126_s1 + $0xb8] sm:$0xff]   ;;  %v8768_v44 = vld [vmem:[%s11127_s0 + $0x28] sm:$0xff]   ;;  %v8770_v45 = vld [vmem:[%s11127_s0 + $0x30] ss:$0 sps:$4 sm:$0x11]  }
  0x10   :  { %6253 = vmatprep.subr.bf16.mxu0 %v8997_v0  ;;  %6649 = vmatprep.subr.bf16.mxu1 %v8997_v0  ;;  %v8772_v46 = vld [vmem:[%s11127_s0 + $0x9c] sm:$0xff]   ;;  %v8774_v48 = vld [vmem:[%s11126_s1 + $0xc8] sm:$0xff]   ;;  %v8776_v50 = vld [vmem:[%s11126_s1 + $0xd0] sm:$0xff]  }
  0x11   :  { %v8773_v47 = vld [vmem:[%s11126_s1 + $0xc0] sm:$0xff]   ;;  %v8778_v51 = vld [vmem:[%s11126_s1 + $0xd8] sm:$0xff]   ;;  %v8777_v52 = vld [vmem:[%s11127_s0 + $0xac] sm:$0xff]  }
  0x12   :  { %v8775_v49 = vld [vmem:[%s11127_s0 + $0xa4] sm:$0xff]   ;;  %v8779_v55 = vld [vmem:[%s11127_s0 + $0xb4] sm:$0xff]   ;;  %v8781_v58 = vld [vmem:[%s11127_s0 + $0xbc] sm:$0xff]  }
  0x13   :  { %6254 = vmatpush3.bf16.msra.mxu0 %v8731_v5  ;;  %6650 = vmatpush3.bf16.msra.mxu1 %v8731_v5  ;;  %v8780_v53 = vld [vmem:[%s11126_s1 + $0xe0] sm:$0xff]   ;;  %v8782_v54 = vld [vmem:[%s11126_s1 + $0xe8] sm:$0xff]   ;;  %v8784_v56 = vld [vmem:[%s11126_s1 + $0xf0] sm:$0xff]  }
  0x14   :  { %6255 = vmatprep.subr.bf16.mxu0 %v8997_v0  ;;  %6651 = vmatprep.subr.bf16.mxu1 %v8997_v0  ;;  %v8786_v57 = vld [vmem:[%s11126_s1 + $0xf8] sm:$0xff]   ;;  %v8783_v59 = vld [vmem:[%s11127_s0 + $0xc4] sm:$0xff]   ;;  %v8785_v60 = vld [vmem:[%s11127_s0 + $0xcc] ss:$0 sps:$4 sm:$0x11]  }
  0x15   :  { %v8787_v61 = vld [vmem:[%s11127_s0 + $0xd0] sm:$0xff]   ;;  %v9415_v62 = vld [vmem:[%s11127_s0 + $0x104] sm:$0xff]   ;;  %v8790_v2 = vld [vmem:[%s11127_s0 + $0xd8] sm:$0xff]  }
  0x16   :  { %v8789_v63 = vld [vmem:[%s11126_s1 + $0x100] sm:$0xff]   ;;  %v8791_v1 = vld [vmem:[%s11126_s1 + $0x108] sm:$0xff]   ;;  %v8793_v4 = vld [vmem:[%s11126_s1 + $0x110] sm:$0xff]  }
  0x17   :  { %6256 = vmatpush3.bf16.msra.mxu0 %v8732_v6  ;;  %6652 = vmatpush3.bf16.msra.mxu1 %v8732_v6  ;;  %v9436_v3 = vld [vmem:[%s11127_s0 + $0x10c] sm:$0xff]   ;;  %v8796_v5 = vld [vmem:[%s11126_s1 + $0x118] sm:$0xff]   ;;  %v8794_v6 = vld [vmem:[%s11127_s0 + $0xe0] sm:$0xff]  }
  0x18   :  { %6257 = vmatprep.subr.bf16.mxu0 %v8997_v0  ;;  %6653 = vmatprep.subr.bf16.mxu1 %v8997_v0 }
  0x1b   :  { %6258 = vmatpush3.bf16.msra.mxu0 %v8733_v7  ;;  %6654 = vmatpush3.bf16.msra.mxu1 %v8733_v7  ;;  %v9459_v7 = vld [vmem:[%s11127_s0 + $0x114] sm:$0xff]  }
  0x1c   :  { %6259 = vmatprep.subr.bf16.mxu0 %v8997_v0  ;;  %6655 = vmatprep.subr.bf16.mxu1 %v8997_v0 }
  0x1f   :  { %6260 = vmatpush3.bf16.msra.mxu0 %v8734_v8  ;;  %6656 = vmatpush3.bf16.msra.mxu1 %v8734_v8  ;;  %v8799_v8 = vld [vmem:[%s11126_s1 + $0x120] sm:$0xff]  }
  0x20   :  { %6289 = vmatprep.subr.bf16.mxu0 %v8997_v0  ;;  %6685 = vmatprep.subr.bf16.mxu1 %v8997_v0 }
  0x22   :  { %6262 = vmatmul.mubr.bf16.vlgmr.msra.gmra.mrb[0].mxu0 %v9066_v9  ;;  %6658 = vmatmul.mubr.bf16.vlgmr.msra.gmra.mrb[0].mxu1 %v9071_v10 }
  0x23   :  { %6290 = vmatpush3.bf16.msra.mxu0 %v8737_v11  ;;  %6686 = vmatpush3.bf16.msra.mxu1 %v8737_v11  ;;  %v9484_v11 = vld [vmem:[%s11127_s0 + $0x11c] sm:$0xff]  }
  0x24   :  { %6265 = vmatprep.mubr.msk.bf16.mxu0 %vm8998_vm0, %v8997_v0  ;;  %6291 = vmatprep.subr.bf16.mxu0 %v8997_v0 }
  0x25   :  { %6661 = vmatprep.mubr.msk.bf16.mxu1 %vm8998_vm0, %v8997_v0  ;;  %6687 = vmatprep.subr.bf16.mxu1 %v8997_v0 }
  0x27   :  { %6292 = vmatpush3.bf16.msra.mxu0 %v8739_v12  ;;  %6688 = vmatpush3.bf16.msra.mxu1 %v8739_v12  ;;  %v8805_v12 = vld [vmem:[%s11126_s1 + $0x130] sm:$0xff]  }
  0x28   :  { %6293 = vmatprep.subr.bf16.mxu0 %v8997_v0  ;;  %6689 = vmatprep.subr.bf16.mxu1 %v8997_v0 }
  0x2a   :  { %6266 = vmatmul.mubr.bf16.gmra.mrb[4].mxu0 %v9091_v13  ;;  %6662 = vmatmul.mubr.bf16.gmra.mrb[4].mxu1 %v9097_v14 }
  0x2b   :  { %6269 = vmatprep.mubr.msk.bf16.mxu0 %vm8998_vm0, %v8997_v0  ;;  %6294 = vmatpush3.bf16.msra.mxu0 %v8741_v15 }
  0x2c   :  { %6665 = vmatprep.mubr.msk.bf16.mxu1 %vm8998_vm0, %v8997_v0  ;;  %6690 = vmatpush3.bf16.msra.mxu1 %v8741_v15  ;;  %v9510_v15 = vld [vmem:[%s11127_s0 + $0x124] sm:$0xff]  }
  0x2d   :  { %6295 = vmatprep.subr.bf16.mxu0 %v8997_v0  ;;  %6691 = vmatprep.subr.bf16.mxu1 %v8997_v0 }
  0x2f   :  { %6296 = vmatpush3.bf16.msra.mxu0 %v8744_v16 }
  0x30   :  { %6692 = vmatpush3.bf16.msra.mxu1 %v8744_v16  ;;  %6297 = vmatprep.subr.bf16.mxu0 %v8997_v0  ;;  %v9523_v16 = vld [vmem:[%s11127_s0 + $0xf8] sm:$0xff]  }
  0x31   :  { %6693 = vmatprep.subr.bf16.mxu1 %v8997_v0 }
  0x32   :  { %6270 = vmatmul.mubr.bf16.gmra.mrb[8].mxu0 %v9116_v17  ;;  %6666 = vmatmul.mubr.bf16.gmra.mrb[8].mxu1 %v9123_v18 }
  0x33   :  { %6273 = vmatprep.mubr.msk.bf16.mxu0 %vm8998_vm0, %v8997_v0  ;;  %6669 = vmatprep.mubr.msk.bf16.mxu1 %vm8998_vm0, %v8997_v0 }
  0x34   :  { %6298 = vmatpush3.bf16.msra.mxu0 %v8747_v19  ;;  %6694 = vmatpush3.bf16.msra.mxu1 %v8747_v19  ;;  %v9544_v19 = vld [vmem:[%s11127_s0 + $0x134] ss:$0 sps:$4 sm:$0x11]  }
  0x35   :  { %6299 = vmatprep.subr.bf16.mxu0 %v8997_v0  ;;  %6695 = vmatprep.subr.bf16.mxu1 %v8997_v0 }
  0x38   :  { %6300 = vmatpush3.bf16.msra.mxu0 %v8750_v20  ;;  %6696 = vmatpush3.bf16.msra.mxu1 %v8750_v20  ;;  %v9555_v20 = vld [vmem:[%s11127_s0 + $0x138] sm:$0xff]  }
  0x39   :  { %6301 = vmatprep.subr.bf16.mxu0 %v8997_v0  ;;  %6697 = vmatprep.subr.bf16.mxu1 %v8997_v0 }
  0x3a   :  { %6274 = vmatmul.mubr.bf16.gmra.mrb[12].mxu0 %v9142_v21  ;;  %6670 = vmatmul.mubr.bf16.gmra.mrb[12].mxu1 %v9149_v22 }
  0x3b   :  { %6277 = vmatprep.mubr.msk.bf16.mxu0 %vm8998_vm0, %v8997_v0  ;;  %6673 = vmatprep.mubr.msk.bf16.mxu1 %vm8998_vm0, %v8997_v0 }
  0x3c   :  { %6302 = vmatpush3.bf16.msra.mxu0 %v8753_v23  ;;  %6698 = vmatpush3.bf16.msra.mxu1 %v8753_v23  ;;  %v9574_v23 = vld [vmem:[%s11127_s0 + $0x140] sm:$0xff]  }
  0x3d   :  { %6303 = vmatprep.subr.bf16.mxu0 %v8997_v0  ;;  %6699 = vmatprep.subr.bf16.mxu1 %v8997_v0 }
  0x40   :  { %6304 = vmatpush3.bf16.msra.mxu0 %v8756_v24  ;;  %6700 = vmatpush3.bf16.msra.mxu1 %v8756_v24  ;;  %v8813_v24 = vld [vmem:[%s11126_s1 + $0x150] sm:$0xff]  }
  0x41   :  { %6333 = vmatprep.subr.bf16.mxu0 %v8997_v0  ;;  %6729 = vmatprep.subr.bf16.mxu1 %v8997_v0 }
  0x42   :  { %6278 = vmatmul.mubr.bf16.gmra.mrb[16].mxu0 %v9168_v25  ;;  %6674 = vmatmul.mubr.bf16.gmra.mrb[16].mxu1 %v9173_v26 }
  0x43   :  { %6281 = vmatprep.mubr.msk.bf16.mxu0 %vm8998_vm0, %v8997_v0  ;;  %6677 = vmatprep.mubr.msk.bf16.mxu1 %vm8998_vm0, %v8997_v0 }
  0x4a   :  { %6282 = vmatmul.mubr.bf16.gmra.mrb[20].mxu0 %v9188_v27  ;;  %6678 = vmatmul.mubr.bf16.gmra.mrb[20].mxu1 %v9193_v28 }
  0x4b   :  { %6285 = vmatprep.mubr.msk.bf16.mxu0 %vm8998_vm0, %v8997_v0  ;;  %6681 = vmatprep.mubr.msk.bf16.mxu1 %vm8998_vm0, %v8997_v0 }
  0x52   :  { %6286 = vmatmul.mubr.bf16.gmra.mrb[24].mxu0 %v9204_v29  ;;  %6682 = vmatmul.mubr.bf16.gmra.mrb[24].mxu1 %v9209_v30 }
  0x53   :  { %6305 = vmatprep.mubr.msk.bf16.mxu0 %vm8998_vm0, %v8997_v0  ;;  %6701 = vmatprep.mubr.msk.bf16.mxu1 %vm8998_vm0, %v8997_v0 }
  0x5a   :  { %6306 = vmatmul.mubr.bf16.vlgmr.msra.gmra.mrb[0].mxu0 %v8757_v31  ;;  %6702 = vmatmul.mubr.bf16.vlgmr.msra.gmra.mrb[0].mxu1 %v9066_v9  ;;  %v8802_v9 = vld [vmem:[%s11126_s1 + $0x128] sm:$0xff]   ;;  %v8823_v31 = vld [vmem:[%s11126_s1 + $0x178] sm:$0xff]  }
  0x5b   :  { %6334 = vmatpush3.bf16.msra.mxu0 %v8758_v32  ;;  %6730 = vmatpush3.bf16.msra.mxu1 %v8758_v32  ;;  %v9637_v32 = vld [vmem:[%s11127_s0 + $0x158] sm:$0xff]  }
  0x5c   :  { %6309 = vmatprep.mubr.msk.bf16.mxu0 %vm8998_vm0, %v8997_v0  ;;  %6335 = vmatprep.subr.bf16.mxu0 %v8997_v0 }
  0x5d   :  { %6705 = vmatprep.mubr.msk.bf16.mxu1 %vm8998_vm0, %v8997_v0  ;;  %6731 = vmatprep.subr.bf16.mxu1 %v8997_v0 }
  0x5f   :  { %6336 = vmatpush3.bf16.msra.mxu0 %v8760_v33  ;;  %6732 = vmatpush3.bf16.msra.mxu1 %v8760_v33  ;;  %v9650_v33 = vld [vmem:[%s11127_s0 + $0x160] sm:$0xff]  }
  0x60   :  { %6337 = vmatprep.subr.bf16.mxu0 %v8997_v0  ;;  %6733 = vmatprep.subr.bf16.mxu1 %v8997_v0 }
  0x62   :  { %6310 = vmatmul.mubr.bf16.gmra.mrb[4].mxu0 %v8759_v34  ;;  %6706 = vmatmul.mubr.bf16.gmra.mrb[4].mxu1 %v9091_v13  ;;  %v8808_v13 = vld [vmem:[%s11126_s1 + $0x138] sm:$0xff]   ;;  %v9661_v34 = vld [vmem:[%s11127_s0 + $0x168] ss:$0 sps:$4 sm:$0x11]  }
  0x63   :  { %6313 = vmatprep.mubr.msk.bf16.mxu0 %vm8998_vm0, %v8997_v0  ;;  %6338 = vmatpush3.bf16.msra.mxu0 %v8761_v35 }
  0x64   :  { %6709 = vmatprep.mubr.msk.bf16.mxu1 %vm8998_vm0, %v8997_v0  ;;  %6734 = vmatpush3.bf16.msra.mxu1 %v8761_v35  ;;  %v9672_v35 = vld [vmem:[%s11127_s0 + $0x16c] sm:$0xff]  }
  0x65   :  { %6339 = vmatprep.subr.bf16.mxu0 %v8997_v0  ;;  %6735 = vmatprep.subr.bf16.mxu1 %v8997_v0 }
  0x67   :  { %6340 = vmatpush3.bf16.msra.mxu0 %v8763_v36 }
  0x68   :  { %6736 = vmatpush3.bf16.msra.mxu1 %v8763_v36  ;;  %6341 = vmatprep.subr.bf16.mxu0 %v8997_v0  ;;  %v8825_v36 = vld [vmem:[%s11126_s1 + $0x180] sm:$0xff]  }
  0x69   :  { %6737 = vmatprep.subr.bf16.mxu1 %v8997_v0 }
  0x6a   :  { %6314 = vmatmul.mubr.bf16.gmra.mrb[8].mxu0 %v8762_v37  ;;  %6710 = vmatmul.mubr.bf16.gmra.mrb[8].mxu1 %v9116_v17  ;;  %v9528_v17 = vld [vmem:[%s11127_s0 + $0x12c] sm:$0xff]  }
  0x6b   :  { %6317 = vmatprep.mubr.msk.bf16.mxu0 %vm8998_vm0, %v8997_v0  ;;  %6713 = vmatprep.mubr.msk.bf16.mxu1 %vm8998_vm0, %v8997_v0  ;;  %v8826_v37 = vld [vmem:[%s11126_s1 + $0x188] sm:$0xff]  }
  0x6c   :  { %6342 = vmatpush3.bf16.msra.mxu0 %v8765_v38  ;;  %6738 = vmatpush3.bf16.msra.mxu1 %v8765_v38  ;;  %v9691_v38 = vld [vmem:[%s11127_s0 + $0x174] sm:$0xff]  }
  0x6d   :  { %6343 = vmatprep.subr.bf16.mxu0 %v8997_v0  ;;  %6739 = vmatprep.subr.bf16.mxu1 %v8997_v0 }
  0x70   :  { %6344 = vmatpush3.bf16.msra.mxu0 %v8767_v39  ;;  %6740 = vmatpush3.bf16.msra.mxu1 %v8767_v39  ;;  %v8828_v39 = vld [vmem:[%s11126_s1 + $0x190] sm:$0xff]  }
  0x71   :  { %6345 = vmatprep.subr.bf16.mxu0 %v8997_v0  ;;  %6741 = vmatprep.subr.bf16.mxu1 %v8997_v0 }
  0x72   :  { %6318 = vmatmul.mubr.bf16.gmra.mrb[12].mxu0 %v8764_v40  ;;  %6714 = vmatmul.mubr.bf16.gmra.mrb[12].mxu1 %v9142_v21  ;;  %v8810_v21 = vld [vmem:[%s11126_s1 + $0x140] sm:$0xff]   ;;  %v8830_v40 = vld [vmem:[%s11126_s1 + $0x198] sm:$0xff]  }
  0x73   :  { %6321 = vmatprep.mubr.msk.bf16.mxu0 %vm8998_vm0, %v8997_v0  ;;  %6717 = vmatprep.mubr.msk.bf16.mxu1 %vm8998_vm0, %v8997_v0 }
  0x74   :  { %6346 = vmatpush3.bf16.msra.mxu0 %v8769_v41  ;;  %6742 = vmatpush3.bf16.msra.mxu1 %v8769_v41  ;;  %v9712_v41 = vld [vmem:[%s11127_s0 + $0x17c] sm:$0xff]  }
  0x75   :  { %6347 = vmatprep.subr.bf16.mxu0 %v8997_v0  ;;  %6743 = vmatprep.subr.bf16.mxu1 %v8997_v0 }
  0x78   :  { %6348 = vmatpush3.bf16.msra.mxu0 %v8771_v42  ;;  %6744 = vmatpush3.bf16.msra.mxu1 %v8771_v42  ;;  %v8832_v42 = vld [vmem:[%s11126_s1 + $0x1a0] sm:$0xff]  }
  0x79   :  { %6377 = vmatprep.subr.bf16.mxu0 %v8997_v0  ;;  %6773 = vmatprep.subr.bf16.mxu1 %v8997_v0 }
  0x7a   :  { %6322 = vmatmul.mubr.bf16.gmra.mrb[16].mxu0 %v8766_v43  ;;  %6718 = vmatmul.mubr.bf16.gmra.mrb[16].mxu1 %v9168_v25  ;;  %v8815_v25 = vld [vmem:[%s11126_s1 + $0x158] sm:$0xff]   ;;  %v8834_v43 = vld [vmem:[%s11126_s1 + $0x1a8] sm:$0xff]  }
  0x7b   :  { %6325 = vmatprep.mubr.msk.bf16.mxu0 %vm8998_vm0, %v8997_v0  ;;  %6721 = vmatprep.mubr.msk.bf16.mxu1 %vm8998_vm0, %v8997_v0 }
  0x82   :  { %6326 = vmatmul.mubr.bf16.gmra.mrb[20].mxu0 %v8768_v44  ;;  %6722 = vmatmul.mubr.bf16.gmra.mrb[20].mxu1 %v9188_v27  ;;  %v8817_v27 = vld [vmem:[%s11126_s1 + $0x160] sm:$0xff]  }
  0x83   :  { %6329 = vmatprep.mubr.msk.bf16.mxu0 %vm8998_vm0, %v8997_v0  ;;  %6725 = vmatprep.mubr.msk.bf16.mxu1 %vm8998_vm0, %v8997_v0  ;;  %v9733_v44 = vld [vmem:[%s11127_s0 + $0x184] sm:$0xff]  }
  0x8a   :  { %6330 = vmatmul.mubr.bf16.gmra.mrb[24].mxu0 %v8770_v45  ;;  %6726 = vmatmul.mubr.bf16.gmra.mrb[24].mxu1 %v9204_v29  ;;  %v9616_v29 = vld [vmem:[%s11127_s0 + $0x150] sm:$0xff]  }
  0x8b   :  { %6349 = vmatprep.mubr.msk.bf16.mxu0 %vm8998_vm0, %v8997_v0  ;;  %6745 = vmatprep.mubr.msk.bf16.mxu1 %vm8998_vm0, %v8997_v0  ;;  %v8836_v45 = vld [vmem:[%s11126_s1 + $0x1b0] sm:$0xff]  }
  0x92   :  { %6350 = vmatmul.mubr.bf16.vlgmr.msra.gmra.mrb[0].mxu0 %v9071_v10  ;;  %6746 = vmatmul.mubr.bf16.vlgmr.msra.gmra.mrb[0].mxu1 %v8772_v46  ;;  %v9479_v10 = vld [vmem:[%s11127_s0 + $0xe8] sm:$0xff]   ;;  %v8838_v46 = vld [vmem:[%s11126_s1 + $0x1b8] sm:$0xff]  }
  0x93   :  { %6378 = vmatpush3.bf16.msra.mxu0 %v8773_v47  ;;  %6774 = vmatpush3.bf16.msra.mxu1 %v8773_v47  ;;  %v9754_v47 = vld [vmem:[%s11127_s0 + $0x18c] sm:$0xff]  }
  0x94   :  { %6353 = vmatprep.mubr.msk.bf16.mxu0 %vm8998_vm0, %v8997_v0  ;;  %6379 = vmatprep.subr.bf16.mxu0 %v8997_v0 }
  0x95   :  { %6749 = vmatprep.mubr.msk.bf16.mxu1 %vm8998_vm0, %v8997_v0  ;;  %6775 = vmatprep.subr.bf16.mxu1 %v8997_v0 }
  0x97   :  { %6380 = vmatpush3.bf16.msra.mxu0 %v8774_v48  ;;  %6776 = vmatpush3.bf16.msra.mxu1 %v8774_v48  ;;  %v9767_v48 = vld [vmem:[%s11127_s0 + $0x194] sm:$0xff]  }
  0x98   :  { %6381 = vmatprep.subr.bf16.mxu0 %v8997_v0  ;;  %6777 = vmatprep.subr.bf16.mxu1 %v8997_v0 }
  0x9a   :  { %6354 = vmatmul.mubr.bf16.gmra.mrb[4].mxu0 %v9097_v14  ;;  %6750 = vmatmul.mubr.bf16.gmra.mrb[4].mxu1 %v8775_v49  ;;  %v9505_v14 = vld [vmem:[%s11127_s0 + $0xf0] sm:$0xff]   ;;  %v9778_v49 = vld [vmem:[%s11127_s0 + $0x19c] ss:$0 sps:$4 sm:$0x11]  }
  0x9b   :  { %6357 = vmatprep.mubr.msk.bf16.mxu0 %vm8998_vm0, %v8997_v0  ;;  %6382 = vmatpush3.bf16.msra.mxu0 %v8776_v50 }
  0x9c   :  { %6753 = vmatprep.mubr.msk.bf16.mxu1 %vm8998_vm0, %v8997_v0  ;;  %6778 = vmatpush3.bf16.msra.mxu1 %v8776_v50  ;;  %v9789_v50 = vld [vmem:[%s11127_s0 + $0x1a0] sm:$0xff]  }
  0x9d   :  { %6383 = vmatprep.subr.bf16.mxu0 %v8997_v0  ;;  %6779 = vmatprep.subr.bf16.mxu1 %v8997_v0 }
  0x9f   :  { %6384 = vmatpush3.bf16.msra.mxu0 %v8778_v51 }
  0xa0   :  { %6780 = vmatpush3.bf16.msra.mxu1 %v8778_v51  ;;  %6385 = vmatprep.subr.bf16.mxu0 %v8997_v0  ;;  %v9794_v51 = vld [vmem:[%s11127_s0 + $0x1d4] sm:$0xff]  }
  0xa1   :  { %6781 = vmatprep.subr.bf16.mxu1 %v8997_v0 }
  0xa2   :  { %6358 = vmatmul.mubr.bf16.gmra.mrb[8].mxu0 %v9123_v18  ;;  %6754 = vmatmul.mubr.bf16.gmra.mrb[8].mxu1 %v8777_v52  ;;  %v9539_v18 = vld [vmem:[%s11127_s0 + $0x100] ss:$0 sps:$4 sm:$0x11]  }
  0xa3   :  { %6361 = vmatprep.mubr.msk.bf16.mxu0 %vm8998_vm0, %v8997_v0  ;;  %6757 = vmatprep.mubr.msk.bf16.mxu1 %vm8998_vm0, %v8997_v0  ;;  %v8841_v52 = vld [vmem:[%s11126_s1 + $0x1c0] sm:$0xff]  }
  0xa4   :  { %6386 = vmatpush3.bf16.msra.mxu0 %v8780_v53  ;;  %6782 = vmatpush3.bf16.msra.mxu1 %v8780_v53  ;;  %v8843_v53 = vld [vmem:[%s11126_s1 + $0x1c8] sm:$0xff]  }
  0xa5   :  { %6387 = vmatprep.subr.bf16.mxu0 %v8997_v0  ;;  %6783 = vmatprep.subr.bf16.mxu1 %v8997_v0 }
  0xa8   :  { %6388 = vmatpush3.bf16.msra.mxu0 %v8782_v54  ;;  %6784 = vmatpush3.bf16.msra.mxu1 %v8782_v54  ;;  %v9813_v54 = vld [vmem:[%s11127_s0 + $0x1a8] sm:$0xff]  }
  0xa9   :  { %6389 = vmatprep.subr.bf16.mxu0 %v8997_v0  ;;  %6785 = vmatprep.subr.bf16.mxu1 %v8997_v0 }
  0xaa   :  { %6362 = vmatmul.mubr.bf16.gmra.mrb[12].mxu0 %v9149_v22  ;;  %6758 = vmatmul.mubr.bf16.gmra.mrb[12].mxu1 %v8779_v55  ;;  %v8811_v22 = vld [vmem:[%s11126_s1 + $0x148] sm:$0xff]   ;;  %v9818_v55 = vld [vmem:[%s11127_s0 + $0x1dc] sm:$0xff]  }
  0xab   :  { %6365 = vmatprep.mubr.msk.bf16.mxu0 %vm8998_vm0, %v8997_v0  ;;  %6761 = vmatprep.mubr.msk.bf16.mxu1 %vm8998_vm0, %v8997_v0 }
  0xac   :  { %6390 = vmatpush3.bf16.msra.mxu0 %v8784_v56  ;;  %6786 = vmatpush3.bf16.msra.mxu1 %v8784_v56  ;;  %v8845_v56 = vld [vmem:[%s11126_s1 + $0x1d0] sm:$0xff]  }
  0xad   :  { %6391 = vmatprep.subr.bf16.mxu0 %v8997_v0  ;;  %6787 = vmatprep.subr.bf16.mxu1 %v8997_v0 }
  0xb0   :  { %6392 = vmatpush3.bf16.msra.mxu0 %v8786_v57  ;;  %6788 = vmatpush3.bf16.msra.mxu1 %v8786_v57  ;;  %v8848_v57 = vld [vmem:[%s11126_s1 + $0x1d8] sm:$0xff]  }
  0xb1   :  { %6421 = vmatprep.subr.bf16.mxu0 %v8997_v0  ;;  %6817 = vmatprep.subr.bf16.mxu1 %v8997_v0 }
  0xb2   :  { %6366 = vmatmul.mubr.bf16.gmra.mrb[16].mxu0 %v9173_v26  ;;  %6762 = vmatmul.mubr.bf16.gmra.mrb[16].mxu1 %v8781_v58  ;;  %v9595_v26 = vld [vmem:[%s11127_s0 + $0x148] sm:$0xff]   ;;  %v9839_v58 = vld [vmem:[%s11127_s0 + $0x1b0] sm:$0xff]  }
  0xb3   :  { %6369 = vmatprep.mubr.msk.bf16.mxu0 %vm8998_vm0, %v8997_v0  ;;  %6765 = vmatprep.mubr.msk.bf16.mxu1 %vm8998_vm0, %v8997_v0 }
  0xba   :  { %6370 = vmatmul.mubr.bf16.gmra.mrb[20].mxu0 %v9193_v28  ;;  %6766 = vmatmul.mubr.bf16.gmra.mrb[20].mxu1 %v8783_v59  ;;  %v8819_v28 = vld [vmem:[%s11126_s1 + $0x168] sm:$0xff]  }
  0xbb   :  { %6373 = vmatprep.mubr.msk.bf16.mxu0 %vm8998_vm0, %v8997_v0  ;;  %6769 = vmatprep.mubr.msk.bf16.mxu1 %vm8998_vm0, %v8997_v0  ;;  %v9844_v59 = vld [vmem:[%s11127_s0 + $0x1e4] sm:$0xff]  }
  0xc2   :  { %6374 = vmatmul.mubr.bf16.gmra.mrb[24].mxu0 %v9209_v30  ;;  %6770 = vmatmul.mubr.bf16.gmra.mrb[24].mxu1 %v8785_v60  ;;  %v8821_v30 = vld [vmem:[%s11126_s1 + $0x170] sm:$0xff]   ;;  %v8851_v60 = vld [vmem:[%s11126_s1 + $0x1e0] sm:$0xff]  }
  0xc3   :  { %6393 = vmatprep.mubr.msk.bf16.mxu0 %vm8998_vm0, %v8997_v0  ;;  %6789 = vmatprep.mubr.msk.bf16.mxu1 %vm8998_vm0, %v8997_v0 }
  0xca   :  { %6394 = vmatmul.mubr.bf16.vlgmr.msra.gmra.mrb[0].mxu0 %v8787_v61  ;;  %6790 = vmatmul.mubr.bf16.vlgmr.msra.gmra.mrb[0].mxu1 %v9415_v62  ;;  %v8854_v61 = vld [vmem:[%s11126_s1 + $0x1e8] sm:$0xff]  }
  0xcb   :  { %6422 = vmatpush3.bf16.msra.mxu0 %v8789_v63  ;;  %6818 = vmatpush3.bf16.msra.mxu1 %v8789_v63  ;;  %v9865_v63 = vld [vmem:[%s11127_s0 + $0x1b8] sm:$0xff]  }
  0xcc   :  { %6397 = vmatprep.mubr.msk.bf16.mxu0 %vm8998_vm0, %v8997_v0  ;;  %6423 = vmatprep.subr.bf16.mxu0 %v8997_v0 }
  0xcd   :  { %6793 = vmatprep.mubr.msk.bf16.mxu1 %vm8998_vm0, %v8997_v0  ;;  %6819 = vmatprep.subr.bf16.mxu1 %v8997_v0 }
  0xcf   :  { %6424 = vmatpush3.bf16.msra.mxu0 %v8791_v1  ;;  %6820 = vmatpush3.bf16.msra.mxu1 %v8791_v1  ;;  %v9870_v1 = vld [vmem:[%s11127_s0 + $0x1ec] sm:$0xff]  }
  0xd0   :  { %6425 = vmatprep.subr.bf16.mxu0 %v8997_v0  ;;  %6821 = vmatprep.subr.bf16.mxu1 %v8997_v0 }
  0xd2   :  { %6398 = vmatmul.mubr.bf16.gmra.mrb[4].mxu0 %v8790_v2  ;;  %6794 = vmatmul.mubr.bf16.gmra.mrb[4].mxu1 %v9436_v3  ;;  %v8857_v2 = vld [vmem:[%s11126_s1 + $0x1f0] sm:$0xff]  }
  0xd3   :  { %6401 = vmatprep.mubr.msk.bf16.mxu0 %vm8998_vm0, %v8997_v0  ;;  %6426 = vmatpush3.bf16.msra.mxu0 %v8793_v4 }
  0xd4   :  { %6797 = vmatprep.mubr.msk.bf16.mxu1 %vm8998_vm0, %v8997_v0  ;;  %6822 = vmatpush3.bf16.msra.mxu1 %v8793_v4  ;;  %v8860_v4 = vld [vmem:[%s11126_s1 + $0x1f8] sm:$0xff]  }
  0xd5   :  { %6427 = vmatprep.subr.bf16.mxu0 %v8997_v0  ;;  %6823 = vmatprep.subr.bf16.mxu1 %v8997_v0 }
  0xd7   :  { %6428 = vmatpush3.bf16.msra.mxu0 %v8796_v5 }
  0xd8   :  { %6824 = vmatpush3.bf16.msra.mxu1 %v8796_v5  ;;  %6429 = vmatprep.subr.bf16.mxu0 %v8997_v0  ;;  %v9891_v5 = vld [vmem:[%s11127_s0 + $0x1c0] sm:$0xff]  }
  0xd9   :  { %6825 = vmatprep.subr.bf16.mxu1 %v8997_v0 }
  0xda   :  { %6402 = vmatmul.mubr.bf16.gmra.mrb[8].mxu0 %v8794_v6  ;;  %6798 = vmatmul.mubr.bf16.gmra.mrb[8].mxu1 %v9459_v7  ;;  %v9896_v6 = vld [vmem:[%s11127_s0 + $0x1f4] sm:$0xff]  }
  0xdb   :  { %6405 = vmatprep.mubr.msk.bf16.mxu0 %vm8998_vm0, %v8997_v0  ;;  %6801 = vmatprep.mubr.msk.bf16.mxu1 %vm8998_vm0, %v8997_v0 }
  0xdc   :  { %6430 = vmatpush3.bf16.msra.mxu0 %v8799_v8  ;;  %6826 = vmatpush3.bf16.msra.mxu1 %v8799_v8  ;;  %v9909_v8 = vld [vmem:[%s11127_s0 + $0x1c8] sm:$0xff]  }
  0xdd   :  { %6431 = vmatprep.subr.bf16.mxu0 %v8997_v0  ;;  %6827 = vmatprep.subr.bf16.mxu1 %v8997_v0 }
  0xe0   :  { %6432 = vmatpush3.bf16.msra.mxu0 %v8802_v9  ;;  %6828 = vmatpush3.bf16.msra.mxu1 %v8802_v9  ;;  %v9914_v9 = vld [vmem:[%s11127_s0 + $0x1fc] sm:$0xff]  }
  0xe1   :  { %6433 = vmatprep.subr.bf16.mxu0 %v8997_v0  ;;  %6829 = vmatprep.subr.bf16.mxu1 %v8997_v0 }
  0xe2   :  { %6406 = vmatmul.mubr.bf16.gmra.mrb[12].mxu0 %v9479_v10  ;;  %6802 = vmatmul.mubr.bf16.gmra.mrb[12].mxu1 %v9484_v11 }
  0xe3   :  { %6409 = vmatprep.mubr.msk.bf16.mxu0 %vm8998_vm0, %v8997_v0  ;;  %6805 = vmatprep.mubr.msk.bf16.mxu1 %vm8998_vm0, %v8997_v0 }
  0xe4   :  { %6434 = vmatpush3.bf16.msra.mxu0 %v8805_v12  ;;  %6830 = vmatpush3.bf16.msra.mxu1 %v8805_v12  ;;  %v9925_v12 = vld [vmem:[%s11127_s0 + $0x1d0] ss:$0 sps:$4 sm:$0x11]  }
  0xe5   :  { %6435 = vmatprep.subr.bf16.mxu0 %v8997_v0  ;;  %6831 = vmatprep.subr.bf16.mxu1 %v8997_v0 }
  0xe8   :  { %6436 = vmatpush3.bf16.msra.mxu0 %v8808_v13  ;;  %6832 = vmatpush3.bf16.msra.mxu1 %v8808_v13  ;;  %v9930_v13 = vld [vmem:[%s11127_s0 + $0x204] ss:$0 sps:$4 sm:$0x11]  }
  0xe9   :  { %6465 = vmatprep.subr.bf16.mxu0 %v8997_v0  ;;  %6861 = vmatprep.subr.bf16.mxu1 %v8997_v0 }
  0xea   :  { %6410 = vmatmul.mubr.bf16.gmra.mrb[16].mxu0 %v9505_v14  ;;  %6806 = vmatmul.mubr.bf16.gmra.mrb[16].mxu1 %v9510_v15 }
  0xeb   :  { %6413 = vmatprep.mubr.msk.bf16.mxu0 %vm8998_vm0, %v8997_v0  ;;  %6809 = vmatprep.mubr.msk.bf16.mxu1 %vm8998_vm0, %v8997_v0 }
  0xf2   :  { %6414 = vmatmul.mubr.bf16.gmra.mrb[20].mxu0 %v9523_v16  ;;  %6810 = vmatmul.mubr.bf16.gmra.mrb[20].mxu1 %v9528_v17 }
  0xf3   :  { %6417 = vmatprep.mubr.msk.bf16.mxu0 %vm8998_vm0, %v8997_v0  ;;  %6813 = vmatprep.mubr.msk.bf16.mxu1 %vm8998_vm0, %v8997_v0 }
  0xfa   :  { %6418 = vmatmul.mubr.bf16.gmra.mrb[24].mxu0 %v9539_v18  ;;  %6814 = vmatmul.mubr.bf16.gmra.mrb[24].mxu1 %v9544_v19 }
  0xfb   :  { %6437 = vmatprep.mubr.msk.bf16.mxu0 %vm8998_vm0, %v8997_v0  ;;  %6833 = vmatprep.mubr.msk.bf16.mxu1 %vm8998_vm0, %v8997_v0 }
 0x102   :  { %6438 = vmatmul.mubr.bf16.vlgmr.msra.gmra.mrb[0].mxu0 %v9415_v62  ;;  %6834 = vmatmul.mubr.bf16.vlgmr.msra.gmra.mrb[0].mxu1 %v9555_v20 }
 0x103   :  { %6466 = vmatpush3.bf16.msra.mxu0 %v8810_v21  ;;  %6862 = vmatpush3.bf16.msra.mxu1 %v8810_v21  ;;  %v9941_v21 = vld [vmem:[%s11127_s0 + $0x208] sm:$0xff]  }
 0x104   :  { %6441 = vmatprep.mubr.msk.bf16.mxu0 %vm8998_vm0, %v8997_v0  ;;  %6467 = vmatprep.subr.bf16.mxu0 %v8997_v0 }
 0x105   :  { %6837 = vmatprep.mubr.msk.bf16.mxu1 %vm8998_vm0, %v8997_v0  ;;  %6863 = vmatprep.subr.bf16.mxu1 %v8997_v0 }
 0x107   :  { %6468 = vmatpush3.bf16.msra.mxu0 %v8811_v22  ;;  %6864 = vmatpush3.bf16.msra.mxu1 %v8811_v22  ;;  %v8862_v22 = vld [vmem:[%s11126_s1 + $0x200] sm:$0xff]  }
 0x108   :  { %6469 = vmatprep.subr.bf16.mxu0 %v8997_v0  ;;  %6865 = vmatprep.subr.bf16.mxu1 %v8997_v0 }
 0x10a   :  { %6442 = vmatmul.mubr.bf16.gmra.mrb[4].mxu0 %v9436_v3  ;;  %6838 = vmatmul.mubr.bf16.gmra.mrb[4].mxu1 %v9574_v23 }
 0x10b   :  { %6445 = vmatprep.mubr.msk.bf16.mxu0 %vm8998_vm0, %v8997_v0  ;;  %6470 = vmatpush3.bf16.msra.mxu0 %v8813_v24 }
 0x10c   :  { %6841 = vmatprep.mubr.msk.bf16.mxu1 %vm8998_vm0, %v8997_v0  ;;  %6866 = vmatpush3.bf16.msra.mxu1 %v8813_v24  ;;  %v8863_v24 = vld [vmem:[%s11126_s1 + $0x208] sm:$0xff]  }
 0x10d   :  { %6471 = vmatprep.subr.bf16.mxu0 %v8997_v0  ;;  %6867 = vmatprep.subr.bf16.mxu1 %v8997_v0 }
 0x10f   :  { %6472 = vmatpush3.bf16.msra.mxu0 %v8815_v25 }
 0x110   :  { %6868 = vmatpush3.bf16.msra.mxu1 %v8815_v25  ;;  %6473 = vmatprep.subr.bf16.mxu0 %v8997_v0  ;;  %v9960_v25 = vld [vmem:[%s11127_s0 + $0x210] sm:$0xff]  }
 0x111   :  { %6869 = vmatprep.subr.bf16.mxu1 %v8997_v0 }
 0x112   :  { %6446 = vmatmul.mubr.bf16.gmra.mrb[8].mxu0 %v9459_v7  ;;  %6842 = vmatmul.mubr.bf16.gmra.mrb[8].mxu1 %v9595_v26 }
 0x113   :  { %6449 = vmatprep.mubr.msk.bf16.mxu0 %vm8998_vm0, %v8997_v0  ;;  %6845 = vmatprep.mubr.msk.bf16.mxu1 %vm8998_vm0, %v8997_v0 }
 0x114   :  { %6474 = vmatpush3.bf16.msra.mxu0 %v8817_v27  ;;  %6870 = vmatpush3.bf16.msra.mxu1 %v8817_v27  ;;  %v8865_v27 = vld [vmem:[%s11126_s1 + $0x210] sm:$0xff]  }
 0x115   :  { %6475 = vmatprep.subr.bf16.mxu0 %v8997_v0  ;;  %6871 = vmatprep.subr.bf16.mxu1 %v8997_v0 }
 0x118   :  { %6476 = vmatpush3.bf16.msra.mxu0 %v8819_v28  ;;  %6872 = vmatpush3.bf16.msra.mxu1 %v8819_v28  ;;  %v8867_v28 = vld [vmem:[%s11126_s1 + $0x218] sm:$0xff]  }
 0x119   :  { %6477 = vmatprep.subr.bf16.mxu0 %v8997_v0  ;;  %6873 = vmatprep.subr.bf16.mxu1 %v8997_v0 }
 0x11a   :  { %6450 = vmatmul.mubr.bf16.gmra.mrb[12].mxu0 %v9484_v11  ;;  %6846 = vmatmul.mubr.bf16.gmra.mrb[12].mxu1 %v9616_v29 }
 0x11b   :  { %6453 = vmatprep.mubr.msk.bf16.mxu0 %vm8998_vm0, %v8997_v0  ;;  %6849 = vmatprep.mubr.msk.bf16.mxu1 %vm8998_vm0, %v8997_v0 }
 0x11c   :  { %6478 = vmatpush3.bf16.msra.mxu0 %v8821_v30  ;;  %6874 = vmatpush3.bf16.msra.mxu1 %v8821_v30  ;;  %v9981_v30 = vld [vmem:[%s11127_s0 + $0x218] sm:$0xff]  }
 0x11d   :  { %6479 = vmatprep.subr.bf16.mxu0 %v8997_v0  ;;  %6875 = vmatprep.subr.bf16.mxu1 %v8997_v0 }
 0x120   :  { %6480 = vmatpush3.bf16.msra.mxu0 %v8823_v31  ;;  %6876 = vmatpush3.bf16.msra.mxu1 %v8823_v31  ;;  %v8869_v31 = vld [vmem:[%s11126_s1 + $0x220] sm:$0xff]  }
 0x121   :  { %6509 = vmatprep.subr.bf16.mxu0 %v8997_v0  ;;  %6905 = vmatprep.subr.bf16.mxu1 %v8997_v0 }
 0x122   :  { %6454 = vmatmul.mubr.bf16.gmra.mrb[16].mxu0 %v9510_v15  ;;  %6850 = vmatmul.mubr.bf16.gmra.mrb[16].mxu1 %v9637_v32 }
 0x123   :  { %6457 = vmatprep.mubr.msk.bf16.mxu0 %vm8998_vm0, %v8997_v0  ;;  %6853 = vmatprep.mubr.msk.bf16.mxu1 %vm8998_vm0, %v8997_v0 }
 0x12a   :  { %6458 = vmatmul.mubr.bf16.gmra.mrb[20].mxu0 %v9528_v17  ;;  %6854 = vmatmul.mubr.bf16.gmra.mrb[20].mxu1 %v9650_v33 }
 0x12b   :  { %6461 = vmatprep.mubr.msk.bf16.mxu0 %vm8998_vm0, %v8997_v0  ;;  %6857 = vmatprep.mubr.msk.bf16.mxu1 %vm8998_vm0, %v8997_v0 }
 0x132   :  { %6462 = vmatmul.mubr.bf16.gmra.mrb[24].mxu0 %v9544_v19  ;;  %6858 = vmatmul.mubr.bf16.gmra.mrb[24].mxu1 %v9661_v34 }
 0x133   :  { %6481 = vmatprep.mubr.msk.bf16.mxu0 %vm8998_vm0, %v8997_v0  ;;  %6877 = vmatprep.mubr.msk.bf16.mxu1 %vm8998_vm0, %v8997_v0 }
 0x13a   :  { %6482 = vmatmul.mubr.bf16.vlgmr.msra.gmra.mrb[0].mxu0 %v9555_v20  ;;  %6878 = vmatmul.mubr.bf16.vlgmr.msra.gmra.mrb[0].mxu1 %v9672_v35 }
 0x13b   :  { %6510 = vmatpush3.bf16.msra.mxu0 %v8825_v36  ;;  %6906 = vmatpush3.bf16.msra.mxu1 %v8825_v36  ;;  %v8871_v36 = vld [vmem:[%s11126_s1 + $0x228] sm:$0xff]  }
 0x13c   :  { %6485 = vmatprep.mubr.msk.bf16.mxu0 %vm8998_vm0, %v8997_v0  ;;  %6511 = vmatprep.subr.bf16.mxu0 %v8997_v0 }
 0x13d   :  { %6881 = vmatprep.mubr.msk.bf16.mxu1 %vm8998_vm0, %v8997_v0  ;;  %6907 = vmatprep.subr.bf16.mxu1 %v8997_v0 }
 0x13f   :  { %6512 = vmatpush3.bf16.msra.mxu0 %v8826_v37  ;;  %6908 = vmatpush3.bf16.msra.mxu1 %v8826_v37  ;;  %v10002_v37 = vld [vmem:[%s11127_s0 + $0x220] sm:$0xff]  }
 0x140   :  { %6513 = vmatprep.subr.bf16.mxu0 %v8997_v0  ;;  %6909 = vmatprep.subr.bf16.mxu1 %v8997_v0 }
 0x142   :  { %6486 = vmatmul.mubr.bf16.gmra.mrb[4].mxu0 %v9574_v23  ;;  %6882 = vmatmul.mubr.bf16.gmra.mrb[4].mxu1 %v9691_v38 }
 0x143   :  { %6489 = vmatprep.mubr.msk.bf16.mxu0 %vm8998_vm0, %v8997_v0  ;;  %6514 = vmatpush3.bf16.msra.mxu0 %v8828_v39 }
 0x144   :  { %6885 = vmatprep.mubr.msk.bf16.mxu1 %vm8998_vm0, %v8997_v0  ;;  %6910 = vmatpush3.bf16.msra.mxu1 %v8828_v39  ;;  %v8873_v39 = vld [vmem:[%s11126_s1 + $0x230] sm:$0xff]  }
 0x145   :  { %6515 = vmatprep.subr.bf16.mxu0 %v8997_v0  ;;  %6911 = vmatprep.subr.bf16.mxu1 %v8997_v0 }
 0x147   :  { %6516 = vmatpush3.bf16.msra.mxu0 %v8830_v40 }
 0x148   :  { %6912 = vmatpush3.bf16.msra.mxu1 %v8830_v40  ;;  %6517 = vmatprep.subr.bf16.mxu0 %v8997_v0  ;;  %v8875_v40 = vld [vmem:[%s11126_s1 + $0x238] sm:$0xff]  }
 0x149   :  { %6913 = vmatprep.subr.bf16.mxu1 %v8997_v0 }
 0x14a   :  { %6490 = vmatmul.mubr.bf16.gmra.mrb[8].mxu0 %v9595_v26  ;;  %6886 = vmatmul.mubr.bf16.gmra.mrb[8].mxu1 %v9712_v41 }
 0x14b   :  { %6493 = vmatprep.mubr.msk.bf16.mxu0 %vm8998_vm0, %v8997_v0  ;;  %6889 = vmatprep.mubr.msk.bf16.mxu1 %vm8998_vm0, %v8997_v0 }
 0x14c   :  { %6518 = vmatpush3.bf16.msra.mxu0 %v8832_v42  ;;  %6914 = vmatpush3.bf16.msra.mxu1 %v8832_v42  ;;  %v10023_v42 = vld [vmem:[%s11127_s0 + $0x228] sm:$0xff]  }
 0x14d   :  { %6519 = vmatprep.subr.bf16.mxu0 %v8997_v0  ;;  %6915 = vmatprep.subr.bf16.mxu1 %v8997_v0 }
 0x150   :  { %6520 = vmatpush3.bf16.msra.mxu0 %v8834_v43  ;;  %6916 = vmatpush3.bf16.msra.mxu1 %v8834_v43  ;;  %v10036_v43 = vld [vmem:[%s11127_s0 + $0x230] sm:$0xff]  }
 0x151   :  { %6521 = vmatprep.subr.bf16.mxu0 %v8997_v0  ;;  %6917 = vmatprep.subr.bf16.mxu1 %v8997_v0 }
 0x152   :  { %6494 = vmatmul.mubr.bf16.gmra.mrb[12].mxu0 %v9616_v29  ;;  %6890 = vmatmul.mubr.bf16.gmra.mrb[12].mxu1 %v9733_v44 }
 0x153   :  { %6497 = vmatprep.mubr.msk.bf16.mxu0 %vm8998_vm0, %v8997_v0  ;;  %6893 = vmatprep.mubr.msk.bf16.mxu1 %vm8998_vm0, %v8997_v0 }
 0x154   :  { %6522 = vmatpush3.bf16.msra.mxu0 %v8836_v45  ;;  %6918 = vmatpush3.bf16.msra.mxu1 %v8836_v45  ;;  %v10047_v45 = vld [vmem:[%s11127_s0 + $0x238] ss:$0 sps:$4 sm:$0x11]  }
 0x155   :  { %6523 = vmatprep.subr.bf16.mxu0 %v8997_v0  ;;  %6919 = vmatprep.subr.bf16.mxu1 %v8997_v0 }
 0x158   :  { %6524 = vmatpush3.bf16.msra.mxu0 %v8838_v46  ;;  %6920 = vmatpush3.bf16.msra.mxu1 %v8838_v46  ;;  %v10058_v46 = vld [vmem:[%s11127_s0 + $0x23c] sm:$0xff]  }
 0x159   :  { %6553 = vmatprep.subr.bf16.mxu0 %v8997_v0  ;;  %6949 = vmatprep.subr.bf16.mxu1 %v8997_v0 }
 0x15a   :  { %6498 = vmatmul.mubr.bf16.gmra.mrb[16].mxu0 %v9637_v32  ;;  %6894 = vmatmul.mubr.bf16.gmra.mrb[16].mxu1 %v9754_v47 }
 0x15b   :  { %6501 = vmatprep.mubr.msk.bf16.mxu0 %vm8998_vm0, %v8997_v0  ;;  %6897 = vmatprep.mubr.msk.bf16.mxu1 %vm8998_vm0, %v8997_v0 }
 0x162   :  { %6502 = vmatmul.mubr.bf16.gmra.mrb[20].mxu0 %v9650_v33  ;;  %6898 = vmatmul.mubr.bf16.gmra.mrb[20].mxu1 %v9767_v48 }
 0x163   :  { %6505 = vmatprep.mubr.msk.bf16.mxu0 %vm8998_vm0, %v8997_v0  ;;  %6901 = vmatprep.mubr.msk.bf16.mxu1 %vm8998_vm0, %v8997_v0 }
 0x16a   :  { %6506 = vmatmul.mubr.bf16.gmra.mrb[24].mxu0 %v9661_v34  ;;  %6902 = vmatmul.mubr.bf16.gmra.mrb[24].mxu1 %v9778_v49 }
 0x16b   :  { %6525 = vmatprep.mubr.msk.bf16.mxu0 %vm8998_vm0, %v8997_v0  ;;  %6921 = vmatprep.mubr.msk.bf16.mxu1 %vm8998_vm0, %v8997_v0 }
 0x172   :  { %6526 = vmatmul.mubr.bf16.vlgmr.msra.gmra.mrb[0].mxu0 %v9789_v50  ;;  %6922 = vmatmul.mubr.bf16.vlgmr.msra.gmra.mrb[0].mxu1 %v9794_v51 }
 0x173   :  { %6554 = vmatpush3.bf16.msra.mxu0 %v8841_v52  ;;  %6950 = vmatpush3.bf16.msra.mxu1 %v8841_v52  ;;  %v8911_v52 = vld [vmem:[%s11126_s1 + $0x40] sm:$0xff]  }
 0x174   :  { %6529 = vmatprep.mubr.msk.bf16.mxu0 %vm8998_vm0, %v8997_v0  ;;  %6555 = vmatprep.subr.bf16.mxu0 %v8997_v0 }
 0x175   :  { %6925 = vmatprep.mubr.msk.bf16.mxu1 %vm8998_vm0, %v8997_v0  ;;  %6951 = vmatprep.subr.bf16.mxu1 %v8997_v0 }
 0x177   :  { %6556 = vmatpush3.bf16.msra.mxu0 %v8843_v53  ;;  %6952 = vmatpush3.bf16.msra.mxu1 %v8843_v53  ;;  %v10074_v53 = vld [vmem:[%s11127_s0 + $0x244] sm:$0xff]  }
 0x178   :  { %6557 = vmatprep.subr.bf16.mxu0 %v8997_v0  ;;  %6953 = vmatprep.subr.bf16.mxu1 %v8997_v0 }
 0x17a   :  { %6530 = vmatmul.mubr.bf16.gmra.mrb[4].mxu0 %v9813_v54  ;;  %6926 = vmatmul.mubr.bf16.gmra.mrb[4].mxu1 %v9818_v55 }
 0x17b   :  { %6533 = vmatprep.mubr.msk.bf16.mxu0 %vm8998_vm0, %v8997_v0  ;;  %6558 = vmatpush3.bf16.msra.mxu0 %v8845_v56 }
 0x17c   :  { %6929 = vmatprep.mubr.msk.bf16.mxu1 %vm8998_vm0, %v8997_v0  ;;  %6954 = vmatpush3.bf16.msra.mxu1 %v8845_v56  ;;  %v8912_v56 = vld [vmem:[%s11126_s1 + $0x48] sm:$0xff]  }
 0x17d   :  { %6559 = vmatprep.subr.bf16.mxu0 %v8997_v0  ;;  %6955 = vmatprep.subr.bf16.mxu1 %v8997_v0 }
 0x17f   :  { %6560 = vmatpush3.bf16.msra.mxu0 %v8848_v57 }
 0x180   :  { %6956 = vmatpush3.bf16.msra.mxu1 %v8848_v57  ;;  %6561 = vmatprep.subr.bf16.mxu0 %v8997_v0  ;;  %v8913_v57 = vld [vmem:[%s11126_s1 + $0x50] sm:$0xff]  }
 0x181   :  { %6957 = vmatprep.subr.bf16.mxu1 %v8997_v0 }
 0x182   :  { %6534 = vmatmul.mubr.bf16.gmra.mrb[8].mxu0 %v9839_v58  ;;  %6930 = vmatmul.mubr.bf16.gmra.mrb[8].mxu1 %v9844_v59 }
 0x183   :  { %6537 = vmatprep.mubr.msk.bf16.mxu0 %vm8998_vm0, %v8997_v0  ;;  %6933 = vmatprep.mubr.msk.bf16.mxu1 %vm8998_vm0, %v8997_v0 }
 0x184   :  { %6562 = vmatpush3.bf16.msra.mxu0 %v8851_v60  ;;  %6958 = vmatpush3.bf16.msra.mxu1 %v8851_v60  ;;  %v10095_v60 = vld [vmem:[%s11127_s0 + $0x24c] sm:$0xff]  }
 0x185   :  { %6563 = vmatprep.subr.bf16.mxu0 %v8997_v0  ;;  %6959 = vmatprep.subr.bf16.mxu1 %v8997_v0 }
 0x188   :  { %6564 = vmatpush3.bf16.msra.mxu0 %v8854_v61  ;;  %6960 = vmatpush3.bf16.msra.mxu1 %v8854_v61  ;;  %v8914_v61 = vld [vmem:[%s11126_s1 + $0x58] sm:$0xff]  }
 0x189   :  { %6565 = vmatprep.subr.bf16.mxu0 %v8997_v0  ;;  %6961 = vmatprep.subr.bf16.mxu1 %v8997_v0 }
 0x18a   :  { %6538 = vmatmul.mubr.bf16.gmra.mrb[12].mxu0 %v9865_v63  ;;  %6934 = vmatmul.mubr.bf16.gmra.mrb[12].mxu1 %v9870_v1 }
 0x18b   :  { %6541 = vmatprep.mubr.msk.bf16.mxu0 %vm8998_vm0, %v8997_v0  ;;  %6937 = vmatprep.mubr.msk.bf16.mxu1 %vm8998_vm0, %v8997_v0 }
 0x18c   :  { %6566 = vmatpush3.bf16.msra.mxu0 %v8857_v2  ;;  %6962 = vmatpush3.bf16.msra.mxu1 %v8857_v2  ;;  %v8915_v2 = vld [vmem:[%s11126_s1 + $0x60] sm:$0xff]  }
 0x18d   :  { %6567 = vmatprep.subr.bf16.mxu0 %v8997_v0  ;;  %6963 = vmatprep.subr.bf16.mxu1 %v8997_v0 }
 0x190   :  { %6568 = vmatpush3.bf16.msra.mxu0 %v8860_v4  ;;  %6964 = vmatpush3.bf16.msra.mxu1 %v8860_v4  ;;  %v10116_v4 = vld [vmem:[%s11127_s0 + $0x254] sm:$0xff]  }
 0x191   :  { %6597 = vmatprep.subr.bf16.mxu0 %v8997_v0  ;;  %6993 = vmatprep.subr.bf16.mxu1 %v8997_v0 }
 0x192   :  { %6542 = vmatmul.mubr.bf16.gmra.mrb[16].mxu0 %v9891_v5  ;;  %6938 = vmatmul.mubr.bf16.gmra.mrb[16].mxu1 %v9896_v6 }
 0x193   :  { %6545 = vmatprep.mubr.msk.bf16.mxu0 %vm8998_vm0, %v8997_v0  ;;  %6941 = vmatprep.mubr.msk.bf16.mxu1 %vm8998_vm0, %v8997_v0 }
 0x19a   :  { %6546 = vmatmul.mubr.bf16.gmra.mrb[20].mxu0 %v9909_v8  ;;  %6942 = vmatmul.mubr.bf16.gmra.mrb[20].mxu1 %v9914_v9 }
 0x19b   :  { %6549 = vmatprep.mubr.msk.bf16.mxu0 %vm8998_vm0, %v8997_v0  ;;  %6945 = vmatprep.mubr.msk.bf16.mxu1 %vm8998_vm0, %v8997_v0 }
 0x1a2   :  { %6550 = vmatmul.mubr.bf16.gmra.mrb[24].mxu0 %v9925_v12  ;;  %6946 = vmatmul.mubr.bf16.gmra.mrb[24].mxu1 %v9930_v13 }
 0x1a3   :  { %6569 = vmatprep.mubr.msk.bf16.mxu0 %vm8998_vm0, %v8997_v0  ;;  %6965 = vmatprep.mubr.msk.bf16.mxu1 %vm8998_vm0, %v8997_v0 }
 0x1aa   :  { %6570 = vmatmul.mubr.bf16.vlgmr.msra.gmra.mrb[0].mxu0 %v9794_v51  ;;  %6966 = vmatmul.mubr.bf16.vlgmr.msra.gmra.mrb[0].mxu1 %v9941_v21 }
 0x1ab   :  { %6598 = vmatpush3.bf16.msra.mxu0 %v8862_v22  ;;  %6994 = vmatpush3.bf16.msra.mxu1 %v8862_v22  ;;  %v8916_v22 = vld [vmem:[%s11126_s1 + $0x68] sm:$0xff]  }
 0x1ac   :  { %6573 = vmatprep.mubr.msk.bf16.mxu0 %vm8998_vm0, %v8997_v0  ;;  %6599 = vmatprep.subr.bf16.mxu0 %v8997_v0 }
 0x1ad   :  { %6969 = vmatprep.mubr.msk.bf16.mxu1 %vm8998_vm0, %v8997_v0  ;;  %6995 = vmatprep.subr.bf16.mxu1 %v8997_v0 }
 0x1af   :  { %6600 = vmatpush3.bf16.msra.mxu0 %v8863_v24  ;;  %6996 = vmatpush3.bf16.msra.mxu1 %v8863_v24  ;;  %v8917_v24 = vld [vmem:[%s11126_s1 + $0x70] sm:$0xff]  }
 0x1b0   :  { %6601 = vmatprep.subr.bf16.mxu0 %v8997_v0  ;;  %6997 = vmatprep.subr.bf16.mxu1 %v8997_v0 }
 0x1b2   :  { %6574 = vmatmul.mubr.bf16.gmra.mrb[4].mxu0 %v9818_v55  ;;  %6970 = vmatmul.mubr.bf16.gmra.mrb[4].mxu1 %v9960_v25 }
 0x1b3   :  { %6577 = vmatprep.mubr.msk.bf16.mxu0 %vm8998_vm0, %v8997_v0  ;;  %6602 = vmatpush3.bf16.msra.mxu0 %v8865_v27 }
 0x1b4   :  { %6973 = vmatprep.mubr.msk.bf16.mxu1 %vm8998_vm0, %v8997_v0  ;;  %6998 = vmatpush3.bf16.msra.mxu1 %v8865_v27  ;;  %v10137_v27 = vld [vmem:[%s11127_s0 + $0x25c] sm:$0xff]  }
 0x1b5   :  { %6603 = vmatprep.subr.bf16.mxu0 %v8997_v0  ;;  %6999 = vmatprep.subr.bf16.mxu1 %v8997_v0 }
 0x1b7   :  { %6604 = vmatpush3.bf16.msra.mxu0 %v8867_v28 }
 0x1b8   :  { %7000 = vmatpush3.bf16.msra.mxu1 %v8867_v28  ;;  %6605 = vmatprep.subr.bf16.mxu0 %v8997_v0  ;;  %v8918_v28 = vld [vmem:[%s11126_s1 + $0x78] sm:$0xff]  }
 0x1b9   :  { %7001 = vmatprep.subr.bf16.mxu1 %v8997_v0 }
 0x1ba   :  { %6578 = vmatmul.mubr.bf16.gmra.mrb[8].mxu0 %v9844_v59  ;;  %6974 = vmatmul.mubr.bf16.gmra.mrb[8].mxu1 %v9981_v30 }
 0x1bb   :  { %6581 = vmatprep.mubr.msk.bf16.mxu0 %vm8998_vm0, %v8997_v0  ;;  %6977 = vmatprep.mubr.msk.bf16.mxu1 %vm8998_vm0, %v8997_v0 }
 0x1bc   :  { %6606 = vmatpush3.bf16.msra.mxu0 %v8869_v31  ;;  %7002 = vmatpush3.bf16.msra.mxu1 %v8869_v31  ;;  %v10153_v31 = vld [vmem:[%s11127_s0 + $0x264] sm:$0xff]  }
 0x1bd   :  { %6607 = vmatprep.subr.bf16.mxu0 %v8997_v0  ;;  %7003 = vmatprep.subr.bf16.mxu1 %v8997_v0 }
 0x1c0   :  { %6608 = vmatpush3.bf16.msra.mxu0 %v8871_v36  ;;  %7004 = vmatpush3.bf16.msra.mxu1 %v8871_v36  ;;  %v10164_v36 = vld [vmem:[%s11127_s0 + $0x26c] ss:$0 sps:$4 sm:$0x11]  }
 0x1c1   :  { %6609 = vmatprep.subr.bf16.mxu0 %v8997_v0  ;;  %7005 = vmatprep.subr.bf16.mxu1 %v8997_v0 }
 0x1c2   :  { %6582 = vmatmul.mubr.bf16.gmra.mrb[12].mxu0 %v9870_v1  ;;  %6978 = vmatmul.mubr.bf16.gmra.mrb[12].mxu1 %v10002_v37 }
 0x1c3   :  { %6585 = vmatprep.mubr.msk.bf16.mxu0 %vm8998_vm0, %v8997_v0  ;;  %6981 = vmatprep.mubr.msk.bf16.mxu1 %vm8998_vm0, %v8997_v0 }
 0x1c4   :  { %6610 = vmatpush3.bf16.msra.mxu0 %v8873_v39  ;;  %7006 = vmatpush3.bf16.msra.mxu1 %v8873_v39  ;;  %v8919_v39 = vld [vmem:[%s11126_s1] sm:$0xff]  }
 0x1c5   :  { %6611 = vmatprep.subr.bf16.mxu0 %v8997_v0  ;;  %7007 = vmatprep.subr.bf16.mxu1 %v8997_v0 }
 0x1c8   :  { %6612 = vmatpush3.bf16.msra.mxu0 %v8875_v40  ;;  %7008 = vmatpush3.bf16.msra.mxu1 %v8875_v40  ;;  %v8921_v40 = vld [vmem:[%s11126_s1 + $0x10] sm:$0xff]  }
 0x1c9   :  { %7037 = vmatprep.subr.bf16.mxu0 %v8997_v0  ;;  %7433 = vmatprep.subr.bf16.mxu1 %v8997_v0 }
 0x1ca   :  { %6586 = vmatmul.mubr.bf16.gmra.mrb[16].mxu0 %v9896_v6  ;;  %6982 = vmatmul.mubr.bf16.gmra.mrb[16].mxu1 %v10023_v42 }
 0x1cb   :  { %6589 = vmatprep.mubr.msk.bf16.mxu0 %vm8998_vm0, %v8997_v0  ;;  %6985 = vmatprep.mubr.msk.bf16.mxu1 %vm8998_vm0, %v8997_v0 }
 0x1d2   :  { %6590 = vmatmul.mubr.bf16.gmra.mrb[20].mxu0 %v9914_v9  ;;  %6986 = vmatmul.mubr.bf16.gmra.mrb[20].mxu1 %v10036_v43 }
 0x1d3   :  { %6593 = vmatprep.mubr.msk.bf16.mxu0 %vm8998_vm0, %v8997_v0  ;;  %6989 = vmatprep.mubr.msk.bf16.mxu1 %vm8998_vm0, %v8997_v0 }
 0x1da   :  { %6594 = vmatmul.mubr.bf16.gmra.mrb[24].mxu0 %v9930_v13  ;;  %6990 = vmatmul.mubr.bf16.gmra.mrb[24].mxu1 %v10047_v45 }
 0x1db   :  { %6613 = vmatprep.mubr.msk.bf16.mxu0 %vm8998_vm0, %v8997_v0  ;;  %7009 = vmatprep.mubr.msk.bf16.mxu1 %vm8998_vm0, %v8997_v0 }
 0x1e2   :  { %6614 = vmatmul.mubr.bf16.vlgmr.msra.gmra.mrb[0].mxu0 %v9941_v21  ;;  %7010 = vmatmul.mubr.bf16.vlgmr.msra.gmra.mrb[0].mxu1 %v10058_v46 }
 0x1e3   :  { %7038 = vmatpush3.bf16.msra.mxu0 %v8911_v52  ;;  %7434 = vmatpush3.bf16.msra.mxu1 %v8911_v52  ;;  %v8923_v52 = vld [vmem:[%s11126_s1 + $0x20] sm:$0xff]  }
 0x1e4   :  { %6617 = vmatprep.mubr.msk.bf16.mxu0 %vm8998_vm0, %v8997_v0  ;;  %7013 = vmatprep.mubr.msk.bf16.mxu1 %vm8998_vm0, %v8997_v0 }
 0x1e5   :  { %7039 = vmatprep.subr.bf16.mxu0 %v8997_v0  ;;  %7435 = vmatprep.subr.bf16.mxu1 %v8997_v0 }
 0x1e7   :  { %7040 = vmatpush3.bf16.msra.mxu0 %v8912_v56  ;;  %7436 = vmatpush3.bf16.msra.mxu1 %v8912_v56  ;;  %v8925_v56 = vld [vmem:[%s11126_s1 + $0x30] sm:$0xff]  }
 0x1e8   :  { %7041 = vmatprep.subr.bf16.mxu0 %v8997_v0  ;;  %7437 = vmatprep.subr.bf16.mxu1 %v8997_v0 }
 0x1ea   :  { %6618 = vmatmul.mubr.bf16.gmra.mrb[4].mxu0 %v9960_v25  ;;  %7014 = vmatmul.mubr.bf16.gmra.mrb[4].mxu1 %v10074_v53 }
 0x1eb   :  { %6621 = vmatprep.mubr.msk.bf16.mxu0 %vm8998_vm0, %v8997_v0  ;;  %7017 = vmatprep.mubr.msk.bf16.mxu1 %vm8998_vm0, %v8997_v0 }
 0x1ec   :  { %7042 = vmatpush3.bf16.msra.mxu0 %v8913_v57  ;;  %7438 = vmatpush3.bf16.msra.mxu1 %v8913_v57  ;;  %v8926_v57 = vld [vmem:[%s11126_s1 + $0x38] sm:$0xff]  }
 0x1ed   :  { %7043 = vmatprep.subr.bf16.mxu0 %v8997_v0  ;;  %7439 = vmatprep.subr.bf16.mxu1 %v8997_v0 }
 0x1f0   :  { %7044 = vmatpush3.bf16.msra.mxu0 %v8914_v61  ;;  %7440 = vmatpush3.bf16.msra.mxu1 %v8914_v61  ;;  %v8927_v61 = vld [vmem:[%s11127_s0 + $0xd0] sm:$0xff]  }
 0x1f1   :  { %7045 = vmatprep.subr.bf16.mxu0 %v8997_v0  ;;  %7441 = vmatprep.subr.bf16.mxu1 %v8997_v0 }
 0x1f2   :  { %6622 = vmatmul.mubr.bf16.gmra.mrb[8].mxu0 %v9981_v30  ;;  %7018 = vmatmul.mubr.bf16.gmra.mrb[8].mxu1 %v10095_v60 }
 0x1f3   :  { %6625 = vmatprep.mubr.msk.bf16.mxu0 %vm8998_vm0, %v8997_v0  ;;  %7021 = vmatprep.mubr.msk.bf16.mxu1 %vm8998_vm0, %v8997_v0 }
 0x1f4   :  { %7046 = vmatpush3.bf16.msra.mxu0 %v8915_v2  ;;  %7442 = vmatpush3.bf16.msra.mxu1 %v8915_v2  ;;  %v8928_v2 = vld [vmem:[%s11127_s0 + $0x104] sm:$0xff]  }
 0x1f5   :  { %7047 = vmatprep.subr.bf16.mxu0 %v8997_v0  ;;  %7443 = vmatprep.subr.bf16.mxu1 %v8997_v0 }
 0x1f8   :  { %7048 = vmatpush3.bf16.msra.mxu0 %v8916_v22  ;;  %7444 = vmatpush3.bf16.msra.mxu1 %v8916_v22  ;;  %v8929_v22 = vld [vmem:[%s11126_s1 + $0x80] sm:$0xff]  }
 0x1f9   :  { %7049 = vmatprep.subr.bf16.mxu0 %v8997_v0  ;;  %7445 = vmatprep.subr.bf16.mxu1 %v8997_v0 }
 0x1fa   :  { %6626 = vmatmul.mubr.bf16.gmra.mrb[12].mxu0 %v10002_v37  ;;  %7022 = vmatmul.mubr.bf16.gmra.mrb[12].mxu1 %v10116_v4 }
 0x1fb   :  { %6629 = vmatprep.mubr.msk.bf16.mxu0 %vm8998_vm0, %v8997_v0  ;;  %7025 = vmatprep.mubr.msk.bf16.mxu1 %vm8998_vm0, %v8997_v0 }
 0x1fc   :  { %7050 = vmatpush3.bf16.msra.mxu0 %v8917_v24  ;;  %7446 = vmatpush3.bf16.msra.mxu1 %v8917_v24  ;;  %v8930_v24 = vld [vmem:[%s11126_s1 + $0x88] sm:$0xff]  }
 0x1fd   :  { %7051 = vmatprep.subr.bf16.mxu0 %v8997_v0  ;;  %7447 = vmatprep.subr.bf16.mxu1 %v8997_v0 }
 0x200   :  { %7052 = vmatpush3.bf16.msra.mxu0 %v8918_v28  ;;  %7448 = vmatpush3.bf16.msra.mxu1 %v8918_v28  ;;  %v8931_v28 = vld [vmem:[%s11127_s0 + $0xd8] sm:$0xff]  }
 0x201   :  { %7081 = vmatprep.subr.bf16.mxu0 %v8997_v0  ;;  %7477 = vmatprep.subr.bf16.mxu1 %v8997_v0 }
 0x202   :  { %6630 = vmatmul.mubr.bf16.gmra.mrb[16].mxu0 %v10023_v42  ;;  %7026 = vmatmul.mubr.bf16.gmra.mrb[16].mxu1 %v10137_v27 }
 0x203   :  { %6633 = vmatprep.mubr.msk.bf16.mxu0 %vm8998_vm0, %v8997_v0  ;;  %7029 = vmatprep.mubr.msk.bf16.mxu1 %vm8998_vm0, %v8997_v0 }
 0x20a   :  { %6634 = vmatmul.mubr.bf16.gmra.mrb[20].mxu0 %v10036_v43  ;;  %7030 = vmatmul.mubr.bf16.gmra.mrb[20].mxu1 %v10153_v31 }
 0x20b   :  { %6637 = vmatprep.mubr.msk.bf16.mxu0 %vm8998_vm0, %v8997_v0  ;;  %7033 = vmatprep.mubr.msk.bf16.mxu1 %vm8998_vm0, %v8997_v0 }
 0x212   :  { %6638 = vmatmul.mubr.bf16.gmra.mrb[24].mxu0 %v10047_v45  ;;  %7034 = vmatmul.mubr.bf16.gmra.mrb[24].mxu1 %v10164_v36 }
 0x213   :  { %7053 = vmatprep.mubr.msk.bf16.mxu0 %vm8998_vm0, %v8997_v0  ;;  %7449 = vmatprep.mubr.msk.bf16.mxu1 %vm8998_vm0, %v8997_v0 }
 0x21a   :  { %7054 = vmatmul.mubr.bf16.vlgmr.msra.gmra.mrb[28].mxu0 %v9415_v62  ;;  %7450 = vmatmul.mubr.bf16.vlgmr.msra.gmra.mrb[28].mxu1 %v9555_v20  ;;  %v8920_v62 = vld [vmem:[%s11126_s1 + $0x8] sm:$0xff]  }
 0x21b   :  { %7082 = vmatpush3.bf16.msra.mxu0 %v8919_v39  ;;  %7478 = vmatpush3.bf16.msra.mxu1 %v8919_v39  ;;  %v8932_v39 = vld [vmem:[%s11127_s0 + $0x10c] sm:$0xff]  }
 0x21c   :  { %7057 = vmatprep.mubr.msk.bf16.mxu0 %vm8998_vm0, %v8997_v0  ;;  %7083 = vmatprep.subr.bf16.mxu0 %v8997_v0 }
 0x21d   :  { %7453 = vmatprep.mubr.msk.bf16.mxu1 %vm8998_vm0, %v8997_v0  ;;  %7479 = vmatprep.subr.bf16.mxu1 %v8997_v0 }
 0x21f   :  { %7084 = vmatpush3.bf16.msra.mxu0 %v8920_v62  ;;  %7480 = vmatpush3.bf16.msra.mxu1 %v8920_v62  ;;  %v8933_v62 = vld [vmem:[%s11126_s1 + $0x90] sm:$0xff]  }
 0x220   :  { %7085 = vmatprep.subr.bf16.mxu0 %v8997_v0  ;;  %7481 = vmatprep.subr.bf16.mxu1 %v8997_v0 }
 0x222   :  { %7058 = vmatmul.mubr.bf16.gmra.mrb[32].mxu0 %v9436_v3  ;;  %7454 = vmatmul.mubr.bf16.gmra.mrb[32].mxu1 %v9574_v23  ;;  %v8922_v3 = vld [vmem:[%s11126_s1 + $0x18] sm:$0xff]  }
 0x223   :  { %7061 = vmatprep.mubr.msk.bf16.mxu0 %vm8998_vm0, %v8997_v0  ;;  %7086 = vmatpush3.bf16.msra.mxu0 %v8921_v40 }
 0x224   :  { %7457 = vmatprep.mubr.msk.bf16.mxu1 %vm8998_vm0, %v8997_v0  ;;  %7482 = vmatpush3.bf16.msra.mxu1 %v8921_v40  ;;  %v8934_v40 = vld [vmem:[%s11126_s1 + $0x98] sm:$0xff]  }
 0x225   :  { %7087 = vmatprep.subr.bf16.mxu0 %v8997_v0  ;;  %7483 = vmatprep.subr.bf16.mxu1 %v8997_v0 }
 0x227   :  { %7088 = vmatpush3.bf16.msra.mxu0 %v8922_v3 }
 0x228   :  { %7484 = vmatpush3.bf16.msra.mxu1 %v8922_v3  ;;  %7089 = vmatprep.subr.bf16.mxu0 %v8997_v0  ;;  %v8935_v3 = vld [vmem:[%s11127_s0 + $0xe0] sm:$0xff]  }
 0x229   :  { %7485 = vmatprep.subr.bf16.mxu1 %v8997_v0 }
 0x22a   :  { %7062 = vmatmul.mubr.bf16.gmra.mrb[36].mxu0 %v9459_v7  ;;  %7458 = vmatmul.mubr.bf16.gmra.mrb[36].mxu1 %v9595_v26  ;;  %v8924_v7 = vld [vmem:[%s11126_s1 + $0x28] sm:$0xff]  }
 0x22b   :  { %7065 = vmatprep.mubr.msk.bf16.mxu0 %vm8998_vm0, %v8997_v0  ;;  %7461 = vmatprep.mubr.msk.bf16.mxu1 %vm8998_vm0, %v8997_v0 }
 0x22c   :  { %7090 = vmatpush3.bf16.msra.mxu0 %v8923_v52  ;;  %7486 = vmatpush3.bf16.msra.mxu1 %v8923_v52  ;;  %v8936_v52 = vld [vmem:[%s11127_s0 + $0x114] sm:$0xff]  }
 0x22d   :  { %7091 = vmatprep.subr.bf16.mxu0 %v8997_v0  ;;  %7487 = vmatprep.subr.bf16.mxu1 %v8997_v0 }
 0x230   :  { %7092 = vmatpush3.bf16.msra.mxu0 %v8924_v7  ;;  %7488 = vmatpush3.bf16.msra.mxu1 %v8924_v7  ;;  %v8937_v7 = vld [vmem:[%s11126_s1 + $0xa0] sm:$0xff]  }
 0x231   :  { %7093 = vmatprep.subr.bf16.mxu0 %v8997_v0  ;;  %7489 = vmatprep.subr.bf16.mxu1 %v8997_v0 }
 0x232   :  { %7066 = vmatmul.mubr.bf16.gmra.mrb[40].mxu0 %v9484_v11  ;;  %7462 = vmatmul.mubr.bf16.gmra.mrb[40].mxu1 %v9616_v29 }
 0x233   :  { %7069 = vmatprep.mubr.msk.bf16.mxu0 %vm8998_vm0, %v8997_v0  ;;  %7465 = vmatprep.mubr.msk.bf16.mxu1 %vm8998_vm0, %v8997_v0 }
 0x234   :  { %7094 = vmatpush3.bf16.msra.mxu0 %v8925_v56  ;;  %7490 = vmatpush3.bf16.msra.mxu1 %v8925_v56  ;;  %v8938_v56 = vld [vmem:[%s11126_s1 + $0xa8] sm:$0xff]  }
 0x235   :  { %7095 = vmatprep.subr.bf16.mxu0 %v8997_v0  ;;  %7491 = vmatprep.subr.bf16.mxu1 %v8997_v0 }
 0x238   :  { %7096 = vmatpush3.bf16.msra.mxu0 %v8926_v57  ;;  %7492 = vmatpush3.bf16.msra.mxu1 %v8926_v57  ;;  %v8939_v57 = vld [vmem:[%s11126_s1 + $0xb0] sm:$0xff]  }
 0x239   :  { %7125 = vmatprep.subr.bf16.mxu0 %v8997_v0  ;;  %7521 = vmatprep.subr.bf16.mxu1 %v8997_v0 }
 0x23a   :  { %7070 = vmatmul.mubr.bf16.gmra.mrb[44].mxu0 %v9510_v15  ;;  %7466 = vmatmul.mubr.bf16.gmra.mrb[44].mxu1 %v9637_v32 }
 0x23b   :  { %7073 = vmatprep.mubr.msk.bf16.mxu0 %vm8998_vm0, %v8997_v0  ;;  %7469 = vmatprep.mubr.msk.bf16.mxu1 %vm8998_vm0, %v8997_v0 }
 0x242   :  { %7074 = vmatmul.mubr.bf16.gmra.mrb[48].mxu0 %v9528_v17  ;;  %7470 = vmatmul.mubr.bf16.gmra.mrb[48].mxu1 %v9650_v33 }
 0x243   :  { %7077 = vmatprep.mubr.msk.bf16.mxu0 %vm8998_vm0, %v8997_v0  ;;  %7473 = vmatprep.mubr.msk.bf16.mxu1 %vm8998_vm0, %v8997_v0 }
 0x24a   :  { %7078 = vmatmul.mubr.bf16.gmra.mrb[52].mxu0 %v9544_v19  ;;  %7474 = vmatmul.mubr.bf16.gmra.mrb[52].mxu1 %v9661_v34 }
 0x24b   :  { %7097 = vmatprep.mubr.msk.bf16.mxu0 %vm8998_vm0, %v8997_v0  ;;  %7493 = vmatprep.mubr.msk.bf16.mxu1 %vm8998_vm0, %v8997_v0 }
 0x252   :  { %7098 = vmatmul.mubr.bf16.vlgmr.msra.gmra.mrb[28].mxu0 %v8927_v61  ;;  %7494 = vmatmul.mubr.bf16.vlgmr.msra.gmra.mrb[28].mxu1 %v8928_v2 }
 0x253   :  { %7126 = vmatpush3.bf16.msra.mxu0 %v8929_v22  ;;  %7522 = vmatpush3.bf16.msra.mxu1 %v8929_v22 }
 0x254   :  { %7101 = vmatprep.mubr.msk.bf16.mxu0 %vm8998_vm0, %v8997_v0  ;;  %7127 = vmatprep.subr.bf16.mxu0 %v8997_v0 }
 0x255   :  { %7497 = vmatprep.mubr.msk.bf16.mxu1 %vm8998_vm0, %v8997_v0  ;;  %7523 = vmatprep.subr.bf16.mxu1 %v8997_v0 }
 0x257   :  { %7128 = vmatpush3.bf16.msra.mxu0 %v8930_v24  ;;  %7524 = vmatpush3.bf16.msra.mxu1 %v8930_v24 }
 0x258   :  { %7129 = vmatprep.subr.bf16.mxu0 %v8997_v0  ;;  %7525 = vmatprep.subr.bf16.mxu1 %v8997_v0 }
 0x25a   :  { %7102 = vmatmul.mubr.bf16.gmra.mrb[32].mxu0 %v8931_v28  ;;  %7498 = vmatmul.mubr.bf16.gmra.mrb[32].mxu1 %v8932_v39 }
 0x25b   :  { %7105 = vmatprep.mubr.msk.bf16.mxu0 %vm8998_vm0, %v8997_v0  ;;  %7130 = vmatpush3.bf16.msra.mxu0 %v8933_v62 }
 0x25c   :  { %7501 = vmatprep.mubr.msk.bf16.mxu1 %vm8998_vm0, %v8997_v0  ;;  %7526 = vmatpush3.bf16.msra.mxu1 %v8933_v62 }
 0x25d   :  { %7131 = vmatprep.subr.bf16.mxu0 %v8997_v0  ;;  %7527 = vmatprep.subr.bf16.mxu1 %v8997_v0 }
 0x25f   :  { %7132 = vmatpush3.bf16.msra.mxu0 %v8934_v40 }
 0x260   :  { %7528 = vmatpush3.bf16.msra.mxu1 %v8934_v40  ;;  %7133 = vmatprep.subr.bf16.mxu0 %v8997_v0  ;;  %v8949_v40 = vld [vmem:[%s11126_s1 + $0x100] sm:$0xff]  }
 0x261   :  { %7529 = vmatprep.subr.bf16.mxu1 %v8997_v0 }
 0x262   :  { %7106 = vmatmul.mubr.bf16.gmra.mrb[36].mxu0 %v8935_v3  ;;  %7502 = vmatmul.mubr.bf16.gmra.mrb[36].mxu1 %v8936_v52 }
 0x263   :  { %7109 = vmatprep.mubr.msk.bf16.mxu0 %vm8998_vm0, %v8997_v0  ;;  %7505 = vmatprep.mubr.msk.bf16.mxu1 %vm8998_vm0, %v8997_v0 }
 0x264   :  { %7134 = vmatpush3.bf16.msra.mxu0 %v8937_v7  ;;  %7530 = vmatpush3.bf16.msra.mxu1 %v8937_v7 }
 0x265   :  { %7135 = vmatprep.subr.bf16.mxu0 %v8997_v0  ;;  %7531 = vmatprep.subr.bf16.mxu1 %v8997_v0 }
 0x268   :  { %7136 = vmatpush3.bf16.msra.mxu0 %v8938_v56  ;;  %7532 = vmatpush3.bf16.msra.mxu1 %v8938_v56 }
 0x269   :  { %7137 = vmatprep.subr.bf16.mxu0 %v8997_v0  ;;  %7533 = vmatprep.subr.bf16.mxu1 %v8997_v0 }
 0x26a   :  { %7110 = vmatmul.mubr.bf16.gmra.mrb[40].mxu0 %v9479_v10  ;;  %7506 = vmatmul.mubr.bf16.gmra.mrb[40].mxu1 %v9484_v11  ;;  %v8940_v10 = vld [vmem:[%s11126_s1 + $0xb8] sm:$0xff]   ;;  %v8941_v11 = vld [vmem:[%s11126_s1 + $0xc0] sm:$0xff]  }
 0x26b   :  { %7113 = vmatprep.mubr.msk.bf16.mxu0 %vm8998_vm0, %v8997_v0  ;;  %7509 = vmatprep.mubr.msk.bf16.mxu1 %vm8998_vm0, %v8997_v0 }
 0x26c   :  { %7138 = vmatpush3.bf16.msra.mxu0 %v8939_v57  ;;  %7534 = vmatpush3.bf16.msra.mxu1 %v8939_v57 }
 0x26d   :  { %7139 = vmatprep.subr.bf16.mxu0 %v8997_v0  ;;  %7535 = vmatprep.subr.bf16.mxu1 %v8997_v0 }
 0x270   :  { %7140 = vmatpush3.bf16.msra.mxu0 %v8940_v10  ;;  %7536 = vmatpush3.bf16.msra.mxu1 %v8940_v10  ;;  %v8950_v10 = vld [vmem:[%s11126_s1 + $0x108] sm:$0xff]  }
 0x271   :  { %7169 = vmatprep.subr.bf16.mxu0 %v8997_v0  ;;  %7565 = vmatprep.subr.bf16.mxu1 %v8997_v0 }
 0x272   :  { %7114 = vmatmul.mubr.bf16.gmra.mrb[44].mxu0 %v9505_v14  ;;  %7510 = vmatmul.mubr.bf16.gmra.mrb[44].mxu1 %v9510_v15  ;;  %v8942_v14 = vld [vmem:[%s11126_s1 + $0xc8] sm:$0xff]   ;;  %v8943_v15 = vld [vmem:[%s11126_s1 + $0xd0] sm:$0xff]  }
 0x273   :  { %7117 = vmatprep.mubr.msk.bf16.mxu0 %vm8998_vm0, %v8997_v0  ;;  %7513 = vmatprep.mubr.msk.bf16.mxu1 %vm8998_vm0, %v8997_v0 }
 0x27a   :  { %7118 = vmatmul.mubr.bf16.gmra.mrb[48].mxu0 %v9523_v16  ;;  %7514 = vmatmul.mubr.bf16.gmra.mrb[48].mxu1 %v9528_v17  ;;  %v8944_v16 = vld [vmem:[%s11126_s1 + $0xd8] sm:$0xff]   ;;  %v8945_v17 = vld [vmem:[%s11126_s1 + $0xe0] sm:$0xff]  }
 0x27b   :  { %7121 = vmatprep.mubr.msk.bf16.mxu0 %vm8998_vm0, %v8997_v0  ;;  %7517 = vmatprep.mubr.msk.bf16.mxu1 %vm8998_vm0, %v8997_v0 }
 0x282   :  { %7122 = vmatmul.mubr.bf16.gmra.mrb[52].mxu0 %v9539_v18  ;;  %7518 = vmatmul.mubr.bf16.gmra.mrb[52].mxu1 %v9544_v19  ;;  %v8946_v18 = vld [vmem:[%s11126_s1 + $0xe8] sm:$0xff]   ;;  %v8947_v19 = vld [vmem:[%s11126_s1 + $0xf0] sm:$0xff]  }
 0x283   :  { %7141 = vmatprep.mubr.msk.bf16.mxu0 %vm8998_vm0, %v8997_v0  ;;  %7537 = vmatprep.mubr.msk.bf16.mxu1 %vm8998_vm0, %v8997_v0 }
 0x28a   :  { %7142 = vmatmul.mubr.bf16.vlgmr.msra.gmra.mrb[28].mxu0 %v9555_v20  ;;  %7538 = vmatmul.mubr.bf16.vlgmr.msra.gmra.mrb[28].mxu1 %v9672_v35  ;;  %v8948_v20 = vld [vmem:[%s11126_s1 + $0xf8] sm:$0xff]  }
 0x28b   :  { %7170 = vmatpush3.bf16.msra.mxu0 %v8941_v11  ;;  %7566 = vmatpush3.bf16.msra.mxu1 %v8941_v11 }
 0x28c   :  { %7145 = vmatprep.mubr.msk.bf16.mxu0 %vm8998_vm0, %v8997_v0  ;;  %7171 = vmatprep.subr.bf16.mxu0 %v8997_v0 }
 0x28d   :  { %7541 = vmatprep.mubr.msk.bf16.mxu1 %vm8998_vm0, %v8997_v0  ;;  %7567 = vmatprep.subr.bf16.mxu1 %v8997_v0 }
 0x28f   :  { %7172 = vmatpush3.bf16.msra.mxu0 %v8942_v14  ;;  %7568 = vmatpush3.bf16.msra.mxu1 %v8942_v14 }
 0x290   :  { %7173 = vmatprep.subr.bf16.mxu0 %v8997_v0  ;;  %7569 = vmatprep.subr.bf16.mxu1 %v8997_v0 }
 0x292   :  { %7146 = vmatmul.mubr.bf16.gmra.mrb[32].mxu0 %v9574_v23  ;;  %7542 = vmatmul.mubr.bf16.gmra.mrb[32].mxu1 %v9691_v38 }
 0x293   :  { %7149 = vmatprep.mubr.msk.bf16.mxu0 %vm8998_vm0, %v8997_v0  ;;  %7174 = vmatpush3.bf16.msra.mxu0 %v8943_v15 }
 0x294   :  { %7545 = vmatprep.mubr.msk.bf16.mxu1 %vm8998_vm0, %v8997_v0  ;;  %7570 = vmatpush3.bf16.msra.mxu1 %v8943_v15 }
 0x295   :  { %7175 = vmatprep.subr.bf16.mxu0 %v8997_v0  ;;  %7571 = vmatprep.subr.bf16.mxu1 %v8997_v0 }
 0x297   :  { %7176 = vmatpush3.bf16.msra.mxu0 %v8944_v16 }
 0x298   :  { %7572 = vmatpush3.bf16.msra.mxu1 %v8944_v16  ;;  %7177 = vmatprep.subr.bf16.mxu0 %v8997_v0  ;;  %v8951_v16 = vld [vmem:[%s11126_s1 + $0x110] sm:$0xff]  }
 0x299   :  { %7573 = vmatprep.subr.bf16.mxu1 %v8997_v0 }
 0x29a   :  { %7150 = vmatmul.mubr.bf16.gmra.mrb[36].mxu0 %v9595_v26  ;;  %7546 = vmatmul.mubr.bf16.gmra.mrb[36].mxu1 %v9712_v41 }
 0x29b   :  { %7153 = vmatprep.mubr.msk.bf16.mxu0 %vm8998_vm0, %v8997_v0  ;;  %7549 = vmatprep.mubr.msk.bf16.mxu1 %vm8998_vm0, %v8997_v0 }
 0x29c   :  { %7178 = vmatpush3.bf16.msra.mxu0 %v8945_v17  ;;  %7574 = vmatpush3.bf16.msra.mxu1 %v8945_v17 }
 0x29d   :  { %7179 = vmatprep.subr.bf16.mxu0 %v8997_v0  ;;  %7575 = vmatprep.subr.bf16.mxu1 %v8997_v0 }
 0x2a0   :  { %7180 = vmatpush3.bf16.msra.mxu0 %v8946_v18  ;;  %7576 = vmatpush3.bf16.msra.mxu1 %v8946_v18 }
 0x2a1   :  { %7181 = vmatprep.subr.bf16.mxu0 %v8997_v0  ;;  %7577 = vmatprep.subr.bf16.mxu1 %v8997_v0 }
 0x2a2   :  { %7154 = vmatmul.mubr.bf16.gmra.mrb[40].mxu0 %v9616_v29  ;;  %7550 = vmatmul.mubr.bf16.gmra.mrb[40].mxu1 %v9733_v44 }
 0x2a3   :  { %7157 = vmatprep.mubr.msk.bf16.mxu0 %vm8998_vm0, %v8997_v0  ;;  %7553 = vmatprep.mubr.msk.bf16.mxu1 %vm8998_vm0, %v8997_v0 }
 0x2a4   :  { %7182 = vmatpush3.bf16.msra.mxu0 %v8947_v19  ;;  %7578 = vmatpush3.bf16.msra.mxu1 %v8947_v19 }
 0x2a5   :  { %7183 = vmatprep.subr.bf16.mxu0 %v8997_v0  ;;  %7579 = vmatprep.subr.bf16.mxu1 %v8997_v0 }
 0x2a8   :  { %7184 = vmatpush3.bf16.msra.mxu0 %v8948_v20  ;;  %7580 = vmatpush3.bf16.msra.mxu1 %v8948_v20 }
 0x2a9   :  { %7213 = vmatprep.subr.bf16.mxu0 %v8997_v0  ;;  %7609 = vmatprep.subr.bf16.mxu1 %v8997_v0 }
 0x2aa   :  { %7158 = vmatmul.mubr.bf16.gmra.mrb[44].mxu0 %v9637_v32  ;;  %7554 = vmatmul.mubr.bf16.gmra.mrb[44].mxu1 %v9754_v47 }
 0x2ab   :  { %7161 = vmatprep.mubr.msk.bf16.mxu0 %vm8998_vm0, %v8997_v0  ;;  %7557 = vmatprep.mubr.msk.bf16.mxu1 %vm8998_vm0, %v8997_v0 }
 0x2b2   :  { %7162 = vmatmul.mubr.bf16.gmra.mrb[48].mxu0 %v9650_v33  ;;  %7558 = vmatmul.mubr.bf16.gmra.mrb[48].mxu1 %v9767_v48 }
 0x2b3   :  { %7165 = vmatprep.mubr.msk.bf16.mxu0 %vm8998_vm0, %v8997_v0  ;;  %7561 = vmatprep.mubr.msk.bf16.mxu1 %vm8998_vm0, %v8997_v0 }
 0x2b5   :  { %v10424_v23 = vpop.f32.mrb[0].mxu0  ;;  %v10426_v26 = vpop.f32.mrb[0].mxu1 }
 0x2b6   :  { %v3012_v29 = vmax.f32 %v10424_v23, %v10426_v26  ;;  %v6615_v32 = vpop.f32.mrb[1].mxu0  ;;  %v7011_v35 = vpop.f32.mrb[1].mxu1 }
 0x2b7   :  { %v10430_v38 = vpop.f32.mrb[2].mxu0  ;;  %v10432_v33 = vpop.f32.mrb[2].mxu1  ;;  %v8952_v35 = vld [vmem:[%s11126_s1 + $0x118] sm:$0xff]  }
 0x2b8   :  { %v3013_v41 = vmax.f32 %v10430_v38, %v10432_v33  ;;  %v6616_v44 = vpop.f32.mrb[3].mxu0  ;;  %v7012_v47 = vpop.f32.mrb[3].mxu1 }
 0x2ba   :  { %7166 = vmatmul.mubr.bf16.gmra.mrb[52].mxu0 %v9661_v34  ;;  %7562 = vmatmul.mubr.bf16.gmra.mrb[52].mxu1 %v9778_v49 }
 0x2bb   :  { %7185 = vmatprep.mubr.msk.bf16.mxu0 %vm8998_vm0, %v8997_v0  ;;  %7581 = vmatprep.mubr.msk.bf16.mxu1 %vm8998_vm0, %v8997_v0 }
 0x2bd   :  { %v10442_v48 = vpop.f32.mrb[4].mxu0  ;;  %v10444_v61 = vpop.f32.mrb[4].mxu1 }
 0x2be   :  { %v3014_v2 = vmax.f32 %v10442_v48, %v10444_v61  ;;  %v6619_v22 = vpop.f32.mrb[5].mxu0  ;;  %v7015_v24 = vpop.f32.mrb[5].mxu1 }
 0x2bf   :  { %v10448_v28 = vpop.f32.mrb[6].mxu0  ;;  %v10450_v34 = vpop.f32.mrb[6].mxu1  ;;  %v8953_v24 = vld [vmem:[%s11126_s1 + $0x120] sm:$0xff]  }
 0x2c0   :  { %v3015_v49 = vmax.f32 %v10448_v28, %v10450_v34  ;;  %v6620_v39 = vpop.f32.mrb[7].mxu0  ;;  %v7016_v62 = vpop.f32.mrb[7].mxu1 }
 0x2c2   :  { %7186 = vmatmul.mubr.bf16.vlgmr.msra.gmra.mrb[28].mxu0 %v9789_v50  ;;  %7582 = vmatmul.mubr.bf16.vlgmr.msra.gmra.mrb[28].mxu1 %v9794_v51 }
 0x2c3   :  { %7214 = vmatpush3.bf16.msra.mxu0 %v8949_v40  ;;  %7610 = vmatpush3.bf16.msra.mxu1 %v8949_v40 }
 0x2c4   :  { %7189 = vmatprep.mubr.msk.bf16.mxu0 %vm8998_vm0, %v8997_v0  ;;  %7215 = vmatprep.subr.bf16.mxu0 %v8997_v0 }
 0x2c5   :  { %v10462_v3 = vpop.f32.mrb[8].mxu0  ;;  %v10464_v52 = vpop.f32.mrb[8].mxu1  ;;  %7585 = vmatprep.mubr.msk.bf16.mxu1 %vm8998_vm0, %v8997_v0  ;;  %7611 = vmatprep.subr.bf16.mxu1 %v8997_v0 }
 0x2c6   :  { %v3016_v50 = vmax.f32 %v10462_v3, %v10464_v52  ;;  %v6623_v51 = vpop.f32.mrb[9].mxu0  ;;  %v7019_v7 = vpop.f32.mrb[9].mxu1 }
 0x2c7   :  { %v10471_v56 = vpop.f32.mrb[10].mxu0  ;;  %v10473_v57 = vpop.f32.mrb[10].mxu1  ;;  %7216 = vmatpush3.bf16.msra.mxu0 %v8950_v10  ;;  %7612 = vmatpush3.bf16.msra.mxu1 %v8950_v10 }
 0x2c8   :  { %v3017_v11 = vmax.f32 %v10471_v56, %v10473_v57  ;;  %v6624_v14 = vpop.f32.mrb[11].mxu0  ;;  %v7020_v15 = vpop.f32.mrb[11].mxu1  ;;  %7217 = vmatprep.subr.bf16.mxu0 %v8997_v0  ;;  %7613 = vmatprep.subr.bf16.mxu1 %v8997_v0 }
 0x2ca   :  { %7190 = vmatmul.mubr.bf16.gmra.mrb[32].mxu0 %v9813_v54  ;;  %7586 = vmatmul.mubr.bf16.gmra.mrb[32].mxu1 %v9818_v55 }
 0x2cb   :  { %7193 = vmatprep.mubr.msk.bf16.mxu0 %vm8998_vm0, %v8997_v0  ;;  %7218 = vmatpush3.bf16.msra.mxu0 %v8951_v16 }
 0x2cc   :  { %7589 = vmatprep.mubr.msk.bf16.mxu1 %vm8998_vm0, %v8997_v0  ;;  %7614 = vmatpush3.bf16.msra.mxu1 %v8951_v16  ;;  %v8954_v16 = vld [vmem:[%s11126_s1 + $0x128] sm:$0xff]  }
 0x2cd   :  { %v10491_v17 = vpop.f32.mrb[12].mxu0  ;;  %v10493_v18 = vpop.f32.mrb[12].mxu1  ;;  %7219 = vmatprep.subr.bf16.mxu0 %v8997_v0  ;;  %7615 = vmatprep.subr.bf16.mxu1 %v8997_v0 }
 0x2ce   :  { %v3018_v54 = vmax.f32 %v10491_v17, %v10493_v18  ;;  %v6627_v55 = vpop.f32.mrb[13].mxu0  ;;  %v7023_v19 = vpop.f32.mrb[13].mxu1 }
 0x2cf   :  { %v10499_v20 = vpop.f32.mrb[14].mxu0  ;;  %v10501_v32 = vpop.f32.mrb[14].mxu1  ;;  %7220 = vmatpush3.bf16.msra.mxu0 %v8952_v35  ;;  %v8955_v55 = vld [vmem:[%s11126_s1 + $0x130] sm:$0xff]  }
 0x2d0   :  { %v3019_v44 = vmax.f32 %v10499_v20, %v10501_v32  ;;  %v6628_v47 = vpop.f32.mrb[15].mxu0  ;;  %v7024_v22 = vpop.f32.mrb[15].mxu1  ;;  %7616 = vmatpush3.bf16.msra.mxu1 %v8952_v35  ;;  %7221 = vmatprep.subr.bf16.mxu0 %v8997_v0 }
 0x2d1   :  { %7617 = vmatprep.subr.bf16.mxu1 %v8997_v0 }
 0x2d2   :  { %7194 = vmatmul.mubr.bf16.gmra.mrb[36].mxu0 %v9839_v58  ;;  %7590 = vmatmul.mubr.bf16.gmra.mrb[36].mxu1 %v9844_v59 }
 0x2d3   :  { %7197 = vmatprep.mubr.msk.bf16.mxu0 %vm8998_vm0, %v8997_v0  ;;  %7593 = vmatprep.mubr.msk.bf16.mxu1 %vm8998_vm0, %v8997_v0 }
 0x2d4   :  { %7222 = vmatpush3.bf16.msra.mxu0 %v8953_v24  ;;  %7618 = vmatpush3.bf16.msra.mxu1 %v8953_v24 }
 0x2d5   :  { %v10519_v39 = vpop.f32.mrb[16].mxu0  ;;  %v10521_v62 = vpop.f32.mrb[16].mxu1  ;;  %7223 = vmatprep.subr.bf16.mxu0 %v8997_v0  ;;  %7619 = vmatprep.subr.bf16.mxu1 %v8997_v0 }
 0x2d6   :  { %v3020_v58 = vmax.f32 %v10519_v39, %v10521_v62  ;;  %v6631_v59 = vpop.f32.mrb[17].mxu0  ;;  %v7027_v40 = vpop.f32.mrb[17].mxu1 }
 0x2d7   :  { %v10527_v51 = vpop.f32.mrb[18].mxu0  ;;  %v10529_v7 = vpop.f32.mrb[18].mxu1 }
 0x2d8   :  { %v3021_v10 = vmax.f32 %v10527_v51, %v10529_v7  ;;  %v6632_v14 = vpop.f32.mrb[19].mxu0  ;;  %v7028_v15 = vpop.f32.mrb[19].mxu1  ;;  %7224 = vmatpush3.bf16.msra.mxu0 %v8954_v16  ;;  %7620 = vmatpush3.bf16.msra.mxu1 %v8954_v16 }
 0x2d9   :  { %7225 = vmatprep.subr.bf16.mxu0 %v8997_v0  ;;  %7621 = vmatprep.subr.bf16.mxu1 %v8997_v0  ;;  %v8956_v15 = vld [vmem:[%s11126_s1 + $0x138] sm:$0xff]  }
 0x2da   :  { %7198 = vmatmul.mubr.bf16.gmra.mrb[40].mxu0 %v9865_v63  ;;  %7594 = vmatmul.mubr.bf16.gmra.mrb[40].mxu1 %v9870_v1 }
 0x2db   :  { %7201 = vmatprep.mubr.msk.bf16.mxu0 %vm8998_vm0, %v8997_v0  ;;  %7597 = vmatprep.mubr.msk.bf16.mxu1 %vm8998_vm0, %v8997_v0 }
 0x2dc   :  { %7226 = vmatpush3.bf16.msra.mxu0 %v8955_v55  ;;  %7622 = vmatpush3.bf16.msra.mxu1 %v8955_v55 }
 0x2dd   :  { %v10547_v19 = vpop.f32.mrb[20].mxu0  ;;  %v10549_v35 = vpop.f32.mrb[20].mxu1  ;;  %7227 = vmatprep.subr.bf16.mxu0 %v8997_v0  ;;  %7623 = vmatprep.subr.bf16.mxu1 %v8997_v0 }
 0x2de   :  { %v3022_v63 = vmax.f32 %v10547_v19, %v10549_v35  ;;  %v6635_v1 = vpop.f32.mrb[21].mxu0  ;;  %v7031_v47 = vpop.f32.mrb[21].mxu1 }
 0x2df   :  { %v10555_v22 = vpop.f32.mrb[22].mxu0  ;;  %v10557_v24 = vpop.f32.mrb[22].mxu1 }
 0x2e0   :  { %v6636_v40 = vpop.f32.mrb[23].mxu0  ;;  %v7032_v14 = vpop.f32.mrb[23].mxu1  ;;  %7228 = vmatpush3.bf16.msra.mxu0 %v8956_v15  ;;  %7624 = vmatpush3.bf16.msra.mxu1 %v8956_v15 }
 0x2e1   :  { %7257 = vmatprep.subr.bf16.mxu0 %v8997_v0  ;;  %7653 = vmatprep.subr.bf16.mxu1 %v8997_v0 }
 0x2e2   :  { %7202 = vmatmul.mubr.bf16.gmra.mrb[44].mxu0 %v9891_v5  ;;  %7598 = vmatmul.mubr.bf16.gmra.mrb[44].mxu1 %v9896_v6  ;;  %v8957_v6 = vld [vmem:[%s11127_s0 + $0x1d4] sm:$0xff]  }
 0x2e3   :  { %7205 = vmatprep.mubr.msk.bf16.mxu0 %vm8998_vm0, %v8997_v0  ;;  %7601 = vmatprep.mubr.msk.bf16.mxu1 %vm8998_vm0, %v8997_v0 }
 0x2e5   :  { %v10572_v16 = vpop.f32.mrb[24].mxu0  ;;  %v10574_v55 = vpop.f32.mrb[24].mxu1 }
 0x2e6   :  { %v3024_v1 = vmax.f32 %v10572_v16, %v10574_v55  ;;  %v6639_v47 = vpop.f32.mrb[25].mxu0  ;;  %v7035_v40 = vpop.f32.mrb[25].mxu1 }
 0x2e7   :  { %v1951_v14 = vpop.f32.mrb[26].mxu0  ;;  %v2996_v15 = vpop.f32.mrb[26].mxu1  ;;  %v8964_v47 = vld [vmem:[%s11126_s1 + $0x160] sm:$0xff]   ;;  %v8965_v40 = vld [vmem:[%s11126_s1 + $0x168] sm:$0xff]  }
 0x2e8   :  { %v6640_v5 = vpop.f32.mrb[27].mxu0  ;;  %v7036_v59 = vpop.f32.mrb[27].mxu1  ;;  %v8966_v14 = vld [vmem:[%s11127_s0 + $0x1ec] sm:$0xff]  }
 0x2e9   :  { %v8963_v59 = vld [vmem:[%s11127_s0 + $0x1e4] sm:$0xff]   ;;  %v8967_v15 = vld [vmem:[%s11126_s1 + $0x170] sm:$0xff]   ;;  %v8968_v5 = vld [vmem:[%s11126_s1 + $0x178] sm:$0xff]  }
 0x2ea   :  { %7206 = vmatmul.mubr.bf16.gmra.mrb[48].mxu0 %v9909_v8  ;;  %7602 = vmatmul.mubr.bf16.gmra.mrb[48].mxu1 %v9914_v9  ;;  %v8958_v8 = vld [vmem:[%s11126_s1 + $0x140] sm:$0xff]   ;;  %v8959_v9 = vld [vmem:[%s11126_s1 + $0x148] sm:$0xff]  }
 0x2eb   :  { %7209 = vmatprep.mubr.msk.bf16.mxu0 %vm8998_vm0, %v8997_v0  ;;  %7605 = vmatprep.mubr.msk.bf16.mxu1 %vm8998_vm0, %v8997_v0 }
 0x2f2   :  { %7210 = vmatmul.mubr.bf16.gmra.mrb[52].mxu0 %v9925_v12  ;;  %7606 = vmatmul.mubr.bf16.gmra.mrb[52].mxu1 %v9930_v13  ;;  %v8960_v12 = vld [vmem:[%s11127_s0 + $0x1dc] sm:$0xff]   ;;  %v8961_v13 = vld [vmem:[%s11126_s1 + $0x150] sm:$0xff]  }
 0x2f3   :  { %7229 = vmatprep.mubr.msk.bf16.mxu0 %vm8998_vm0, %v8997_v0  ;;  %7625 = vmatprep.mubr.msk.bf16.mxu1 %vm8998_vm0, %v8997_v0 }
 0x2fa   :  { %7230 = vmatmul.mubr.bf16.vlgmr.msra.gmra.mrb[28].mxu0 %v8957_v6  ;;  %7626 = vmatmul.mubr.bf16.vlgmr.msra.gmra.mrb[28].mxu1 %v9941_v21  ;;  %v8969_v6 = vld [vmem:[%s11127_s0 + $0x1f4] sm:$0xff]  }
 0x2fb   :  { %7258 = vmatpush3.bf16.msra.mxu0 %v8958_v8  ;;  %7654 = vmatpush3.bf16.msra.mxu1 %v8958_v8  ;;  %v8970_v8 = vld [vmem:[%s11127_s0 + $0x1fc] sm:$0xff]  }
 0x2fc   :  { %7233 = vmatprep.mubr.msk.bf16.mxu0 %vm8998_vm0, %v8997_v0  ;;  %7259 = vmatprep.subr.bf16.mxu0 %v8997_v0 }
 0x2fd   :  { %7629 = vmatprep.mubr.msk.bf16.mxu1 %vm8998_vm0, %v8997_v0  ;;  %7655 = vmatprep.subr.bf16.mxu1 %v8997_v0 }
 0x2ff   :  { %7260 = vmatpush3.bf16.msra.mxu0 %v8959_v9  ;;  %7656 = vmatpush3.bf16.msra.mxu1 %v8959_v9  ;;  %v8971_v9 = vld [vmem:[%s11127_s0 + $0x204] ss:$0 sps:$4 sm:$0x11]  }
 0x300   :  { %7261 = vmatprep.subr.bf16.mxu0 %v8997_v0  ;;  %7657 = vmatprep.subr.bf16.mxu1 %v8997_v0 }
 0x302   :  { %7234 = vmatmul.mubr.bf16.gmra.mrb[32].mxu0 %v8960_v12  ;;  %7630 = vmatmul.mubr.bf16.gmra.mrb[32].mxu1 %v9960_v25  ;;  %v8962_v25 = vld [vmem:[%s11126_s1 + $0x158] sm:$0xff]   ;;  %v8972_v12 = vld [vmem:[%s11126_s1 + $0x180] sm:$0xff]  }
 0x303   :  { %7237 = vmatprep.mubr.msk.bf16.mxu0 %vm8998_vm0, %v8997_v0  ;;  %7262 = vmatpush3.bf16.msra.mxu0 %v8961_v13 }
 0x304   :  { %7633 = vmatprep.mubr.msk.bf16.mxu1 %vm8998_vm0, %v8997_v0  ;;  %7658 = vmatpush3.bf16.msra.mxu1 %v8961_v13  ;;  %v8975_v13 = vld [vmem:[%s11126_s1 + $0x190] sm:$0xff]  }
 0x305   :  { %7263 = vmatprep.subr.bf16.mxu0 %v8997_v0  ;;  %7659 = vmatprep.subr.bf16.mxu1 %v8997_v0 }
 0x307   :  { %7264 = vmatpush3.bf16.msra.mxu0 %v8962_v25 }
 0x308   :  { %7660 = vmatpush3.bf16.msra.mxu1 %v8962_v25  ;;  %7265 = vmatprep.subr.bf16.mxu0 %v8997_v0  ;;  %v8977_v25 = vld [vmem:[%s11126_s1 + $0x1a0] sm:$0xff]  }
 0x309   :  { %7661 = vmatprep.subr.bf16.mxu1 %v8997_v0 }
 0x30a   :  { %7238 = vmatmul.mubr.bf16.gmra.mrb[36].mxu0 %v8963_v59  ;;  %7634 = vmatmul.mubr.bf16.gmra.mrb[36].mxu1 %v9981_v30  ;;  %v8887_v59 = vld [vmem:[%s11127_s0 + $0x280] sm:$0xff]  }
 0x30b   :  { %7241 = vmatprep.mubr.msk.bf16.mxu0 %vm8998_vm0, %v8997_v0  ;;  %7637 = vmatprep.mubr.msk.bf16.mxu1 %vm8998_vm0, %v8997_v0 }
 0x30c   :  { %7266 = vmatpush3.bf16.msra.mxu0 %v8964_v47  ;;  %7662 = vmatpush3.bf16.msra.mxu1 %v8964_v47  ;;  %v10817_v47 = vld [vmem:[%s11127_s0 + $0x2b4] sm:$0xff]  }
 0x30d   :  { %7267 = vmatprep.subr.bf16.mxu0 %v8997_v0  ;;  %7663 = vmatprep.subr.bf16.mxu1 %v8997_v0 }
 0x310   :  { %7268 = vmatpush3.bf16.msra.mxu0 %v8965_v40  ;;  %7664 = vmatpush3.bf16.msra.mxu1 %v8965_v40  ;;  %v8984_v40 = vld [vmem:[%s11126_s1 + $0x1d8] sm:$0xff]  }
 0x311   :  { %7269 = vmatprep.subr.bf16.mxu0 %v8997_v0  ;;  %7665 = vmatprep.subr.bf16.mxu1 %v8997_v0 }
 0x312   :  { %7242 = vmatmul.mubr.bf16.gmra.mrb[40].mxu0 %v8966_v14  ;;  %7638 = vmatmul.mubr.bf16.gmra.mrb[40].mxu1 %v10002_v37  ;;  %v8985_v14 = vld [vmem:[%s11126_s1 + $0x1e0] sm:$0xff]  }
 0x313   :  { %7245 = vmatprep.mubr.msk.bf16.mxu0 %vm8998_vm0, %v8997_v0  ;;  %7641 = vmatprep.mubr.msk.bf16.mxu1 %vm8998_vm0, %v8997_v0 }
 0x314   :  { %7270 = vmatpush3.bf16.msra.mxu0 %v8967_v15  ;;  %7666 = vmatpush3.bf16.msra.mxu1 %v8967_v15  ;;  %v8889_v15 = vld [vmem:[%s11127_s0 + $0x288] sm:$0xff]  }
 0x315   :  { %7271 = vmatprep.subr.bf16.mxu0 %v8997_v0  ;;  %7667 = vmatprep.subr.bf16.mxu1 %v8997_v0 }
 0x318   :  { %7272 = vmatpush3.bf16.msra.mxu0 %v8968_v5  ;;  %7668 = vmatpush3.bf16.msra.mxu1 %v8968_v5  ;;  %v10840_v5 = vld [vmem:[%s11127_s0 + $0x2bc] sm:$0xff]  }
 0x319   :  { %7301 = vmatprep.subr.bf16.mxu0 %v8997_v0  ;;  %7697 = vmatprep.subr.bf16.mxu1 %v8997_v0 }
 0x31a   :  { %7246 = vmatmul.mubr.bf16.gmra.mrb[44].mxu0 %v8969_v6  ;;  %7642 = vmatmul.mubr.bf16.gmra.mrb[44].mxu1 %v10023_v42  ;;  %v8986_v6 = vld [vmem:[%s11126_s1 + $0x1e8] sm:$0xff]  }
 0x31b   :  { %7249 = vmatprep.mubr.msk.bf16.mxu0 %vm8998_vm0, %v8997_v0  ;;  %7645 = vmatprep.mubr.msk.bf16.mxu1 %vm8998_vm0, %v8997_v0 }
 0x322   :  { %7250 = vmatmul.mubr.bf16.gmra.mrb[48].mxu0 %v8970_v8  ;;  %7646 = vmatmul.mubr.bf16.gmra.mrb[48].mxu1 %v10036_v43  ;;  %v8987_v8 = vld [vmem:[%s11126_s1 + $0x1f0] sm:$0xff]  }
 0x323   :  { %7253 = vmatprep.mubr.msk.bf16.mxu0 %vm8998_vm0, %v8997_v0  ;;  %7649 = vmatprep.mubr.msk.bf16.mxu1 %vm8998_vm0, %v8997_v0 }
 0x32a   :  { %7254 = vmatmul.mubr.bf16.gmra.mrb[52].mxu0 %v8971_v9  ;;  %7650 = vmatmul.mubr.bf16.gmra.mrb[52].mxu1 %v10047_v45  ;;  %v8891_v9 = vld [vmem:[%s11127_s0 + $0x290] sm:$0xff]  }
 0x32b   :  { %7273 = vmatprep.mubr.msk.bf16.mxu0 %vm8998_vm0, %v8997_v0  ;;  %7669 = vmatprep.mubr.msk.bf16.mxu1 %vm8998_vm0, %v8997_v0 }
 0x332   :  { %7274 = vmatmul.mubr.bf16.vlgmr.msra.gmra.mrb[28].mxu0 %v9941_v21  ;;  %7670 = vmatmul.mubr.bf16.vlgmr.msra.gmra.mrb[28].mxu1 %v10058_v46  ;;  %v8973_v21 = vld [vmem:[%s11126_s1 + $0x188] sm:$0xff]   ;;  %v8974_v46 = vld [vmem:[%s11127_s0 + $0x210] sm:$0xff]  }
 0x333   :  { %7302 = vmatpush3.bf16.msra.mxu0 %v8972_v12  ;;  %7698 = vmatpush3.bf16.msra.mxu1 %v8972_v12  ;;  %v10863_v12 = vld [vmem:[%s11127_s0 + $0x2c4] sm:$0xff]  }
 0x334   :  { %7277 = vmatprep.mubr.msk.bf16.mxu0 %vm8998_vm0, %v8997_v0  ;;  %7303 = vmatprep.subr.bf16.mxu0 %v8997_v0 }
 0x335   :  { %7673 = vmatprep.mubr.msk.bf16.mxu1 %vm8998_vm0, %v8997_v0  ;;  %7699 = vmatprep.subr.bf16.mxu1 %v8997_v0 }
 0x337   :  { %7304 = vmatpush3.bf16.msra.mxu0 %v8973_v21  ;;  %7700 = vmatpush3.bf16.msra.mxu1 %v8973_v21  ;;  %v8988_v21 = vld [vmem:[%s11126_s1 + $0x1f8] sm:$0xff]  }
 0x338   :  { %7305 = vmatprep.subr.bf16.mxu0 %v8997_v0  ;;  %7701 = vmatprep.subr.bf16.mxu1 %v8997_v0 }
 0x33a   :  { %7278 = vmatmul.mubr.bf16.gmra.mrb[32].mxu0 %v8974_v46  ;;  %7674 = vmatmul.mubr.bf16.gmra.mrb[32].mxu1 %v10074_v53  ;;  %v8976_v53 = vld [vmem:[%s11126_s1 + $0x198] sm:$0xff]  }
 0x33b   :  { %7281 = vmatprep.mubr.msk.bf16.mxu0 %vm8998_vm0, %v8997_v0  ;;  %7306 = vmatpush3.bf16.msra.mxu0 %v8975_v13  ;;  %v8893_v46 = vld [vmem:[%s11127_s0 + $0x298] sm:$0xff]  }
 0x33c   :  { %7677 = vmatprep.mubr.msk.bf16.mxu1 %vm8998_vm0, %v8997_v0  ;;  %7702 = vmatpush3.bf16.msra.mxu1 %v8975_v13  ;;  %v10881_v13 = vld [vmem:[%s11127_s0 + $0x2cc] sm:$0xff]  }
 0x33d   :  { %7307 = vmatprep.subr.bf16.mxu0 %v8997_v0  ;;  %7703 = vmatprep.subr.bf16.mxu1 %v8997_v0 }
 0x33f   :  { %7308 = vmatpush3.bf16.msra.mxu0 %v8976_v53 }
 0x340   :  { %7704 = vmatpush3.bf16.msra.mxu1 %v8976_v53  ;;  %7309 = vmatprep.subr.bf16.mxu0 %v8997_v0  ;;  %v8895_v53 = vld [vmem:[%s11127_s0 + $0x2a0] ss:$0 sps:$4 sm:$0x11]  }
 0x341   :  { %7705 = vmatprep.subr.bf16.mxu1 %v8997_v0 }
 0x342   :  { %7282 = vmatmul.mubr.bf16.gmra.mrb[36].mxu0 %v9981_v30  ;;  %7678 = vmatmul.mubr.bf16.gmra.mrb[36].mxu1 %v10095_v60  ;;  %v8978_v30 = vld [vmem:[%s11126_s1 + $0x1a8] sm:$0xff]   ;;  %v8979_v60 = vld [vmem:[%s11126_s1 + $0x1b0] sm:$0xff]  }
 0x343   :  { %7285 = vmatprep.mubr.msk.bf16.mxu0 %vm8998_vm0, %v8997_v0  ;;  %7681 = vmatprep.mubr.msk.bf16.mxu1 %vm8998_vm0, %v8997_v0 }
 0x344   :  { %7310 = vmatpush3.bf16.msra.mxu0 %v8977_v25  ;;  %7706 = vmatpush3.bf16.msra.mxu1 %v8977_v25  ;;  %v10894_v25 = vld [vmem:[%s11127_s0 + $0x2d4] ss:$0 sps:$4 sm:$0x11]  }
 0x345   :  { %7311 = vmatprep.subr.bf16.mxu0 %v8997_v0  ;;  %7707 = vmatprep.subr.bf16.mxu1 %v8997_v0 }
 0x348   :  { %7312 = vmatpush3.bf16.msra.mxu0 %v8978_v30  ;;  %7708 = vmatpush3.bf16.msra.mxu1 %v8978_v30  ;;  %v10904_v30 = vld [vmem:[%s11127_s0 + $0x2d8] sm:$0xff]  }
 0x349   :  { %7313 = vmatprep.subr.bf16.mxu0 %v8997_v0  ;;  %7709 = vmatprep.subr.bf16.mxu1 %v8997_v0 }
 0x34a   :  { %7286 = vmatmul.mubr.bf16.gmra.mrb[40].mxu0 %v10002_v37  ;;  %7682 = vmatmul.mubr.bf16.gmra.mrb[40].mxu1 %v10116_v4  ;;  %v8980_v37 = vld [vmem:[%s11126_s1 + $0x1b8] sm:$0xff]  }
 0x34b   :  { %7289 = vmatprep.mubr.msk.bf16.mxu0 %vm8998_vm0, %v8997_v0  ;;  %7685 = vmatprep.mubr.msk.bf16.mxu1 %vm8998_vm0, %v8997_v0  ;;  %v8885_v4 = vld [vmem:[%s11127_s0 + $0x278] sm:$0xff]  }
 0x34c   :  { %7314 = vmatpush3.bf16.msra.mxu0 %v8979_v60  ;;  %7710 = vmatpush3.bf16.msra.mxu1 %v8979_v60  ;;  %v8989_v60 = vld [vmem:[%s11126_s1 + $0x200] sm:$0xff]  }
 0x34d   :  { %7315 = vmatprep.subr.bf16.mxu0 %v8997_v0  ;;  %7711 = vmatprep.subr.bf16.mxu1 %v8997_v0 }
 0x350   :  { %7316 = vmatpush3.bf16.msra.mxu0 %v8980_v37  ;;  %7712 = vmatpush3.bf16.msra.mxu1 %v8980_v37  ;;  %v10920_v37 = vld [vmem:[%s11127_s0 + $0x2e0] sm:$0xff]  }
 0x351   :  { %7345 = vmatprep.subr.bf16.mxu0 %v8997_v0  ;;  %7741 = vmatprep.subr.bf16.mxu1 %v8997_v0 }
 0x352   :  { %7290 = vmatmul.mubr.bf16.gmra.mrb[44].mxu0 %v10023_v42  ;;  %7686 = vmatmul.mubr.bf16.gmra.mrb[44].mxu1 %v10137_v27  ;;  %v8883_v42 = vld [vmem:[%s11127_s0 + $0x270] sm:$0xff]  }
 0x353   :  { %7293 = vmatprep.mubr.msk.bf16.mxu0 %vm8998_vm0, %v8997_v0  ;;  %7689 = vmatprep.mubr.msk.bf16.mxu1 %vm8998_vm0, %v8997_v0  ;;  %v10794_v27 = vld [vmem:[%s11127_s0 + $0x2ac] sm:$0xff]  }
 0x35a   :  { %7294 = vmatmul.mubr.bf16.gmra.mrb[48].mxu0 %v10036_v43  ;;  %7690 = vmatmul.mubr.bf16.gmra.mrb[48].mxu1 %v10153_v31  ;;  %v10776_v43 = vld [vmem:[%s11127_s0 + $0x2a4] sm:$0xff]  }
 0x35b   :  { %7297 = vmatprep.mubr.msk.bf16.mxu0 %vm8998_vm0, %v8997_v0  ;;  %7693 = vmatprep.mubr.msk.bf16.mxu1 %vm8998_vm0, %v8997_v0  ;;  %v8982_v31 = vld [vmem:[%s11126_s1 + $0x1c8] sm:$0xff]  }
 0x362   :  { %7298 = vmatmul.mubr.bf16.gmra.mrb[52].mxu0 %v10047_v45  ;;  %7694 = vmatmul.mubr.bf16.gmra.mrb[52].mxu1 %v10164_v36  ;;  %v8981_v45 = vld [vmem:[%s11126_s1 + $0x1c0] sm:$0xff]   ;;  %v8983_v36 = vld [vmem:[%s11126_s1 + $0x1d0] sm:$0xff]  }
 0x363   :  { %7317 = vmatprep.mubr.msk.bf16.mxu0 %vm8998_vm0, %v8997_v0  ;;  %7713 = vmatprep.mubr.msk.bf16.mxu1 %vm8998_vm0, %v8997_v0 }
 0x36a   :  { %7318 = vmatmul.mubr.bf16.vlgmr.msra.gmra.mrb[28].mxu0 %v8883_v42  ;;  %7714 = vmatmul.mubr.bf16.vlgmr.msra.gmra.mrb[28].mxu1 %v10776_v43  ;;  %v8990_v42 = vld [vmem:[%s11126_s1 + $0x208] sm:$0xff]  }
 0x36b   :  { %7346 = vmatpush3.bf16.msra.mxu0 %v8981_v45  ;;  %7742 = vmatpush3.bf16.msra.mxu1 %v8981_v45  ;;  %v8899_v45 = vld [vmem:[%s11127_s0 + $0x2e8] sm:$0xff]  }
 0x36c   :  { %7321 = vmatprep.mubr.msk.bf16.mxu0 %vm8998_vm0, %v8997_v0  ;;  %7347 = vmatprep.subr.bf16.mxu0 %v8997_v0 }
 0x36d   :  { %7717 = vmatprep.mubr.msk.bf16.mxu1 %vm8998_vm0, %v8997_v0  ;;  %7743 = vmatprep.subr.bf16.mxu1 %v8997_v0 }
 0x36f   :  { %7348 = vmatpush3.bf16.msra.mxu0 %v8982_v31  ;;  %7744 = vmatpush3.bf16.msra.mxu1 %v8982_v31  ;;  %v8900_v31 = vld [vmem:[%s11127_s0 + $0x2f0] sm:$0xff]  }
 0x370   :  { %7349 = vmatprep.subr.bf16.mxu0 %v8997_v0  ;;  %7745 = vmatprep.subr.bf16.mxu1 %v8997_v0 }
 0x372   :  { %7322 = vmatmul.mubr.bf16.gmra.mrb[32].mxu0 %v8885_v4  ;;  %7718 = vmatmul.mubr.bf16.gmra.mrb[32].mxu1 %v10794_v27  ;;  %v8992_v4 = vld [vmem:[%s11126_s1 + $0x218] sm:$0xff]  }
 0x373   :  { %7325 = vmatprep.mubr.msk.bf16.mxu0 %vm8998_vm0, %v8997_v0  ;;  %7350 = vmatpush3.bf16.msra.mxu0 %v8983_v36 }
 0x374   :  { %7721 = vmatprep.mubr.msk.bf16.mxu1 %vm8998_vm0, %v8997_v0  ;;  %7746 = vmatpush3.bf16.msra.mxu1 %v8983_v36  ;;  %v8994_v36 = vld [vmem:[%s11126_s1 + $0x228] sm:$0xff]  }
 0x375   :  { %7351 = vmatprep.subr.bf16.mxu0 %v8997_v0  ;;  %7747 = vmatprep.subr.bf16.mxu1 %v8997_v0 }
 0x377   :  { %7352 = vmatpush3.bf16.msra.mxu0 %v8984_v40 }
 0x378   :  { %7748 = vmatpush3.bf16.msra.mxu1 %v8984_v40  ;;  %7353 = vmatprep.subr.bf16.mxu0 %v8997_v0  ;;  %v8996_v40 = vld [vmem:[%s11126_s1 + $0x238] sm:$0xff]  }
 0x379   :  { %7749 = vmatprep.subr.bf16.mxu1 %v8997_v0 }
 0x37a   :  { %7326 = vmatmul.mubr.bf16.gmra.mrb[36].mxu0 %v8887_v59  ;;  %7722 = vmatmul.mubr.bf16.gmra.mrb[36].mxu1 %v10817_v47  ;;  %v8995_v59 = vld [vmem:[%s11126_s1 + $0x230] sm:$0xff]  }
 0x37b   :  { %7329 = vmatprep.mubr.msk.bf16.mxu0 %vm8998_vm0, %v8997_v0  ;;  %7725 = vmatprep.mubr.msk.bf16.mxu1 %vm8998_vm0, %v8997_v0 }
 0x37c   :  { %7354 = vmatpush3.bf16.msra.mxu0 %v8985_v14  ;;  %7750 = vmatpush3.bf16.msra.mxu1 %v8985_v14  ;;  %v8902_v14 = vld [vmem:[%s11127_s0 + $0x300] sm:$0xff]  }
 0x37d   :  { %7355 = vmatprep.subr.bf16.mxu0 %v8997_v0  ;;  %7751 = vmatprep.subr.bf16.mxu1 %v8997_v0 }
 0x380   :  { %7356 = vmatpush3.bf16.msra.mxu0 %v8986_v6  ;;  %7752 = vmatpush3.bf16.msra.mxu1 %v8986_v6  ;;  %v8905_v6 = vld [vmem:[%s11127_s0 + $0x314] sm:$0xff]  }
 0x381   :  { %7357 = vmatprep.subr.bf16.mxu0 %v8997_v0  ;;  %7753 = vmatprep.subr.bf16.mxu1 %v8997_v0 }
 0x382   :  { %7330 = vmatmul.mubr.bf16.gmra.mrb[40].mxu0 %v8889_v15  ;;  %7726 = vmatmul.mubr.bf16.gmra.mrb[40].mxu1 %v10840_v5  ;;  %v8903_v15 = vld [vmem:[%s11127_s0 + $0x308] ss:$0 sps:$4 sm:$0x11]  }
 0x383   :  { %7333 = vmatprep.mubr.msk.bf16.mxu0 %vm8998_vm0, %v8997_v0  ;;  %7729 = vmatprep.mubr.msk.bf16.mxu1 %vm8998_vm0, %v8997_v0 }
 0x384   :  { %7358 = vmatpush3.bf16.msra.mxu0 %v8987_v8  ;;  %7754 = vmatpush3.bf16.msra.mxu1 %v8987_v8  ;;  %v8906_v8 = vld [vmem:[%s11127_s0 + $0x31c] sm:$0xff]  }
 0x385   :  { %7359 = vmatprep.subr.bf16.mxu0 %v8997_v0  ;;  %7755 = vmatprep.subr.bf16.mxu1 %v8997_v0 }
 0x388   :  { %7360 = vmatpush3.bf16.msra.mxu0 %v8988_v21  ;;  %7756 = vmatpush3.bf16.msra.mxu1 %v8988_v21  ;;  %v8909_v21 = vld [vmem:[%s11127_s0 + $0x334] sm:$0xff]  }
 0x389   :  { %7389 = vmatprep.subr.bf16.mxu0 %v8997_v0  ;;  %7785 = vmatprep.subr.bf16.mxu1 %v8997_v0 }
 0x38a   :  { %7334 = vmatmul.mubr.bf16.gmra.mrb[44].mxu0 %v8891_v9  ;;  %7730 = vmatmul.mubr.bf16.gmra.mrb[44].mxu1 %v10863_v12  ;;  %v8907_v9 = vld [vmem:[%s11127_s0 + $0x324] sm:$0xff]  }
 0x38b   :  { %7337 = vmatprep.mubr.msk.bf16.mxu0 %vm8998_vm0, %v8997_v0  ;;  %7733 = vmatprep.mubr.msk.bf16.mxu1 %vm8998_vm0, %v8997_v0 }
 0x392   :  { %7338 = vmatmul.mubr.bf16.gmra.mrb[48].mxu0 %v8893_v46  ;;  %7734 = vmatmul.mubr.bf16.gmra.mrb[48].mxu1 %v10881_v13  ;;  %v8910_v46 = vld [vmem:[%s11127_s0 + $0x33c] ss:$0 sps:$4 sm:$0x11]  }
 0x393   :  { %7341 = vmatprep.mubr.msk.bf16.mxu0 %vm8998_vm0, %v8997_v0  ;;  %7737 = vmatprep.mubr.msk.bf16.mxu1 %vm8998_vm0, %v8997_v0 }
 0x39a   :  { %7342 = vmatmul.mubr.bf16.gmra.mrb[52].mxu0 %v8895_v53  ;;  %7738 = vmatmul.mubr.bf16.gmra.mrb[52].mxu1 %v10894_v25 }
 0x39b   :  { %7361 = vmatprep.mubr.msk.bf16.mxu0 %vm8998_vm0, %v8997_v0  ;;  %7757 = vmatprep.mubr.msk.bf16.mxu1 %vm8998_vm0, %v8997_v0 }
 0x3a2   :  { %7362 = vmatmul.mubr.bf16.vlgmr.msra.gmra.mrb[28].mxu0 %v10776_v43  ;;  %7758 = vmatmul.mubr.bf16.vlgmr.msra.gmra.mrb[28].mxu1 %v10904_v30  ;;  %v8991_v43 = vld [vmem:[%s11126_s1 + $0x210] sm:$0xff]  }
 0x3a3   :  { %7390 = vmatpush3.bf16.msra.mxu0 %v8989_v60  ;;  %7786 = vmatpush3.bf16.msra.mxu1 %v8989_v60 }
 0x3a4   :  { %7365 = vmatprep.mubr.msk.bf16.mxu0 %vm8998_vm0, %v8997_v0  ;;  %7391 = vmatprep.subr.bf16.mxu0 %v8997_v0 }
 0x3a5   :  { %7761 = vmatprep.mubr.msk.bf16.mxu1 %vm8998_vm0, %v8997_v0  ;;  %7787 = vmatprep.subr.bf16.mxu1 %v8997_v0 }
 0x3a7   :  { %7392 = vmatpush3.bf16.msra.mxu0 %v8990_v42  ;;  %7788 = vmatpush3.bf16.msra.mxu1 %v8990_v42 }
 0x3a8   :  { %7393 = vmatprep.subr.bf16.mxu0 %v8997_v0  ;;  %7789 = vmatprep.subr.bf16.mxu1 %v8997_v0 }
 0x3aa   :  { %7366 = vmatmul.mubr.bf16.gmra.mrb[32].mxu0 %v10794_v27  ;;  %7762 = vmatmul.mubr.bf16.gmra.mrb[32].mxu1 %v10920_v37  ;;  %v8993_v27 = vld [vmem:[%s11126_s1 + $0x220] sm:$0xff]  }
 0x3ab   :  { %7369 = vmatprep.mubr.msk.bf16.mxu0 %vm8998_vm0, %v8997_v0  ;;  %7394 = vmatpush3.bf16.msra.mxu0 %v8991_v43 }
 0x3ac   :  { %7765 = vmatprep.mubr.msk.bf16.mxu1 %vm8998_vm0, %v8997_v0  ;;  %7790 = vmatpush3.bf16.msra.mxu1 %v8991_v43 }
 0x3ad   :  { %7395 = vmatprep.subr.bf16.mxu0 %v8997_v0  ;;  %7791 = vmatprep.subr.bf16.mxu1 %v8997_v0 }
 0x3af   :  { %7396 = vmatpush3.bf16.msra.mxu0 %v8992_v4 }
 0x3b0   :  { %7792 = vmatpush3.bf16.msra.mxu1 %v8992_v4  ;;  %7397 = vmatprep.subr.bf16.mxu0 %v8997_v0 }
 0x3b1   :  { %7793 = vmatprep.subr.bf16.mxu1 %v8997_v0 }
 0x3b2   :  { %7370 = vmatmul.mubr.bf16.gmra.mrb[36].mxu0 %v10817_v47  ;;  %7766 = vmatmul.mubr.bf16.gmra.mrb[36].mxu1 %v8899_v45  ;;  %v8901_v47 = vld [vmem:[%s11127_s0 + $0x2f8] sm:$0xff]  }
 0x3b3   :  { %7373 = vmatprep.mubr.msk.bf16.mxu0 %vm8998_vm0, %v8997_v0  ;;  %7769 = vmatprep.mubr.msk.bf16.mxu1 %vm8998_vm0, %v8997_v0 }
 0x3b4   :  { %7398 = vmatpush3.bf16.msra.mxu0 %v8993_v27  ;;  %7794 = vmatpush3.bf16.msra.mxu1 %v8993_v27 }
 0x3b5   :  { %7399 = vmatprep.subr.bf16.mxu0 %v8997_v0  ;;  %7795 = vmatprep.subr.bf16.mxu1 %v8997_v0 }
 0x3b8   :  { %7400 = vmatpush3.bf16.msra.mxu0 %v8994_v36  ;;  %7796 = vmatpush3.bf16.msra.mxu1 %v8994_v36 }
 0x3b9   :  { %7401 = vmatprep.subr.bf16.mxu0 %v8997_v0  ;;  %7797 = vmatprep.subr.bf16.mxu1 %v8997_v0 }
 0x3ba   :  { %7374 = vmatmul.mubr.bf16.gmra.mrb[40].mxu0 %v10840_v5  ;;  %7770 = vmatmul.mubr.bf16.gmra.mrb[40].mxu1 %v8900_v31  ;;  %v8904_v5 = vld [vmem:[%s11127_s0 + $0x30c] sm:$0xff]  }
 0x3bb   :  { %7377 = vmatprep.mubr.msk.bf16.mxu0 %vm8998_vm0, %v8997_v0  ;;  %7773 = vmatprep.mubr.msk.bf16.mxu1 %vm8998_vm0, %v8997_v0 }
 0x3bc   :  { %7402 = vmatpush3.bf16.msra.mxu0 %v8995_v59  ;;  %7798 = vmatpush3.bf16.msra.mxu1 %v8995_v59 }
 0x3bd   :  { %7403 = vmatprep.subr.bf16.mxu0 %v8997_v0  ;;  %7799 = vmatprep.subr.bf16.mxu1 %v8997_v0 }
 0x3c0   :  { %7404 = vmatpush3.bf16.msra.mxu0 %v8996_v40  ;;  %7800 = vmatpush3.bf16.msra.mxu1 %v8996_v40 }
 0x3c2   :  { %7378 = vmatmul.mubr.bf16.gmra.mrb[44].mxu0 %v10863_v12  ;;  %7774 = vmatmul.mubr.bf16.gmra.mrb[44].mxu1 %v8901_v47  ;;  %v8908_v12 = vld [vmem:[%s11127_s0 + $0x32c] sm:$0xff]  }
 0x3c3   :  { %7381 = vmatprep.mubr.msk.bf16.mxu0 %vm8998_vm0, %v8997_v0  ;;  %7777 = vmatprep.mubr.msk.bf16.mxu1 %vm8998_vm0, %v8997_v0 }
 0x3ca   :  { %7382 = vmatmul.mubr.bf16.gmra.mrb[48].mxu0 %v10881_v13  ;;  %7778 = vmatmul.mubr.bf16.gmra.mrb[48].mxu1 %v8902_v14 }
 0x3cb   :  { %7385 = vmatprep.mubr.msk.bf16.mxu0 %vm8998_vm0, %v8997_v0  ;;  %7781 = vmatprep.mubr.msk.bf16.mxu1 %vm8998_vm0, %v8997_v0 }
 0x3d2   :  { %7386 = vmatmul.mubr.bf16.gmra.mrb[52].mxu0 %v10894_v25  ;;  %7782 = vmatmul.mubr.bf16.gmra.mrb[52].mxu1 %v8903_v15 }
 0x3d3   :  { %7405 = vmatprep.mubr.msk.bf16.mxu0 %vm8998_vm0, %v8997_v0  ;;  %7801 = vmatprep.mubr.msk.bf16.mxu1 %vm8998_vm0, %v8997_v0 }
 0x3da   :  { %7406 = vmatmul.mubr.bf16.vlgmr.msra.gmra.mrb[28].mxu0 %v10904_v30  ;;  %7802 = vmatmul.mubr.bf16.vlgmr.msra.gmra.mrb[28].mxu1 %v8904_v5 }
 0x3db   :  { %7409 = vmatprep.mubr.msk.bf16.mxu0 %vm8998_vm0, %v8997_v0  ;;  %7805 = vmatprep.mubr.msk.bf16.mxu1 %vm8998_vm0, %v8997_v0 }
 0x3e2   :  { %7410 = vmatmul.mubr.bf16.gmra.mrb[32].mxu0 %v10920_v37  ;;  %7806 = vmatmul.mubr.bf16.gmra.mrb[32].mxu1 %v8905_v6  ;;  %v11054_v37 = vld [vmem:[%s11128_s2] ss:$0 sm:$0xff] }
 0x3e3   :  { %7413 = vmatprep.mubr.msk.bf16.mxu0 %vm8998_vm0, %v8997_v0  ;;  %7809 = vmatprep.mubr.msk.bf16.mxu1 %vm8998_vm0, %v8997_v0 }
 0x3ea   :  { %7414 = vmatmul.mubr.bf16.gmra.mrb[36].mxu0 %v8899_v45  ;;  %7810 = vmatmul.mubr.bf16.gmra.mrb[36].mxu1 %v8906_v8 }
 0x3eb   :  { %7417 = vmatprep.mubr.msk.bf16.mxu0 %vm8998_vm0, %v8997_v0  ;;  %7813 = vmatprep.mubr.msk.bf16.mxu1 %vm8998_vm0, %v8997_v0 }
 0x3f2   :  { %7418 = vmatmul.mubr.bf16.gmra.mrb[40].mxu0 %v8900_v31  ;;  %7814 = vmatmul.mubr.bf16.gmra.mrb[40].mxu1 %v8907_v9 }
 0x3f3   :  { %7421 = vmatprep.mubr.msk.bf16.mxu0 %vm8998_vm0, %v8997_v0  ;;  %7817 = vmatprep.mubr.msk.bf16.mxu1 %vm8998_vm0, %v8997_v0 }
 0x3fa   :  { %7422 = vmatmul.mubr.bf16.gmra.mrb[44].mxu0 %v8901_v47  ;;  %7818 = vmatmul.mubr.bf16.gmra.mrb[44].mxu1 %v8908_v12 }
 0x3fb   :  { %7425 = vmatprep.mubr.msk.bf16.mxu0 %vm8998_vm0, %v8997_v0  ;;  %7821 = vmatprep.mubr.msk.bf16.mxu1 %vm8998_vm0, %v8997_v0 }
 0x402   :  { %7426 = vmatmul.mubr.bf16.gmra.mrb[48].mxu0 %v8902_v14  ;;  %7822 = vmatmul.mubr.bf16.gmra.mrb[48].mxu1 %v8909_v21 }
 0x403   :  { %7429 = vmatprep.mubr.msk.bf16.mxu0 %vm8998_vm0, %v8997_v0  ;;  %7825 = vmatprep.mubr.msk.bf16.mxu1 %vm8998_vm0, %v8997_v0 }
 0x40a   :  { %7430 = vmatmul.mubr.bf16.gmra.mrb[52].mxu0 %v8903_v15  ;;  %7826 = vmatmul.mubr.bf16.gmra.mrb[52].mxu1 %v8910_v46 }
 0x4ad   :  { %v4003_v13 = vpop.f32.mrb[28].mxu0  ;;  %v4953_v53 = vpop.f32.mrb[28].mxu1 }
 0x4ae   :  { %v4070_v25 = vmax.f32 %v3012_v29, %v4003_v13  ;;  %v7407_v30 = vpop.f32.mrb[29].mxu0  ;;  %v7803_v60 = vpop.f32.mrb[29].mxu1 }
 0x4af   :  { %v4006_v0 = vpop.f32.mrb[30].mxu0  ;;  %v4956_v42 = vpop.f32.mrb[30].mxu1 }
 0x4b0   :  { %v5020_v43 = vmax.f32 %v4070_v25, %v4953_v53  ;;  %v4071_v45 = vmax.f32 %v3013_v41, %v4006_v0  ;;  %v7408_v4 = vpop.f32.mrb[31].mxu0  ;;  %v7804_v27 = vpop.f32.mrb[31].mxu1 }
 0x4b2   :  { %v5040_v31 = vadd.f32 %v11054_v37, %v5020_v43  ;;  %v5021_v23 = vmax.f32 %v4071_v45, %v4956_v42 }
 0x4b4   :  { %v5041_v26 = vadd.f32 %v11054_v37, %v5021_v23  ;;  %v5053_v59 = vmax.f32 %v5040_v31, 0.0 }
 0x4b5   :  { %v4011_v29 = vpop.f32.mrb[32].mxu0  ;;  %v4961_v36 = vpop.f32.mrb[32].mxu1 }
 0x4b6   :  { %v5054_v47 = vmax.f32 %v5041_v26, 0.0  ;;  %v4072_v40 = vmax.f32 %v3014_v2, %v4011_v29  ;;  %v7411_v14 = vpop.f32.mrb[33].mxu0  ;;  %v7807_v15 = vpop.f32.mrb[33].mxu1 }
 0x4b7   :  { %v4014_v5 = vpop.f32.mrb[34].mxu0  ;;  %v4964_v38 = vpop.f32.mrb[34].mxu1 }
 0x4b8   :  { %v5673_v33 = vpack.c.bf16 %v5054_v47, %v5053_v59  ;;  %v5022_v41 = vmax.f32 %v4072_v40, %v4961_v36  ;;  %v4073_v6 = vmax.f32 %v3015_v49, %v4014_v5  ;;  %v7412_v8 = vpop.f32.mrb[35].mxu0  ;;  %v7808_v9 = vpop.f32.mrb[35].mxu1 }
 0x4ba   :  { %5674 = vst [vmem:[%s11129_s3] sm:$0xff] %v5673_v33   ;;  %v5042_v12 = vadd.f32 %v11054_v37, %v5022_v41  ;;  %v5023_v48 = vmax.f32 %v4073_v6, %v4964_v38 }
 0x4bc   :  { %v5043_v61 = vadd.f32 %v11054_v37, %v5023_v48  ;;  %v5055_v46 = vmax.f32 %v5042_v12, 0.0 }
 0x4bd   :  { %v4019_v2 = vpop.f32.mrb[36].mxu0  ;;  %v4969_v21 = vpop.f32.mrb[36].mxu1 }
 0x4be   :  { %v5056_v13 = vmax.f32 %v5043_v61, 0.0  ;;  %v4074_v28 = vmax.f32 %v3016_v50, %v4019_v2  ;;  %v7415_v34 = vpop.f32.mrb[37].mxu0  ;;  %v7811_v49 = vpop.f32.mrb[37].mxu1 }
 0x4bf   :  { %v4022_v53 = vpop.f32.mrb[38].mxu0  ;;  %v4972_v25 = vpop.f32.mrb[38].mxu1 }
 0x4c0   :  { %v5678_v30 = vpack.c.bf16 %v5056_v13, %v5055_v46  ;;  %v5024_v60 = vmax.f32 %v4074_v28, %v4969_v21  ;;  %v4075_v0 = vmax.f32 %v3017_v11, %v4022_v53  ;;  %v7416_v42 = vpop.f32.mrb[39].mxu0  ;;  %v7812_v43 = vpop.f32.mrb[39].mxu1  ;;  %v11130_v53 = vmax.f32 %v10555_v22, %v10557_v24 }
 0x4c2   :  { %5700 = vst [vmem:[%s11129_s3 + $0x8] sm:$0xff] %v5678_v30   ;;  %v5044_v45 = vadd.f32 %v11054_v37, %v5024_v60  ;;  %v5025_v3 = vmax.f32 %v4075_v0, %v4972_v25 }
 0x4c4   :  { %v5045_v52 = vadd.f32 %v11054_v37, %v5025_v3  ;;  %v5057_v27 = vmax.f32 %v5044_v45, 0.0 }
 0x4c5   :  { %v4027_v50 = vpop.f32.mrb[40].mxu0  ;;  %v4977_v4 = vpop.f32.mrb[40].mxu1 }
 0x4c6   :  { %v5058_v31 = vmax.f32 %v5045_v52, 0.0  ;;  %v4076_v56 = vmax.f32 %v3018_v54, %v4027_v50  ;;  %v7419_v57 = vpop.f32.mrb[41].mxu0  ;;  %v7815_v11 = vpop.f32.mrb[41].mxu1 }
 0x4c7   :  { %v4030_v23 = vpop.f32.mrb[42].mxu0  ;;  %v4980_v26 = vpop.f32.mrb[42].mxu1 }
 0x4c8   :  { %v5683_v29 = vpack.c.bf16 %v5058_v31, %v5057_v27  ;;  %v5026_v36 = vmax.f32 %v4076_v56, %v4977_v4  ;;  %v4077_v59 = vmax.f32 %v3019_v44, %v4030_v23  ;;  %v7420_v47 = vpop.f32.mrb[43].mxu0  ;;  %v7816_v40 = vpop.f32.mrb[43].mxu1 }
 0x4ca   :  { %5701 = vst [vmem:[%s11129_s3 + $0x10] sm:$0xff] %v5683_v29   ;;  %v5046_v14 = vadd.f32 %v11054_v37, %v5026_v36  ;;  %v5027_v17 = vmax.f32 %v4077_v59, %v4980_v26 }
 0x4cc   :  { %v5047_v18 = vadd.f32 %v11054_v37, %v5027_v17  ;;  %v5059_v5 = vmax.f32 %v5046_v14, 0.0 }
 0x4cd   :  { %v4035_v54 = vpop.f32.mrb[44].mxu0  ;;  %v4985_v15 = vpop.f32.mrb[44].mxu1 }
 0x4ce   :  { %v5060_v38 = vmax.f32 %v5047_v18, 0.0  ;;  %v4078_v20 = vmax.f32 %v3020_v58, %v4035_v54  ;;  %v7423_v32 = vpop.f32.mrb[45].mxu0  ;;  %v7819_v44 = vpop.f32.mrb[45].mxu1 }
 0x4cf   :  { %v4038_v33 = vpop.f32.mrb[46].mxu0  ;;  %v4988_v41 = vpop.f32.mrb[46].mxu1 }
 0x4d0   :  { %v5688_v6 = vpack.c.bf16 %v5060_v38, %v5059_v5  ;;  %v5028_v8 = vmax.f32 %v4078_v20, %v4985_v15  ;;  %v4079_v9 = vmax.f32 %v3021_v10, %v4038_v33  ;;  %v7424_v12 = vpop.f32.mrb[47].mxu0  ;;  %v7820_v48 = vpop.f32.mrb[47].mxu1 }
 0x4d2   :  { %5702 = vst [vmem:[%s11129_s3 + $0x18] sm:$0xff] %v5688_v6   ;;  %v5048_v61 = vadd.f32 %v11054_v37, %v5028_v8  ;;  %v5029_v39 = vmax.f32 %v4079_v9, %v4988_v41 }
 0x4d4   :  { %v5049_v62 = vadd.f32 %v11054_v37, %v5029_v39  ;;  %v5061_v21 = vmax.f32 %v5048_v61, 0.0 }
 0x4d5   :  { %v4043_v58 = vpop.f32.mrb[48].mxu0  ;;  %v4993_v2 = vpop.f32.mrb[48].mxu1 }
 0x4d6   :  { %v5062_v46 = vmax.f32 %v5049_v62, 0.0  ;;  %v4080_v51 = vmax.f32 %v3022_v63, %v4043_v58  ;;  %v7427_v7 = vpop.f32.mrb[49].mxu0  ;;  %v7823_v10 = vpop.f32.mrb[49].mxu1 }
 0x4d7   :  { %v4046_v13 = vpop.f32.mrb[50].mxu0  ;;  %v4996_v28 = vpop.f32.mrb[50].mxu1 }
 0x4d8   :  { %v5693_v34 = vpack.c.bf16 %v5062_v46, %v5061_v21  ;;  %v5030_v49 = vmax.f32 %v4080_v51, %v4993_v2  ;;  %v4081_v25 = vmax.f32 %v11130_v53, %v4046_v13  ;;  %v7428_v30 = vpop.f32.mrb[51].mxu0  ;;  %v7824_v60 = vpop.f32.mrb[51].mxu1 }
 0x4da   :  { %5703 = vst [vmem:[%s11129_s3 + $0x20] sm:$0xff] %v5693_v34   ;;  %v5050_v0 = vadd.f32 %v11054_v37, %v5030_v49  ;;  %v5031_v19 = vmax.f32 %v4081_v25, %v4996_v28 }
 0x4dc   :  { %v5051_v35 = vadd.f32 %v11054_v37, %v5031_v19  ;;  %v5063_v43 = vmax.f32 %v5050_v0, 0.0 }
 0x4dd   :  { %v4051_v63 = vpop.f32.mrb[52].mxu0  ;;  %v5001_v42 = vpop.f32.mrb[52].mxu1 }
 0x4de   :  { %v5064_v45 = vmax.f32 %v5051_v35, 0.0  ;;  %v4082_v22 = vmax.f32 %v3024_v1, %v4051_v63  ;;  %v7431_v24 = vpop.f32.mrb[53].mxu0  ;;  %v7827_v3 = vpop.f32.mrb[53].mxu1 }
 0x4df   :  { %v4054_v52 = vpop.f32.mrb[54].mxu0  ;;  %v5004_v50 = vpop.f32.mrb[54].mxu1 }
 0x4e0   :  { %v5698_v4 = vpack.c.bf16 %v5064_v45, %v5063_v43  ;;  %v5032_v27 = vmax.f32 %v4082_v22, %v5001_v42  ;;  %v7432_v31 = vpop.f32.mrb[55].mxu0  ;;  %v7828_v56 = vpop.f32.mrb[55].mxu1 }
 0x4e2   :  { %5704 = vst [vmem:[%s11129_s3 + $0x28] sm:$0xff] %v5698_v4   ;;  %v5052_v57 = vadd.f32 %v11054_v37, %v5032_v27 }
 0x4e4   :  { %v5065_v11 = vmax.f32 %v5052_v57, 0.0 }
 0x4e6   :  { %v5669_v23 = vpack.c.bf16 %v5065_v11, %v5065_v11 }
 0x4e8   :  { %5131 = vst [vmem:[%s11129_s3 + $0x30] sm:$0x1] %v5669_v23 }

// kernel: net_forward.7
= control target key start
LH: loop header
LB: loop body
LE: loop exit
PB: predicated region body
PF: predicated region fallthrough
CT: control target
= control target key end

     0   :  { %v458_v36 = vlaneseq  ;;  %v4713_v37 = vmov 1966171168   ;;  %s6072_s0 = inlined_call_operand.vmem [shape: bf16[2,1152], index: 0, kind: input, shape index: {}]   ;;  %s6073_s1 = inlined_call_operand.vmem [shape: bf16[1152,640], index: 1, kind: input, shape index: {}]   ;;  %s6074_s2 = inlined_call_operand.vmem [shape: f32[1,640], index: 2, kind: input, shape index: {}]   ;;  %s6075_s3 = inlined_call_operand.vmem [shape: bf16[640,128], index: 3, kind: input, shape index: {}]   ;;  %s6076_s4 = inlined_call_operand.vmem [shape: f32[1,128], index: 4, kind: input, shape index: {}]   ;;  %s6077_s5 = inlined_call_operand.hbm [shape: f32[2,128], index: 5, kind: output, shape index: {}]  }
   0x1   :  { %v4144_v0 = vld [vmem:[%s6073_s1 + $0x4] ss:$20 sps:$4 sm:$0xff]   ;;  %v4146_v1 = vld [vmem:[%s6073_s1 + $0xc] ss:$20 sps:$4 sm:$0xff]   ;;  %v4149_v3 = vld [vmem:[%s6073_s1 + $0x8] ss:$20 sps:$4 sm:$0xff]   ;;  %v487_v38 = vunpack.c.l.s4 %v4713_v37 }
   0x2   :  { %2429 = vmatprep.subr.bf16.mxu0 %v4144_v0  ;;  %v4148_v2 = vld [vmem:[%s6073_s1] ss:$20 sps:$4 sm:$0xff]   ;;  %2634 = vmatprep.subr.bf16.mxu1 %v4146_v1  ;;  %v4154_v6 = vld [vmem:[%s6073_s1 + $0x28] ss:$20 sps:$4 sm:$0xff]   ;;  %v4155_v7 = vld [vmem:[%s6073_s1 + $0x30] ss:$20 sps:$4 sm:$0xff]  }
   0x3   :  { %v4150_v4 = vld [vmem:[%s6073_s1 + $0x2c] ss:$20 sps:$4 sm:$0xff]   ;;  %2430 = vmatpush1.bf16.msra.mxu0 %v4148_v2  ;;  %2635 = vmatpush1.bf16.msra.mxu1 %v4149_v3  ;;  %v4152_v5 = vld [vmem:[%s6073_s1 + $0x34] ss:$20 sps:$4 sm:$0xff]   ;;  %v4158_v9 = vld [vmem:[%s6073_s1 + $0x5c] ss:$20 sps:$4 sm:$0xff]   ;;  %v488_v43 = vunpack.c.0.s8 %v487_v38 }
   0x4   :  { %2431 = vmatprep.subr.bf16.mxu0 %v4150_v4  ;;  %2636 = vmatprep.subr.bf16.mxu1 %v4152_v5  ;;  %v4156_v8 = vld [vmem:[%s6073_s1 + $0x54] ss:$20 sps:$4 sm:$0xff]   ;;  %v4160_v10 = vld [vmem:[%s6073_s1 + $0x50] ss:$20 sps:$4 sm:$0xff]   ;;  %v4161_v11 = vld [vmem:[%s6073_s1 + $0x58] ss:$20 sps:$4 sm:$0xff]  }
   0x5   :  { %v4162_v12 = vld [vmem:[%s6073_s1 + $0x7c] ss:$20 sps:$4 sm:$0xff]   ;;  %v4164_v13 = vld [vmem:[%s6073_s1 + $0x84] ss:$20 sps:$4 sm:$0xff]   ;;  %v4167_v15 = vld [vmem:[%s6073_s1 + $0x80] ss:$20 sps:$4 sm:$0xff]  }
   0x6   :  { %v4166_v14 = vld [vmem:[%s6073_s1 + $0x78] ss:$20 sps:$4 sm:$0xff]   ;;  %v4172_v18 = vld [vmem:[%s6073_s1 + $0xa0] ss:$20 sps:$4 sm:$0xff]   ;;  %v4173_v19 = vld [vmem:[%s6073_s1 + $0xa8] ss:$20 sps:$4 sm:$0xff]  }
   0x7   :  { %2432 = vmatpush1.bf16.msra.mxu0 %v4154_v6  ;;  %2637 = vmatpush1.bf16.msra.mxu1 %v4155_v7  ;;  %v4168_v16 = vld [vmem:[%s6073_s1 + $0xa4] ss:$20 sps:$4 sm:$0xff]   ;;  %v4170_v17 = vld [vmem:[%s6073_s1 + $0xac] ss:$20 sps:$4 sm:$0xff]   ;;  %v4176_v21 = vld [vmem:[%s6073_s1 + $0xd4] ss:$20 sps:$4 sm:$0xff]  }
   0x8   :  { %2433 = vmatprep.subr.bf16.mxu0 %v4156_v8  ;;  %2638 = vmatprep.subr.bf16.mxu1 %v4158_v9  ;;  %v4174_v20 = vld [vmem:[%s6073_s1 + $0xcc] ss:$20 sps:$4 sm:$0xff]   ;;  %v4178_v22 = vld [vmem:[%s6073_s1 + $0xc8] ss:$20 sps:$4 sm:$0xff]   ;;  %v4179_v23 = vld [vmem:[%s6073_s1 + $0xd0] ss:$20 sps:$4 sm:$0xff]  }
   0x9   :  { %v4180_v24 = vld [vmem:[%s6073_s1 + $0xf4] ss:$20 sps:$4 sm:$0xff]   ;;  %v4182_v25 = vld [vmem:[%s6073_s1 + $0xfc] ss:$20 sps:$4 sm:$0xff]   ;;  %v4185_v27 = vld [vmem:[%s6073_s1 + $0xf8] ss:$20 sps:$4 sm:$0xff]  }
   0xa   :  { %v4184_v26 = vld [vmem:[%s6073_s1 + $0xf0] ss:$20 sps:$4 sm:$0xff]   ;;  %v4190_v30 = vld [vmem:[%s6073_s1 + $0x118] ss:$20 sps:$4 sm:$0xff]   ;;  %v4191_v31 = vld [vmem:[%s6073_s1 + $0x120] ss:$20 sps:$4 sm:$0xff]  }
   0xb   :  { %2434 = vmatpush1.bf16.msra.mxu0 %v4160_v10  ;;  %2639 = vmatpush1.bf16.msra.mxu1 %v4161_v11  ;;  %v4186_v28 = vld [vmem:[%s6073_s1 + $0x11c] ss:$20 sps:$4 sm:$0xff]   ;;  %v4188_v29 = vld [vmem:[%s6073_s1 + $0x124] ss:$20 sps:$4 sm:$0xff]   ;;  %v4194_v33 = vld [vmem:[%s6073_s1 + $0x14c] ss:$20 sps:$4 sm:$0xff]  }
   0xc   :  { %2435 = vmatprep.subr.bf16.mxu0 %v4162_v12  ;;  %2640 = vmatprep.subr.bf16.mxu1 %v4164_v13  ;;  %v4192_v32 = vld [vmem:[%s6073_s1 + $0x144] ss:$20 sps:$4 sm:$0xff]   ;;  %v4196_v34 = vld [vmem:[%s6073_s1 + $0x140] ss:$20 sps:$4 sm:$0xff]   ;;  %v4197_v35 = vld [vmem:[%s6073_s1 + $0x148] ss:$20 sps:$4 sm:$0xff]  }
   0xd   :  { %v4198_v39 = vld [vmem:[%s6073_s1 + $0x16c] ss:$20 sps:$4 sm:$0xff]   ;;  %v4200_v40 = vld [vmem:[%s6073_s1 + $0x174] ss:$20 sps:$4 sm:$0xff]   ;;  %v4865_v42 = vshrl.u32 %v458_v36, 7 }
   0xe   :  { %v4202_v41 = vld [vmem:[%s6073_s1 + $0x168] ss:$20 sps:$4 sm:$0xff]   ;;  %v4203_v44 = vld [vmem:[%s6073_s1 + $0x170] ss:$20 sps:$4 sm:$0xff]   ;;  %v4209_v48 = vld [vmem:[%s6073_s1 + $0x198] ss:$20 sps:$4 sm:$0xff]  }
   0xf   :  { %2436 = vmatpush1.bf16.msra.mxu0 %v4166_v14  ;;  %2641 = vmatpush1.bf16.msra.mxu1 %v4167_v15  ;;  %v4204_v45 = vld [vmem:[%s6073_s1 + $0x194] ss:$20 sps:$4 sm:$0xff]   ;;  %v4206_v46 = vld [vmem:[%s6073_s1 + $0x19c] ss:$20 sps:$4 sm:$0xff]   ;;  %v4883_v49 = vsub.s32 %v488_v43, %v4865_v42  ;;  %v4212_v51 = vld [vmem:[%s6073_s1 + $0x1c4] ss:$20 sps:$4 sm:$0xff]  }
  0x10   :  { %2437 = vmatprep.subr.bf16.mxu0 %v4168_v16  ;;  %2642 = vmatprep.subr.bf16.mxu1 %v4170_v17  ;;  %v4208_v47 = vld [vmem:[%s6073_s1 + $0x190] ss:$20 sps:$4 sm:$0xff]   ;;  %v4214_v53 = vld [vmem:[%s6073_s1 + $0x1b8] ss:$20 sps:$4 sm:$0xff]   ;;  %v4215_v55 = vld [vmem:[%s6073_s1 + $0x1c0] ss:$20 sps:$4 sm:$0xff]  }
  0x11   :  { %v4210_v50 = vld [vmem:[%s6073_s1 + $0x1bc] ss:$20 sps:$4 sm:$0xff]   ;;  %v4894_v52 = vld [vmem:[%s6072_s0] sm:$0xff]  ;;  %v4224_v63 = vld [vmem:[%s6073_s1 + $0x214] ss:$20 sps:$4 sm:$0xff]  }
  0x12   :  { %v492_v54 = vrot.slane %v4894_v52, %v4883_v49  ;;  %v4216_v56 = vld [vmem:[%s6073_s1 + $0x1e4] ss:$20 sps:$4 sm:$0xff]   ;;  %v4218_v57 = vld [vmem:[%s6073_s1 + $0x1ec] ss:$20 sps:$4 sm:$0xff]   ;;  %v4221_v61 = vld [vmem:[%s6073_s1 + $0x1e8] ss:$20 sps:$4 sm:$0xff]  }
  0x13   :  { %2438 = vmatpush1.bf16.msra.mxu0 %v4172_v18  ;;  %2643 = vmatpush1.bf16.msra.mxu1 %v4173_v19  ;;  %v4220_v59 = vld [vmem:[%s6073_s1 + $0x1e0] ss:$20 sps:$4 sm:$0xff]   ;;  %v4226_v0 = vld [vmem:[%s6073_s1 + $0x208] ss:$20 sps:$4 sm:$0xff]   ;;  %v4227_v1 = vld [vmem:[%s6073_s1 + $0x210] ss:$20 sps:$4 sm:$0xff]  }
  0x14   :  { %2439 = vmatprep.subr.bf16.mxu0 %v4174_v20  ;;  %2644 = vmatprep.subr.bf16.mxu1 %v4176_v21  ;;  %v500_v58 = vcombine.high %v492_v54, %v492_v54  ;;  %v4222_v62 = vld [vmem:[%s6073_s1 + $0x20c] ss:$20 sps:$4 sm:$0xff]   ;;  %v4228_v2 = vld [vmem:[%s6073_s1 + $0x234] ss:$20 sps:$4 sm:$0xff]   ;;  %v4230_v3 = vld [vmem:[%s6073_s1 + $0x23c] ss:$20 sps:$4 sm:$0xff]   ;;  %v4967_v13 = vrot.slane %v492_v54, %v4883_v49 }
  0x15   :  { %v4232_v4 = vld [vmem:[%s6073_s1 + $0x230] ss:$20 sps:$4 sm:$0xff]   ;;  %v4233_v5 = vld [vmem:[%s6073_s1 + $0x238] ss:$20 sps:$4 sm:$0xff]   ;;  %v4239_v9 = vld [vmem:[%s6073_s1 + $0x260] ss:$20 sps:$4 sm:$0xff]  }
  0x16   :  { %v4914_v60 = vrot.slane %v500_v58, %v4883_v49  ;;  %v4234_v6 = vld [vmem:[%s6073_s1 + $0x25c] ss:$20 sps:$4 sm:$0xff]   ;;  %v4236_v7 = vld [vmem:[%s6073_s1 + $0x264] ss:$20 sps:$4 sm:$0xff]   ;;  %v4245_v11 = vld [vmem:[%s6073_s1 + $0x28c] ss:$20 sps:$4 sm:$0xff]  }
  0x17   :  { %2440 = vmatpush1.bf16.msra.mxu0 %v4178_v22  ;;  %2645 = vmatpush1.bf16.msra.mxu1 %v4179_v23  ;;  %v4238_v8 = vld [vmem:[%s6073_s1 + $0x258] ss:$20 sps:$4 sm:$0xff]   ;;  %v4240_v12 = vld [vmem:[%s6073_s1 + $0x280] ss:$20 sps:$4 sm:$0xff]   ;;  %v4243_v14 = vld [vmem:[%s6073_s1 + $0x288] ss:$20 sps:$4 sm:$0xff]  }
  0x18   :  { %2441 = vmatprep.subr.bf16.mxu0 %v4180_v24  ;;  %2646 = vmatprep.subr.bf16.mxu1 %v4182_v25  ;;  %v4242_v10 = vld [vmem:[%s6073_s1 + $0x284] ss:$20 sps:$4 sm:$0xff]   ;;  %v4248_v15 = vld [vmem:[%s6073_s1 + $0x2ac] ss:$20 sps:$4 sm:$0xff]   ;;  %v4251_v16 = vld [vmem:[%s6073_s1 + $0x2b4] ss:$20 sps:$4 sm:$0xff]   ;;  %v4980_v17 = vcombine.high %v4914_v60, %v4914_v60 }
  0x19   :  { %2461 = vmatprep.mubr.bf16.mxu0 %v4914_v60  ;;  %2666 = vmatprep.mubr.bf16.mxu1 %v4914_v60  ;;  %v4246_v18 = vld [vmem:[%s6073_s1 + $0x2a8] ss:$20 sps:$4 sm:$0xff]   ;;  %v4249_v19 = vld [vmem:[%s6073_s1 + $0x2b0] ss:$20 sps:$4 sm:$0xff]   ;;  %v4255_v23 = vld [vmem:[%s6073_s1 + $0x2d8] ss:$20 sps:$4 sm:$0xff]  }
  0x1a   :  { %v4254_v20 = vld [vmem:[%s6073_s1 + $0x2d4] ss:$20 sps:$4 sm:$0xff]   ;;  %v4257_v21 = vld [vmem:[%s6073_s1 + $0x2dc] ss:$20 sps:$4 sm:$0xff]   ;;  %v4263_v25 = vld [vmem:[%s6073_s1 + $0x304] ss:$20 sps:$4 sm:$0xff]  }
  0x1b   :  { %2442 = vmatpush1.bf16.msra.mxu0 %v4184_v26  ;;  %2647 = vmatpush1.bf16.msra.mxu1 %v4185_v27  ;;  %v4252_v22 = vld [vmem:[%s6073_s1 + $0x2d0] ss:$20 sps:$4 sm:$0xff]   ;;  %v4258_v26 = vld [vmem:[%s6073_s1 + $0x2f8] ss:$20 sps:$4 sm:$0xff]   ;;  %v4261_v27 = vld [vmem:[%s6073_s1 + $0x300] ss:$20 sps:$4 sm:$0xff]  }
  0x1c   :  { %2443 = vmatprep.subr.bf16.mxu0 %v4186_v28  ;;  %2648 = vmatprep.subr.bf16.mxu1 %v4188_v29  ;;  %v4260_v24 = vld [vmem:[%s6073_s1 + $0x2fc] ss:$20 sps:$4 sm:$0xff]   ;;  %v4266_v28 = vld [vmem:[%s6073_s1 + $0x324] ss:$20 sps:$4 sm:$0xff]   ;;  %v4269_v29 = vld [vmem:[%s6073_s1 + $0x32c] ss:$20 sps:$4 sm:$0xff]  }
  0x1d   :  { %v4278_v36 = vld [vmem:[%s6073_s1 + $0x374] ss:$20 sps:$4 sm:$0xff]   ;;  %v4281_v37 = vld [vmem:[%s6073_s1 + $0x37c] ss:$20 sps:$4 sm:$0xff]   ;;  %v4282_v43 = vld [vmem:[%s6073_s1 + $0x398] ss:$20 sps:$4 sm:$0xff]  }
  0x1e   :  { %v4276_v38 = vld [vmem:[%s6073_s1 + $0x370] ss:$20 sps:$4 sm:$0xff]   ;;  %v4303_v58 = vld [vmem:[%s6073_s1 + $0x418] ss:$20 sps:$4 sm:$0xff]  }
  0x1f   :  { %2444 = vmatpush1.bf16.msra.mxu0 %v4190_v30  ;;  %2649 = vmatpush1.bf16.msra.mxu1 %v4191_v31  ;;  %v4264_v30 = vld [vmem:[%s6073_s1 + $0x320] ss:$20 sps:$4 sm:$0xff]   ;;  %v4267_v31 = vld [vmem:[%s6073_s1 + $0x328] ss:$20 sps:$4 sm:$0xff]   ;;  %v4297_v54 = vld [vmem:[%s6073_s1 + $0x3f0] ss:$20 sps:$4 sm:$0xff]  }
  0x20   :  { %2445 = vmatprep.subr.bf16.mxu0 %v4192_v32  ;;  %2650 = vmatprep.subr.bf16.mxu1 %v4194_v33  ;;  %v4272_v32 = vld [vmem:[%s6073_s1 + $0x34c] ss:$20 sps:$4 sm:$0xff]   ;;  %v4275_v33 = vld [vmem:[%s6073_s1 + $0x354] ss:$20 sps:$4 sm:$0xff]  }
  0x23   :  { %2446 = vmatpush1.bf16.msra.mxu0 %v4196_v34  ;;  %2651 = vmatpush1.bf16.msra.mxu1 %v4197_v35  ;;  %v4270_v34 = vld [vmem:[%s6073_s1 + $0x348] ss:$20 sps:$4 sm:$0xff]   ;;  %v4273_v35 = vld [vmem:[%s6073_s1 + $0x350] ss:$20 sps:$4 sm:$0xff]  }
  0x24   :  { %2447 = vmatprep.subr.bf16.mxu0 %v4198_v39  ;;  %2652 = vmatprep.subr.bf16.mxu1 %v4200_v40  ;;  %v4279_v39 = vld [vmem:[%s6073_s1 + $0x378] ss:$20 sps:$4 sm:$0xff]   ;;  %v4284_v40 = vld [vmem:[%s6073_s1 + $0x39c] ss:$20 sps:$4 sm:$0xff]  }
  0x27   :  { %2448 = vmatpush1.bf16.msra.mxu0 %v4202_v41  ;;  %2653 = vmatpush1.bf16.msra.mxu1 %v4203_v44  ;;  %v4287_v41 = vld [vmem:[%s6073_s1 + $0x3a4] ss:$20 sps:$4 sm:$0xff]   ;;  %v4285_v44 = vld [vmem:[%s6073_s1 + $0x3a0] ss:$20 sps:$4 sm:$0xff]  }
  0x28   :  { %2449 = vmatprep.subr.bf16.mxu0 %v4204_v45  ;;  %2654 = vmatprep.subr.bf16.mxu1 %v4206_v46  ;;  %v4290_v45 = vld [vmem:[%s6073_s1 + $0x3c4] ss:$20 sps:$4 sm:$0xff]   ;;  %v4293_v46 = vld [vmem:[%s6073_s1 + $0x3cc] ss:$20 sps:$4 sm:$0xff]  }
  0x2b   :  { %2450 = vmatpush1.bf16.msra.mxu0 %v4208_v47  ;;  %2655 = vmatpush1.bf16.msra.mxu1 %v4209_v48  ;;  %v4288_v47 = vld [vmem:[%s6073_s1 + $0x3c0] ss:$20 sps:$4 sm:$0xff]   ;;  %v4291_v48 = vld [vmem:[%s6073_s1 + $0x3c8] ss:$20 sps:$4 sm:$0xff]  }
  0x2c   :  { %2451 = vmatprep.subr.bf16.mxu0 %v4210_v50  ;;  %2656 = vmatprep.subr.bf16.mxu1 %v4212_v51  ;;  %v4296_v50 = vld [vmem:[%s6073_s1 + $0x3ec] ss:$20 sps:$4 sm:$0xff]   ;;  %v4299_v51 = vld [vmem:[%s6073_s1 + $0x3f4] ss:$20 sps:$4 sm:$0xff]  }
  0x2f   :  { %2452 = vmatpush1.bf16.msra.mxu0 %v4214_v53  ;;  %2657 = vmatpush1.bf16.msra.mxu1 %v4215_v55  ;;  %v4294_v53 = vld [vmem:[%s6073_s1 + $0x3e8] ss:$20 sps:$4 sm:$0xff]  }
  0x30   :  { %2453 = vmatprep.subr.bf16.mxu0 %v4216_v56  ;;  %2658 = vmatprep.subr.bf16.mxu1 %v4218_v57  ;;  %v4302_v55 = vld [vmem:[%s6073_s1 + $0x414] ss:$20 sps:$4 sm:$0xff]   ;;  %v4305_v56 = vld [vmem:[%s6073_s1 + $0x41c] ss:$20 sps:$4 sm:$0xff]  }
  0x31   :  { %v4300_v57 = vld [vmem:[%s6073_s1 + $0x410] ss:$20 sps:$4 sm:$0xff]  }
  0x33   :  { %2454 = vmatpush1.bf16.msra.mxu0 %v4220_v59  ;;  %2659 = vmatpush1.bf16.msra.mxu1 %v4221_v61  ;;  %v4308_v59 = vld [vmem:[%s6073_s1 + $0x43c] ss:$20 sps:$4 sm:$0xff]   ;;  %v4311_v61 = vld [vmem:[%s6073_s1 + $0x444] ss:$20 sps:$4 sm:$0xff]  }
  0x34   :  { %2455 = vmatprep.subr.bf16.mxu0 %v4222_v62  ;;  %2660 = vmatprep.subr.bf16.mxu1 %v4224_v63  ;;  %v4306_v62 = vld [vmem:[%s6073_s1 + $0x438] ss:$20 sps:$4 sm:$0xff]   ;;  %v4309_v63 = vld [vmem:[%s6073_s1 + $0x440] ss:$20 sps:$4 sm:$0xff]  }
  0x37   :  { %2456 = vmatpush1.bf16.msra.mxu0 %v4226_v0  ;;  %2661 = vmatpush1.bf16.msra.mxu1 %v4227_v1  ;;  %v4314_v0 = vld [vmem:[%s6073_s1 + $0x464] ss:$20 sps:$4 sm:$0xff]   ;;  %v4317_v1 = vld [vmem:[%s6073_s1 + $0x46c] ss:$20 sps:$4 sm:$0xff]  }
  0x38   :  { %2457 = vmatprep.subr.bf16.mxu0 %v4228_v2  ;;  %2662 = vmatprep.subr.bf16.mxu1 %v4230_v3  ;;  %v4312_v2 = vld [vmem:[%s6073_s1 + $0x460] ss:$20 sps:$4 sm:$0xff]   ;;  %v4315_v3 = vld [vmem:[%s6073_s1 + $0x468] ss:$20 sps:$4 sm:$0xff]  }
  0x3b   :  { %2458 = vmatpush1.bf16.msra.mxu0 %v4232_v4  ;;  %2663 = vmatpush1.bf16.msra.mxu1 %v4233_v5  ;;  %v4320_v4 = vld [vmem:[%s6073_s1 + $0x48c] ss:$20 sps:$4 sm:$0xff]   ;;  %v4323_v5 = vld [vmem:[%s6073_s1 + $0x494] ss:$20 sps:$4 sm:$0xff]  }
  0x3c   :  { %2459 = vmatprep.subr.bf16.mxu0 %v4234_v6  ;;  %2664 = vmatprep.subr.bf16.mxu1 %v4236_v7  ;;  %v4318_v6 = vld [vmem:[%s6073_s1 + $0x488] ss:$20 sps:$4 sm:$0xff]   ;;  %v4321_v7 = vld [vmem:[%s6073_s1 + $0x490] ss:$20 sps:$4 sm:$0xff]  }
  0x3f   :  { %2460 = vmatpush1.bf16.msra.mxu0 %v4238_v8  ;;  %2665 = vmatpush1.bf16.msra.mxu1 %v4239_v9  ;;  %v4326_v8 = vld [vmem:[%s6073_s1 + $0x4b4] ss:$20 sps:$4 sm:$0xff]   ;;  %v4329_v9 = vld [vmem:[%s6073_s1 + $0x4bc] ss:$20 sps:$4 sm:$0xff]  }
  0x40   :  { %2470 = vmatprep.subr.bf16.mxu0 %v4242_v10  ;;  %2675 = vmatprep.subr.bf16.mxu1 %v4245_v11  ;;  %v485_v10 = vcombine.high %v4894_v52, %v4894_v52  ;;  %v4324_v11 = vld [vmem:[%s6073_s1 + $0x4b0] ss:$20 sps:$4 sm:$0xff]  }
  0x41   :  { %v4335_v52 = vld [vmem:[%s6073_s1 + $0x4e4] ss:$20 sps:$4 sm:$0xff]  }
  0x42   :  { %2462 = vmatmul.mubr.bf16.vlgmr.msra.gmra.mrb[0].mxu0 %v4967_v13  ;;  %2667 = vmatmul.mubr.bf16.vlgmr.msra.gmra.mrb[0].mxu1 %v4967_v13 }
  0x43   :  { %2471 = vmatpush1.bf16.msra.mxu0 %v4240_v12  ;;  %2676 = vmatpush1.bf16.msra.mxu1 %v4243_v14  ;;  %v4327_v12 = vld [vmem:[%s6073_s1 + $0x4b8] ss:$20 sps:$4 sm:$0xff]   ;;  %v4332_v14 = vld [vmem:[%s6073_s1 + $0x4dc] ss:$20 sps:$4 sm:$0xff]  }
  0x44   :  { %2472 = vmatprep.subr.bf16.mxu0 %v4248_v15  ;;  %2677 = vmatprep.subr.bf16.mxu1 %v4251_v16  ;;  %v5157_v15 = vrot.slane %v485_v10, %v4883_v49  ;;  %v4330_v16 = vld [vmem:[%s6073_s1 + $0x4d8] ss:$20 sps:$4 sm:$0xff]  }
  0x45   :  { %2502 = vmatprep.mubr.bf16.mxu0 %v4980_v17  ;;  %2707 = vmatprep.mubr.bf16.mxu1 %v4980_v17  ;;  %v4410_v10 = vld [vmem:[%s6073_s1 + $0x6e4] ss:$20 sps:$4 sm:$0xff]  }
  0x47   :  { %2473 = vmatpush1.bf16.msra.mxu0 %v4246_v18  ;;  %2678 = vmatpush1.bf16.msra.mxu1 %v4249_v19  ;;  %v4333_v18 = vld [vmem:[%s6073_s1 + $0x4e0] ss:$20 sps:$4 sm:$0xff]   ;;  %v4338_v19 = vld [vmem:[%s6073_s1 + $0x504] ss:$20 sps:$4 sm:$0xff]  }
  0x48   :  { %2474 = vmatprep.subr.bf16.mxu0 %v4254_v20  ;;  %2679 = vmatprep.subr.bf16.mxu1 %v4257_v21  ;;  %v4341_v20 = vld [vmem:[%s6073_s1 + $0x50c] ss:$20 sps:$4 sm:$0xff]   ;;  %v501_v21 = vcombine.high %v5157_v15, %v5157_v15 }
  0x4b   :  { %2475 = vmatpush1.bf16.msra.mxu0 %v4252_v22  ;;  %2680 = vmatpush1.bf16.msra.mxu1 %v4255_v23  ;;  %v4336_v22 = vld [vmem:[%s6073_s1 + $0x500] ss:$20 sps:$4 sm:$0xff]   ;;  %v5178_v23 = vcombine.high %v4967_v13, %v4967_v13 }
  0x4c   :  { %2476 = vmatprep.subr.bf16.mxu0 %v4260_v24  ;;  %2681 = vmatprep.subr.bf16.mxu1 %v4263_v25  ;;  %v4339_v24 = vld [vmem:[%s6073_s1 + $0x508] ss:$20 sps:$4 sm:$0xff]   ;;  %v4344_v25 = vld [vmem:[%s6073_s1 + $0x52c] ss:$20 sps:$4 sm:$0xff]  }
  0x4f   :  { %2477 = vmatpush1.bf16.msra.mxu0 %v4258_v26  ;;  %2682 = vmatpush1.bf16.msra.mxu1 %v4261_v27  ;;  %v4347_v26 = vld [vmem:[%s6073_s1 + $0x534] ss:$20 sps:$4 sm:$0xff]   ;;  %v5190_v27 = vrot.slane %v501_v21, %v4883_v49  ;;  %v4425_v21 = vld [vmem:[%s6073_s1 + $0x73c] ss:$20 sps:$4 sm:$0xff]  }
  0x50   :  { %2478 = vmatprep.subr.bf16.mxu0 %v4266_v28  ;;  %2683 = vmatprep.subr.bf16.mxu1 %v4269_v29  ;;  %v4342_v28 = vld [vmem:[%s6073_s1 + $0x528] ss:$20 sps:$4 sm:$0xff]   ;;  %v4345_v29 = vld [vmem:[%s6073_s1 + $0x530] ss:$20 sps:$4 sm:$0xff]  }
  0x53   :  { %2479 = vmatpush1.bf16.msra.mxu0 %v4264_v30  ;;  %2684 = vmatpush1.bf16.msra.mxu1 %v4267_v31  ;;  %v4350_v30 = vld [vmem:[%s6073_s1 + $0x554] ss:$20 sps:$4 sm:$0xff]   ;;  %v4353_v31 = vld [vmem:[%s6073_s1 + $0x55c] ss:$20 sps:$4 sm:$0xff]  }
  0x54   :  { %2480 = vmatprep.subr.bf16.mxu0 %v4272_v32  ;;  %2685 = vmatprep.subr.bf16.mxu1 %v4275_v33  ;;  %v4348_v32 = vld [vmem:[%s6073_s1 + $0x550] ss:$20 sps:$4 sm:$0xff]   ;;  %v4351_v33 = vld [vmem:[%s6073_s1 + $0x558] ss:$20 sps:$4 sm:$0xff]  }
  0x57   :  { %2481 = vmatpush1.bf16.msra.mxu0 %v4270_v34  ;;  %2686 = vmatpush1.bf16.msra.mxu1 %v4273_v35  ;;  %v4356_v34 = vld [vmem:[%s6073_s1 + $0x57c] ss:$20 sps:$4 sm:$0xff]   ;;  %v4359_v35 = vld [vmem:[%s6073_s1 + $0x584] ss:$20 sps:$4 sm:$0xff]  }
  0x58   :  { %2482 = vmatprep.subr.bf16.mxu0 %v4278_v36  ;;  %2687 = vmatprep.subr.bf16.mxu1 %v4281_v37  ;;  %v4354_v36 = vld [vmem:[%s6073_s1 + $0x578] ss:$20 sps:$4 sm:$0xff]   ;;  %v4357_v37 = vld [vmem:[%s6073_s1 + $0x580] ss:$20 sps:$4 sm:$0xff]  }
  0x5b   :  { %2483 = vmatpush1.bf16.msra.mxu0 %v4276_v38  ;;  %2688 = vmatpush1.bf16.msra.mxu1 %v4279_v39  ;;  %v4362_v38 = vld [vmem:[%s6073_s1 + $0x5a4] ss:$20 sps:$4 sm:$0xff]   ;;  %v4365_v39 = vld [vmem:[%s6073_s1 + $0x5ac] ss:$20 sps:$4 sm:$0xff]  }
  0x5c   :  { %2484 = vmatprep.subr.bf16.mxu0 %v4284_v40  ;;  %2689 = vmatprep.subr.bf16.mxu1 %v4287_v41  ;;  %v4360_v40 = vld [vmem:[%s6073_s1 + $0x5a0] ss:$20 sps:$4 sm:$0xff]   ;;  %v4363_v41 = vld [vmem:[%s6073_s1 + $0x5a8] ss:$20 sps:$4 sm:$0xff]  }
  0x5f   :  { %2485 = vmatpush1.bf16.msra.mxu0 %v4282_v43  ;;  %2690 = vmatpush1.bf16.msra.mxu1 %v4285_v44  ;;  %v4368_v43 = vld [vmem:[%s6073_s1 + $0x5cc] ss:$20 sps:$4 sm:$0xff]   ;;  %v4371_v44 = vld [vmem:[%s6073_s1 + $0x5d4] ss:$20 sps:$4 sm:$0xff]  }
  0x60   :  { %2486 = vmatprep.subr.bf16.mxu0 %v4290_v45  ;;  %2691 = vmatprep.subr.bf16.mxu1 %v4293_v46  ;;  %v4366_v45 = vld [vmem:[%s6073_s1 + $0x5c8] ss:$20 sps:$4 sm:$0xff]   ;;  %v4369_v46 = vld [vmem:[%s6073_s1 + $0x5d0] ss:$20 sps:$4 sm:$0xff]  }
  0x63   :  { %2487 = vmatpush1.bf16.msra.mxu0 %v4288_v47  ;;  %2692 = vmatpush1.bf16.msra.mxu1 %v4291_v48  ;;  %v4374_v47 = vld [vmem:[%s6073_s1 + $0x5f4] ss:$20 sps:$4 sm:$0xff]   ;;  %v4377_v48 = vld [vmem:[%s6073_s1 + $0x5fc] ss:$20 sps:$4 sm:$0xff]  }
  0x64   :  { %2488 = vmatprep.subr.bf16.mxu0 %v4296_v50  ;;  %2693 = vmatprep.subr.bf16.mxu1 %v4299_v51  ;;  %v4372_v50 = vld [vmem:[%s6073_s1 + $0x5f0] ss:$20 sps:$4 sm:$0xff]   ;;  %v4375_v51 = vld [vmem:[%s6073_s1 + $0x5f8] ss:$20 sps:$4 sm:$0xff]  }
  0x67   :  { %2489 = vmatpush1.bf16.msra.mxu0 %v4294_v53  ;;  %2694 = vmatpush1.bf16.msra.mxu1 %v4297_v54  ;;  %v4380_v53 = vld [vmem:[%s6073_s1 + $0x61c] ss:$20 sps:$4 sm:$0xff]   ;;  %v4383_v54 = vld [vmem:[%s6073_s1 + $0x624] ss:$20 sps:$4 sm:$0xff]  }
  0x68   :  { %2490 = vmatprep.subr.bf16.mxu0 %v4302_v55  ;;  %2695 = vmatprep.subr.bf16.mxu1 %v4305_v56  ;;  %v4378_v55 = vld [vmem:[%s6073_s1 + $0x618] ss:$20 sps:$4 sm:$0xff]   ;;  %v4381_v56 = vld [vmem:[%s6073_s1 + $0x620] ss:$20 sps:$4 sm:$0xff]  }
  0x6b   :  { %2491 = vmatpush1.bf16.msra.mxu0 %v4300_v57  ;;  %2696 = vmatpush1.bf16.msra.mxu1 %v4303_v58  ;;  %v4386_v57 = vld [vmem:[%s6073_s1 + $0x644] ss:$20 sps:$4 sm:$0xff]   ;;  %v4389_v58 = vld [vmem:[%s6073_s1 + $0x64c] ss:$20 sps:$4 sm:$0xff]  }
  0x6c   :  { %2492 = vmatprep.subr.bf16.mxu0 %v4308_v59  ;;  %2697 = vmatprep.subr.bf16.mxu1 %v4311_v61  ;;  %v4384_v59 = vld [vmem:[%s6073_s1 + $0x640] ss:$20 sps:$4 sm:$0xff]   ;;  %v4387_v61 = vld [vmem:[%s6073_s1 + $0x648] ss:$20 sps:$4 sm:$0xff]  }
  0x6f   :  { %2493 = vmatpush1.bf16.msra.mxu0 %v4306_v62  ;;  %2698 = vmatpush1.bf16.msra.mxu1 %v4309_v63  ;;  %v4392_v62 = vld [vmem:[%s6073_s1 + $0x66c] ss:$20 sps:$4 sm:$0xff]   ;;  %v4395_v63 = vld [vmem:[%s6073_s1 + $0x674] ss:$20 sps:$4 sm:$0xff]  }
  0x70   :  { %2494 = vmatprep.subr.bf16.mxu0 %v4314_v0  ;;  %2699 = vmatprep.subr.bf16.mxu1 %v4317_v1  ;;  %v4390_v0 = vld [vmem:[%s6073_s1 + $0x668] ss:$20 sps:$4 sm:$0xff]   ;;  %v4393_v1 = vld [vmem:[%s6073_s1 + $0x670] ss:$20 sps:$4 sm:$0xff]  }
  0x73   :  { %2495 = vmatpush1.bf16.msra.mxu0 %v4312_v2  ;;  %2700 = vmatpush1.bf16.msra.mxu1 %v4315_v3  ;;  %v4398_v2 = vld [vmem:[%s6073_s1 + $0x694] ss:$20 sps:$4 sm:$0xff]   ;;  %v4401_v3 = vld [vmem:[%s6073_s1 + $0x69c] ss:$20 sps:$4 sm:$0xff]  }
  0x74   :  { %2496 = vmatprep.subr.bf16.mxu0 %v4320_v4  ;;  %2701 = vmatprep.subr.bf16.mxu1 %v4323_v5  ;;  %v4396_v4 = vld [vmem:[%s6073_s1 + $0x690] ss:$20 sps:$4 sm:$0xff]   ;;  %v4399_v5 = vld [vmem:[%s6073_s1 + $0x698] ss:$20 sps:$4 sm:$0xff]  }
  0x77   :  { %2497 = vmatpush1.bf16.msra.mxu0 %v4318_v6  ;;  %2702 = vmatpush1.bf16.msra.mxu1 %v4321_v7  ;;  %v4404_v6 = vld [vmem:[%s6073_s1 + $0x6bc] ss:$20 sps:$4 sm:$0xff]   ;;  %v4407_v7 = vld [vmem:[%s6073_s1 + $0x6c4] ss:$20 sps:$4 sm:$0xff]  }
  0x78   :  { %2498 = vmatprep.subr.bf16.mxu0 %v4326_v8  ;;  %2703 = vmatprep.subr.bf16.mxu1 %v4329_v9  ;;  %v4402_v8 = vld [vmem:[%s6073_s1 + $0x6b8] ss:$20 sps:$4 sm:$0xff]   ;;  %v4405_v9 = vld [vmem:[%s6073_s1 + $0x6c0] ss:$20 sps:$4 sm:$0xff]  }
  0x7b   :  { %2499 = vmatpush1.bf16.msra.mxu0 %v4324_v11  ;;  %2704 = vmatpush1.bf16.msra.mxu1 %v4327_v12  ;;  %v4413_v11 = vld [vmem:[%s6073_s1 + $0x6ec] ss:$20 sps:$4 sm:$0xff]  }
  0x7c   :  { %2500 = vmatprep.subr.bf16.mxu0 %v4332_v14  ;;  %2705 = vmatprep.subr.bf16.mxu1 %v4335_v52  ;;  %v4408_v12 = vld [vmem:[%s6073_s1 + $0x6e0] ss:$20 sps:$4 sm:$0xff]   ;;  %v4411_v14 = vld [vmem:[%s6073_s1 + $0x6e8] ss:$20 sps:$4 sm:$0xff]  }
  0x7d   :  { %v4416_v52 = vld [vmem:[%s6073_s1 + $0x70c] ss:$20 sps:$4 sm:$0xff]  }
  0x7f   :  { %2501 = vmatpush1.bf16.msra.mxu0 %v4330_v16  ;;  %2706 = vmatpush1.bf16.msra.mxu1 %v4333_v18  ;;  %v4419_v16 = vld [vmem:[%s6073_s1 + $0x714] ss:$20 sps:$4 sm:$0xff]  }
  0x80   :  { %2511 = vmatprep.subr.bf16.mxu0 %v4338_v19  ;;  %2716 = vmatprep.subr.bf16.mxu1 %v4341_v20  ;;  %v4414_v18 = vld [vmem:[%s6073_s1 + $0x708] ss:$20 sps:$4 sm:$0xff]   ;;  %v4417_v19 = vld [vmem:[%s6073_s1 + $0x710] ss:$20 sps:$4 sm:$0xff]  }
  0x81   :  { %v4422_v20 = vld [vmem:[%s6073_s1 + $0x734] ss:$20 sps:$4 sm:$0xff]  }
  0x82   :  { %2503 = vmatmul.mubr.bf16.vlgmr.msra.gmra.mrb[0].mxu0 %v5178_v23  ;;  %2708 = vmatmul.mubr.bf16.vlgmr.msra.gmra.mrb[0].mxu1 %v5178_v23 }
  0x83   :  { %2512 = vmatpush1.bf16.msra.mxu0 %v4336_v22  ;;  %2717 = vmatpush1.bf16.msra.mxu1 %v4339_v24  ;;  %v4420_v22 = vld [vmem:[%s6073_s1 + $0x730] ss:$20 sps:$4 sm:$0xff]   ;;  %v4423_v24 = vld [vmem:[%s6073_s1 + $0x738] ss:$20 sps:$4 sm:$0xff]  }
  0x84   :  { %2513 = vmatprep.subr.bf16.mxu0 %v4344_v25  ;;  %2718 = vmatprep.subr.bf16.mxu1 %v4347_v26  ;;  %v4428_v25 = vld [vmem:[%s6073_s1 + $0x75c] ss:$20 sps:$4 sm:$0xff]   ;;  %v4431_v26 = vld [vmem:[%s6073_s1 + $0x764] ss:$20 sps:$4 sm:$0xff]  }
  0x85   :  { %2543 = vmatprep.mubr.bf16.mxu0 %v5190_v27  ;;  %2748 = vmatprep.mubr.bf16.mxu1 %v5190_v27 }
  0x87   :  { %2514 = vmatpush1.bf16.msra.mxu0 %v4342_v28  ;;  %2719 = vmatpush1.bf16.msra.mxu1 %v4345_v29  ;;  %v4426_v28 = vld [vmem:[%s6073_s1 + $0x758] ss:$20 sps:$4 sm:$0xff]   ;;  %v4429_v29 = vld [vmem:[%s6073_s1 + $0x760] ss:$20 sps:$4 sm:$0xff]  }
  0x88   :  { %2515 = vmatprep.subr.bf16.mxu0 %v4350_v30  ;;  %2720 = vmatprep.subr.bf16.mxu1 %v4353_v31  ;;  %v4435_v30 = vld [vmem:[%s6073_s1 + $0x784] ss:$20 sps:$4 sm:$0xff]   ;;  %v4438_v31 = vld [vmem:[%s6073_s1 + $0x78c] ss:$20 sps:$4 sm:$0xff]  }
  0x8b   :  { %2516 = vmatpush1.bf16.msra.mxu0 %v4348_v32  ;;  %2721 = vmatpush1.bf16.msra.mxu1 %v4351_v33  ;;  %v5378_v32 = vrot.slane %v5157_v15, %v4883_v49  ;;  %v4433_v33 = vld [vmem:[%s6073_s1 + $0x780] ss:$20 sps:$4 sm:$0xff]  }
  0x8c   :  { %2517 = vmatprep.subr.bf16.mxu0 %v4356_v34  ;;  %2722 = vmatprep.subr.bf16.mxu1 %v4359_v35  ;;  %v4436_v34 = vld [vmem:[%s6073_s1 + $0x788] ss:$20 sps:$4 sm:$0xff]   ;;  %v4441_v35 = vld [vmem:[%s6073_s1 + $0x7ac] ss:$20 sps:$4 sm:$0xff]  }
  0x8d   :  { %v4444_v15 = vld [vmem:[%s6073_s1 + $0x7b4] ss:$20 sps:$4 sm:$0xff]  }
  0x8f   :  { %2518 = vmatpush1.bf16.msra.mxu0 %v4354_v36  ;;  %2723 = vmatpush1.bf16.msra.mxu1 %v4357_v37  ;;  %v4439_v36 = vld [vmem:[%s6073_s1 + $0x7a8] ss:$20 sps:$4 sm:$0xff]   ;;  %v5397_v37 = vcombine.high %v5190_v27, %v5190_v27 }
  0x90   :  { %2519 = vmatprep.subr.bf16.mxu0 %v4362_v38  ;;  %2724 = vmatprep.subr.bf16.mxu1 %v4365_v39  ;;  %v4442_v38 = vld [vmem:[%s6073_s1 + $0x7b0] ss:$20 sps:$4 sm:$0xff]   ;;  %v4447_v39 = vld [vmem:[%s6073_s1 + $0x7d4] ss:$20 sps:$4 sm:$0xff]  }
  0x93   :  { %2520 = vmatpush1.bf16.msra.mxu0 %v4360_v40  ;;  %2725 = vmatpush1.bf16.msra.mxu1 %v4363_v41  ;;  %v4450_v40 = vld [vmem:[%s6073_s1 + $0x7dc] ss:$20 sps:$4 sm:$0xff]  }
  0x94   :  { %2521 = vmatprep.subr.bf16.mxu0 %v4368_v43  ;;  %2726 = vmatprep.subr.bf16.mxu1 %v4371_v44  ;;  %v4445_v41 = vld [vmem:[%s6073_s1 + $0x7d0] ss:$20 sps:$4 sm:$0xff]   ;;  %v4448_v43 = vld [vmem:[%s6073_s1 + $0x7d8] ss:$20 sps:$4 sm:$0xff]  }
  0x95   :  { %v4453_v44 = vld [vmem:[%s6073_s1 + $0x7fc] ss:$20 sps:$4 sm:$0xff]  }
  0x97   :  { %2522 = vmatpush1.bf16.msra.mxu0 %v4366_v45  ;;  %2727 = vmatpush1.bf16.msra.mxu1 %v4369_v46  ;;  %v4456_v45 = vld [vmem:[%s6073_s1 + $0x804] ss:$20 sps:$4 sm:$0xff]  }
  0x98   :  { %2523 = vmatprep.subr.bf16.mxu0 %v4374_v47  ;;  %2728 = vmatprep.subr.bf16.mxu1 %v4377_v48  ;;  %v4451_v46 = vld [vmem:[%s6073_s1 + $0x7f8] ss:$20 sps:$4 sm:$0xff]   ;;  %v4454_v47 = vld [vmem:[%s6073_s1 + $0x800] ss:$20 sps:$4 sm:$0xff]  }
  0x99   :  { %v4459_v48 = vld [vmem:[%s6073_s1 + $0x824] ss:$20 sps:$4 sm:$0xff]  }
  0x9b   :  { %2524 = vmatpush1.bf16.msra.mxu0 %v4372_v50  ;;  %2729 = vmatpush1.bf16.msra.mxu1 %v4375_v51  ;;  %v4462_v50 = vld [vmem:[%s6073_s1 + $0x82c] ss:$20 sps:$4 sm:$0xff]  }
  0x9c   :  { %2525 = vmatprep.subr.bf16.mxu0 %v4380_v53  ;;  %2730 = vmatprep.subr.bf16.mxu1 %v4383_v54  ;;  %v4457_v51 = vld [vmem:[%s6073_s1 + $0x820] ss:$20 sps:$4 sm:$0xff]   ;;  %v4460_v53 = vld [vmem:[%s6073_s1 + $0x828] ss:$20 sps:$4 sm:$0xff]  }
  0x9d   :  { %v4465_v54 = vld [vmem:[%s6073_s1 + $0x84c] ss:$20 sps:$4 sm:$0xff]  }
  0x9f   :  { %2526 = vmatpush1.bf16.msra.mxu0 %v4378_v55  ;;  %2731 = vmatpush1.bf16.msra.mxu1 %v4381_v56  ;;  %v4468_v55 = vld [vmem:[%s6073_s1 + $0x854] ss:$20 sps:$4 sm:$0xff]  }
  0xa0   :  { %2527 = vmatprep.subr.bf16.mxu0 %v4386_v57  ;;  %2732 = vmatprep.subr.bf16.mxu1 %v4389_v58  ;;  %v4463_v56 = vld [vmem:[%s6073_s1 + $0x848] ss:$20 sps:$4 sm:$0xff]   ;;  %v4466_v57 = vld [vmem:[%s6073_s1 + $0x850] ss:$20 sps:$4 sm:$0xff]  }
  0xa1   :  { %v4471_v58 = vld [vmem:[%s6073_s1 + $0x874] ss:$20 sps:$4 sm:$0xff]  }
  0xa3   :  { %2528 = vmatpush1.bf16.msra.mxu0 %v4384_v59  ;;  %2733 = vmatpush1.bf16.msra.mxu1 %v4387_v61  ;;  %v4474_v59 = vld [vmem:[%s6073_s1 + $0x87c] ss:$20 sps:$4 sm:$0xff]  }
  0xa4   :  { %2529 = vmatprep.subr.bf16.mxu0 %v4392_v62  ;;  %2734 = vmatprep.subr.bf16.mxu1 %v4395_v63  ;;  %v4469_v61 = vld [vmem:[%s6073_s1 + $0x870] ss:$20 sps:$4 sm:$0xff]   ;;  %v4472_v62 = vld [vmem:[%s6073_s1 + $0x878] ss:$20 sps:$4 sm:$0xff]  }
  0xa5   :  { %v4477_v63 = vld [vmem:[%s6073_s1 + $0x89c] ss:$20 sps:$4 sm:$0xff]  }
  0xa7   :  { %2530 = vmatpush1.bf16.msra.mxu0 %v4390_v0  ;;  %2735 = vmatpush1.bf16.msra.mxu1 %v4393_v1  ;;  %v4480_v0 = vld [vmem:[%s6073_s1 + $0x8a4] ss:$20 sps:$4 sm:$0xff]  }
  0xa8   :  { %2531 = vmatprep.subr.bf16.mxu0 %v4398_v2  ;;  %2736 = vmatprep.subr.bf16.mxu1 %v4401_v3  ;;  %v4475_v1 = vld [vmem:[%s6073_s1 + $0x898] ss:$20 sps:$4 sm:$0xff]   ;;  %v4478_v2 = vld [vmem:[%s6073_s1 + $0x8a0] ss:$20 sps:$4 sm:$0xff]  }
  0xa9   :  { %v4483_v3 = vld [vmem:[%s6073_s1 + $0x8c4] ss:$20 sps:$4 sm:$0xff]  }
  0xab   :  { %2532 = vmatpush1.bf16.msra.mxu0 %v4396_v4  ;;  %2737 = vmatpush1.bf16.msra.mxu1 %v4399_v5  ;;  %v4486_v4 = vld [vmem:[%s6073_s1 + $0x8cc] ss:$20 sps:$4 sm:$0xff]  }
  0xac   :  { %2533 = vmatprep.subr.bf16.mxu0 %v4404_v6  ;;  %2738 = vmatprep.subr.bf16.mxu1 %v4407_v7  ;;  %v4481_v5 = vld [vmem:[%s6073_s1 + $0x8c0] ss:$20 sps:$4 sm:$0xff]   ;;  %v4484_v6 = vld [vmem:[%s6073_s1 + $0x8c8] ss:$20 sps:$4 sm:$0xff]  }
  0xad   :  { %v4489_v7 = vld [vmem:[%s6073_s1 + $0x8ec] ss:$20 sps:$4 sm:$0xff]  }
  0xaf   :  { %2534 = vmatpush1.bf16.msra.mxu0 %v4402_v8  ;;  %2739 = vmatpush1.bf16.msra.mxu1 %v4405_v9  ;;  %v4492_v8 = vld [vmem:[%s6073_s1 + $0x8f4] ss:$20 sps:$4 sm:$0xff]  }
  0xb0   :  { %2535 = vmatprep.subr.bf16.mxu0 %v4410_v10  ;;  %2740 = vmatprep.subr.bf16.mxu1 %v4413_v11  ;;  %v4487_v9 = vld [vmem:[%s6073_s1 + $0x8e8] ss:$20 sps:$4 sm:$0xff]   ;;  %v4490_v10 = vld [vmem:[%s6073_s1 + $0x8f0] ss:$20 sps:$4 sm:$0xff]  }
  0xb1   :  { %v4495_v11 = vld [vmem:[%s6073_s1 + $0x914] ss:$20 sps:$4 sm:$0xff]  }
  0xb3   :  { %2536 = vmatpush1.bf16.msra.mxu0 %v4408_v12  ;;  %2741 = vmatpush1.bf16.msra.mxu1 %v4411_v14  ;;  %v4498_v12 = vld [vmem:[%s6073_s1 + $0x91c] ss:$20 sps:$4 sm:$0xff]  }
  0xb4   :  { %2537 = vmatprep.subr.bf16.mxu0 %v4416_v52  ;;  %2742 = vmatprep.subr.bf16.mxu1 %v4419_v16  ;;  %v4493_v14 = vld [vmem:[%s6073_s1 + $0x910] ss:$20 sps:$4 sm:$0xff]   ;;  %v4496_v52 = vld [vmem:[%s6073_s1 + $0x918] ss:$20 sps:$4 sm:$0xff]  }
  0xb5   :  { %v4501_v16 = vld [vmem:[%s6073_s1 + $0x93c] ss:$20 sps:$4 sm:$0xff]  }
  0xb7   :  { %2538 = vmatpush1.bf16.msra.mxu0 %v4414_v18  ;;  %2743 = vmatpush1.bf16.msra.mxu1 %v4417_v19  ;;  %v4504_v18 = vld [vmem:[%s6073_s1 + $0x944] ss:$20 sps:$4 sm:$0xff]  }
  0xb8   :  { %2539 = vmatprep.subr.bf16.mxu0 %v4422_v20  ;;  %2744 = vmatprep.subr.bf16.mxu1 %v4425_v21  ;;  %v4499_v19 = vld [vmem:[%s6073_s1 + $0x938] ss:$20 sps:$4 sm:$0xff]   ;;  %v4502_v20 = vld [vmem:[%s6073_s1 + $0x940] ss:$20 sps:$4 sm:$0xff]  }
  0xb9   :  { %v4507_v21 = vld [vmem:[%s6073_s1 + $0x964] ss:$20 sps:$4 sm:$0xff]  }
  0xbb   :  { %2540 = vmatpush1.bf16.msra.mxu0 %v4420_v22  ;;  %2745 = vmatpush1.bf16.msra.mxu1 %v4423_v24  ;;  %v4510_v22 = vld [vmem:[%s6073_s1 + $0x96c] ss:$20 sps:$4 sm:$0xff]  }
  0xbc   :  { %2541 = vmatprep.subr.bf16.mxu0 %v4428_v25  ;;  %2746 = vmatprep.subr.bf16.mxu1 %v4431_v26  ;;  %v4505_v24 = vld [vmem:[%s6073_s1 + $0x960] ss:$20 sps:$4 sm:$0xff]   ;;  %v4508_v25 = vld [vmem:[%s6073_s1 + $0x968] ss:$20 sps:$4 sm:$0xff]  }
  0xbd   :  { %v4513_v26 = vld [vmem:[%s6073_s1 + $0x98c] ss:$20 sps:$4 sm:$0xff]  }
  0xbf   :  { %2542 = vmatpush1.bf16.msra.mxu0 %v4426_v28  ;;  %2747 = vmatpush1.bf16.msra.mxu1 %v4429_v29  ;;  %v4516_v28 = vld [vmem:[%s6073_s1 + $0x994] ss:$20 sps:$4 sm:$0xff]  }
  0xc0   :  { %2552 = vmatprep.subr.bf16.mxu0 %v4435_v30  ;;  %2757 = vmatprep.subr.bf16.mxu1 %v4438_v31  ;;  %v4511_v29 = vld [vmem:[%s6073_s1 + $0x988] ss:$20 sps:$4 sm:$0xff]   ;;  %v4514_v30 = vld [vmem:[%s6073_s1 + $0x990] ss:$20 sps:$4 sm:$0xff]  }
  0xc1   :  { %v4519_v31 = vld [vmem:[%s6073_s1 + $0x9b4] ss:$20 sps:$4 sm:$0xff]  }
  0xc2   :  { %2544 = vmatmul.mubr.bf16.vlgmr.msra.gmra.mrb[0].mxu0 %v5378_v32  ;;  %2749 = vmatmul.mubr.bf16.vlgmr.msra.gmra.mrb[0].mxu1 %v5378_v32 }
  0xc3   :  { %2553 = vmatpush1.bf16.msra.mxu0 %v4433_v33  ;;  %2758 = vmatpush1.bf16.msra.mxu1 %v4436_v34  ;;  %v4522_v33 = vld [vmem:[%s6073_s1 + $0x9bc] ss:$20 sps:$4 sm:$0xff]  }
  0xc4   :  { %2554 = vmatprep.subr.bf16.mxu0 %v4441_v35  ;;  %2759 = vmatprep.subr.bf16.mxu1 %v4444_v15  ;;  %v4517_v34 = vld [vmem:[%s6073_s1 + $0x9b0] ss:$20 sps:$4 sm:$0xff]   ;;  %v4520_v35 = vld [vmem:[%s6073_s1 + $0x9b8] ss:$20 sps:$4 sm:$0xff]  }
  0xc5   :  { %2584 = vmatprep.mubr.bf16.mxu0 %v5397_v37  ;;  %2789 = vmatprep.mubr.bf16.mxu1 %v5397_v37  ;;  %v4525_v15 = vld [vmem:[%s6073_s1 + $0x9dc] ss:$20 sps:$4 sm:$0xff]  }
  0xc7   :  { %2555 = vmatpush1.bf16.msra.mxu0 %v4439_v36  ;;  %2760 = vmatpush1.bf16.msra.mxu1 %v4442_v38  ;;  %v4528_v36 = vld [vmem:[%s6073_s1 + $0x9e4] ss:$20 sps:$4 sm:$0xff]  }
  0xc8   :  { %2556 = vmatprep.subr.bf16.mxu0 %v4447_v39  ;;  %2761 = vmatprep.subr.bf16.mxu1 %v4450_v40  ;;  %v4523_v38 = vld [vmem:[%s6073_s1 + $0x9d8] ss:$20 sps:$4 sm:$0xff]   ;;  %v4526_v39 = vld [vmem:[%s6073_s1 + $0x9e0] ss:$20 sps:$4 sm:$0xff]  }
  0xc9   :  { %v4531_v40 = vld [vmem:[%s6073_s1 + $0xa04] ss:$20 sps:$4 sm:$0xff]  }
  0xcb   :  { %2557 = vmatpush1.bf16.msra.mxu0 %v4445_v41  ;;  %2762 = vmatpush1.bf16.msra.mxu1 %v4448_v43  ;;  %v4534_v41 = vld [vmem:[%s6073_s1 + $0xa0c] ss:$20 sps:$4 sm:$0xff]  }
  0xcc   :  { %2558 = vmatprep.subr.bf16.mxu0 %v4453_v44  ;;  %2763 = vmatprep.subr.bf16.mxu1 %v4456_v45  ;;  %v4529_v43 = vld [vmem:[%s6073_s1 + $0xa00] ss:$20 sps:$4 sm:$0xff]   ;;  %v4532_v44 = vld [vmem:[%s6073_s1 + $0xa08] ss:$20 sps:$4 sm:$0xff]   ;;  %v5588_v45 = vcombine.high %v5378_v32, %v5378_v32 }
  0xcf   :  { %2559 = vmatpush1.bf16.msra.mxu0 %v4451_v46  ;;  %2764 = vmatpush1.bf16.msra.mxu1 %v4454_v47  ;;  %v4537_v46 = vld [vmem:[%s6073_s1 + $0xa2c] ss:$20 sps:$4 sm:$0xff]   ;;  %v4540_v47 = vld [vmem:[%s6073_s1 + $0xa34] ss:$20 sps:$4 sm:$0xff]  }
  0xd0   :  { %2560 = vmatprep.subr.bf16.mxu0 %v4459_v48  ;;  %2765 = vmatprep.subr.bf16.mxu1 %v4462_v50  ;;  %v4535_v48 = vld [vmem:[%s6073_s1 + $0xa28] ss:$20 sps:$4 sm:$0xff]   ;;  %v4538_v50 = vld [vmem:[%s6073_s1 + $0xa30] ss:$20 sps:$4 sm:$0xff]  }
  0xd3   :  { %2561 = vmatpush1.bf16.msra.mxu0 %v4457_v51  ;;  %2766 = vmatpush1.bf16.msra.mxu1 %v4460_v53  ;;  %v4543_v51 = vld [vmem:[%s6073_s1 + $0xa54] ss:$20 sps:$4 sm:$0xff]   ;;  %v4546_v53 = vld [vmem:[%s6073_s1 + $0xa5c] ss:$20 sps:$4 sm:$0xff]  }
  0xd4   :  { %2562 = vmatprep.subr.bf16.mxu0 %v4465_v54  ;;  %2767 = vmatprep.subr.bf16.mxu1 %v4468_v55  ;;  %v4541_v54 = vld [vmem:[%s6073_s1 + $0xa50] ss:$20 sps:$4 sm:$0xff]   ;;  %v4714_v55 = vmov 0  }
  0xd7   :  { %2563 = vmatpush1.bf16.msra.mxu0 %v4463_v56  ;;  %2768 = vmatpush1.bf16.msra.mxu1 %v4466_v57  ;;  %v4544_v56 = vld [vmem:[%s6073_s1 + $0xa58] ss:$20 sps:$4 sm:$0xff]   ;;  %v4549_v57 = vld [vmem:[%s6073_s1 + $0xa7c] ss:$20 sps:$4 sm:$0xff]  }
  0xd8   :  { %2564 = vmatprep.subr.bf16.mxu0 %v4471_v58  ;;  %2769 = vmatprep.subr.bf16.mxu1 %v4474_v59  ;;  %v4552_v58 = vld [vmem:[%s6073_s1 + $0xa84] ss:$20 sps:$4 sm:$0xff]  }
  0xd9   :  { %v4547_v59 = vld [vmem:[%s6073_s1 + $0xa78] ss:$20 sps:$4 sm:$0xff]  }
  0xdb   :  { %2565 = vmatpush1.bf16.msra.mxu0 %v4469_v61  ;;  %2770 = vmatpush1.bf16.msra.mxu1 %v4472_v62  ;;  %v4550_v61 = vld [vmem:[%s6073_s1 + $0xa80] ss:$20 sps:$4 sm:$0xff]   ;;  %v4555_v62 = vld [vmem:[%s6073_s1 + $0xaa4] ss:$20 sps:$4 sm:$0xff]  }
  0xdc   :  { %2566 = vmatprep.subr.bf16.mxu0 %v4477_v63  ;;  %2771 = vmatprep.subr.bf16.mxu1 %v4480_v0  ;;  %v4558_v63 = vld [vmem:[%s6073_s1 + $0xaac] ss:$20 sps:$4 sm:$0xff]  }
  0xdd   :  { %v4553_v0 = vld [vmem:[%s6073_s1 + $0xaa0] ss:$20 sps:$4 sm:$0xff]  }
  0xdf   :  { %2567 = vmatpush1.bf16.msra.mxu0 %v4475_v1  ;;  %2772 = vmatpush1.bf16.msra.mxu1 %v4478_v2  ;;  %v4556_v1 = vld [vmem:[%s6073_s1 + $0xaa8] ss:$20 sps:$4 sm:$0xff]   ;;  %v4561_v2 = vld [vmem:[%s6073_s1 + $0xacc] ss:$20 sps:$4 sm:$0xff]  }
  0xe0   :  { %2568 = vmatprep.subr.bf16.mxu0 %v4483_v3  ;;  %2773 = vmatprep.subr.bf16.mxu1 %v4486_v4  ;;  %v4564_v3 = vld [vmem:[%s6073_s1 + $0xad4] ss:$20 sps:$4 sm:$0xff]  }
  0xe1   :  { %v4559_v4 = vld [vmem:[%s6073_s1 + $0xac8] ss:$20 sps:$4 sm:$0xff]  }
  0xe3   :  { %2569 = vmatpush1.bf16.msra.mxu0 %v4481_v5  ;;  %2774 = vmatpush1.bf16.msra.mxu1 %v4484_v6  ;;  %v4562_v5 = vld [vmem:[%s6073_s1 + $0xad0] ss:$20 sps:$4 sm:$0xff]   ;;  %v4567_v6 = vld [vmem:[%s6073_s1 + $0xaf4] ss:$20 sps:$4 sm:$0xff]  }
  0xe4   :  { %2570 = vmatprep.subr.bf16.mxu0 %v4489_v7  ;;  %2775 = vmatprep.subr.bf16.mxu1 %v4492_v8  ;;  %v4570_v7 = vld [vmem:[%s6073_s1 + $0xafc] ss:$20 sps:$4 sm:$0xff]  }
  0xe5   :  { %v4565_v8 = vld [vmem:[%s6073_s1 + $0xaf0] ss:$20 sps:$4 sm:$0xff]  }
  0xe7   :  { %2571 = vmatpush1.bf16.msra.mxu0 %v4487_v9  ;;  %2776 = vmatpush1.bf16.msra.mxu1 %v4490_v10  ;;  %v4568_v9 = vld [vmem:[%s6073_s1 + $0xaf8] ss:$20 sps:$4 sm:$0xff]   ;;  %v4573_v10 = vld [vmem:[%s6073_s1 + $0xb1c] ss:$20 sps:$4 sm:$0xff]  }
  0xe8   :  { %2572 = vmatprep.subr.bf16.mxu0 %v4495_v11  ;;  %2777 = vmatprep.subr.bf16.mxu1 %v4498_v12  ;;  %v4576_v11 = vld [vmem:[%s6073_s1 + $0xb24] ss:$20 sps:$4 sm:$0xff]  }
  0xe9   :  { %v4571_v12 = vld [vmem:[%s6073_s1 + $0xb18] ss:$20 sps:$4 sm:$0xff]  }
  0xeb   :  { %2573 = vmatpush1.bf16.msra.mxu0 %v4493_v14  ;;  %2778 = vmatpush1.bf16.msra.mxu1 %v4496_v52  ;;  %v3511_v14 = vld.sshfl [vmem:[%s6072_s0 + $0x8] sm:$0x1 pattern:$0x75316420]  ;;  %v4574_v52 = vld [vmem:[%s6073_s1 + $0xb20] ss:$20 sps:$4 sm:$0xff]  }
  0xec   :  { %2574 = vmatprep.subr.bf16.mxu0 %v4501_v16  ;;  %2779 = vmatprep.subr.bf16.mxu1 %v4504_v18  ;;  %v4577_v16 = vld [vmem:[%s6073_s1 + $0x150] ss:$20 sps:$4 sm:$0xff]  }
  0xed   :  { %v4579_v18 = vld [vmem:[%s6073_s1 + $0x3d0] ss:$20 sps:$4 sm:$0xff]  }
  0xef   :  { %2575 = vmatpush1.bf16.msra.mxu0 %v4499_v19  ;;  %2780 = vmatpush1.bf16.msra.mxu1 %v4502_v20  ;;  %v5686_v19 = vrot.slane %v3511_v14, %v4883_v49  ;;  %v4578_v20 = vld [vmem:[%s6073_s1 + $0x10] ss:$20 sps:$4 sm:$0xff]   ;;  %v4583_v49 = vld [vmem:[%s6073_s1 + $0x3f8] ss:$20 sps:$4 sm:$0xff]  }
  0xf0   :  { %2576 = vmatprep.subr.bf16.mxu0 %v4507_v21  ;;  %2781 = vmatprep.subr.bf16.mxu1 %v4510_v22  ;;  %v4580_v21 = vld [vmem:[%s6073_s1 + $0x290] ss:$20 sps:$4 sm:$0xff]   ;;  %v4581_v22 = vld [vmem:[%s6073_s1 + $0x178] ss:$20 sps:$4 sm:$0xff]  }
  0xf3   :  { %2577 = vmatpush1.bf16.msra.mxu0 %v4505_v24  ;;  %2782 = vmatpush1.bf16.msra.mxu1 %v4508_v25  ;;  %v4582_v24 = vld [vmem:[%s6073_s1 + $0x38] ss:$20 sps:$4 sm:$0xff]  }
  0xf4   :  { %2578 = vmatprep.subr.bf16.mxu0 %v4513_v26  ;;  %2783 = vmatprep.subr.bf16.mxu1 %v4516_v28  ;;  %v4584_v25 = vld [vmem:[%s6073_s1 + $0x2b8] ss:$20 sps:$4 sm:$0xff]   ;;  %v4585_v26 = vld [vmem:[%s6073_s1 + $0x1a0] ss:$20 sps:$4 sm:$0xff]  }
  0xf5   :  { %v4587_v28 = vld [vmem:[%s6073_s1 + $0x420] ss:$20 sps:$4 sm:$0xff]  }
  0xf7   :  { %2579 = vmatpush1.bf16.msra.mxu0 %v4511_v29  ;;  %2784 = vmatpush1.bf16.msra.mxu1 %v4514_v30  ;;  %v4586_v29 = vld [vmem:[%s6073_s1 + $0x60] ss:$20 sps:$4 sm:$0xff]  }
  0xf8   :  { %2580 = vmatprep.subr.bf16.mxu0 %v4519_v31  ;;  %2785 = vmatprep.subr.bf16.mxu1 %v4522_v33  ;;  %v4588_v30 = vld [vmem:[%s6073_s1 + $0x2e0] ss:$20 sps:$4 sm:$0xff]   ;;  %v4589_v31 = vld [vmem:[%s6073_s1 + $0x1c8] ss:$20 sps:$4 sm:$0xff]  }
  0xf9   :  { %v4591_v33 = vld [vmem:[%s6073_s1 + $0x448] ss:$20 sps:$4 sm:$0xff]  }
  0xfb   :  { %2581 = vmatpush1.bf16.msra.mxu0 %v4517_v34  ;;  %2786 = vmatpush1.bf16.msra.mxu1 %v4520_v35  ;;  %v4590_v34 = vld [vmem:[%s6073_s1 + $0x88] ss:$20 sps:$4 sm:$0xff]  }
  0xfc   :  { %2582 = vmatprep.subr.bf16.mxu0 %v4525_v15  ;;  %2787 = vmatprep.subr.bf16.mxu1 %v4528_v36 }
  0xff   :  { %2583 = vmatpush1.bf16.msra.mxu0 %v4523_v38  ;;  %2788 = vmatpush1.bf16.msra.mxu1 %v4526_v39 }
 0x100   :  { %2593 = vmatprep.subr.bf16.mxu0 %v4531_v40  ;;  %2798 = vmatprep.subr.bf16.mxu1 %v4534_v41 }
 0x102   :  { %2585 = vmatmul.mubr.bf16.vlgmr.msra.gmra.mrb[0].mxu0 %v5588_v45  ;;  %2790 = vmatmul.mubr.bf16.vlgmr.msra.gmra.mrb[0].mxu1 %v5588_v45 }
 0x103   :  { %2594 = vmatpush1.bf16.msra.mxu0 %v4529_v43  ;;  %2799 = vmatpush1.bf16.msra.mxu1 %v4532_v44 }
 0x104   :  { %2595 = vmatprep.subr.bf16.mxu0 %v4537_v46  ;;  %2800 = vmatprep.subr.bf16.mxu1 %v4540_v47 }
 0x105   :  { %2625 = vmatprep.mubr.bf16.mxu0 %v4714_v55  ;;  %2830 = vmatprep.mubr.bf16.mxu1 %v4714_v55 }
 0x107   :  { %2596 = vmatpush1.bf16.msra.mxu0 %v4535_v48  ;;  %2801 = vmatpush1.bf16.msra.mxu1 %v4538_v50 }
 0x108   :  { %2597 = vmatprep.subr.bf16.mxu0 %v4543_v51  ;;  %2802 = vmatprep.subr.bf16.mxu1 %v4546_v53 }
 0x10b   :  { %2598 = vmatpush1.bf16.msra.mxu0 %v4541_v54  ;;  %2803 = vmatpush1.bf16.msra.mxu1 %v4544_v56 }
 0x10c   :  { %2599 = vmatprep.subr.bf16.mxu0 %v4549_v57  ;;  %2804 = vmatprep.subr.bf16.mxu1 %v4552_v58 }
 0x10f   :  { %2600 = vmatpush1.bf16.msra.mxu0 %v4547_v59  ;;  %2805 = vmatpush1.bf16.msra.mxu1 %v4550_v61 }
 0x110   :  { %2601 = vmatprep.subr.bf16.mxu0 %v4555_v62  ;;  %2806 = vmatprep.subr.bf16.mxu1 %v4558_v63 }
 0x113   :  { %2602 = vmatpush1.bf16.msra.mxu0 %v4553_v0  ;;  %2807 = vmatpush1.bf16.msra.mxu1 %v4556_v1 }
 0x114   :  { %2603 = vmatprep.subr.bf16.mxu0 %v4561_v2  ;;  %2808 = vmatprep.subr.bf16.mxu1 %v4564_v3 }
 0x117   :  { %2604 = vmatpush1.bf16.msra.mxu0 %v4559_v4  ;;  %2809 = vmatpush1.bf16.msra.mxu1 %v4562_v5 }
 0x118   :  { %2605 = vmatprep.subr.bf16.mxu0 %v4567_v6  ;;  %2810 = vmatprep.subr.bf16.mxu1 %v4570_v7 }
 0x11b   :  { %2606 = vmatpush1.bf16.msra.mxu0 %v4565_v8  ;;  %2811 = vmatpush1.bf16.msra.mxu1 %v4568_v9 }
 0x11c   :  { %2607 = vmatprep.subr.bf16.mxu0 %v4573_v10  ;;  %2812 = vmatprep.subr.bf16.mxu1 %v4576_v11 }
 0x11f   :  { %2608 = vmatpush1.bf16.msra.mxu0 %v4571_v12  ;;  %2813 = vmatpush1.bf16.msra.mxu1 %v4574_v52 }
 0x120   :  { %3913 = vmatprep.subr.bf16.mxu0 %v4577_v16  ;;  %3935 = vmatprep.subr.bf16.mxu1 %v4579_v18 }
 0x122   :  { %2626 = vmatmul.mubr.bf16.vlgmr.msra.gmra.mrb[0].mxu0 %v5686_v19  ;;  %2831 = vmatmul.mubr.bf16.vlgmr.msra.gmra.mrb[0].mxu1 %v5686_v19 }
 0x123   :  { %3914 = vmatpush3.bf16.msra.mxu0 %v4578_v20  ;;  %3936 = vmatpush3.bf16.msra.mxu1 %v4580_v21 }
 0x124   :  { %3915 = vmatprep.subr.bf16.mxu0 %v4581_v22  ;;  %3937 = vmatprep.subr.bf16.mxu1 %v4583_v49 }
 0x125   :  { %2871 = vmatprep.mubr.bf16.mxu0 %v4914_v60  ;;  %2911 = vmatprep.mubr.bf16.mxu1 %v4980_v17  ;;  %v4592_v60 = vld [vmem:[%s6073_s1 + $0x308] ss:$20 sps:$4 sm:$0xff]  }
 0x127   :  { %3916 = vmatpush3.bf16.msra.mxu0 %v4582_v24  ;;  %3938 = vmatpush3.bf16.msra.mxu1 %v4584_v25 }
 0x128   :  { %3917 = vmatprep.subr.bf16.mxu0 %v4585_v26  ;;  %3939 = vmatprep.subr.bf16.mxu1 %v4587_v28 }
 0x12b   :  { %3918 = vmatpush3.bf16.msra.mxu0 %v4586_v29  ;;  %3940 = vmatpush3.bf16.msra.mxu1 %v4588_v30 }
 0x12c   :  { %10 = vsyncpa [#allocation3], 0  ;;  %3919 = vmatprep.subr.bf16.mxu0 %v4589_v31  ;;  %3941 = vmatprep.subr.bf16.mxu1 %v4591_v33  ;;  %v4593_v17 = vld [vmem:[%s6073_s1 + $0x1f0] ss:$20 sps:$4 sm:$0xff]   ;;  %v4597_v38 = vld [vmem:[%s6073_s1 + $0x218] ss:$20 sps:$4 sm:$0xff]  }
 0x12d   :  { %v4595_v35 = vld [vmem:[%s6073_s1 + $0x470] ss:$20 sps:$4 sm:$0xff]   ;;  %v4599_v39 = vld [vmem:[%s6073_s1 + $0x498] ss:$20 sps:$4 sm:$0xff]   ;;  %v4601_v43 = vld [vmem:[%s6073_s1 + $0x240] ss:$20 sps:$4 sm:$0xff]  }
 0x12e   :  { %v4594_v15 = vld [vmem:[%s6073_s1 + $0xb0] ss:$20 sps:$4 sm:$0xff]   ;;  %v4598_v40 = vld [vmem:[%s6073_s1 + $0xd8] ss:$20 sps:$4 sm:$0xff]   ;;  %v4603_v44 = vld [vmem:[%s6073_s1 + $0x4c0] ss:$20 sps:$4 sm:$0xff]  }
 0x12f   :  { %3920 = vmatpush3.bf16.msra.mxu0 %v4590_v34  ;;  %3942 = vmatpush3.bf16.msra.mxu1 %v4592_v60  ;;  %v4596_v36 = vld [vmem:[%s6073_s1 + $0x330] ss:$20 sps:$4 sm:$0xff]   ;;  %v4600_v41 = vld [vmem:[%s6073_s1 + $0x358] ss:$20 sps:$4 sm:$0xff]   ;;  %v4602_v46 = vld [vmem:[%s6073_s1 + $0x100] ss:$20 sps:$4 sm:$0xff]  }
 0x130   :  { %3921 = vmatprep.subr.bf16.mxu0 %v4593_v17  ;;  %3943 = vmatprep.subr.bf16.mxu1 %v4595_v35  ;;  %v4604_v47 = vld [vmem:[%s6073_s1 + $0x380] ss:$20 sps:$4 sm:$0xff]   ;;  %v4605_v48 = vld [vmem:[%s6073_s1 + $0x268] ss:$20 sps:$4 sm:$0xff]   ;;  %v4609_v54 = vld [vmem:[%s6073_s1 + $0x650] ss:$20 sps:$4 sm:$0xff]  }
 0x131   :  { %v4607_v50 = vld [vmem:[%s6073_s1 + $0x4e8] ss:$20 sps:$4 sm:$0xff]   ;;  %v4611_v55 = vld [vmem:[%s6073_s1 + $0x8d0] ss:$20 sps:$4 sm:$0xff]   ;;  %v4613_v58 = vld [vmem:[%s6073_s1 + $0x678] ss:$20 sps:$4 sm:$0xff]  }
 0x132   :  { %v4606_v51 = vld [vmem:[%s6073_s1 + $0x128] ss:$20 sps:$4 sm:$0xff]   ;;  %v4610_v56 = vld [vmem:[%s6073_s1 + $0x510] ss:$20 sps:$4 sm:$0xff]   ;;  %v4615_v59 = vld [vmem:[%s6073_s1 + $0x8f8] ss:$20 sps:$4 sm:$0xff]  }
 0x133   :  { %3922 = vmatpush3.bf16.msra.mxu0 %v4594_v15  ;;  %3944 = vmatpush3.bf16.msra.mxu1 %v4596_v36  ;;  %v4608_v53 = vld [vmem:[%s6073_s1 + $0x3a8] ss:$20 sps:$4 sm:$0xff]   ;;  %v4612_v57 = vld [vmem:[%s6073_s1 + $0x790] ss:$20 sps:$4 sm:$0xff]   ;;  %v4614_v61 = vld [vmem:[%s6073_s1 + $0x538] ss:$20 sps:$4 sm:$0xff]  }
 0x134   :  { %3923 = vmatprep.subr.bf16.mxu0 %v4597_v38  ;;  %3945 = vmatprep.subr.bf16.mxu1 %v4599_v39  ;;  %v4616_v62 = vld [vmem:[%s6073_s1 + $0x7b8] ss:$20 sps:$4 sm:$0xff]   ;;  %v4617_v63 = vld [vmem:[%s6073_s1 + $0x6a0] ss:$20 sps:$4 sm:$0xff]   ;;  %v4621_v1 = vld [vmem:[%s6073_s1 + $0x6c8] ss:$20 sps:$4 sm:$0xff]  }
 0x135   :  { %v4620_v0 = vld [vmem:[%s6073_s1 + $0x7e0] ss:$20 sps:$4 sm:$0xff]   ;;  %v4624_v2 = vld [vmem:[%s6073_s1 + $0x808] ss:$20 sps:$4 sm:$0xff]   ;;  %v4625_v3 = vld [vmem:[%s6073_s1 + $0x6f0] ss:$20 sps:$4 sm:$0xff]  }
 0x136   :  { %v4627_v4 = vld [vmem:[%s6073_s1 + $0x970] ss:$20 sps:$4 sm:$0xff]   ;;  %v4629_v7 = vld [vmem:[%s6073_s1 + $0x718] ss:$20 sps:$4 sm:$0xff]   ;;  %v4633_v11 = vld [vmem:[%s6073_s1 + $0x740] ss:$20 sps:$4 sm:$0xff]  }
 0x137   :  { %3924 = vmatpush3.bf16.msra.mxu0 %v4598_v40  ;;  %3946 = vmatpush3.bf16.msra.mxu1 %v4600_v41  ;;  %v4626_v5 = vld [vmem:[%s6073_s1 + $0x5b0] ss:$20 sps:$4 sm:$0xff]   ;;  %v4631_v8 = vld [vmem:[%s6073_s1 + $0x998] ss:$20 sps:$4 sm:$0xff]   ;;  %v4635_v12 = vld [vmem:[%s6073_s1 + $0x9c0] ss:$20 sps:$4 sm:$0xff]  }
 0x138   :  { %3925 = vmatprep.subr.bf16.mxu0 %v4601_v43  ;;  %3947 = vmatprep.subr.bf16.mxu1 %v4603_v44  ;;  %v4628_v6 = vld [vmem:[%s6073_s1 + $0x830] ss:$20 sps:$4 sm:$0xff]   ;;  %v4630_v9 = vld [vmem:[%s6073_s1 + $0x5d8] ss:$20 sps:$4 sm:$0xff]   ;;  %v4634_v14 = vld [vmem:[%s6073_s1 + $0x600] ss:$20 sps:$4 sm:$0xff]  }
 0x139   :  { %v4632_v10 = vld [vmem:[%s6073_s1 + $0x858] ss:$20 sps:$4 sm:$0xff]   ;;  %v4636_v52 = vld [vmem:[%s6073_s1 + $0x880] ss:$20 sps:$4 sm:$0xff]   ;;  %v4637_v16 = vld [vmem:[%s6073_s1 + $0x768] ss:$20 sps:$4 sm:$0xff]  }
 0x13a   :  { %v4639_v18 = vld [vmem:[%s6073_s1 + $0x9e8] ss:$20 sps:$4 sm:$0xff]   ;;  %v4649_v22 = vld [vmem:[%s6075_s3 + $0x40] sm:$0xff]   ;;  %v4715_v24 = vmov 0.0   ;;  %v4642_v28 = vld [vmem:[%s6073_s1 + $0xa38] ss:$20 sps:$4 sm:$0xff]  }
 0x13b   :  { %3926 = vmatpush3.bf16.msra.mxu0 %v4602_v46  ;;  %3948 = vmatpush3.bf16.msra.mxu1 %v4604_v47  ;;  %v4638_v20 = vld [vmem:[%s6073_s1 + $0x628] ss:$20 sps:$4 sm:$0xff]   ;;  %v4641_v49 = vld [vmem:[%s6073_s1 + $0xa10] ss:$20 sps:$4 sm:$0xff]   ;;  %vm4716_vm0 = vmmov 0   ;;  %s4717_s13 = smov [#allocation2]  }
 0x13c   :  { %3927 = vmatprep.subr.bf16.mxu0 %v4605_v48  ;;  %3949 = vmatprep.subr.bf16.mxu1 %v4607_v50  ;;  %v4640_v21 = vld [vmem:[%s6073_s1 + $0x8a8] ss:$20 sps:$4 sm:$0xff]   ;;  %v4651_v25 = vld [vmem:[%s6075_s3] sm:$0xff]   ;;  %v4659_v30 = vld [vmem:[%s6075_s3 + $0x10] sm:$0xff]   ;;  %s3503_s14 = sshll.u32 %s4717_s13, 4  ;;  %s3504_s14 = int_to_ptr.vmem [resolvable:$true] %s3503_s14 }
 0x13d   :  { %v4653_v26 = vld [vmem:[%s6075_s3 + $0x48] sm:$0xff]   ;;  %v4661_v31 = vld [vmem:[%s6075_s3 + $0x58] sm:$0xff]   ;;  %v4665_v60 = vld [vmem:[%s6075_s3 + $0x60] sm:$0xff]   ;;  %p4694_p1 = scmp.lt.s32.totalorder %s3504_s14, %s3504_s14 }
 0x13e   :  { %v4655_v29 = vld [vmem:[%s6075_s3 + $0x8] sm:$0xff]   ;;  %v4663_v34 = vld [vmem:[%s6075_s3 + $0x18] sm:$0xff]   ;;  %v4645_v17 = vld [vmem:[%s6073_s1 + $0xab0] ss:$20 sps:$4 sm:$0xff]  }
 0x13f   :  { %3928 = vmatpush3.bf16.msra.mxu0 %v4606_v51  ;;  %3950 = vmatpush3.bf16.msra.mxu1 %v4608_v53  ;;  %v4644_v33 = vld [vmem:[%s6073_s1 + $0xa88] ss:$20 sps:$4 sm:$0xff]   ;;  %v4667_v35 = vld [vmem:[%s6075_s3 + $0x20] sm:$0xff]   ;;  %v4646_v36 = vld [vmem:[%s6073_s1 + $0xad8] ss:$20 sps:$4 sm:$0xff]  }
 0x140   :  { %3957 = vmatprep.subr.bf16.mxu0 %v4609_v54  ;;  %3979 = vmatprep.subr.bf16.mxu1 %v4611_v55  ;;  %v4669_v15 = vld [vmem:[%s6075_s3 + $0x68] sm:$0xff]   ;;  %v4673_v39 = vld [vmem:[%s6075_s3 + $0x70] sm:$0xff]   ;;  %v4677_v43 = vld [vmem:[%s6075_s3 + $0x78] sm:$0xff]  }
 0x141   :  { %v4671_v38 = vld [vmem:[%s6075_s3 + $0x28] sm:$0xff]   ;;  %v4647_v40 = vld [vmem:[%s6073_s1 + $0xb00] ss:$20 sps:$4 sm:$0xff]   ;;  %v4679_v47 = vld [vmem:[%s6075_s3 + $0x38] sm:$0xff]  }
 0x142   :  { %2872 = vmatmul.mubr.bf16.vlgmr.msra.gmra.mrb[4].mxu0 %v4967_v13  ;;  %2912 = vmatmul.mubr.bf16.vlgmr.msra.gmra.mrb[4].mxu1 %v5178_v23  ;;  %v4619_v13 = vld [vmem:[%s6073_s1 + $0x920] ss:$20 sps:$4 sm:$0xff]   ;;  %v4648_v44 = vld [vmem:[%s6073_s1 + $0xb28] ss:$20 sps:$4 sm:$0xff]  }
 0x143   :  { %3958 = vmatpush3.bf16.msra.mxu0 %v4610_v56  ;;  %3980 = vmatpush3.bf16.msra.mxu1 %v4612_v57  ;;  %v4618_v23 = vld [vmem:[%s6073_s1 + $0x560] ss:$20 sps:$4 sm:$0xff]   ;;  %v4654_v50 = vld [vmem:[%s6075_s3 + $0xc8] sm:$0xff]   ;;  %v4664_v55 = vld [vmem:[%s6075_s3 + $0x98] sm:$0xff]  }
 0x144   :  { %3959 = vmatprep.subr.bf16.mxu0 %v4613_v58  ;;  %3981 = vmatprep.subr.bf16.mxu1 %v4615_v59  ;;  %v4675_v41 = vld [vmem:[%s6075_s3 + $0x30] sm:$0xff]   ;;  %v4650_v46 = vld [vmem:[%s6075_s3 + $0xc0] sm:$0xff]   ;;  %v4656_v51 = vld [vmem:[%s6075_s3 + $0x88] sm:$0xff]  }
 0x145   :  { %2951 = vmatprep.mubr.bf16.mxu0 %v5190_v27  ;;  %2991 = vmatprep.mubr.bf16.mxu1 %v5397_v37  ;;  %v4623_v27 = vld [vmem:[%s6073_s1 + $0x948] ss:$20 sps:$4 sm:$0xff]   ;;  %v4652_v48 = vld [vmem:[%s6075_s3 + $0x80] sm:$0xff]   ;;  %v4658_v53 = vld [vmem:[%s6075_s3 + $0xd0] sm:$0xff]  }
 0x146   :  { %v4622_v37 = vld [vmem:[%s6073_s1 + $0x588] ss:$20 sps:$4 sm:$0xff]   ;;  %v4660_v54 = vld [vmem:[%s6075_s3 + $0x90] sm:$0xff]   ;;  %v4666_v56 = vld [vmem:[%s6075_s3 + $0xe0] sm:$0xff]  }
 0x147   :  { %3960 = vmatpush3.bf16.msra.mxu0 %v4614_v61  ;;  %3982 = vmatpush3.bf16.msra.mxu1 %v4616_v62  ;;  %v4668_v57 = vld [vmem:[%s6075_s3 + $0xa0] sm:$0xff]   ;;  %v4670_v58 = vld [vmem:[%s6075_s3 + $0xe8] sm:$0xff]   ;;  %v4674_v61 = vld [vmem:[%s6075_s3 + $0xf0] sm:$0xff]  }
 0x148   :  { %3961 = vmatprep.subr.bf16.mxu0 %v4617_v63  ;;  %3983 = vmatprep.subr.bf16.mxu1 %v4619_v13  ;;  %v4672_v59 = vld [vmem:[%s6075_s3 + $0xa8] sm:$0xff]   ;;  %v4676_v62 = vld [vmem:[%s6075_s3 + $0xb0] sm:$0xff]   ;;  %v4678_v63 = vld [vmem:[%s6075_s3 + $0xf8] sm:$0xff]  }
 0x149   :  { %v4680_v13 = vld [vmem:[%s6075_s3 + $0xb8] sm:$0xff]  }
 0x14b   :  { %3962 = vmatpush3.bf16.msra.mxu0 %v4618_v23  ;;  %3984 = vmatpush3.bf16.msra.mxu1 %v4620_v0  ;;  %v460_v23 = vsub.s32 0, %v4865_v42  ;;  %v468_v0 = vsub.s32 2, %v4865_v42 }
 0x14c   :  { %3963 = vmatprep.subr.bf16.mxu0 %v4621_v1  ;;  %3985 = vmatprep.subr.bf16.mxu1 %v4623_v27  ;;  %v456_v1 = vld [vmem:[%s6074_s2] sm:$0x1f]  ;;  %v464_v27 = vsub.s32 1, %v4865_v42 }
 0x14f   :  { %3964 = vmatpush3.bf16.msra.mxu0 %v4622_v37  ;;  %3986 = vmatpush3.bf16.msra.mxu1 %v4624_v2  ;;  %v472_v37 = vsub.s32 3, %v4865_v42  ;;  %v461_v2 = vrot.slane %v456_v1, %v460_v23 }
 0x150   :  { %3965 = vmatprep.subr.bf16.mxu0 %v4625_v3  ;;  %3987 = vmatprep.subr.bf16.mxu1 %v4627_v4  ;;  %v469_v3 = vrot.slane %v456_v1, %v468_v0  ;;  %v465_v4 = vrot.slane %v456_v1, %v464_v27 }
 0x153   :  { %3966 = vmatpush3.bf16.msra.mxu0 %v4626_v5  ;;  %3988 = vmatpush3.bf16.msra.mxu1 %v4628_v6  ;;  %v473_v5 = vrot.slane %v456_v1, %v472_v37 }
 0x154   :  { %3967 = vmatprep.subr.bf16.mxu0 %v4629_v7  ;;  %3989 = vmatprep.subr.bf16.mxu1 %v4631_v8 }
 0x157   :  { %3968 = vmatpush3.bf16.msra.mxu0 %v4630_v9  ;;  %3990 = vmatpush3.bf16.msra.mxu1 %v4632_v10 }
 0x158   :  { %3969 = vmatprep.subr.bf16.mxu0 %v4633_v11  ;;  %3991 = vmatprep.subr.bf16.mxu1 %v4635_v12 }
 0x15b   :  { %3970 = vmatpush3.bf16.msra.mxu0 %v4634_v14  ;;  %3992 = vmatpush3.bf16.msra.mxu1 %v4636_v52 }
 0x15c   :  { %3971 = vmatprep.subr.bf16.mxu0 %v4637_v16  ;;  %3993 = vmatprep.subr.bf16.mxu1 %v4639_v18 }
 0x15f   :  { %3972 = vmatpush3.bf16.msra.mxu0 %v4638_v20  ;;  %3994 = vmatpush3.bf16.msra.mxu1 %v4640_v21 }
 0x160   :  { %4063 = vmatprep.subr.bf16.mxu0 %v4715_v24  ;;  %4010 = vmatprep.subr.bf16.mxu1 %v4649_v22 }
 0x162   :  { %2952 = vmatmul.mubr.bf16.vlgmr.msra.gmra.mrb[8].mxu0 %v5378_v32  ;;  %2992 = vmatmul.mubr.bf16.vlgmr.msra.gmra.mrb[8].mxu1 %v5588_v45  ;;  %v4657_v32 = vld [vmem:[%s6075_s3 + $0x50] sm:$0xff]  }
 0x163   :  { %4064 = vmatpush3.bf16.msra.mxu0 %v4641_v49  ;;  %4079 = vmatprep.mubr.msk.bf16.mxu0 %vm4716_vm0, %v4715_v24  ;;  %v4643_v45 = vld [vmem:[%s6073_s1 + $0xa60] ss:$20 sps:$4 sm:$0xff]  }
 0x164   :  { %4065 = vmatprep.subr.bf16.mxu0 %v4715_v24  ;;  %4011 = vmatpush3.bf16.msra.mxu1 %v4651_v25 }
 0x165   :  { %4012 = vmatprep.subr.bf16.mxu1 %v4653_v26 }
 0x167   :  { %4066 = vmatpush3.bf16.msra.mxu0 %v4642_v28 }
 0x168   :  { %4067 = vmatprep.subr.bf16.mxu0 %v4715_v24  ;;  %4013 = vmatpush3.bf16.msra.mxu1 %v4655_v29  ;;  %v4681_v29 = vld [vmem:[%s6075_s3 + $0x100] sm:$0xff]  }
 0x169   :  { %4014 = vmatprep.subr.bf16.mxu1 %v4657_v32 }
 0x16b   :  { %4068 = vmatpush3.bf16.msra.mxu0 %v4643_v45 }
 0x16c   :  { %4069 = vmatprep.subr.bf16.mxu0 %v4715_v24  ;;  %4015 = vmatpush3.bf16.msra.mxu1 %v4659_v30  ;;  %v4682_v30 = vld [vmem:[%s6075_s3 + $0x108] sm:$0xff]  }
 0x16d   :  { %4016 = vmatprep.subr.bf16.mxu1 %v4661_v31  ;;  %v4683_v31 = vld [vmem:[%s6075_s3 + $0x110] sm:$0xff]  }
 0x16f   :  { %4070 = vmatpush3.bf16.msra.mxu0 %v4644_v33  ;;  %v4684_v33 = vld [vmem:[%s6075_s3 + $0x118] sm:$0xff]  }
 0x170   :  { %4071 = vmatprep.subr.bf16.mxu0 %v4715_v24  ;;  %4017 = vmatpush3.bf16.msra.mxu1 %v4663_v34  ;;  %v4685_v34 = vld [vmem:[%s6075_s3 + $0x120] sm:$0xff]  }
 0x171   :  { %4018 = vmatprep.subr.bf16.mxu1 %v4665_v60  ;;  %v4686_v60 = vld [vmem:[%s6075_s3 + $0x128] sm:$0xff]  }
 0x173   :  { %4072 = vmatpush3.bf16.msra.mxu0 %v4645_v17  ;;  %v476_v17 = vsub.s32 4, %v4865_v42  ;;  %v4688_v42 = vld [vmem:[%s6075_s3 + $0x138] sm:$0xff]  }
 0x174   :  { %4073 = vmatprep.subr.bf16.mxu0 %v4715_v24  ;;  %4019 = vmatpush3.bf16.msra.mxu1 %v4667_v35  ;;  %v4687_v35 = vld [vmem:[%s6075_s3 + $0x130] sm:$0xff]  }
 0x175   :  { %4020 = vmatprep.subr.bf16.mxu1 %v4669_v15 }
 0x177   :  { %4074 = vmatpush3.bf16.msra.mxu0 %v4646_v36  ;;  %v477_v36 = vrot.slane %v456_v1, %v476_v17 }
 0x178   :  { %4075 = vmatprep.subr.bf16.mxu0 %v4715_v24  ;;  %4021 = vmatpush3.bf16.msra.mxu1 %v4671_v38 }
 0x179   :  { %4022 = vmatprep.subr.bf16.mxu1 %v4673_v39 }
 0x17b   :  { %4076 = vmatpush3.bf16.msra.mxu0 %v4647_v40 }
 0x17c   :  { %4077 = vmatprep.subr.bf16.mxu0 %v4715_v24  ;;  %4023 = vmatpush3.bf16.msra.mxu1 %v4675_v41 }
 0x17d   :  { %4024 = vmatprep.subr.bf16.mxu1 %v4677_v43 }
 0x17f   :  { %4078 = vmatpush3.bf16.msra.mxu0 %v4648_v44 }
 0x180   :  { %4032 = vmatprep.subr.bf16.mxu0 %v4650_v46  ;;  %4025 = vmatpush3.bf16.msra.mxu1 %v4679_v47 }
 0x181   :  { %4083 = vmatprep.subr.bf16.mxu1 %v4715_v24 }
 0x182   :  { %4080 = vmatmul.mubr.bf16.vlgmr.msra.gmra.mrb[12].mxu0 %v5686_v19  ;;  %v4662_v19 = vld [vmem:[%s6075_s3 + $0xd8] sm:$0xff]  }
 0x183   :  { %4033 = vmatpush3.bf16.msra.mxu0 %v4652_v48 }
 0x184   :  { %4034 = vmatprep.subr.bf16.mxu0 %v4654_v50 }
 0x187   :  { %4035 = vmatpush3.bf16.msra.mxu0 %v4656_v51 }
 0x188   :  { %4036 = vmatprep.subr.bf16.mxu0 %v4658_v53 }
 0x18b   :  { %4037 = vmatpush3.bf16.msra.mxu0 %v4660_v54 }
 0x18c   :  { %4038 = vmatprep.subr.bf16.mxu0 %v4662_v19 }
 0x18f   :  { %4039 = vmatpush3.bf16.msra.mxu0 %v4664_v55 }
 0x190   :  { %4040 = vmatprep.subr.bf16.mxu0 %v4666_v56 }
 0x193   :  { %4041 = vmatpush3.bf16.msra.mxu0 %v4668_v57 }
 0x194   :  { %4042 = vmatprep.subr.bf16.mxu0 %v4670_v58 }
 0x197   :  { %4043 = vmatpush3.bf16.msra.mxu0 %v4672_v59 }
 0x198   :  { %4044 = vmatprep.subr.bf16.mxu0 %v4674_v61 }
 0x19b   :  { %4045 = vmatpush3.bf16.msra.mxu0 %v4676_v62 }
 0x19c   :  { %4046 = vmatprep.subr.bf16.mxu0 %v4678_v63 }
 0x19f   :  { %4047 = vmatpush3.bf16.msra.mxu0 %v4680_v13 }
 0x1f5   :  { %v2627_v6 = vpop.f32.mrb[0].mxu0  ;;  %v2832_v7 = vpop.f32.mrb[0].mxu1 }
 0x1f6   :  { %v4103_v8 = vadd.f32 %v2627_v6, %v461_v2  ;;  %v4105_v9 = vadd.f32 %v2832_v7, %v469_v3  ;;  %v2629_v10 = vpop.f32.mrb[1].mxu0  ;;  %v2834_v11 = vpop.f32.mrb[1].mxu1 }
 0x1f7   :  { %v4104_v12 = vadd.f32 %v2629_v10, %v465_v4  ;;  %v4106_v14 = vadd.f32 %v2834_v11, %v473_v5  ;;  %v2631_v52 = vpop.f32.mrb[2].mxu0  ;;  %v2836_v16 = vpop.f32.mrb[2].mxu1  ;;  %v3872_v5 = vld [vmem:[%s6076_s4] ss:$0 sm:$0xff]  ;;  %s4689_s4 = scalar_lea.vmem %s3504_s14, 32 }
 0x1f8   :  { %v3039_v18 = vmax.f32 %v4103_v8, 0.0  ;;  %v3041_v20 = vmax.f32 %v4105_v9, 0.0  ;;  %v2632_v21 = vpop.f32.mrb[3].mxu0  ;;  %v2837_v22 = vpop.f32.mrb[3].mxu1  ;;  %p4690_p0 = scmp.ne.s32.totalorder %s3504_s14, %s4689_s4  ;;  %p4695_p2 = scmp.lt.s32.totalorder %s4689_s4, %s4689_s4 }
 0x1f9   :  { %v3040_v49 = vmax.f32 %v4104_v12, 0.0  ;;  %v3042_v25 = vmax.f32 %v4106_v14, 0.0 }
 0x1fa   :  { %v3044_v32 = vpack.c.bf16 %v3039_v18, %v3039_v18  ;;  %v3046_v45 = vpack.c.bf16 %v3041_v20, %v3041_v20  ;;  %p4696_p3 = por %p4695_p2, %p4694_p1 }
 0x1fb   :  { %v3045_v26 = vpack.c.bf16 %v3040_v49, %v3040_v49  ;;  %v3047_v28 = vpack.c.bf16 %v3042_v25, %v3042_v25 }
 0x1fc   :  { %p4697_p4 = pnand %p4696_p3, %p4690_p0 }
 0x1fd   :  { %3408 = vmatprep.mubr.bf16.mxu1 %v3045_v26  ;;  %3448 = vmatprep.mubr.bf16.mxu0 %v3047_v28 }
 0x1fe   :  { %3409 = vmatmul.mubr.bf16.vlgmr.msra.gmra.mrb[12].mxu1 %v3044_v32  ;;  %3449 = vmatmul.mubr.bf16.vlgmr.msra.gmra.mrb[16].mxu0 %v3046_v45 }
 0x1ff   :  { %4084 = vmatpush3.bf16.msra.mxu1 %v4681_v29  ;;  %4099 = vmatprep.mubr.msk.bf16.mxu1 %vm4716_vm0, %v4715_v24 }
 0x200   :  { %4085 = vmatprep.subr.bf16.mxu1 %v4715_v24 }
 0x203   :  { %4086 = vmatpush3.bf16.msra.mxu1 %v4682_v30 }
 0x204   :  { %4087 = vmatprep.subr.bf16.mxu1 %v4715_v24 }
 0x207   :  { %4088 = vmatpush3.bf16.msra.mxu1 %v4683_v31 }
 0x208   :  { %4089 = vmatprep.subr.bf16.mxu1 %v4715_v24 }
 0x20b   :  { %4090 = vmatpush3.bf16.msra.mxu1 %v4684_v33 }
 0x20c   :  { %4091 = vmatprep.subr.bf16.mxu1 %v4715_v24 }
 0x20f   :  { %4092 = vmatpush3.bf16.msra.mxu1 %v4685_v34 }
 0x210   :  { %4093 = vmatprep.subr.bf16.mxu1 %v4715_v24 }
 0x213   :  { %4094 = vmatpush3.bf16.msra.mxu1 %v4686_v60 }
 0x214   :  { %4095 = vmatprep.subr.bf16.mxu1 %v4715_v24 }
 0x215   :  { %v3929_v15 = vpop.f32.mrb[4].mxu0  ;;  %v3951_v38 = vpop.f32.mrb[4].mxu1 }
 0x216   :  { %v3930_v39 = vpop.f32.mrb[5].mxu0  ;;  %v3952_v40 = vpop.f32.mrb[5].mxu1 }
 0x217   :  { %v3931_v41 = vadd.f32 %v3930_v39, %v3929_v15  ;;  %v3932_v43 = vpop.f32.mrb[6].mxu0  ;;  %v3953_v44 = vadd.f32 %v3952_v40, %v3951_v38  ;;  %v3954_v46 = vpop.f32.mrb[6].mxu1  ;;  %4096 = vmatpush3.bf16.msra.mxu1 %v4687_v35 }
 0x218   :  { %v3933_v47 = vpop.f32.mrb[7].mxu0  ;;  %v3955_v48 = vpop.f32.mrb[7].mxu1  ;;  %4097 = vmatprep.subr.bf16.mxu1 %v4715_v24 }
 0x219   :  { %v2874_v50 = vadd.f32 %v3931_v41, %v477_v36 }
 0x21b   :  { %v2914_v51 = vadd.f32 %v3953_v44, %v2874_v50  ;;  %4098 = vmatpush3.bf16.msra.mxu1 %v4688_v42 }
 0x235   :  { %v3973_v53 = vpop.f32.mrb[8].mxu0  ;;  %v3995_v54 = vpop.f32.mrb[8].mxu1 }
 0x236   :  { %v3974_v19 = vpop.f32.mrb[9].mxu0  ;;  %v3996_v55 = vpop.f32.mrb[9].mxu1 }
 0x237   :  { %v3975_v56 = vadd.f32 %v3974_v19, %v3973_v53  ;;  %v3976_v57 = vpop.f32.mrb[10].mxu0  ;;  %v3997_v58 = vadd.f32 %v3996_v55, %v3995_v54  ;;  %v3998_v59 = vpop.f32.mrb[10].mxu1 }
 0x238   :  { %v3977_v61 = vpop.f32.mrb[11].mxu0  ;;  %v3999_v62 = vpop.f32.mrb[11].mxu1 }
 0x239   :  { %v2954_v63 = vadd.f32 %v3975_v56, %v2914_v51 }
 0x23b   :  { %v2994_v13 = vadd.f32 %v3997_v58, %v2954_v63 }
 0x255   :  { %v3033_v23 = vpop.f32.mrb[12].mxu0 }
 0x256   :  { %v3034_v0 = vadd.f32 %v3033_v23, %v2994_v13  ;;  %v4081_v1 = vpop.f32.mrb[13].mxu0 }
 0x257   :  { %v3036_v27 = vpop.f32.mrb[14].mxu0 }
 0x258   :  { %v3043_v24 = vmax.f32 %v3034_v0, 0.0  ;;  %v4082_v37 = vpop.f32.mrb[15].mxu0 }
 0x25a   :  { %v3048_v2 = vpack.c.bf16 %v3043_v24, %v3043_v24 }
 0x25c   :  { %4100 = vmatmul.mubr.bf16.vlgmr.msra.gmra.mrb[16].mxu1 %v3048_v2 }
 0x2d1   :  { %v4026_v3 = vpop.f32.mrb[12].mxu1  ;;  %v4048_v4 = vpop.f32.mrb[16].mxu0 }
 0x2d2   :  { %v4027_v6 = vpop.f32.mrb[13].mxu1  ;;  %v4049_v7 = vpop.f32.mrb[17].mxu0 }
 0x2d3   :  { %v4028_v8 = vadd.f32 %v4027_v6, %v4026_v3  ;;  %v4050_v9 = vadd.f32 %v4049_v7, %v4048_v4  ;;  %v4029_v10 = vpop.f32.mrb[14].mxu1  ;;  %v4051_v11 = vpop.f32.mrb[18].mxu0 }
 0x2d4   :  { %v4030_v12 = vpop.f32.mrb[15].mxu1  ;;  %v4052_v14 = vpop.f32.mrb[19].mxu0 }
 0x2d5   :  { %v3411_v52 = vadd.f32 %v4028_v8, %v3872_v5 }
 0x2d7   :  { %v3451_v16 = vadd.f32 %v4050_v9, %v3411_v52 }
 0x32f   :  { %v3490_v18 = vpop.f32.mrb[16].mxu1 }
 0x330   :  { %v3491_v20 = vadd.f32 %v3490_v18, %v3451_v16  ;;  %v4101_v21 = vpop.f32.mrb[17].mxu1 }
 0x331   :  { %v3493_v22 = vpop.f32.mrb[18].mxu1 }
 0x332   :  { %3496 = vst [vmem:[#allocation2] sm:$0x3] %v3491_v20  ;;  %v4102_v49 = vpop.f32.mrb[19].mxu1 }
 0x333   :  { %4700 = shalt.err (!%p4697_p4)
}
 0x334   :  { %s4701_s17 = scalar_lea.hbm %s6077_s5, 32 }
 0x335   :  { %p4702_p5 = scmp.ne.s32.totalorder %s6077_s5, %s4701_s17  ;;  %p4705_p6 = scmp.lt.u32.totalorder %s4701_s17, %s6077_s5 }
 0x337   :  { %p4707_p7 = pnand %p4705_p6, %p4702_p5 }
 0x339   :  { %4710 = shalt.err (!%p4707_p7)
}
 0x33a   :  { %3506 = dma.vmem_to_hbm [thread:$0]  %s3504_s14, 32, %s6077_s5, [#allocation3]  }
 0x33b   :  { %4711 = dma.done.wait [#allocation3], 32  }
 0x33c   :  { %4712 = vsyncadd [#allocation3], 4294967264 }
 0x33d   :  { %3510 = vsyncpa [#allocation3], 1 }

</bundles_post_ra>
